<compile_context>
chip_gen: v6e
topology: v6e:2x2x1
jax: 0.10.0
libtpu: 0.0.40
codegen_flags: <defaults>
</compile_context>

<pallas_src>
import jax
import jax.numpy as jnp
from jax import lax
from jax.experimental import pallas as pl
from jax.experimental.pallas import tpu as pltpu

# Model dims (from the PyTorch module).
N_IN, H1, H2, N_OUT = 4, 16, 12, 3

LANE = 128
CHUNK_LANES = 1024            # batch elements per inner-loop step
CR = CHUNK_LANES // LANE      # sublane rows per chunk (8 -> one (8,128) f32 vreg/plane)

# Flat packed-parameter layout (single SMEM-resident f32 buffer, one DMA).
OFF_W1 = 0                        # [16,4] row-major: o*4 + k
OFF_B1 = OFF_W1 + H1 * N_IN       # 64
OFF_W2 = OFF_B1 + H1              # 80, [12,16] row-major: o*16 + k
OFF_B2 = OFF_W2 + H2 * H1         # 272
OFF_W3 = OFF_B2 + H2              # 284, [3,12] row-major: o*12 + k
OFF_B3 = OFF_W3 + N_OUT * H2      # 320
P_SIZE = OFF_B3 + N_OUT           # 323


def _round_up(n, m):
    return ((n + m - 1) // m) * m


def _dense_scalar_mac(p_ref, w_off, b_off, out_f, in_f, h, relu):
    """h: list of in_f [CR,128] planes -> list of out_f [CR,128] planes.

    y[o] = b[o] + sum_k W[o,k] * h[k]; weights are SMEM scalars, so every MAC is
    a scalar x vector VPU op (zero broadcast/relayout work).
    """
    shape = h[0].shape
    out = []
    for o in range(out_f):
        acc = jnp.broadcast_to(p_ref[b_off + o], shape)          # bias splat
        for k in range(in_f):                                    # unrolled at trace time
            acc = acc + p_ref[w_off + o * in_f + k] * h[k]
        out.append(jnp.maximum(acc, 0.0) if relu else acc)
    return out


def ann_kernel(p_ref, x_ref, o_ref):
    # p_ref: [P_SIZE] f32 in SMEM (resident packed params)
    # x_ref: [N_IN,  TR, 128]  per-feature batch planes
    # o_ref: [N_OUT, TR, 128]
    tr = x_ref.shape[1]
    n_chunks = tr // CR

    def chunk_body(c, carry):
        r0 = pl.multiple_of(c * CR, CR)                          # 8-aligned row start
        x = [x_ref[k, pl.ds(r0, CR), :].astype(jnp.float32) for k in range(N_IN)]
        h1 = _dense_scalar_mac(p_ref, OFF_W1, OFF_B1, H1, N_IN, x, relu=True)
        h2 = _dense_scalar_mac(p_ref, OFF_W2, OFF_B2, H2, H1, h1, relu=True)
        y = _dense_scalar_mac(p_ref, OFF_W3, OFF_B3, N_OUT, H2, h2, relu=False)
        for j in range(N_OUT):
            o_ref[j, pl.ds(r0, CR), :] = y[j].astype(o_ref.dtype)  # dense (8,128) vst
        return carry

    # Fully unroll short chunk loops (scheduler visibility); partial unroll for
    # long ones to keep code size bounded.
    unroll = n_chunks if n_chunks <= 8 else 4
    lax.fori_loop(0, n_chunks, chunk_body, 0, unroll=unroll)


def ann_forward_planes(x_planes, packed_params, *, tile_b=16384):
    """Zero-copy entry point. x_planes: [N_IN, R, 128] f32 (feature-major batch
    planes, R % 8 == 0). Returns [N_OUT, R, 128] f32."""
    nf, R, lanes = x_planes.shape
    assert nf == N_IN and lanes == LANE and R % CR == 0, x_planes.shape
    assert packed_params.shape == (P_SIZE,)

    tr_req = _round_up(max(int(tile_b), CHUNK_LANES), CHUNK_LANES) // LANE
    tr = min(tr_req, R)                       # multiple of CR, <= R
    grid = (pl.cdiv(R, tr),)                  # last block may be partial (masked)

    batch = R * LANE
    cost = pl.CostEstimate(
        flops=2 * batch * (N_IN * H1 + H1 * H2 + H2 * N_OUT),
        transcendentals=0,
        bytes_accessed=4 * (batch * (N_IN + N_OUT) + P_SIZE),
    )

    return pl.pallas_call(
        ann_kernel,
        out_shape=jax.ShapeDtypeStruct((N_OUT, R, LANE), jnp.float32),
        grid_spec=pltpu.PrefetchScalarGridSpec(
            num_scalar_prefetch=0,
            grid=grid,
            in_specs=[
                # Packed params: whole array, SMEM-resident, fetched once.
                pl.BlockSpec(memory_space=pltpu.MemorySpace.SMEM),
                # x tile: all 4 feature planes, `tr` rows of 128 batch lanes.
                pl.BlockSpec((N_IN, tr, LANE), lambda i: (0, i, 0)),
            ],
            out_specs=pl.BlockSpec((N_OUT, tr, LANE), lambda i: (0, i, 0)),
        ),
        compiler_params=pltpu.CompilerParams(
            # Batch tiles are independent -> shard across v7x's 2 TensorCores
            # (harmless no-op on single-TC v5e/v6e).
            dimension_semantics=("parallel",),
        ),
        cost_estimate=cost,
    )(packed_params, x_planes)


def ann_forward(x, packed_params, *, tile_b=16384):
    """PyTorch-compatible contract: x [B, N_IN] -> [B, N_OUT] float32."""
    B = x.shape[0]
    Bp = _round_up(B, CHUNK_LANES)            # pad only to a chunk (1024 lanes)
    xt = jnp.pad(jnp.asarray(x, jnp.float32).T, ((0, 0), (0, Bp - B)))
    planes = xt.reshape(N_IN, Bp // LANE, LANE)          # free reshape
    out_planes = ann_forward_planes(planes, packed_params, tile_b=tile_b)
    return out_planes.reshape(N_OUT, Bp)[:, :B].T


def init_params(key):
    """nn.Linear-style init: W ~ U(-1/sqrt(fan_in), +), W:[out,in], b:[out]."""
    ks = jax.random.split(key, 6)

    def linear(kw, kb, fan_in, fan_out):
        bound = 1.0 / jnp.sqrt(jnp.float32(fan_in))
        w = jax.random.uniform(kw, (fan_out, fan_in), jnp.float32, -bound, bound)
        b = jax.random.uniform(kb, (fan_out,), jnp.float32, -bound, bound)
        return w, b

    w1, b1 = linear(ks[0], ks[1], N_IN, H1)
    w2, b2 = linear(ks[2], ks[3], H1, H2)
    w3, b3 = linear(ks[4], ks[5], H2, N_OUT)
    return w1, b1, w2, b2, w3, b3


def pack_params(w1, b1, w2, b2, w3, b3):
    """Pack all 6 params into one flat [P_SIZE] f32 buffer (single SMEM DMA)."""
    return jnp.concatenate([
        w1.reshape(-1).astype(jnp.float32), b1.astype(jnp.float32),
        w2.reshape(-1).astype(jnp.float32), b2.astype(jnp.float32),
        w3.reshape(-1).astype(jnp.float32), b3.astype(jnp.float32),
    ])


def _reference(x, w1, b1, w2, b2, w3, b3):
    """Pure-JAX reference of the PyTorch forward (y = x @ W.T + b)."""
    h = jnp.maximum(x @ w1.T + b1, 0.0)
    h = jnp.maximum(h @ w2.T + b2, 0.0)
    return h @ w3.T + b3


if __name__ == "__main__":
    key = jax.random.PRNGKey(0)
    k_x1, k_x2, k_p = jax.random.split(key, 3)

    params = init_params(k_p)
    packed = pack_params(*params)

    # Multi-tile / multi-chunk path: 4096 rows -> 2 grid steps x 2 inner chunks.
    x_big = jax.random.normal(k_x1, (4096, N_IN), jnp.float32)
    ref_big = _reference(x_big, *params)
    out_big = jax.block_until_ready(ann_forward(x_big, packed, tile_b=2048))
    assert out_big.shape == (4096, N_OUT)
    assert jnp.allclose(out_big, ref_big, atol=1e-5, rtol=1e-5), "mismatch (tiled)"

    # Default large-tile config on the same data: single tile, 4 inner chunks.
    out_def = jax.block_until_ready(ann_forward(x_big, packed))
    assert jnp.allclose(out_def, ref_big, atol=1e-5, rtol=1e-5), "mismatch (default tile)"

    # Small ragged batch exercising the pad-to-chunk path.
    x_small = jax.random.normal(k_x2, (8, N_IN), jnp.float32)
    out_small = jax.block_until_ready(ann_forward(x_small, packed))
    ref_small = _reference(x_small, *params)
    assert out_small.shape == (8, N_OUT)
    assert jnp.allclose(out_small, ref_small, atol=1e-5, rtol=1e-5), "mismatch (small)"

    print("KERNEL_OK")
</pallas_src>

<mosaic_0001>
module attributes {stable_mosaic.version = 11 : i64} {
  func.func @ann_kernel(%arg0: i32, %arg1: memref<323xf32, #tpu.memory_space<smem>>, %arg2: memref<4x16x128xf32, #tpu.memory_space<vmem>>, %arg3: memref<3x16x128xf32, #tpu.memory_space<vmem>>) attributes {dimension_semantics = [#tpu.dimension_semantics<parallel>], iteration_bounds = array<i64: 2>, scalar_prefetch = 0 : i64, scratch_operands = 0 : i64, tpu.core_type = #tpu.core_type<tc>, window_params = [{transform_indices = @transform_0, window_bounds = array<i64: 323>}, {transform_indices = @transform_1, window_bounds = array<i64: 4, 16, 128>}, {transform_indices = @transform_2, window_bounds = array<i64: 3, 16, 128>}]} {
    %c0_i32 = arith.constant 0 : i32
    %c8_i32 = arith.constant 8 : i32
    %0 = arith.muli %c0_i32, %c8_i32 : i32
    %1 = tpu.assume_multiple %0, 8 : i32
    %c0 = arith.constant 0 : index
    %2 = arith.index_cast %1 : i32 to index
    %c0_0 = arith.constant 0 : index
    %3 = vector.load %arg2[%c0, %2, %c0_0] : memref<4x16x128xf32, #tpu.memory_space<vmem>>, vector<1x8x128xf32>
    %4 = vector.shape_cast %3 : vector<1x8x128xf32> to vector<8x128xf32>
    %c1 = arith.constant 1 : index
    %5 = arith.index_cast %1 : i32 to index
    %c0_1 = arith.constant 0 : index
    %6 = vector.load %arg2[%c1, %5, %c0_1] : memref<4x16x128xf32, #tpu.memory_space<vmem>>, vector<1x8x128xf32>
    %7 = vector.shape_cast %6 : vector<1x8x128xf32> to vector<8x128xf32>
    %c2 = arith.constant 2 : index
    %8 = arith.index_cast %1 : i32 to index
    %c0_2 = arith.constant 0 : index
    %9 = vector.load %arg2[%c2, %8, %c0_2] : memref<4x16x128xf32, #tpu.memory_space<vmem>>, vector<1x8x128xf32>
    %10 = vector.shape_cast %9 : vector<1x8x128xf32> to vector<8x128xf32>
    %c3 = arith.constant 3 : index
    %11 = arith.index_cast %1 : i32 to index
    %c0_3 = arith.constant 0 : index
    %12 = vector.load %arg2[%c3, %11, %c0_3] : memref<4x16x128xf32, #tpu.memory_space<vmem>>, vector<1x8x128xf32>
    %13 = vector.shape_cast %12 : vector<1x8x128xf32> to vector<8x128xf32>
    %c64 = arith.constant 64 : index
    %14 = memref.load %arg1[%c64] : memref<323xf32, #tpu.memory_space<smem>>
    %15 = vector.broadcast %14 : f32 to vector<8x128xf32>
    %c0_4 = arith.constant 0 : index
    %16 = memref.load %arg1[%c0_4] : memref<323xf32, #tpu.memory_space<smem>>
    %17 = vector.broadcast %16 : f32 to vector<8x128xf32>
    %18 = arith.mulf %17, %4 : vector<8x128xf32>
    %19 = arith.addf %15, %18 : vector<8x128xf32>
    %c1_5 = arith.constant 1 : index
    %20 = memref.load %arg1[%c1_5] : memref<323xf32, #tpu.memory_space<smem>>
    %21 = vector.broadcast %20 : f32 to vector<8x128xf32>
    %22 = arith.mulf %21, %7 : vector<8x128xf32>
    %23 = arith.addf %19, %22 : vector<8x128xf32>
    %c2_6 = arith.constant 2 : index
    %24 = memref.load %arg1[%c2_6] : memref<323xf32, #tpu.memory_space<smem>>
    %25 = vector.broadcast %24 : f32 to vector<8x128xf32>
    %26 = arith.mulf %25, %10 : vector<8x128xf32>
    %27 = arith.addf %23, %26 : vector<8x128xf32>
    %c3_7 = arith.constant 3 : index
    %28 = memref.load %arg1[%c3_7] : memref<323xf32, #tpu.memory_space<smem>>
    %29 = vector.broadcast %28 : f32 to vector<8x128xf32>
    %30 = arith.mulf %29, %13 : vector<8x128xf32>
    %31 = arith.addf %27, %30 : vector<8x128xf32>
    %cst = arith.constant 0.000000e+00 : f32
    %32 = vector.broadcast %cst : f32 to vector<8x128xf32>
    %33 = arith.maximumf %31, %32 : vector<8x128xf32>
    %c65 = arith.constant 65 : index
    %34 = memref.load %arg1[%c65] : memref<323xf32, #tpu.memory_space<smem>>
    %35 = vector.broadcast %34 : f32 to vector<8x128xf32>
    %c4 = arith.constant 4 : index
    %36 = memref.load %arg1[%c4] : memref<323xf32, #tpu.memory_space<smem>>
    %37 = vector.broadcast %36 : f32 to vector<8x128xf32>
    %38 = arith.mulf %37, %4 : vector<8x128xf32>
    %39 = arith.addf %35, %38 : vector<8x128xf32>
    %c5 = arith.constant 5 : index
    %40 = memref.load %arg1[%c5] : memref<323xf32, #tpu.memory_space<smem>>
    %41 = vector.broadcast %40 : f32 to vector<8x128xf32>
    %42 = arith.mulf %41, %7 : vector<8x128xf32>
    %43 = arith.addf %39, %42 : vector<8x128xf32>
    %c6 = arith.constant 6 : index
    %44 = memref.load %arg1[%c6] : memref<323xf32, #tpu.memory_space<smem>>
    %45 = vector.broadcast %44 : f32 to vector<8x128xf32>
    %46 = arith.mulf %45, %10 : vector<8x128xf32>
    %47 = arith.addf %43, %46 : vector<8x128xf32>
    %c7 = arith.constant 7 : index
    %48 = memref.load %arg1[%c7] : memref<323xf32, #tpu.memory_space<smem>>
    %49 = vector.broadcast %48 : f32 to vector<8x128xf32>
    %50 = arith.mulf %49, %13 : vector<8x128xf32>
    %51 = arith.addf %47, %50 : vector<8x128xf32>
    %cst_8 = arith.constant 0.000000e+00 : f32
    %52 = vector.broadcast %cst_8 : f32 to vector<8x128xf32>
    %53 = arith.maximumf %51, %52 : vector<8x128xf32>
    %c66 = arith.constant 66 : index
    %54 = memref.load %arg1[%c66] : memref<323xf32, #tpu.memory_space<smem>>
    %55 = vector.broadcast %54 : f32 to vector<8x128xf32>
    %c8 = arith.constant 8 : index
    %56 = memref.load %arg1[%c8] : memref<323xf32, #tpu.memory_space<smem>>
    %57 = vector.broadcast %56 : f32 to vector<8x128xf32>
    %58 = arith.mulf %57, %4 : vector<8x128xf32>
    %59 = arith.addf %55, %58 : vector<8x128xf32>
    %c9 = arith.constant 9 : index
    %60 = memref.load %arg1[%c9] : memref<323xf32, #tpu.memory_space<smem>>
    %61 = vector.broadcast %60 : f32 to vector<8x128xf32>
    %62 = arith.mulf %61, %7 : vector<8x128xf32>
    %63 = arith.addf %59, %62 : vector<8x128xf32>
    %c10 = arith.constant 10 : index
    %64 = memref.load %arg1[%c10] : memref<323xf32, #tpu.memory_space<smem>>
    %65 = vector.broadcast %64 : f32 to vector<8x128xf32>
    %66 = arith.mulf %65, %10 : vector<8x128xf32>
    %67 = arith.addf %63, %66 : vector<8x128xf32>
    %c11 = arith.constant 11 : index
    %68 = memref.load %arg1[%c11] : memref<323xf32, #tpu.memory_space<smem>>
    %69 = vector.broadcast %68 : f32 to vector<8x128xf32>
    %70 = arith.mulf %69, %13 : vector<8x128xf32>
    %71 = arith.addf %67, %70 : vector<8x128xf32>
    %cst_9 = arith.constant 0.000000e+00 : f32
    %72 = vector.broadcast %cst_9 : f32 to vector<8x128xf32>
    %73 = arith.maximumf %71, %72 : vector<8x128xf32>
    %c67 = arith.constant 67 : index
    %74 = memref.load %arg1[%c67] : memref<323xf32, #tpu.memory_space<smem>>
    %75 = vector.broadcast %74 : f32 to vector<8x128xf32>
    %c12 = arith.constant 12 : index
    %76 = memref.load %arg1[%c12] : memref<323xf32, #tpu.memory_space<smem>>
    %77 = vector.broadcast %76 : f32 to vector<8x128xf32>
    %78 = arith.mulf %77, %4 : vector<8x128xf32>
    %79 = arith.addf %75, %78 : vector<8x128xf32>
    %c13 = arith.constant 13 : index
    %80 = memref.load %arg1[%c13] : memref<323xf32, #tpu.memory_space<smem>>
    %81 = vector.broadcast %80 : f32 to vector<8x128xf32>
    %82 = arith.mulf %81, %7 : vector<8x128xf32>
    %83 = arith.addf %79, %82 : vector<8x128xf32>
    %c14 = arith.constant 14 : index
    %84 = memref.load %arg1[%c14] : memref<323xf32, #tpu.memory_space<smem>>
    %85 = vector.broadcast %84 : f32 to vector<8x128xf32>
    %86 = arith.mulf %85, %10 : vector<8x128xf32>
    %87 = arith.addf %83, %86 : vector<8x128xf32>
    %c15 = arith.constant 15 : index
    %88 = memref.load %arg1[%c15] : memref<323xf32, #tpu.memory_space<smem>>
    %89 = vector.broadcast %88 : f32 to vector<8x128xf32>
    %90 = arith.mulf %89, %13 : vector<8x128xf32>
    %91 = arith.addf %87, %90 : vector<8x128xf32>
    %cst_10 = arith.constant 0.000000e+00 : f32
    %92 = vector.broadcast %cst_10 : f32 to vector<8x128xf32>
    %93 = arith.maximumf %91, %92 : vector<8x128xf32>
    %c68 = arith.constant 68 : index
    %94 = memref.load %arg1[%c68] : memref<323xf32, #tpu.memory_space<smem>>
    %95 = vector.broadcast %94 : f32 to vector<8x128xf32>
    %c16 = arith.constant 16 : index
    %96 = memref.load %arg1[%c16] : memref<323xf32, #tpu.memory_space<smem>>
    %97 = vector.broadcast %96 : f32 to vector<8x128xf32>
    %98 = arith.mulf %97, %4 : vector<8x128xf32>
    %99 = arith.addf %95, %98 : vector<8x128xf32>
    %c17 = arith.constant 17 : index
    %100 = memref.load %arg1[%c17] : memref<323xf32, #tpu.memory_space<smem>>
    %101 = vector.broadcast %100 : f32 to vector<8x128xf32>
    %102 = arith.mulf %101, %7 : vector<8x128xf32>
    %103 = arith.addf %99, %102 : vector<8x128xf32>
    %c18 = arith.constant 18 : index
    %104 = memref.load %arg1[%c18] : memref<323xf32, #tpu.memory_space<smem>>
    %105 = vector.broadcast %104 : f32 to vector<8x128xf32>
    %106 = arith.mulf %105, %10 : vector<8x128xf32>
    %107 = arith.addf %103, %106 : vector<8x128xf32>
    %c19 = arith.constant 19 : index
    %108 = memref.load %arg1[%c19] : memref<323xf32, #tpu.memory_space<smem>>
    %109 = vector.broadcast %108 : f32 to vector<8x128xf32>
    %110 = arith.mulf %109, %13 : vector<8x128xf32>
    %111 = arith.addf %107, %110 : vector<8x128xf32>
    %cst_11 = arith.constant 0.000000e+00 : f32
    %112 = vector.broadcast %cst_11 : f32 to vector<8x128xf32>
    %113 = arith.maximumf %111, %112 : vector<8x128xf32>
    %c69 = arith.constant 69 : index
    %114 = memref.load %arg1[%c69] : memref<323xf32, #tpu.memory_space<smem>>
    %115 = vector.broadcast %114 : f32 to vector<8x128xf32>
    %c20 = arith.constant 20 : index
    %116 = memref.load %arg1[%c20] : memref<323xf32, #tpu.memory_space<smem>>
    %117 = vector.broadcast %116 : f32 to vector<8x128xf32>
    %118 = arith.mulf %117, %4 : vector<8x128xf32>
    %119 = arith.addf %115, %118 : vector<8x128xf32>
    %c21 = arith.constant 21 : index
    %120 = memref.load %arg1[%c21] : memref<323xf32, #tpu.memory_space<smem>>
    %121 = vector.broadcast %120 : f32 to vector<8x128xf32>
    %122 = arith.mulf %121, %7 : vector<8x128xf32>
    %123 = arith.addf %119, %122 : vector<8x128xf32>
    %c22 = arith.constant 22 : index
    %124 = memref.load %arg1[%c22] : memref<323xf32, #tpu.memory_space<smem>>
    %125 = vector.broadcast %124 : f32 to vector<8x128xf32>
    %126 = arith.mulf %125, %10 : vector<8x128xf32>
    %127 = arith.addf %123, %126 : vector<8x128xf32>
    %c23 = arith.constant 23 : index
    %128 = memref.load %arg1[%c23] : memref<323xf32, #tpu.memory_space<smem>>
    %129 = vector.broadcast %128 : f32 to vector<8x128xf32>
    %130 = arith.mulf %129, %13 : vector<8x128xf32>
    %131 = arith.addf %127, %130 : vector<8x128xf32>
    %cst_12 = arith.constant 0.000000e+00 : f32
    %132 = vector.broadcast %cst_12 : f32 to vector<8x128xf32>
    %133 = arith.maximumf %131, %132 : vector<8x128xf32>
    %c70 = arith.constant 70 : index
    %134 = memref.load %arg1[%c70] : memref<323xf32, #tpu.memory_space<smem>>
    %135 = vector.broadcast %134 : f32 to vector<8x128xf32>
    %c24 = arith.constant 24 : index
    %136 = memref.load %arg1[%c24] : memref<323xf32, #tpu.memory_space<smem>>
    %137 = vector.broadcast %136 : f32 to vector<8x128xf32>
    %138 = arith.mulf %137, %4 : vector<8x128xf32>
    %139 = arith.addf %135, %138 : vector<8x128xf32>
    %c25 = arith.constant 25 : index
    %140 = memref.load %arg1[%c25] : memref<323xf32, #tpu.memory_space<smem>>
    %141 = vector.broadcast %140 : f32 to vector<8x128xf32>
    %142 = arith.mulf %141, %7 : vector<8x128xf32>
    %143 = arith.addf %139, %142 : vector<8x128xf32>
    %c26 = arith.constant 26 : index
    %144 = memref.load %arg1[%c26] : memref<323xf32, #tpu.memory_space<smem>>
    %145 = vector.broadcast %144 : f32 to vector<8x128xf32>
    %146 = arith.mulf %145, %10 : vector<8x128xf32>
    %147 = arith.addf %143, %146 : vector<8x128xf32>
    %c27 = arith.constant 27 : index
    %148 = memref.load %arg1[%c27] : memref<323xf32, #tpu.memory_space<smem>>
    %149 = vector.broadcast %148 : f32 to vector<8x128xf32>
    %150 = arith.mulf %149, %13 : vector<8x128xf32>
    %151 = arith.addf %147, %150 : vector<8x128xf32>
    %cst_13 = arith.constant 0.000000e+00 : f32
    %152 = vector.broadcast %cst_13 : f32 to vector<8x128xf32>
    %153 = arith.maximumf %151, %152 : vector<8x128xf32>
    %c71 = arith.constant 71 : index
    %154 = memref.load %arg1[%c71] : memref<323xf32, #tpu.memory_space<smem>>
    %155 = vector.broadcast %154 : f32 to vector<8x128xf32>
    %c28 = arith.constant 28 : index
    %156 = memref.load %arg1[%c28] : memref<323xf32, #tpu.memory_space<smem>>
    %157 = vector.broadcast %156 : f32 to vector<8x128xf32>
    %158 = arith.mulf %157, %4 : vector<8x128xf32>
    %159 = arith.addf %155, %158 : vector<8x128xf32>
    %c29 = arith.constant 29 : index
    %160 = memref.load %arg1[%c29] : memref<323xf32, #tpu.memory_space<smem>>
    %161 = vector.broadcast %160 : f32 to vector<8x128xf32>
    %162 = arith.mulf %161, %7 : vector<8x128xf32>
    %163 = arith.addf %159, %162 : vector<8x128xf32>
    %c30 = arith.constant 30 : index
    %164 = memref.load %arg1[%c30] : memref<323xf32, #tpu.memory_space<smem>>
    %165 = vector.broadcast %164 : f32 to vector<8x128xf32>
    %166 = arith.mulf %165, %10 : vector<8x128xf32>
    %167 = arith.addf %163, %166 : vector<8x128xf32>
    %c31 = arith.constant 31 : index
    %168 = memref.load %arg1[%c31] : memref<323xf32, #tpu.memory_space<smem>>
    %169 = vector.broadcast %168 : f32 to vector<8x128xf32>
    %170 = arith.mulf %169, %13 : vector<8x128xf32>
    %171 = arith.addf %167, %170 : vector<8x128xf32>
    %cst_14 = arith.constant 0.000000e+00 : f32
    %172 = vector.broadcast %cst_14 : f32 to vector<8x128xf32>
    %173 = arith.maximumf %171, %172 : vector<8x128xf32>
    %c72 = arith.constant 72 : index
    %174 = memref.load %arg1[%c72] : memref<323xf32, #tpu.memory_space<smem>>
    %175 = vector.broadcast %174 : f32 to vector<8x128xf32>
    %c32 = arith.constant 32 : index
    %176 = memref.load %arg1[%c32] : memref<323xf32, #tpu.memory_space<smem>>
    %177 = vector.broadcast %176 : f32 to vector<8x128xf32>
    %178 = arith.mulf %177, %4 : vector<8x128xf32>
    %179 = arith.addf %175, %178 : vector<8x128xf32>
    %c33 = arith.constant 33 : index
    %180 = memref.load %arg1[%c33] : memref<323xf32, #tpu.memory_space<smem>>
    %181 = vector.broadcast %180 : f32 to vector<8x128xf32>
    %182 = arith.mulf %181, %7 : vector<8x128xf32>
    %183 = arith.addf %179, %182 : vector<8x128xf32>
    %c34 = arith.constant 34 : index
    %184 = memref.load %arg1[%c34] : memref<323xf32, #tpu.memory_space<smem>>
    %185 = vector.broadcast %184 : f32 to vector<8x128xf32>
    %186 = arith.mulf %185, %10 : vector<8x128xf32>
    %187 = arith.addf %183, %186 : vector<8x128xf32>
    %c35 = arith.constant 35 : index
    %188 = memref.load %arg1[%c35] : memref<323xf32, #tpu.memory_space<smem>>
    %189 = vector.broadcast %188 : f32 to vector<8x128xf32>
    %190 = arith.mulf %189, %13 : vector<8x128xf32>
    %191 = arith.addf %187, %190 : vector<8x128xf32>
    %cst_15 = arith.constant 0.000000e+00 : f32
    %192 = vector.broadcast %cst_15 : f32 to vector<8x128xf32>
    %193 = arith.maximumf %191, %192 : vector<8x128xf32>
    %c73 = arith.constant 73 : index
    %194 = memref.load %arg1[%c73] : memref<323xf32, #tpu.memory_space<smem>>
    %195 = vector.broadcast %194 : f32 to vector<8x128xf32>
    %c36 = arith.constant 36 : index
    %196 = memref.load %arg1[%c36] : memref<323xf32, #tpu.memory_space<smem>>
    %197 = vector.broadcast %196 : f32 to vector<8x128xf32>
    %198 = arith.mulf %197, %4 : vector<8x128xf32>
    %199 = arith.addf %195, %198 : vector<8x128xf32>
    %c37 = arith.constant 37 : index
    %200 = memref.load %arg1[%c37] : memref<323xf32, #tpu.memory_space<smem>>
    %201 = vector.broadcast %200 : f32 to vector<8x128xf32>
    %202 = arith.mulf %201, %7 : vector<8x128xf32>
    %203 = arith.addf %199, %202 : vector<8x128xf32>
    %c38 = arith.constant 38 : index
    %204 = memref.load %arg1[%c38] : memref<323xf32, #tpu.memory_space<smem>>
    %205 = vector.broadcast %204 : f32 to vector<8x128xf32>
    %206 = arith.mulf %205, %10 : vector<8x128xf32>
    %207 = arith.addf %203, %206 : vector<8x128xf32>
    %c39 = arith.constant 39 : index
    %208 = memref.load %arg1[%c39] : memref<323xf32, #tpu.memory_space<smem>>
    %209 = vector.broadcast %208 : f32 to vector<8x128xf32>
    %210 = arith.mulf %209, %13 : vector<8x128xf32>
    %211 = arith.addf %207, %210 : vector<8x128xf32>
    %cst_16 = arith.constant 0.000000e+00 : f32
    %212 = vector.broadcast %cst_16 : f32 to vector<8x128xf32>
    %213 = arith.maximumf %211, %212 : vector<8x128xf32>
    %c74 = arith.constant 74 : index
    %214 = memref.load %arg1[%c74] : memref<323xf32, #tpu.memory_space<smem>>
    %215 = vector.broadcast %214 : f32 to vector<8x128xf32>
    %c40 = arith.constant 40 : index
    %216 = memref.load %arg1[%c40] : memref<323xf32, #tpu.memory_space<smem>>
    %217 = vector.broadcast %216 : f32 to vector<8x128xf32>
    %218 = arith.mulf %217, %4 : vector<8x128xf32>
    %219 = arith.addf %215, %218 : vector<8x128xf32>
    %c41 = arith.constant 41 : index
    %220 = memref.load %arg1[%c41] : memref<323xf32, #tpu.memory_space<smem>>
    %221 = vector.broadcast %220 : f32 to vector<8x128xf32>
    %222 = arith.mulf %221, %7 : vector<8x128xf32>
    %223 = arith.addf %219, %222 : vector<8x128xf32>
    %c42 = arith.constant 42 : index
    %224 = memref.load %arg1[%c42] : memref<323xf32, #tpu.memory_space<smem>>
    %225 = vector.broadcast %224 : f32 to vector<8x128xf32>
    %226 = arith.mulf %225, %10 : vector<8x128xf32>
    %227 = arith.addf %223, %226 : vector<8x128xf32>
    %c43 = arith.constant 43 : index
    %228 = memref.load %arg1[%c43] : memref<323xf32, #tpu.memory_space<smem>>
    %229 = vector.broadcast %228 : f32 to vector<8x128xf32>
    %230 = arith.mulf %229, %13 : vector<8x128xf32>
    %231 = arith.addf %227, %230 : vector<8x128xf32>
    %cst_17 = arith.constant 0.000000e+00 : f32
    %232 = vector.broadcast %cst_17 : f32 to vector<8x128xf32>
    %233 = arith.maximumf %231, %232 : vector<8x128xf32>
    %c75 = arith.constant 75 : index
    %234 = memref.load %arg1[%c75] : memref<323xf32, #tpu.memory_space<smem>>
    %235 = vector.broadcast %234 : f32 to vector<8x128xf32>
    %c44 = arith.constant 44 : index
    %236 = memref.load %arg1[%c44] : memref<323xf32, #tpu.memory_space<smem>>
    %237 = vector.broadcast %236 : f32 to vector<8x128xf32>
    %238 = arith.mulf %237, %4 : vector<8x128xf32>
    %239 = arith.addf %235, %238 : vector<8x128xf32>
    %c45 = arith.constant 45 : index
    %240 = memref.load %arg1[%c45] : memref<323xf32, #tpu.memory_space<smem>>
    %241 = vector.broadcast %240 : f32 to vector<8x128xf32>
    %242 = arith.mulf %241, %7 : vector<8x128xf32>
    %243 = arith.addf %239, %242 : vector<8x128xf32>
    %c46 = arith.constant 46 : index
    %244 = memref.load %arg1[%c46] : memref<323xf32, #tpu.memory_space<smem>>
    %245 = vector.broadcast %244 : f32 to vector<8x128xf32>
    %246 = arith.mulf %245, %10 : vector<8x128xf32>
    %247 = arith.addf %243, %246 : vector<8x128xf32>
    %c47 = arith.constant 47 : index
    %248 = memref.load %arg1[%c47] : memref<323xf32, #tpu.memory_space<smem>>
    %249 = vector.broadcast %248 : f32 to vector<8x128xf32>
    %250 = arith.mulf %249, %13 : vector<8x128xf32>
    %251 = arith.addf %247, %250 : vector<8x128xf32>
    %cst_18 = arith.constant 0.000000e+00 : f32
    %252 = vector.broadcast %cst_18 : f32 to vector<8x128xf32>
    %253 = arith.maximumf %251, %252 : vector<8x128xf32>
    %c76 = arith.constant 76 : index
    %254 = memref.load %arg1[%c76] : memref<323xf32, #tpu.memory_space<smem>>
    %255 = vector.broadcast %254 : f32 to vector<8x128xf32>
    %c48 = arith.constant 48 : index
    %256 = memref.load %arg1[%c48] : memref<323xf32, #tpu.memory_space<smem>>
    %257 = vector.broadcast %256 : f32 to vector<8x128xf32>
    %258 = arith.mulf %257, %4 : vector<8x128xf32>
    %259 = arith.addf %255, %258 : vector<8x128xf32>
    %c49 = arith.constant 49 : index
    %260 = memref.load %arg1[%c49] : memref<323xf32, #tpu.memory_space<smem>>
    %261 = vector.broadcast %260 : f32 to vector<8x128xf32>
    %262 = arith.mulf %261, %7 : vector<8x128xf32>
    %263 = arith.addf %259, %262 : vector<8x128xf32>
    %c50 = arith.constant 50 : index
    %264 = memref.load %arg1[%c50] : memref<323xf32, #tpu.memory_space<smem>>
    %265 = vector.broadcast %264 : f32 to vector<8x128xf32>
    %266 = arith.mulf %265, %10 : vector<8x128xf32>
    %267 = arith.addf %263, %266 : vector<8x128xf32>
    %c51 = arith.constant 51 : index
    %268 = memref.load %arg1[%c51] : memref<323xf32, #tpu.memory_space<smem>>
    %269 = vector.broadcast %268 : f32 to vector<8x128xf32>
    %270 = arith.mulf %269, %13 : vector<8x128xf32>
    %271 = arith.addf %267, %270 : vector<8x128xf32>
    %cst_19 = arith.constant 0.000000e+00 : f32
    %272 = vector.broadcast %cst_19 : f32 to vector<8x128xf32>
    %273 = arith.maximumf %271, %272 : vector<8x128xf32>
    %c77 = arith.constant 77 : index
    %274 = memref.load %arg1[%c77] : memref<323xf32, #tpu.memory_space<smem>>
    %275 = vector.broadcast %274 : f32 to vector<8x128xf32>
    %c52 = arith.constant 52 : index
    %276 = memref.load %arg1[%c52] : memref<323xf32, #tpu.memory_space<smem>>
    %277 = vector.broadcast %276 : f32 to vector<8x128xf32>
    %278 = arith.mulf %277, %4 : vector<8x128xf32>
    %279 = arith.addf %275, %278 : vector<8x128xf32>
    %c53 = arith.constant 53 : index
    %280 = memref.load %arg1[%c53] : memref<323xf32, #tpu.memory_space<smem>>
    %281 = vector.broadcast %280 : f32 to vector<8x128xf32>
    %282 = arith.mulf %281, %7 : vector<8x128xf32>
    %283 = arith.addf %279, %282 : vector<8x128xf32>
    %c54 = arith.constant 54 : index
    %284 = memref.load %arg1[%c54] : memref<323xf32, #tpu.memory_space<smem>>
    %285 = vector.broadcast %284 : f32 to vector<8x128xf32>
    %286 = arith.mulf %285, %10 : vector<8x128xf32>
    %287 = arith.addf %283, %286 : vector<8x128xf32>
    %c55 = arith.constant 55 : index
    %288 = memref.load %arg1[%c55] : memref<323xf32, #tpu.memory_space<smem>>
    %289 = vector.broadcast %288 : f32 to vector<8x128xf32>
    %290 = arith.mulf %289, %13 : vector<8x128xf32>
    %291 = arith.addf %287, %290 : vector<8x128xf32>
    %cst_20 = arith.constant 0.000000e+00 : f32
    %292 = vector.broadcast %cst_20 : f32 to vector<8x128xf32>
    %293 = arith.maximumf %291, %292 : vector<8x128xf32>
    %c78 = arith.constant 78 : index
    %294 = memref.load %arg1[%c78] : memref<323xf32, #tpu.memory_space<smem>>
    %295 = vector.broadcast %294 : f32 to vector<8x128xf32>
    %c56 = arith.constant 56 : index
    %296 = memref.load %arg1[%c56] : memref<323xf32, #tpu.memory_space<smem>>
    %297 = vector.broadcast %296 : f32 to vector<8x128xf32>
    %298 = arith.mulf %297, %4 : vector<8x128xf32>
    %299 = arith.addf %295, %298 : vector<8x128xf32>
    %c57 = arith.constant 57 : index
    %300 = memref.load %arg1[%c57] : memref<323xf32, #tpu.memory_space<smem>>
    %301 = vector.broadcast %300 : f32 to vector<8x128xf32>
    %302 = arith.mulf %301, %7 : vector<8x128xf32>
    %303 = arith.addf %299, %302 : vector<8x128xf32>
    %c58 = arith.constant 58 : index
    %304 = memref.load %arg1[%c58] : memref<323xf32, #tpu.memory_space<smem>>
    %305 = vector.broadcast %304 : f32 to vector<8x128xf32>
    %306 = arith.mulf %305, %10 : vector<8x128xf32>
    %307 = arith.addf %303, %306 : vector<8x128xf32>
    %c59 = arith.constant 59 : index
    %308 = memref.load %arg1[%c59] : memref<323xf32, #tpu.memory_space<smem>>
    %309 = vector.broadcast %308 : f32 to vector<8x128xf32>
    %310 = arith.mulf %309, %13 : vector<8x128xf32>
    %311 = arith.addf %307, %310 : vector<8x128xf32>
    %cst_21 = arith.constant 0.000000e+00 : f32
    %312 = vector.broadcast %cst_21 : f32 to vector<8x128xf32>
    %313 = arith.maximumf %311, %312 : vector<8x128xf32>
    %c79 = arith.constant 79 : index
    %314 = memref.load %arg1[%c79] : memref<323xf32, #tpu.memory_space<smem>>
    %315 = vector.broadcast %314 : f32 to vector<8x128xf32>
    %c60 = arith.constant 60 : index
    %316 = memref.load %arg1[%c60] : memref<323xf32, #tpu.memory_space<smem>>
    %317 = vector.broadcast %316 : f32 to vector<8x128xf32>
    %318 = arith.mulf %317, %4 : vector<8x128xf32>
    %319 = arith.addf %315, %318 : vector<8x128xf32>
    %c61 = arith.constant 61 : index
    %320 = memref.load %arg1[%c61] : memref<323xf32, #tpu.memory_space<smem>>
    %321 = vector.broadcast %320 : f32 to vector<8x128xf32>
    %322 = arith.mulf %321, %7 : vector<8x128xf32>
    %323 = arith.addf %319, %322 : vector<8x128xf32>
    %c62 = arith.constant 62 : index
    %324 = memref.load %arg1[%c62] : memref<323xf32, #tpu.memory_space<smem>>
    %325 = vector.broadcast %324 : f32 to vector<8x128xf32>
    %326 = arith.mulf %325, %10 : vector<8x128xf32>
    %327 = arith.addf %323, %326 : vector<8x128xf32>
    %c63 = arith.constant 63 : index
    %328 = memref.load %arg1[%c63] : memref<323xf32, #tpu.memory_space<smem>>
    %329 = vector.broadcast %328 : f32 to vector<8x128xf32>
    %330 = arith.mulf %329, %13 : vector<8x128xf32>
    %331 = arith.addf %327, %330 : vector<8x128xf32>
    %cst_22 = arith.constant 0.000000e+00 : f32
    %332 = vector.broadcast %cst_22 : f32 to vector<8x128xf32>
    %333 = arith.maximumf %331, %332 : vector<8x128xf32>
    %c272 = arith.constant 272 : index
    %334 = memref.load %arg1[%c272] : memref<323xf32, #tpu.memory_space<smem>>
    %335 = vector.broadcast %334 : f32 to vector<8x128xf32>
    %c80 = arith.constant 80 : index
    %336 = memref.load %arg1[%c80] : memref<323xf32, #tpu.memory_space<smem>>
    %337 = vector.broadcast %336 : f32 to vector<8x128xf32>
    %338 = arith.mulf %337, %33 : vector<8x128xf32>
    %339 = arith.addf %335, %338 : vector<8x128xf32>
    %c81 = arith.constant 81 : index
    %340 = memref.load %arg1[%c81] : memref<323xf32, #tpu.memory_space<smem>>
    %341 = vector.broadcast %340 : f32 to vector<8x128xf32>
    %342 = arith.mulf %341, %53 : vector<8x128xf32>
    %343 = arith.addf %339, %342 : vector<8x128xf32>
    %c82 = arith.constant 82 : index
    %344 = memref.load %arg1[%c82] : memref<323xf32, #tpu.memory_space<smem>>
    %345 = vector.broadcast %344 : f32 to vector<8x128xf32>
    %346 = arith.mulf %345, %73 : vector<8x128xf32>
    %347 = arith.addf %343, %346 : vector<8x128xf32>
    %c83 = arith.constant 83 : index
    %348 = memref.load %arg1[%c83] : memref<323xf32, #tpu.memory_space<smem>>
    %349 = vector.broadcast %348 : f32 to vector<8x128xf32>
    %350 = arith.mulf %349, %93 : vector<8x128xf32>
    %351 = arith.addf %347, %350 : vector<8x128xf32>
    %c84 = arith.constant 84 : index
    %352 = memref.load %arg1[%c84] : memref<323xf32, #tpu.memory_space<smem>>
    %353 = vector.broadcast %352 : f32 to vector<8x128xf32>
    %354 = arith.mulf %353, %113 : vector<8x128xf32>
    %355 = arith.addf %351, %354 : vector<8x128xf32>
    %c85 = arith.constant 85 : index
    %356 = memref.load %arg1[%c85] : memref<323xf32, #tpu.memory_space<smem>>
    %357 = vector.broadcast %356 : f32 to vector<8x128xf32>
    %358 = arith.mulf %357, %133 : vector<8x128xf32>
    %359 = arith.addf %355, %358 : vector<8x128xf32>
    %c86 = arith.constant 86 : index
    %360 = memref.load %arg1[%c86] : memref<323xf32, #tpu.memory_space<smem>>
    %361 = vector.broadcast %360 : f32 to vector<8x128xf32>
    %362 = arith.mulf %361, %153 : vector<8x128xf32>
    %363 = arith.addf %359, %362 : vector<8x128xf32>
    %c87 = arith.constant 87 : index
    %364 = memref.load %arg1[%c87] : memref<323xf32, #tpu.memory_space<smem>>
    %365 = vector.broadcast %364 : f32 to vector<8x128xf32>
    %366 = arith.mulf %365, %173 : vector<8x128xf32>
    %367 = arith.addf %363, %366 : vector<8x128xf32>
    %c88 = arith.constant 88 : index
    %368 = memref.load %arg1[%c88] : memref<323xf32, #tpu.memory_space<smem>>
    %369 = vector.broadcast %368 : f32 to vector<8x128xf32>
    %370 = arith.mulf %369, %193 : vector<8x128xf32>
    %371 = arith.addf %367, %370 : vector<8x128xf32>
    %c89 = arith.constant 89 : index
    %372 = memref.load %arg1[%c89] : memref<323xf32, #tpu.memory_space<smem>>
    %373 = vector.broadcast %372 : f32 to vector<8x128xf32>
    %374 = arith.mulf %373, %213 : vector<8x128xf32>
    %375 = arith.addf %371, %374 : vector<8x128xf32>
    %c90 = arith.constant 90 : index
    %376 = memref.load %arg1[%c90] : memref<323xf32, #tpu.memory_space<smem>>
    %377 = vector.broadcast %376 : f32 to vector<8x128xf32>
    %378 = arith.mulf %377, %233 : vector<8x128xf32>
    %379 = arith.addf %375, %378 : vector<8x128xf32>
    %c91 = arith.constant 91 : index
    %380 = memref.load %arg1[%c91] : memref<323xf32, #tpu.memory_space<smem>>
    %381 = vector.broadcast %380 : f32 to vector<8x128xf32>
    %382 = arith.mulf %381, %253 : vector<8x128xf32>
    %383 = arith.addf %379, %382 : vector<8x128xf32>
    %c92 = arith.constant 92 : index
    %384 = memref.load %arg1[%c92] : memref<323xf32, #tpu.memory_space<smem>>
    %385 = vector.broadcast %384 : f32 to vector<8x128xf32>
    %386 = arith.mulf %385, %273 : vector<8x128xf32>
    %387 = arith.addf %383, %386 : vector<8x128xf32>
    %c93 = arith.constant 93 : index
    %388 = memref.load %arg1[%c93] : memref<323xf32, #tpu.memory_space<smem>>
    %389 = vector.broadcast %388 : f32 to vector<8x128xf32>
    %390 = arith.mulf %389, %293 : vector<8x128xf32>
    %391 = arith.addf %387, %390 : vector<8x128xf32>
    %c94 = arith.constant 94 : index
    %392 = memref.load %arg1[%c94] : memref<323xf32, #tpu.memory_space<smem>>
    %393 = vector.broadcast %392 : f32 to vector<8x128xf32>
    %394 = arith.mulf %393, %313 : vector<8x128xf32>
    %395 = arith.addf %391, %394 : vector<8x128xf32>
    %c95 = arith.constant 95 : index
    %396 = memref.load %arg1[%c95] : memref<323xf32, #tpu.memory_space<smem>>
    %397 = vector.broadcast %396 : f32 to vector<8x128xf32>
    %398 = arith.mulf %397, %333 : vector<8x128xf32>
    %399 = arith.addf %395, %398 : vector<8x128xf32>
    %cst_23 = arith.constant 0.000000e+00 : f32
    %400 = vector.broadcast %cst_23 : f32 to vector<8x128xf32>
    %401 = arith.maximumf %399, %400 : vector<8x128xf32>
    %c273 = arith.constant 273 : index
    %402 = memref.load %arg1[%c273] : memref<323xf32, #tpu.memory_space<smem>>
    %403 = vector.broadcast %402 : f32 to vector<8x128xf32>
    %c96 = arith.constant 96 : index
    %404 = memref.load %arg1[%c96] : memref<323xf32, #tpu.memory_space<smem>>
    %405 = vector.broadcast %404 : f32 to vector<8x128xf32>
    %406 = arith.mulf %405, %33 : vector<8x128xf32>
    %407 = arith.addf %403, %406 : vector<8x128xf32>
    %c97 = arith.constant 97 : index
    %408 = memref.load %arg1[%c97] : memref<323xf32, #tpu.memory_space<smem>>
    %409 = vector.broadcast %408 : f32 to vector<8x128xf32>
    %410 = arith.mulf %409, %53 : vector<8x128xf32>
    %411 = arith.addf %407, %410 : vector<8x128xf32>
    %c98 = arith.constant 98 : index
    %412 = memref.load %arg1[%c98] : memref<323xf32, #tpu.memory_space<smem>>
    %413 = vector.broadcast %412 : f32 to vector<8x128xf32>
    %414 = arith.mulf %413, %73 : vector<8x128xf32>
    %415 = arith.addf %411, %414 : vector<8x128xf32>
    %c99 = arith.constant 99 : index
    %416 = memref.load %arg1[%c99] : memref<323xf32, #tpu.memory_space<smem>>
    %417 = vector.broadcast %416 : f32 to vector<8x128xf32>
    %418 = arith.mulf %417, %93 : vector<8x128xf32>
    %419 = arith.addf %415, %418 : vector<8x128xf32>
    %c100 = arith.constant 100 : index
    %420 = memref.load %arg1[%c100] : memref<323xf32, #tpu.memory_space<smem>>
    %421 = vector.broadcast %420 : f32 to vector<8x128xf32>
    %422 = arith.mulf %421, %113 : vector<8x128xf32>
    %423 = arith.addf %419, %422 : vector<8x128xf32>
    %c101 = arith.constant 101 : index
    %424 = memref.load %arg1[%c101] : memref<323xf32, #tpu.memory_space<smem>>
    %425 = vector.broadcast %424 : f32 to vector<8x128xf32>
    %426 = arith.mulf %425, %133 : vector<8x128xf32>
    %427 = arith.addf %423, %426 : vector<8x128xf32>
    %c102 = arith.constant 102 : index
    %428 = memref.load %arg1[%c102] : memref<323xf32, #tpu.memory_space<smem>>
    %429 = vector.broadcast %428 : f32 to vector<8x128xf32>
    %430 = arith.mulf %429, %153 : vector<8x128xf32>
    %431 = arith.addf %427, %430 : vector<8x128xf32>
    %c103 = arith.constant 103 : index
    %432 = memref.load %arg1[%c103] : memref<323xf32, #tpu.memory_space<smem>>
    %433 = vector.broadcast %432 : f32 to vector<8x128xf32>
    %434 = arith.mulf %433, %173 : vector<8x128xf32>
    %435 = arith.addf %431, %434 : vector<8x128xf32>
    %c104 = arith.constant 104 : index
    %436 = memref.load %arg1[%c104] : memref<323xf32, #tpu.memory_space<smem>>
    %437 = vector.broadcast %436 : f32 to vector<8x128xf32>
    %438 = arith.mulf %437, %193 : vector<8x128xf32>
    %439 = arith.addf %435, %438 : vector<8x128xf32>
    %c105 = arith.constant 105 : index
    %440 = memref.load %arg1[%c105] : memref<323xf32, #tpu.memory_space<smem>>
    %441 = vector.broadcast %440 : f32 to vector<8x128xf32>
    %442 = arith.mulf %441, %213 : vector<8x128xf32>
    %443 = arith.addf %439, %442 : vector<8x128xf32>
    %c106 = arith.constant 106 : index
    %444 = memref.load %arg1[%c106] : memref<323xf32, #tpu.memory_space<smem>>
    %445 = vector.broadcast %444 : f32 to vector<8x128xf32>
    %446 = arith.mulf %445, %233 : vector<8x128xf32>
    %447 = arith.addf %443, %446 : vector<8x128xf32>
    %c107 = arith.constant 107 : index
    %448 = memref.load %arg1[%c107] : memref<323xf32, #tpu.memory_space<smem>>
    %449 = vector.broadcast %448 : f32 to vector<8x128xf32>
    %450 = arith.mulf %449, %253 : vector<8x128xf32>
    %451 = arith.addf %447, %450 : vector<8x128xf32>
    %c108 = arith.constant 108 : index
    %452 = memref.load %arg1[%c108] : memref<323xf32, #tpu.memory_space<smem>>
    %453 = vector.broadcast %452 : f32 to vector<8x128xf32>
    %454 = arith.mulf %453, %273 : vector<8x128xf32>
    %455 = arith.addf %451, %454 : vector<8x128xf32>
    %c109 = arith.constant 109 : index
    %456 = memref.load %arg1[%c109] : memref<323xf32, #tpu.memory_space<smem>>
    %457 = vector.broadcast %456 : f32 to vector<8x128xf32>
    %458 = arith.mulf %457, %293 : vector<8x128xf32>
    %459 = arith.addf %455, %458 : vector<8x128xf32>
    %c110 = arith.constant 110 : index
    %460 = memref.load %arg1[%c110] : memref<323xf32, #tpu.memory_space<smem>>
    %461 = vector.broadcast %460 : f32 to vector<8x128xf32>
    %462 = arith.mulf %461, %313 : vector<8x128xf32>
    %463 = arith.addf %459, %462 : vector<8x128xf32>
    %c111 = arith.constant 111 : index
    %464 = memref.load %arg1[%c111] : memref<323xf32, #tpu.memory_space<smem>>
    %465 = vector.broadcast %464 : f32 to vector<8x128xf32>
    %466 = arith.mulf %465, %333 : vector<8x128xf32>
    %467 = arith.addf %463, %466 : vector<8x128xf32>
    %cst_24 = arith.constant 0.000000e+00 : f32
    %468 = vector.broadcast %cst_24 : f32 to vector<8x128xf32>
    %469 = arith.maximumf %467, %468 : vector<8x128xf32>
    %c274 = arith.constant 274 : index
    %470 = memref.load %arg1[%c274] : memref<323xf32, #tpu.memory_space<smem>>
    %471 = vector.broadcast %470 : f32 to vector<8x128xf32>
    %c112 = arith.constant 112 : index
    %472 = memref.load %arg1[%c112] : memref<323xf32, #tpu.memory_space<smem>>
    %473 = vector.broadcast %472 : f32 to vector<8x128xf32>
    %474 = arith.mulf %473, %33 : vector<8x128xf32>
    %475 = arith.addf %471, %474 : vector<8x128xf32>
    %c113 = arith.constant 113 : index
    %476 = memref.load %arg1[%c113] : memref<323xf32, #tpu.memory_space<smem>>
    %477 = vector.broadcast %476 : f32 to vector<8x128xf32>
    %478 = arith.mulf %477, %53 : vector<8x128xf32>
    %479 = arith.addf %475, %478 : vector<8x128xf32>
    %c114 = arith.constant 114 : index
    %480 = memref.load %arg1[%c114] : memref<323xf32, #tpu.memory_space<smem>>
    %481 = vector.broadcast %480 : f32 to vector<8x128xf32>
    %482 = arith.mulf %481, %73 : vector<8x128xf32>
    %483 = arith.addf %479, %482 : vector<8x128xf32>
    %c115 = arith.constant 115 : index
    %484 = memref.load %arg1[%c115] : memref<323xf32, #tpu.memory_space<smem>>
    %485 = vector.broadcast %484 : f32 to vector<8x128xf32>
    %486 = arith.mulf %485, %93 : vector<8x128xf32>
    %487 = arith.addf %483, %486 : vector<8x128xf32>
    %c116 = arith.constant 116 : index
    %488 = memref.load %arg1[%c116] : memref<323xf32, #tpu.memory_space<smem>>
    %489 = vector.broadcast %488 : f32 to vector<8x128xf32>
    %490 = arith.mulf %489, %113 : vector<8x128xf32>
    %491 = arith.addf %487, %490 : vector<8x128xf32>
    %c117 = arith.constant 117 : index
    %492 = memref.load %arg1[%c117] : memref<323xf32, #tpu.memory_space<smem>>
    %493 = vector.broadcast %492 : f32 to vector<8x128xf32>
    %494 = arith.mulf %493, %133 : vector<8x128xf32>
    %495 = arith.addf %491, %494 : vector<8x128xf32>
    %c118 = arith.constant 118 : index
    %496 = memref.load %arg1[%c118] : memref<323xf32, #tpu.memory_space<smem>>
    %497 = vector.broadcast %496 : f32 to vector<8x128xf32>
    %498 = arith.mulf %497, %153 : vector<8x128xf32>
    %499 = arith.addf %495, %498 : vector<8x128xf32>
    %c119 = arith.constant 119 : index
    %500 = memref.load %arg1[%c119] : memref<323xf32, #tpu.memory_space<smem>>
    %501 = vector.broadcast %500 : f32 to vector<8x128xf32>
    %502 = arith.mulf %501, %173 : vector<8x128xf32>
    %503 = arith.addf %499, %502 : vector<8x128xf32>
    %c120 = arith.constant 120 : index
    %504 = memref.load %arg1[%c120] : memref<323xf32, #tpu.memory_space<smem>>
    %505 = vector.broadcast %504 : f32 to vector<8x128xf32>
    %506 = arith.mulf %505, %193 : vector<8x128xf32>
    %507 = arith.addf %503, %506 : vector<8x128xf32>
    %c121 = arith.constant 121 : index
    %508 = memref.load %arg1[%c121] : memref<323xf32, #tpu.memory_space<smem>>
    %509 = vector.broadcast %508 : f32 to vector<8x128xf32>
    %510 = arith.mulf %509, %213 : vector<8x128xf32>
    %511 = arith.addf %507, %510 : vector<8x128xf32>
    %c122 = arith.constant 122 : index
    %512 = memref.load %arg1[%c122] : memref<323xf32, #tpu.memory_space<smem>>
    %513 = vector.broadcast %512 : f32 to vector<8x128xf32>
    %514 = arith.mulf %513, %233 : vector<8x128xf32>
    %515 = arith.addf %511, %514 : vector<8x128xf32>
    %c123 = arith.constant 123 : index
    %516 = memref.load %arg1[%c123] : memref<323xf32, #tpu.memory_space<smem>>
    %517 = vector.broadcast %516 : f32 to vector<8x128xf32>
    %518 = arith.mulf %517, %253 : vector<8x128xf32>
    %519 = arith.addf %515, %518 : vector<8x128xf32>
    %c124 = arith.constant 124 : index
    %520 = memref.load %arg1[%c124] : memref<323xf32, #tpu.memory_space<smem>>
    %521 = vector.broadcast %520 : f32 to vector<8x128xf32>
    %522 = arith.mulf %521, %273 : vector<8x128xf32>
    %523 = arith.addf %519, %522 : vector<8x128xf32>
    %c125 = arith.constant 125 : index
    %524 = memref.load %arg1[%c125] : memref<323xf32, #tpu.memory_space<smem>>
    %525 = vector.broadcast %524 : f32 to vector<8x128xf32>
    %526 = arith.mulf %525, %293 : vector<8x128xf32>
    %527 = arith.addf %523, %526 : vector<8x128xf32>
    %c126 = arith.constant 126 : index
    %528 = memref.load %arg1[%c126] : memref<323xf32, #tpu.memory_space<smem>>
    %529 = vector.broadcast %528 : f32 to vector<8x128xf32>
    %530 = arith.mulf %529, %313 : vector<8x128xf32>
    %531 = arith.addf %527, %530 : vector<8x128xf32>
    %c127 = arith.constant 127 : index
    %532 = memref.load %arg1[%c127] : memref<323xf32, #tpu.memory_space<smem>>
    %533 = vector.broadcast %532 : f32 to vector<8x128xf32>
    %534 = arith.mulf %533, %333 : vector<8x128xf32>
    %535 = arith.addf %531, %534 : vector<8x128xf32>
    %cst_25 = arith.constant 0.000000e+00 : f32
    %536 = vector.broadcast %cst_25 : f32 to vector<8x128xf32>
    %537 = arith.maximumf %535, %536 : vector<8x128xf32>
    %c275 = arith.constant 275 : index
    %538 = memref.load %arg1[%c275] : memref<323xf32, #tpu.memory_space<smem>>
    %539 = vector.broadcast %538 : f32 to vector<8x128xf32>
    %c128 = arith.constant 128 : index
    %540 = memref.load %arg1[%c128] : memref<323xf32, #tpu.memory_space<smem>>
    %541 = vector.broadcast %540 : f32 to vector<8x128xf32>
    %542 = arith.mulf %541, %33 : vector<8x128xf32>
    %543 = arith.addf %539, %542 : vector<8x128xf32>
    %c129 = arith.constant 129 : index
    %544 = memref.load %arg1[%c129] : memref<323xf32, #tpu.memory_space<smem>>
    %545 = vector.broadcast %544 : f32 to vector<8x128xf32>
    %546 = arith.mulf %545, %53 : vector<8x128xf32>
    %547 = arith.addf %543, %546 : vector<8x128xf32>
    %c130 = arith.constant 130 : index
    %548 = memref.load %arg1[%c130] : memref<323xf32, #tpu.memory_space<smem>>
    %549 = vector.broadcast %548 : f32 to vector<8x128xf32>
    %550 = arith.mulf %549, %73 : vector<8x128xf32>
    %551 = arith.addf %547, %550 : vector<8x128xf32>
    %c131 = arith.constant 131 : index
    %552 = memref.load %arg1[%c131] : memref<323xf32, #tpu.memory_space<smem>>
    %553 = vector.broadcast %552 : f32 to vector<8x128xf32>
    %554 = arith.mulf %553, %93 : vector<8x128xf32>
    %555 = arith.addf %551, %554 : vector<8x128xf32>
    %c132 = arith.constant 132 : index
    %556 = memref.load %arg1[%c132] : memref<323xf32, #tpu.memory_space<smem>>
    %557 = vector.broadcast %556 : f32 to vector<8x128xf32>
    %558 = arith.mulf %557, %113 : vector<8x128xf32>
    %559 = arith.addf %555, %558 : vector<8x128xf32>
    %c133 = arith.constant 133 : index
    %560 = memref.load %arg1[%c133] : memref<323xf32, #tpu.memory_space<smem>>
    %561 = vector.broadcast %560 : f32 to vector<8x128xf32>
    %562 = arith.mulf %561, %133 : vector<8x128xf32>
    %563 = arith.addf %559, %562 : vector<8x128xf32>
    %c134 = arith.constant 134 : index
    %564 = memref.load %arg1[%c134] : memref<323xf32, #tpu.memory_space<smem>>
    %565 = vector.broadcast %564 : f32 to vector<8x128xf32>
    %566 = arith.mulf %565, %153 : vector<8x128xf32>
    %567 = arith.addf %563, %566 : vector<8x128xf32>
    %c135 = arith.constant 135 : index
    %568 = memref.load %arg1[%c135] : memref<323xf32, #tpu.memory_space<smem>>
    %569 = vector.broadcast %568 : f32 to vector<8x128xf32>
    %570 = arith.mulf %569, %173 : vector<8x128xf32>
    %571 = arith.addf %567, %570 : vector<8x128xf32>
    %c136 = arith.constant 136 : index
    %572 = memref.load %arg1[%c136] : memref<323xf32, #tpu.memory_space<smem>>
    %573 = vector.broadcast %572 : f32 to vector<8x128xf32>
    %574 = arith.mulf %573, %193 : vector<8x128xf32>
    %575 = arith.addf %571, %574 : vector<8x128xf32>
    %c137 = arith.constant 137 : index
    %576 = memref.load %arg1[%c137] : memref<323xf32, #tpu.memory_space<smem>>
    %577 = vector.broadcast %576 : f32 to vector<8x128xf32>
    %578 = arith.mulf %577, %213 : vector<8x128xf32>
    %579 = arith.addf %575, %578 : vector<8x128xf32>
    %c138 = arith.constant 138 : index
    %580 = memref.load %arg1[%c138] : memref<323xf32, #tpu.memory_space<smem>>
    %581 = vector.broadcast %580 : f32 to vector<8x128xf32>
    %582 = arith.mulf %581, %233 : vector<8x128xf32>
    %583 = arith.addf %579, %582 : vector<8x128xf32>
    %c139 = arith.constant 139 : index
    %584 = memref.load %arg1[%c139] : memref<323xf32, #tpu.memory_space<smem>>
    %585 = vector.broadcast %584 : f32 to vector<8x128xf32>
    %586 = arith.mulf %585, %253 : vector<8x128xf32>
    %587 = arith.addf %583, %586 : vector<8x128xf32>
    %c140 = arith.constant 140 : index
    %588 = memref.load %arg1[%c140] : memref<323xf32, #tpu.memory_space<smem>>
    %589 = vector.broadcast %588 : f32 to vector<8x128xf32>
    %590 = arith.mulf %589, %273 : vector<8x128xf32>
    %591 = arith.addf %587, %590 : vector<8x128xf32>
    %c141 = arith.constant 141 : index
    %592 = memref.load %arg1[%c141] : memref<323xf32, #tpu.memory_space<smem>>
    %593 = vector.broadcast %592 : f32 to vector<8x128xf32>
    %594 = arith.mulf %593, %293 : vector<8x128xf32>
    %595 = arith.addf %591, %594 : vector<8x128xf32>
    %c142 = arith.constant 142 : index
    %596 = memref.load %arg1[%c142] : memref<323xf32, #tpu.memory_space<smem>>
    %597 = vector.broadcast %596 : f32 to vector<8x128xf32>
    %598 = arith.mulf %597, %313 : vector<8x128xf32>
    %599 = arith.addf %595, %598 : vector<8x128xf32>
    %c143 = arith.constant 143 : index
    %600 = memref.load %arg1[%c143] : memref<323xf32, #tpu.memory_space<smem>>
    %601 = vector.broadcast %600 : f32 to vector<8x128xf32>
    %602 = arith.mulf %601, %333 : vector<8x128xf32>
    %603 = arith.addf %599, %602 : vector<8x128xf32>
    %cst_26 = arith.constant 0.000000e+00 : f32
    %604 = vector.broadcast %cst_26 : f32 to vector<8x128xf32>
    %605 = arith.maximumf %603, %604 : vector<8x128xf32>
    %c276 = arith.constant 276 : index
    %606 = memref.load %arg1[%c276] : memref<323xf32, #tpu.memory_space<smem>>
    %607 = vector.broadcast %606 : f32 to vector<8x128xf32>
    %c144 = arith.constant 144 : index
    %608 = memref.load %arg1[%c144] : memref<323xf32, #tpu.memory_space<smem>>
    %609 = vector.broadcast %608 : f32 to vector<8x128xf32>
    %610 = arith.mulf %609, %33 : vector<8x128xf32>
    %611 = arith.addf %607, %610 : vector<8x128xf32>
    %c145 = arith.constant 145 : index
    %612 = memref.load %arg1[%c145] : memref<323xf32, #tpu.memory_space<smem>>
    %613 = vector.broadcast %612 : f32 to vector<8x128xf32>
    %614 = arith.mulf %613, %53 : vector<8x128xf32>
    %615 = arith.addf %611, %614 : vector<8x128xf32>
    %c146 = arith.constant 146 : index
    %616 = memref.load %arg1[%c146] : memref<323xf32, #tpu.memory_space<smem>>
    %617 = vector.broadcast %616 : f32 to vector<8x128xf32>
    %618 = arith.mulf %617, %73 : vector<8x128xf32>
    %619 = arith.addf %615, %618 : vector<8x128xf32>
    %c147 = arith.constant 147 : index
    %620 = memref.load %arg1[%c147] : memref<323xf32, #tpu.memory_space<smem>>
    %621 = vector.broadcast %620 : f32 to vector<8x128xf32>
    %622 = arith.mulf %621, %93 : vector<8x128xf32>
    %623 = arith.addf %619, %622 : vector<8x128xf32>
    %c148 = arith.constant 148 : index
    %624 = memref.load %arg1[%c148] : memref<323xf32, #tpu.memory_space<smem>>
    %625 = vector.broadcast %624 : f32 to vector<8x128xf32>
    %626 = arith.mulf %625, %113 : vector<8x128xf32>
    %627 = arith.addf %623, %626 : vector<8x128xf32>
    %c149 = arith.constant 149 : index
    %628 = memref.load %arg1[%c149] : memref<323xf32, #tpu.memory_space<smem>>
    %629 = vector.broadcast %628 : f32 to vector<8x128xf32>
    %630 = arith.mulf %629, %133 : vector<8x128xf32>
    %631 = arith.addf %627, %630 : vector<8x128xf32>
    %c150 = arith.constant 150 : index
    %632 = memref.load %arg1[%c150] : memref<323xf32, #tpu.memory_space<smem>>
    %633 = vector.broadcast %632 : f32 to vector<8x128xf32>
    %634 = arith.mulf %633, %153 : vector<8x128xf32>
    %635 = arith.addf %631, %634 : vector<8x128xf32>
    %c151 = arith.constant 151 : index
    %636 = memref.load %arg1[%c151] : memref<323xf32, #tpu.memory_space<smem>>
    %637 = vector.broadcast %636 : f32 to vector<8x128xf32>
    %638 = arith.mulf %637, %173 : vector<8x128xf32>
    %639 = arith.addf %635, %638 : vector<8x128xf32>
    %c152 = arith.constant 152 : index
    %640 = memref.load %arg1[%c152] : memref<323xf32, #tpu.memory_space<smem>>
    %641 = vector.broadcast %640 : f32 to vector<8x128xf32>
    %642 = arith.mulf %641, %193 : vector<8x128xf32>
    %643 = arith.addf %639, %642 : vector<8x128xf32>
    %c153 = arith.constant 153 : index
    %644 = memref.load %arg1[%c153] : memref<323xf32, #tpu.memory_space<smem>>
    %645 = vector.broadcast %644 : f32 to vector<8x128xf32>
    %646 = arith.mulf %645, %213 : vector<8x128xf32>
    %647 = arith.addf %643, %646 : vector<8x128xf32>
    %c154 = arith.constant 154 : index
    %648 = memref.load %arg1[%c154] : memref<323xf32, #tpu.memory_space<smem>>
    %649 = vector.broadcast %648 : f32 to vector<8x128xf32>
    %650 = arith.mulf %649, %233 : vector<8x128xf32>
    %651 = arith.addf %647, %650 : vector<8x128xf32>
    %c155 = arith.constant 155 : index
    %652 = memref.load %arg1[%c155] : memref<323xf32, #tpu.memory_space<smem>>
    %653 = vector.broadcast %652 : f32 to vector<8x128xf32>
    %654 = arith.mulf %653, %253 : vector<8x128xf32>
    %655 = arith.addf %651, %654 : vector<8x128xf32>
    %c156 = arith.constant 156 : index
    %656 = memref.load %arg1[%c156] : memref<323xf32, #tpu.memory_space<smem>>
    %657 = vector.broadcast %656 : f32 to vector<8x128xf32>
    %658 = arith.mulf %657, %273 : vector<8x128xf32>
    %659 = arith.addf %655, %658 : vector<8x128xf32>
    %c157 = arith.constant 157 : index
    %660 = memref.load %arg1[%c157] : memref<323xf32, #tpu.memory_space<smem>>
    %661 = vector.broadcast %660 : f32 to vector<8x128xf32>
    %662 = arith.mulf %661, %293 : vector<8x128xf32>
    %663 = arith.addf %659, %662 : vector<8x128xf32>
    %c158 = arith.constant 158 : index
    %664 = memref.load %arg1[%c158] : memref<323xf32, #tpu.memory_space<smem>>
    %665 = vector.broadcast %664 : f32 to vector<8x128xf32>
    %666 = arith.mulf %665, %313 : vector<8x128xf32>
    %667 = arith.addf %663, %666 : vector<8x128xf32>
    %c159 = arith.constant 159 : index
    %668 = memref.load %arg1[%c159] : memref<323xf32, #tpu.memory_space<smem>>
    %669 = vector.broadcast %668 : f32 to vector<8x128xf32>
    %670 = arith.mulf %669, %333 : vector<8x128xf32>
    %671 = arith.addf %667, %670 : vector<8x128xf32>
    %cst_27 = arith.constant 0.000000e+00 : f32
    %672 = vector.broadcast %cst_27 : f32 to vector<8x128xf32>
    %673 = arith.maximumf %671, %672 : vector<8x128xf32>
    %c277 = arith.constant 277 : index
    %674 = memref.load %arg1[%c277] : memref<323xf32, #tpu.memory_space<smem>>
    %675 = vector.broadcast %674 : f32 to vector<8x128xf32>
    %c160 = arith.constant 160 : index
    %676 = memref.load %arg1[%c160] : memref<323xf32, #tpu.memory_space<smem>>
    %677 = vector.broadcast %676 : f32 to vector<8x128xf32>
    %678 = arith.mulf %677, %33 : vector<8x128xf32>
    %679 = arith.addf %675, %678 : vector<8x128xf32>
    %c161 = arith.constant 161 : index
    %680 = memref.load %arg1[%c161] : memref<323xf32, #tpu.memory_space<smem>>
    %681 = vector.broadcast %680 : f32 to vector<8x128xf32>
    %682 = arith.mulf %681, %53 : vector<8x128xf32>
    %683 = arith.addf %679, %682 : vector<8x128xf32>
    %c162 = arith.constant 162 : index
    %684 = memref.load %arg1[%c162] : memref<323xf32, #tpu.memory_space<smem>>
    %685 = vector.broadcast %684 : f32 to vector<8x128xf32>
    %686 = arith.mulf %685, %73 : vector<8x128xf32>
    %687 = arith.addf %683, %686 : vector<8x128xf32>
    %c163 = arith.constant 163 : index
    %688 = memref.load %arg1[%c163] : memref<323xf32, #tpu.memory_space<smem>>
    %689 = vector.broadcast %688 : f32 to vector<8x128xf32>
    %690 = arith.mulf %689, %93 : vector<8x128xf32>
    %691 = arith.addf %687, %690 : vector<8x128xf32>
    %c164 = arith.constant 164 : index
    %692 = memref.load %arg1[%c164] : memref<323xf32, #tpu.memory_space<smem>>
    %693 = vector.broadcast %692 : f32 to vector<8x128xf32>
    %694 = arith.mulf %693, %113 : vector<8x128xf32>
    %695 = arith.addf %691, %694 : vector<8x128xf32>
    %c165 = arith.constant 165 : index
    %696 = memref.load %arg1[%c165] : memref<323xf32, #tpu.memory_space<smem>>
    %697 = vector.broadcast %696 : f32 to vector<8x128xf32>
    %698 = arith.mulf %697, %133 : vector<8x128xf32>
    %699 = arith.addf %695, %698 : vector<8x128xf32>
    %c166 = arith.constant 166 : index
    %700 = memref.load %arg1[%c166] : memref<323xf32, #tpu.memory_space<smem>>
    %701 = vector.broadcast %700 : f32 to vector<8x128xf32>
    %702 = arith.mulf %701, %153 : vector<8x128xf32>
    %703 = arith.addf %699, %702 : vector<8x128xf32>
    %c167 = arith.constant 167 : index
    %704 = memref.load %arg1[%c167] : memref<323xf32, #tpu.memory_space<smem>>
    %705 = vector.broadcast %704 : f32 to vector<8x128xf32>
    %706 = arith.mulf %705, %173 : vector<8x128xf32>
    %707 = arith.addf %703, %706 : vector<8x128xf32>
    %c168 = arith.constant 168 : index
    %708 = memref.load %arg1[%c168] : memref<323xf32, #tpu.memory_space<smem>>
    %709 = vector.broadcast %708 : f32 to vector<8x128xf32>
    %710 = arith.mulf %709, %193 : vector<8x128xf32>
    %711 = arith.addf %707, %710 : vector<8x128xf32>
    %c169 = arith.constant 169 : index
    %712 = memref.load %arg1[%c169] : memref<323xf32, #tpu.memory_space<smem>>
    %713 = vector.broadcast %712 : f32 to vector<8x128xf32>
    %714 = arith.mulf %713, %213 : vector<8x128xf32>
    %715 = arith.addf %711, %714 : vector<8x128xf32>
    %c170 = arith.constant 170 : index
    %716 = memref.load %arg1[%c170] : memref<323xf32, #tpu.memory_space<smem>>
    %717 = vector.broadcast %716 : f32 to vector<8x128xf32>
    %718 = arith.mulf %717, %233 : vector<8x128xf32>
    %719 = arith.addf %715, %718 : vector<8x128xf32>
    %c171 = arith.constant 171 : index
    %720 = memref.load %arg1[%c171] : memref<323xf32, #tpu.memory_space<smem>>
    %721 = vector.broadcast %720 : f32 to vector<8x128xf32>
    %722 = arith.mulf %721, %253 : vector<8x128xf32>
    %723 = arith.addf %719, %722 : vector<8x128xf32>
    %c172 = arith.constant 172 : index
    %724 = memref.load %arg1[%c172] : memref<323xf32, #tpu.memory_space<smem>>
    %725 = vector.broadcast %724 : f32 to vector<8x128xf32>
    %726 = arith.mulf %725, %273 : vector<8x128xf32>
    %727 = arith.addf %723, %726 : vector<8x128xf32>
    %c173 = arith.constant 173 : index
    %728 = memref.load %arg1[%c173] : memref<323xf32, #tpu.memory_space<smem>>
    %729 = vector.broadcast %728 : f32 to vector<8x128xf32>
    %730 = arith.mulf %729, %293 : vector<8x128xf32>
    %731 = arith.addf %727, %730 : vector<8x128xf32>
    %c174 = arith.constant 174 : index
    %732 = memref.load %arg1[%c174] : memref<323xf32, #tpu.memory_space<smem>>
    %733 = vector.broadcast %732 : f32 to vector<8x128xf32>
    %734 = arith.mulf %733, %313 : vector<8x128xf32>
    %735 = arith.addf %731, %734 : vector<8x128xf32>
    %c175 = arith.constant 175 : index
    %736 = memref.load %arg1[%c175] : memref<323xf32, #tpu.memory_space<smem>>
    %737 = vector.broadcast %736 : f32 to vector<8x128xf32>
    %738 = arith.mulf %737, %333 : vector<8x128xf32>
    %739 = arith.addf %735, %738 : vector<8x128xf32>
    %cst_28 = arith.constant 0.000000e+00 : f32
    %740 = vector.broadcast %cst_28 : f32 to vector<8x128xf32>
    %741 = arith.maximumf %739, %740 : vector<8x128xf32>
    %c278 = arith.constant 278 : index
    %742 = memref.load %arg1[%c278] : memref<323xf32, #tpu.memory_space<smem>>
    %743 = vector.broadcast %742 : f32 to vector<8x128xf32>
    %c176 = arith.constant 176 : index
    %744 = memref.load %arg1[%c176] : memref<323xf32, #tpu.memory_space<smem>>
    %745 = vector.broadcast %744 : f32 to vector<8x128xf32>
    %746 = arith.mulf %745, %33 : vector<8x128xf32>
    %747 = arith.addf %743, %746 : vector<8x128xf32>
    %c177 = arith.constant 177 : index
    %748 = memref.load %arg1[%c177] : memref<323xf32, #tpu.memory_space<smem>>
    %749 = vector.broadcast %748 : f32 to vector<8x128xf32>
    %750 = arith.mulf %749, %53 : vector<8x128xf32>
    %751 = arith.addf %747, %750 : vector<8x128xf32>
    %c178 = arith.constant 178 : index
    %752 = memref.load %arg1[%c178] : memref<323xf32, #tpu.memory_space<smem>>
    %753 = vector.broadcast %752 : f32 to vector<8x128xf32>
    %754 = arith.mulf %753, %73 : vector<8x128xf32>
    %755 = arith.addf %751, %754 : vector<8x128xf32>
    %c179 = arith.constant 179 : index
    %756 = memref.load %arg1[%c179] : memref<323xf32, #tpu.memory_space<smem>>
    %757 = vector.broadcast %756 : f32 to vector<8x128xf32>
    %758 = arith.mulf %757, %93 : vector<8x128xf32>
    %759 = arith.addf %755, %758 : vector<8x128xf32>
    %c180 = arith.constant 180 : index
    %760 = memref.load %arg1[%c180] : memref<323xf32, #tpu.memory_space<smem>>
    %761 = vector.broadcast %760 : f32 to vector<8x128xf32>
    %762 = arith.mulf %761, %113 : vector<8x128xf32>
    %763 = arith.addf %759, %762 : vector<8x128xf32>
    %c181 = arith.constant 181 : index
    %764 = memref.load %arg1[%c181] : memref<323xf32, #tpu.memory_space<smem>>
    %765 = vector.broadcast %764 : f32 to vector<8x128xf32>
    %766 = arith.mulf %765, %133 : vector<8x128xf32>
    %767 = arith.addf %763, %766 : vector<8x128xf32>
    %c182 = arith.constant 182 : index
    %768 = memref.load %arg1[%c182] : memref<323xf32, #tpu.memory_space<smem>>
    %769 = vector.broadcast %768 : f32 to vector<8x128xf32>
    %770 = arith.mulf %769, %153 : vector<8x128xf32>
    %771 = arith.addf %767, %770 : vector<8x128xf32>
    %c183 = arith.constant 183 : index
    %772 = memref.load %arg1[%c183] : memref<323xf32, #tpu.memory_space<smem>>
    %773 = vector.broadcast %772 : f32 to vector<8x128xf32>
    %774 = arith.mulf %773, %173 : vector<8x128xf32>
    %775 = arith.addf %771, %774 : vector<8x128xf32>
    %c184 = arith.constant 184 : index
    %776 = memref.load %arg1[%c184] : memref<323xf32, #tpu.memory_space<smem>>
    %777 = vector.broadcast %776 : f32 to vector<8x128xf32>
    %778 = arith.mulf %777, %193 : vector<8x128xf32>
    %779 = arith.addf %775, %778 : vector<8x128xf32>
    %c185 = arith.constant 185 : index
    %780 = memref.load %arg1[%c185] : memref<323xf32, #tpu.memory_space<smem>>
    %781 = vector.broadcast %780 : f32 to vector<8x128xf32>
    %782 = arith.mulf %781, %213 : vector<8x128xf32>
    %783 = arith.addf %779, %782 : vector<8x128xf32>
    %c186 = arith.constant 186 : index
    %784 = memref.load %arg1[%c186] : memref<323xf32, #tpu.memory_space<smem>>
    %785 = vector.broadcast %784 : f32 to vector<8x128xf32>
    %786 = arith.mulf %785, %233 : vector<8x128xf32>
    %787 = arith.addf %783, %786 : vector<8x128xf32>
    %c187 = arith.constant 187 : index
    %788 = memref.load %arg1[%c187] : memref<323xf32, #tpu.memory_space<smem>>
    %789 = vector.broadcast %788 : f32 to vector<8x128xf32>
    %790 = arith.mulf %789, %253 : vector<8x128xf32>
    %791 = arith.addf %787, %790 : vector<8x128xf32>
    %c188 = arith.constant 188 : index
    %792 = memref.load %arg1[%c188] : memref<323xf32, #tpu.memory_space<smem>>
    %793 = vector.broadcast %792 : f32 to vector<8x128xf32>
    %794 = arith.mulf %793, %273 : vector<8x128xf32>
    %795 = arith.addf %791, %794 : vector<8x128xf32>
    %c189 = arith.constant 189 : index
    %796 = memref.load %arg1[%c189] : memref<323xf32, #tpu.memory_space<smem>>
    %797 = vector.broadcast %796 : f32 to vector<8x128xf32>
    %798 = arith.mulf %797, %293 : vector<8x128xf32>
    %799 = arith.addf %795, %798 : vector<8x128xf32>
    %c190 = arith.constant 190 : index
    %800 = memref.load %arg1[%c190] : memref<323xf32, #tpu.memory_space<smem>>
    %801 = vector.broadcast %800 : f32 to vector<8x128xf32>
    %802 = arith.mulf %801, %313 : vector<8x128xf32>
    %803 = arith.addf %799, %802 : vector<8x128xf32>
    %c191 = arith.constant 191 : index
    %804 = memref.load %arg1[%c191] : memref<323xf32, #tpu.memory_space<smem>>
    %805 = vector.broadcast %804 : f32 to vector<8x128xf32>
    %806 = arith.mulf %805, %333 : vector<8x128xf32>
    %807 = arith.addf %803, %806 : vector<8x128xf32>
    %cst_29 = arith.constant 0.000000e+00 : f32
    %808 = vector.broadcast %cst_29 : f32 to vector<8x128xf32>
    %809 = arith.maximumf %807, %808 : vector<8x128xf32>
    %c279 = arith.constant 279 : index
    %810 = memref.load %arg1[%c279] : memref<323xf32, #tpu.memory_space<smem>>
    %811 = vector.broadcast %810 : f32 to vector<8x128xf32>
    %c192 = arith.constant 192 : index
    %812 = memref.load %arg1[%c192] : memref<323xf32, #tpu.memory_space<smem>>
    %813 = vector.broadcast %812 : f32 to vector<8x128xf32>
    %814 = arith.mulf %813, %33 : vector<8x128xf32>
    %815 = arith.addf %811, %814 : vector<8x128xf32>
    %c193 = arith.constant 193 : index
    %816 = memref.load %arg1[%c193] : memref<323xf32, #tpu.memory_space<smem>>
    %817 = vector.broadcast %816 : f32 to vector<8x128xf32>
    %818 = arith.mulf %817, %53 : vector<8x128xf32>
    %819 = arith.addf %815, %818 : vector<8x128xf32>
    %c194 = arith.constant 194 : index
    %820 = memref.load %arg1[%c194] : memref<323xf32, #tpu.memory_space<smem>>
    %821 = vector.broadcast %820 : f32 to vector<8x128xf32>
    %822 = arith.mulf %821, %73 : vector<8x128xf32>
    %823 = arith.addf %819, %822 : vector<8x128xf32>
    %c195 = arith.constant 195 : index
    %824 = memref.load %arg1[%c195] : memref<323xf32, #tpu.memory_space<smem>>
    %825 = vector.broadcast %824 : f32 to vector<8x128xf32>
    %826 = arith.mulf %825, %93 : vector<8x128xf32>
    %827 = arith.addf %823, %826 : vector<8x128xf32>
    %c196 = arith.constant 196 : index
    %828 = memref.load %arg1[%c196] : memref<323xf32, #tpu.memory_space<smem>>
    %829 = vector.broadcast %828 : f32 to vector<8x128xf32>
    %830 = arith.mulf %829, %113 : vector<8x128xf32>
    %831 = arith.addf %827, %830 : vector<8x128xf32>
    %c197 = arith.constant 197 : index
    %832 = memref.load %arg1[%c197] : memref<323xf32, #tpu.memory_space<smem>>
    %833 = vector.broadcast %832 : f32 to vector<8x128xf32>
    %834 = arith.mulf %833, %133 : vector<8x128xf32>
    %835 = arith.addf %831, %834 : vector<8x128xf32>
    %c198 = arith.constant 198 : index
    %836 = memref.load %arg1[%c198] : memref<323xf32, #tpu.memory_space<smem>>
    %837 = vector.broadcast %836 : f32 to vector<8x128xf32>
    %838 = arith.mulf %837, %153 : vector<8x128xf32>
    %839 = arith.addf %835, %838 : vector<8x128xf32>
    %c199 = arith.constant 199 : index
    %840 = memref.load %arg1[%c199] : memref<323xf32, #tpu.memory_space<smem>>
    %841 = vector.broadcast %840 : f32 to vector<8x128xf32>
    %842 = arith.mulf %841, %173 : vector<8x128xf32>
    %843 = arith.addf %839, %842 : vector<8x128xf32>
    %c200 = arith.constant 200 : index
    %844 = memref.load %arg1[%c200] : memref<323xf32, #tpu.memory_space<smem>>
    %845 = vector.broadcast %844 : f32 to vector<8x128xf32>
    %846 = arith.mulf %845, %193 : vector<8x128xf32>
    %847 = arith.addf %843, %846 : vector<8x128xf32>
    %c201 = arith.constant 201 : index
    %848 = memref.load %arg1[%c201] : memref<323xf32, #tpu.memory_space<smem>>
    %849 = vector.broadcast %848 : f32 to vector<8x128xf32>
    %850 = arith.mulf %849, %213 : vector<8x128xf32>
    %851 = arith.addf %847, %850 : vector<8x128xf32>
    %c202 = arith.constant 202 : index
    %852 = memref.load %arg1[%c202] : memref<323xf32, #tpu.memory_space<smem>>
    %853 = vector.broadcast %852 : f32 to vector<8x128xf32>
    %854 = arith.mulf %853, %233 : vector<8x128xf32>
    %855 = arith.addf %851, %854 : vector<8x128xf32>
    %c203 = arith.constant 203 : index
    %856 = memref.load %arg1[%c203] : memref<323xf32, #tpu.memory_space<smem>>
    %857 = vector.broadcast %856 : f32 to vector<8x128xf32>
    %858 = arith.mulf %857, %253 : vector<8x128xf32>
    %859 = arith.addf %855, %858 : vector<8x128xf32>
    %c204 = arith.constant 204 : index
    %860 = memref.load %arg1[%c204] : memref<323xf32, #tpu.memory_space<smem>>
    %861 = vector.broadcast %860 : f32 to vector<8x128xf32>
    %862 = arith.mulf %861, %273 : vector<8x128xf32>
    %863 = arith.addf %859, %862 : vector<8x128xf32>
    %c205 = arith.constant 205 : index
    %864 = memref.load %arg1[%c205] : memref<323xf32, #tpu.memory_space<smem>>
    %865 = vector.broadcast %864 : f32 to vector<8x128xf32>
    %866 = arith.mulf %865, %293 : vector<8x128xf32>
    %867 = arith.addf %863, %866 : vector<8x128xf32>
    %c206 = arith.constant 206 : index
    %868 = memref.load %arg1[%c206] : memref<323xf32, #tpu.memory_space<smem>>
    %869 = vector.broadcast %868 : f32 to vector<8x128xf32>
    %870 = arith.mulf %869, %313 : vector<8x128xf32>
    %871 = arith.addf %867, %870 : vector<8x128xf32>
    %c207 = arith.constant 207 : index
    %872 = memref.load %arg1[%c207] : memref<323xf32, #tpu.memory_space<smem>>
    %873 = vector.broadcast %872 : f32 to vector<8x128xf32>
    %874 = arith.mulf %873, %333 : vector<8x128xf32>
    %875 = arith.addf %871, %874 : vector<8x128xf32>
    %cst_30 = arith.constant 0.000000e+00 : f32
    %876 = vector.broadcast %cst_30 : f32 to vector<8x128xf32>
    %877 = arith.maximumf %875, %876 : vector<8x128xf32>
    %c280 = arith.constant 280 : index
    %878 = memref.load %arg1[%c280] : memref<323xf32, #tpu.memory_space<smem>>
    %879 = vector.broadcast %878 : f32 to vector<8x128xf32>
    %c208 = arith.constant 208 : index
    %880 = memref.load %arg1[%c208] : memref<323xf32, #tpu.memory_space<smem>>
    %881 = vector.broadcast %880 : f32 to vector<8x128xf32>
    %882 = arith.mulf %881, %33 : vector<8x128xf32>
    %883 = arith.addf %879, %882 : vector<8x128xf32>
    %c209 = arith.constant 209 : index
    %884 = memref.load %arg1[%c209] : memref<323xf32, #tpu.memory_space<smem>>
    %885 = vector.broadcast %884 : f32 to vector<8x128xf32>
    %886 = arith.mulf %885, %53 : vector<8x128xf32>
    %887 = arith.addf %883, %886 : vector<8x128xf32>
    %c210 = arith.constant 210 : index
    %888 = memref.load %arg1[%c210] : memref<323xf32, #tpu.memory_space<smem>>
    %889 = vector.broadcast %888 : f32 to vector<8x128xf32>
    %890 = arith.mulf %889, %73 : vector<8x128xf32>
    %891 = arith.addf %887, %890 : vector<8x128xf32>
    %c211 = arith.constant 211 : index
    %892 = memref.load %arg1[%c211] : memref<323xf32, #tpu.memory_space<smem>>
    %893 = vector.broadcast %892 : f32 to vector<8x128xf32>
    %894 = arith.mulf %893, %93 : vector<8x128xf32>
    %895 = arith.addf %891, %894 : vector<8x128xf32>
    %c212 = arith.constant 212 : index
    %896 = memref.load %arg1[%c212] : memref<323xf32, #tpu.memory_space<smem>>
    %897 = vector.broadcast %896 : f32 to vector<8x128xf32>
    %898 = arith.mulf %897, %113 : vector<8x128xf32>
    %899 = arith.addf %895, %898 : vector<8x128xf32>
    %c213 = arith.constant 213 : index
    %900 = memref.load %arg1[%c213] : memref<323xf32, #tpu.memory_space<smem>>
    %901 = vector.broadcast %900 : f32 to vector<8x128xf32>
    %902 = arith.mulf %901, %133 : vector<8x128xf32>
    %903 = arith.addf %899, %902 : vector<8x128xf32>
    %c214 = arith.constant 214 : index
    %904 = memref.load %arg1[%c214] : memref<323xf32, #tpu.memory_space<smem>>
    %905 = vector.broadcast %904 : f32 to vector<8x128xf32>
    %906 = arith.mulf %905, %153 : vector<8x128xf32>
    %907 = arith.addf %903, %906 : vector<8x128xf32>
    %c215 = arith.constant 215 : index
    %908 = memref.load %arg1[%c215] : memref<323xf32, #tpu.memory_space<smem>>
    %909 = vector.broadcast %908 : f32 to vector<8x128xf32>
    %910 = arith.mulf %909, %173 : vector<8x128xf32>
    %911 = arith.addf %907, %910 : vector<8x128xf32>
    %c216 = arith.constant 216 : index
    %912 = memref.load %arg1[%c216] : memref<323xf32, #tpu.memory_space<smem>>
    %913 = vector.broadcast %912 : f32 to vector<8x128xf32>
    %914 = arith.mulf %913, %193 : vector<8x128xf32>
    %915 = arith.addf %911, %914 : vector<8x128xf32>
    %c217 = arith.constant 217 : index
    %916 = memref.load %arg1[%c217] : memref<323xf32, #tpu.memory_space<smem>>
    %917 = vector.broadcast %916 : f32 to vector<8x128xf32>
    %918 = arith.mulf %917, %213 : vector<8x128xf32>
    %919 = arith.addf %915, %918 : vector<8x128xf32>
    %c218 = arith.constant 218 : index
    %920 = memref.load %arg1[%c218] : memref<323xf32, #tpu.memory_space<smem>>
    %921 = vector.broadcast %920 : f32 to vector<8x128xf32>
    %922 = arith.mulf %921, %233 : vector<8x128xf32>
    %923 = arith.addf %919, %922 : vector<8x128xf32>
    %c219 = arith.constant 219 : index
    %924 = memref.load %arg1[%c219] : memref<323xf32, #tpu.memory_space<smem>>
    %925 = vector.broadcast %924 : f32 to vector<8x128xf32>
    %926 = arith.mulf %925, %253 : vector<8x128xf32>
    %927 = arith.addf %923, %926 : vector<8x128xf32>
    %c220 = arith.constant 220 : index
    %928 = memref.load %arg1[%c220] : memref<323xf32, #tpu.memory_space<smem>>
    %929 = vector.broadcast %928 : f32 to vector<8x128xf32>
    %930 = arith.mulf %929, %273 : vector<8x128xf32>
    %931 = arith.addf %927, %930 : vector<8x128xf32>
    %c221 = arith.constant 221 : index
    %932 = memref.load %arg1[%c221] : memref<323xf32, #tpu.memory_space<smem>>
    %933 = vector.broadcast %932 : f32 to vector<8x128xf32>
    %934 = arith.mulf %933, %293 : vector<8x128xf32>
    %935 = arith.addf %931, %934 : vector<8x128xf32>
    %c222 = arith.constant 222 : index
    %936 = memref.load %arg1[%c222] : memref<323xf32, #tpu.memory_space<smem>>
    %937 = vector.broadcast %936 : f32 to vector<8x128xf32>
    %938 = arith.mulf %937, %313 : vector<8x128xf32>
    %939 = arith.addf %935, %938 : vector<8x128xf32>
    %c223 = arith.constant 223 : index
    %940 = memref.load %arg1[%c223] : memref<323xf32, #tpu.memory_space<smem>>
    %941 = vector.broadcast %940 : f32 to vector<8x128xf32>
    %942 = arith.mulf %941, %333 : vector<8x128xf32>
    %943 = arith.addf %939, %942 : vector<8x128xf32>
    %cst_31 = arith.constant 0.000000e+00 : f32
    %944 = vector.broadcast %cst_31 : f32 to vector<8x128xf32>
    %945 = arith.maximumf %943, %944 : vector<8x128xf32>
    %c281 = arith.constant 281 : index
    %946 = memref.load %arg1[%c281] : memref<323xf32, #tpu.memory_space<smem>>
    %947 = vector.broadcast %946 : f32 to vector<8x128xf32>
    %c224 = arith.constant 224 : index
    %948 = memref.load %arg1[%c224] : memref<323xf32, #tpu.memory_space<smem>>
    %949 = vector.broadcast %948 : f32 to vector<8x128xf32>
    %950 = arith.mulf %949, %33 : vector<8x128xf32>
    %951 = arith.addf %947, %950 : vector<8x128xf32>
    %c225 = arith.constant 225 : index
    %952 = memref.load %arg1[%c225] : memref<323xf32, #tpu.memory_space<smem>>
    %953 = vector.broadcast %952 : f32 to vector<8x128xf32>
    %954 = arith.mulf %953, %53 : vector<8x128xf32>
    %955 = arith.addf %951, %954 : vector<8x128xf32>
    %c226 = arith.constant 226 : index
    %956 = memref.load %arg1[%c226] : memref<323xf32, #tpu.memory_space<smem>>
    %957 = vector.broadcast %956 : f32 to vector<8x128xf32>
    %958 = arith.mulf %957, %73 : vector<8x128xf32>
    %959 = arith.addf %955, %958 : vector<8x128xf32>
    %c227 = arith.constant 227 : index
    %960 = memref.load %arg1[%c227] : memref<323xf32, #tpu.memory_space<smem>>
    %961 = vector.broadcast %960 : f32 to vector<8x128xf32>
    %962 = arith.mulf %961, %93 : vector<8x128xf32>
    %963 = arith.addf %959, %962 : vector<8x128xf32>
    %c228 = arith.constant 228 : index
    %964 = memref.load %arg1[%c228] : memref<323xf32, #tpu.memory_space<smem>>
    %965 = vector.broadcast %964 : f32 to vector<8x128xf32>
    %966 = arith.mulf %965, %113 : vector<8x128xf32>
    %967 = arith.addf %963, %966 : vector<8x128xf32>
    %c229 = arith.constant 229 : index
    %968 = memref.load %arg1[%c229] : memref<323xf32, #tpu.memory_space<smem>>
    %969 = vector.broadcast %968 : f32 to vector<8x128xf32>
    %970 = arith.mulf %969, %133 : vector<8x128xf32>
    %971 = arith.addf %967, %970 : vector<8x128xf32>
    %c230 = arith.constant 230 : index
    %972 = memref.load %arg1[%c230] : memref<323xf32, #tpu.memory_space<smem>>
    %973 = vector.broadcast %972 : f32 to vector<8x128xf32>
    %974 = arith.mulf %973, %153 : vector<8x128xf32>
    %975 = arith.addf %971, %974 : vector<8x128xf32>
    %c231 = arith.constant 231 : index
    %976 = memref.load %arg1[%c231] : memref<323xf32, #tpu.memory_space<smem>>
    %977 = vector.broadcast %976 : f32 to vector<8x128xf32>
    %978 = arith.mulf %977, %173 : vector<8x128xf32>
    %979 = arith.addf %975, %978 : vector<8x128xf32>
    %c232 = arith.constant 232 : index
    %980 = memref.load %arg1[%c232] : memref<323xf32, #tpu.memory_space<smem>>
    %981 = vector.broadcast %980 : f32 to vector<8x128xf32>
    %982 = arith.mulf %981, %193 : vector<8x128xf32>
    %983 = arith.addf %979, %982 : vector<8x128xf32>
    %c233 = arith.constant 233 : index
    %984 = memref.load %arg1[%c233] : memref<323xf32, #tpu.memory_space<smem>>
    %985 = vector.broadcast %984 : f32 to vector<8x128xf32>
    %986 = arith.mulf %985, %213 : vector<8x128xf32>
    %987 = arith.addf %983, %986 : vector<8x128xf32>
    %c234 = arith.constant 234 : index
    %988 = memref.load %arg1[%c234] : memref<323xf32, #tpu.memory_space<smem>>
    %989 = vector.broadcast %988 : f32 to vector<8x128xf32>
    %990 = arith.mulf %989, %233 : vector<8x128xf32>
    %991 = arith.addf %987, %990 : vector<8x128xf32>
    %c235 = arith.constant 235 : index
    %992 = memref.load %arg1[%c235] : memref<323xf32, #tpu.memory_space<smem>>
    %993 = vector.broadcast %992 : f32 to vector<8x128xf32>
    %994 = arith.mulf %993, %253 : vector<8x128xf32>
    %995 = arith.addf %991, %994 : vector<8x128xf32>
    %c236 = arith.constant 236 : index
    %996 = memref.load %arg1[%c236] : memref<323xf32, #tpu.memory_space<smem>>
    %997 = vector.broadcast %996 : f32 to vector<8x128xf32>
    %998 = arith.mulf %997, %273 : vector<8x128xf32>
    %999 = arith.addf %995, %998 : vector<8x128xf32>
    %c237 = arith.constant 237 : index
    %1000 = memref.load %arg1[%c237] : memref<323xf32, #tpu.memory_space<smem>>
    %1001 = vector.broadcast %1000 : f32 to vector<8x128xf32>
    %1002 = arith.mulf %1001, %293 : vector<8x128xf32>
    %1003 = arith.addf %999, %1002 : vector<8x128xf32>
    %c238 = arith.constant 238 : index
    %1004 = memref.load %arg1[%c238] : memref<323xf32, #tpu.memory_space<smem>>
    %1005 = vector.broadcast %1004 : f32 to vector<8x128xf32>
    %1006 = arith.mulf %1005, %313 : vector<8x128xf32>
    %1007 = arith.addf %1003, %1006 : vector<8x128xf32>
    %c239 = arith.constant 239 : index
    %1008 = memref.load %arg1[%c239] : memref<323xf32, #tpu.memory_space<smem>>
    %1009 = vector.broadcast %1008 : f32 to vector<8x128xf32>
    %1010 = arith.mulf %1009, %333 : vector<8x128xf32>
    %1011 = arith.addf %1007, %1010 : vector<8x128xf32>
    %cst_32 = arith.constant 0.000000e+00 : f32
    %1012 = vector.broadcast %cst_32 : f32 to vector<8x128xf32>
    %1013 = arith.maximumf %1011, %1012 : vector<8x128xf32>
    %c282 = arith.constant 282 : index
    %1014 = memref.load %arg1[%c282] : memref<323xf32, #tpu.memory_space<smem>>
    %1015 = vector.broadcast %1014 : f32 to vector<8x128xf32>
    %c240 = arith.constant 240 : index
    %1016 = memref.load %arg1[%c240] : memref<323xf32, #tpu.memory_space<smem>>
    %1017 = vector.broadcast %1016 : f32 to vector<8x128xf32>
    %1018 = arith.mulf %1017, %33 : vector<8x128xf32>
    %1019 = arith.addf %1015, %1018 : vector<8x128xf32>
    %c241 = arith.constant 241 : index
    %1020 = memref.load %arg1[%c241] : memref<323xf32, #tpu.memory_space<smem>>
    %1021 = vector.broadcast %1020 : f32 to vector<8x128xf32>
    %1022 = arith.mulf %1021, %53 : vector<8x128xf32>
    %1023 = arith.addf %1019, %1022 : vector<8x128xf32>
    %c242 = arith.constant 242 : index
    %1024 = memref.load %arg1[%c242] : memref<323xf32, #tpu.memory_space<smem>>
    %1025 = vector.broadcast %1024 : f32 to vector<8x128xf32>
    %1026 = arith.mulf %1025, %73 : vector<8x128xf32>
    %1027 = arith.addf %1023, %1026 : vector<8x128xf32>
    %c243 = arith.constant 243 : index
    %1028 = memref.load %arg1[%c243] : memref<323xf32, #tpu.memory_space<smem>>
    %1029 = vector.broadcast %1028 : f32 to vector<8x128xf32>
    %1030 = arith.mulf %1029, %93 : vector<8x128xf32>
    %1031 = arith.addf %1027, %1030 : vector<8x128xf32>
    %c244 = arith.constant 244 : index
    %1032 = memref.load %arg1[%c244] : memref<323xf32, #tpu.memory_space<smem>>
    %1033 = vector.broadcast %1032 : f32 to vector<8x128xf32>
    %1034 = arith.mulf %1033, %113 : vector<8x128xf32>
    %1035 = arith.addf %1031, %1034 : vector<8x128xf32>
    %c245 = arith.constant 245 : index
    %1036 = memref.load %arg1[%c245] : memref<323xf32, #tpu.memory_space<smem>>
    %1037 = vector.broadcast %1036 : f32 to vector<8x128xf32>
    %1038 = arith.mulf %1037, %133 : vector<8x128xf32>
    %1039 = arith.addf %1035, %1038 : vector<8x128xf32>
    %c246 = arith.constant 246 : index
    %1040 = memref.load %arg1[%c246] : memref<323xf32, #tpu.memory_space<smem>>
    %1041 = vector.broadcast %1040 : f32 to vector<8x128xf32>
    %1042 = arith.mulf %1041, %153 : vector<8x128xf32>
    %1043 = arith.addf %1039, %1042 : vector<8x128xf32>
    %c247 = arith.constant 247 : index
    %1044 = memref.load %arg1[%c247] : memref<323xf32, #tpu.memory_space<smem>>
    %1045 = vector.broadcast %1044 : f32 to vector<8x128xf32>
    %1046 = arith.mulf %1045, %173 : vector<8x128xf32>
    %1047 = arith.addf %1043, %1046 : vector<8x128xf32>
    %c248 = arith.constant 248 : index
    %1048 = memref.load %arg1[%c248] : memref<323xf32, #tpu.memory_space<smem>>
    %1049 = vector.broadcast %1048 : f32 to vector<8x128xf32>
    %1050 = arith.mulf %1049, %193 : vector<8x128xf32>
    %1051 = arith.addf %1047, %1050 : vector<8x128xf32>
    %c249 = arith.constant 249 : index
    %1052 = memref.load %arg1[%c249] : memref<323xf32, #tpu.memory_space<smem>>
    %1053 = vector.broadcast %1052 : f32 to vector<8x128xf32>
    %1054 = arith.mulf %1053, %213 : vector<8x128xf32>
    %1055 = arith.addf %1051, %1054 : vector<8x128xf32>
    %c250 = arith.constant 250 : index
    %1056 = memref.load %arg1[%c250] : memref<323xf32, #tpu.memory_space<smem>>
    %1057 = vector.broadcast %1056 : f32 to vector<8x128xf32>
    %1058 = arith.mulf %1057, %233 : vector<8x128xf32>
    %1059 = arith.addf %1055, %1058 : vector<8x128xf32>
    %c251 = arith.constant 251 : index
    %1060 = memref.load %arg1[%c251] : memref<323xf32, #tpu.memory_space<smem>>
    %1061 = vector.broadcast %1060 : f32 to vector<8x128xf32>
    %1062 = arith.mulf %1061, %253 : vector<8x128xf32>
    %1063 = arith.addf %1059, %1062 : vector<8x128xf32>
    %c252 = arith.constant 252 : index
    %1064 = memref.load %arg1[%c252] : memref<323xf32, #tpu.memory_space<smem>>
    %1065 = vector.broadcast %1064 : f32 to vector<8x128xf32>
    %1066 = arith.mulf %1065, %273 : vector<8x128xf32>
    %1067 = arith.addf %1063, %1066 : vector<8x128xf32>
    %c253 = arith.constant 253 : index
    %1068 = memref.load %arg1[%c253] : memref<323xf32, #tpu.memory_space<smem>>
    %1069 = vector.broadcast %1068 : f32 to vector<8x128xf32>
    %1070 = arith.mulf %1069, %293 : vector<8x128xf32>
    %1071 = arith.addf %1067, %1070 : vector<8x128xf32>
    %c254 = arith.constant 254 : index
    %1072 = memref.load %arg1[%c254] : memref<323xf32, #tpu.memory_space<smem>>
    %1073 = vector.broadcast %1072 : f32 to vector<8x128xf32>
    %1074 = arith.mulf %1073, %313 : vector<8x128xf32>
    %1075 = arith.addf %1071, %1074 : vector<8x128xf32>
    %c255 = arith.constant 255 : index
    %1076 = memref.load %arg1[%c255] : memref<323xf32, #tpu.memory_space<smem>>
    %1077 = vector.broadcast %1076 : f32 to vector<8x128xf32>
    %1078 = arith.mulf %1077, %333 : vector<8x128xf32>
    %1079 = arith.addf %1075, %1078 : vector<8x128xf32>
    %cst_33 = arith.constant 0.000000e+00 : f32
    %1080 = vector.broadcast %cst_33 : f32 to vector<8x128xf32>
    %1081 = arith.maximumf %1079, %1080 : vector<8x128xf32>
    %c283 = arith.constant 283 : index
    %1082 = memref.load %arg1[%c283] : memref<323xf32, #tpu.memory_space<smem>>
    %1083 = vector.broadcast %1082 : f32 to vector<8x128xf32>
    %c256 = arith.constant 256 : index
    %1084 = memref.load %arg1[%c256] : memref<323xf32, #tpu.memory_space<smem>>
    %1085 = vector.broadcast %1084 : f32 to vector<8x128xf32>
    %1086 = arith.mulf %1085, %33 : vector<8x128xf32>
    %1087 = arith.addf %1083, %1086 : vector<8x128xf32>
    %c257 = arith.constant 257 : index
    %1088 = memref.load %arg1[%c257] : memref<323xf32, #tpu.memory_space<smem>>
    %1089 = vector.broadcast %1088 : f32 to vector<8x128xf32>
    %1090 = arith.mulf %1089, %53 : vector<8x128xf32>
    %1091 = arith.addf %1087, %1090 : vector<8x128xf32>
    %c258 = arith.constant 258 : index
    %1092 = memref.load %arg1[%c258] : memref<323xf32, #tpu.memory_space<smem>>
    %1093 = vector.broadcast %1092 : f32 to vector<8x128xf32>
    %1094 = arith.mulf %1093, %73 : vector<8x128xf32>
    %1095 = arith.addf %1091, %1094 : vector<8x128xf32>
    %c259 = arith.constant 259 : index
    %1096 = memref.load %arg1[%c259] : memref<323xf32, #tpu.memory_space<smem>>
    %1097 = vector.broadcast %1096 : f32 to vector<8x128xf32>
    %1098 = arith.mulf %1097, %93 : vector<8x128xf32>
    %1099 = arith.addf %1095, %1098 : vector<8x128xf32>
    %c260 = arith.constant 260 : index
    %1100 = memref.load %arg1[%c260] : memref<323xf32, #tpu.memory_space<smem>>
    %1101 = vector.broadcast %1100 : f32 to vector<8x128xf32>
    %1102 = arith.mulf %1101, %113 : vector<8x128xf32>
    %1103 = arith.addf %1099, %1102 : vector<8x128xf32>
    %c261 = arith.constant 261 : index
    %1104 = memref.load %arg1[%c261] : memref<323xf32, #tpu.memory_space<smem>>
    %1105 = vector.broadcast %1104 : f32 to vector<8x128xf32>
    %1106 = arith.mulf %1105, %133 : vector<8x128xf32>
    %1107 = arith.addf %1103, %1106 : vector<8x128xf32>
    %c262 = arith.constant 262 : index
    %1108 = memref.load %arg1[%c262] : memref<323xf32, #tpu.memory_space<smem>>
    %1109 = vector.broadcast %1108 : f32 to vector<8x128xf32>
    %1110 = arith.mulf %1109, %153 : vector<8x128xf32>
    %1111 = arith.addf %1107, %1110 : vector<8x128xf32>
    %c263 = arith.constant 263 : index
    %1112 = memref.load %arg1[%c263] : memref<323xf32, #tpu.memory_space<smem>>
    %1113 = vector.broadcast %1112 : f32 to vector<8x128xf32>
    %1114 = arith.mulf %1113, %173 : vector<8x128xf32>
    %1115 = arith.addf %1111, %1114 : vector<8x128xf32>
    %c264 = arith.constant 264 : index
    %1116 = memref.load %arg1[%c264] : memref<323xf32, #tpu.memory_space<smem>>
    %1117 = vector.broadcast %1116 : f32 to vector<8x128xf32>
    %1118 = arith.mulf %1117, %193 : vector<8x128xf32>
    %1119 = arith.addf %1115, %1118 : vector<8x128xf32>
    %c265 = arith.constant 265 : index
    %1120 = memref.load %arg1[%c265] : memref<323xf32, #tpu.memory_space<smem>>
    %1121 = vector.broadcast %1120 : f32 to vector<8x128xf32>
    %1122 = arith.mulf %1121, %213 : vector<8x128xf32>
    %1123 = arith.addf %1119, %1122 : vector<8x128xf32>
    %c266 = arith.constant 266 : index
    %1124 = memref.load %arg1[%c266] : memref<323xf32, #tpu.memory_space<smem>>
    %1125 = vector.broadcast %1124 : f32 to vector<8x128xf32>
    %1126 = arith.mulf %1125, %233 : vector<8x128xf32>
    %1127 = arith.addf %1123, %1126 : vector<8x128xf32>
    %c267 = arith.constant 267 : index
    %1128 = memref.load %arg1[%c267] : memref<323xf32, #tpu.memory_space<smem>>
    %1129 = vector.broadcast %1128 : f32 to vector<8x128xf32>
    %1130 = arith.mulf %1129, %253 : vector<8x128xf32>
    %1131 = arith.addf %1127, %1130 : vector<8x128xf32>
    %c268 = arith.constant 268 : index
    %1132 = memref.load %arg1[%c268] : memref<323xf32, #tpu.memory_space<smem>>
    %1133 = vector.broadcast %1132 : f32 to vector<8x128xf32>
    %1134 = arith.mulf %1133, %273 : vector<8x128xf32>
    %1135 = arith.addf %1131, %1134 : vector<8x128xf32>
    %c269 = arith.constant 269 : index
    %1136 = memref.load %arg1[%c269] : memref<323xf32, #tpu.memory_space<smem>>
    %1137 = vector.broadcast %1136 : f32 to vector<8x128xf32>
    %1138 = arith.mulf %1137, %293 : vector<8x128xf32>
    %1139 = arith.addf %1135, %1138 : vector<8x128xf32>
    %c270 = arith.constant 270 : index
    %1140 = memref.load %arg1[%c270] : memref<323xf32, #tpu.memory_space<smem>>
    %1141 = vector.broadcast %1140 : f32 to vector<8x128xf32>
    %1142 = arith.mulf %1141, %313 : vector<8x128xf32>
    %1143 = arith.addf %1139, %1142 : vector<8x128xf32>
    %c271 = arith.constant 271 : index
    %1144 = memref.load %arg1[%c271] : memref<323xf32, #tpu.memory_space<smem>>
    %1145 = vector.broadcast %1144 : f32 to vector<8x128xf32>
    %1146 = arith.mulf %1145, %333 : vector<8x128xf32>
    %1147 = arith.addf %1143, %1146 : vector<8x128xf32>
    %cst_34 = arith.constant 0.000000e+00 : f32
    %1148 = vector.broadcast %cst_34 : f32 to vector<8x128xf32>
    %1149 = arith.maximumf %1147, %1148 : vector<8x128xf32>
    %c320 = arith.constant 320 : index
    %1150 = memref.load %arg1[%c320] : memref<323xf32, #tpu.memory_space<smem>>
    %1151 = vector.broadcast %1150 : f32 to vector<8x128xf32>
    %c284 = arith.constant 284 : index
    %1152 = memref.load %arg1[%c284] : memref<323xf32, #tpu.memory_space<smem>>
    %1153 = vector.broadcast %1152 : f32 to vector<8x128xf32>
    %1154 = arith.mulf %1153, %401 : vector<8x128xf32>
    %1155 = arith.addf %1151, %1154 : vector<8x128xf32>
    %c285 = arith.constant 285 : index
    %1156 = memref.load %arg1[%c285] : memref<323xf32, #tpu.memory_space<smem>>
    %1157 = vector.broadcast %1156 : f32 to vector<8x128xf32>
    %1158 = arith.mulf %1157, %469 : vector<8x128xf32>
    %1159 = arith.addf %1155, %1158 : vector<8x128xf32>
    %c286 = arith.constant 286 : index
    %1160 = memref.load %arg1[%c286] : memref<323xf32, #tpu.memory_space<smem>>
    %1161 = vector.broadcast %1160 : f32 to vector<8x128xf32>
    %1162 = arith.mulf %1161, %537 : vector<8x128xf32>
    %1163 = arith.addf %1159, %1162 : vector<8x128xf32>
    %c287 = arith.constant 287 : index
    %1164 = memref.load %arg1[%c287] : memref<323xf32, #tpu.memory_space<smem>>
    %1165 = vector.broadcast %1164 : f32 to vector<8x128xf32>
    %1166 = arith.mulf %1165, %605 : vector<8x128xf32>
    %1167 = arith.addf %1163, %1166 : vector<8x128xf32>
    %c288 = arith.constant 288 : index
    %1168 = memref.load %arg1[%c288] : memref<323xf32, #tpu.memory_space<smem>>
    %1169 = vector.broadcast %1168 : f32 to vector<8x128xf32>
    %1170 = arith.mulf %1169, %673 : vector<8x128xf32>
    %1171 = arith.addf %1167, %1170 : vector<8x128xf32>
    %c289 = arith.constant 289 : index
    %1172 = memref.load %arg1[%c289] : memref<323xf32, #tpu.memory_space<smem>>
    %1173 = vector.broadcast %1172 : f32 to vector<8x128xf32>
    %1174 = arith.mulf %1173, %741 : vector<8x128xf32>
    %1175 = arith.addf %1171, %1174 : vector<8x128xf32>
    %c290 = arith.constant 290 : index
    %1176 = memref.load %arg1[%c290] : memref<323xf32, #tpu.memory_space<smem>>
    %1177 = vector.broadcast %1176 : f32 to vector<8x128xf32>
    %1178 = arith.mulf %1177, %809 : vector<8x128xf32>
    %1179 = arith.addf %1175, %1178 : vector<8x128xf32>
    %c291 = arith.constant 291 : index
    %1180 = memref.load %arg1[%c291] : memref<323xf32, #tpu.memory_space<smem>>
    %1181 = vector.broadcast %1180 : f32 to vector<8x128xf32>
    %1182 = arith.mulf %1181, %877 : vector<8x128xf32>
    %1183 = arith.addf %1179, %1182 : vector<8x128xf32>
    %c292 = arith.constant 292 : index
    %1184 = memref.load %arg1[%c292] : memref<323xf32, #tpu.memory_space<smem>>
    %1185 = vector.broadcast %1184 : f32 to vector<8x128xf32>
    %1186 = arith.mulf %1185, %945 : vector<8x128xf32>
    %1187 = arith.addf %1183, %1186 : vector<8x128xf32>
    %c293 = arith.constant 293 : index
    %1188 = memref.load %arg1[%c293] : memref<323xf32, #tpu.memory_space<smem>>
    %1189 = vector.broadcast %1188 : f32 to vector<8x128xf32>
    %1190 = arith.mulf %1189, %1013 : vector<8x128xf32>
    %1191 = arith.addf %1187, %1190 : vector<8x128xf32>
    %c294 = arith.constant 294 : index
    %1192 = memref.load %arg1[%c294] : memref<323xf32, #tpu.memory_space<smem>>
    %1193 = vector.broadcast %1192 : f32 to vector<8x128xf32>
    %1194 = arith.mulf %1193, %1081 : vector<8x128xf32>
    %1195 = arith.addf %1191, %1194 : vector<8x128xf32>
    %c295 = arith.constant 295 : index
    %1196 = memref.load %arg1[%c295] : memref<323xf32, #tpu.memory_space<smem>>
    %1197 = vector.broadcast %1196 : f32 to vector<8x128xf32>
    %1198 = arith.mulf %1197, %1149 : vector<8x128xf32>
    %1199 = arith.addf %1195, %1198 : vector<8x128xf32>
    %c321 = arith.constant 321 : index
    %1200 = memref.load %arg1[%c321] : memref<323xf32, #tpu.memory_space<smem>>
    %1201 = vector.broadcast %1200 : f32 to vector<8x128xf32>
    %c296 = arith.constant 296 : index
    %1202 = memref.load %arg1[%c296] : memref<323xf32, #tpu.memory_space<smem>>
    %1203 = vector.broadcast %1202 : f32 to vector<8x128xf32>
    %1204 = arith.mulf %1203, %401 : vector<8x128xf32>
    %1205 = arith.addf %1201, %1204 : vector<8x128xf32>
    %c297 = arith.constant 297 : index
    %1206 = memref.load %arg1[%c297] : memref<323xf32, #tpu.memory_space<smem>>
    %1207 = vector.broadcast %1206 : f32 to vector<8x128xf32>
    %1208 = arith.mulf %1207, %469 : vector<8x128xf32>
    %1209 = arith.addf %1205, %1208 : vector<8x128xf32>
    %c298 = arith.constant 298 : index
    %1210 = memref.load %arg1[%c298] : memref<323xf32, #tpu.memory_space<smem>>
    %1211 = vector.broadcast %1210 : f32 to vector<8x128xf32>
    %1212 = arith.mulf %1211, %537 : vector<8x128xf32>
    %1213 = arith.addf %1209, %1212 : vector<8x128xf32>
    %c299 = arith.constant 299 : index
    %1214 = memref.load %arg1[%c299] : memref<323xf32, #tpu.memory_space<smem>>
    %1215 = vector.broadcast %1214 : f32 to vector<8x128xf32>
    %1216 = arith.mulf %1215, %605 : vector<8x128xf32>
    %1217 = arith.addf %1213, %1216 : vector<8x128xf32>
    %c300 = arith.constant 300 : index
    %1218 = memref.load %arg1[%c300] : memref<323xf32, #tpu.memory_space<smem>>
    %1219 = vector.broadcast %1218 : f32 to vector<8x128xf32>
    %1220 = arith.mulf %1219, %673 : vector<8x128xf32>
    %1221 = arith.addf %1217, %1220 : vector<8x128xf32>
    %c301 = arith.constant 301 : index
    %1222 = memref.load %arg1[%c301] : memref<323xf32, #tpu.memory_space<smem>>
    %1223 = vector.broadcast %1222 : f32 to vector<8x128xf32>
    %1224 = arith.mulf %1223, %741 : vector<8x128xf32>
    %1225 = arith.addf %1221, %1224 : vector<8x128xf32>
    %c302 = arith.constant 302 : index
    %1226 = memref.load %arg1[%c302] : memref<323xf32, #tpu.memory_space<smem>>
    %1227 = vector.broadcast %1226 : f32 to vector<8x128xf32>
    %1228 = arith.mulf %1227, %809 : vector<8x128xf32>
    %1229 = arith.addf %1225, %1228 : vector<8x128xf32>
    %c303 = arith.constant 303 : index
    %1230 = memref.load %arg1[%c303] : memref<323xf32, #tpu.memory_space<smem>>
    %1231 = vector.broadcast %1230 : f32 to vector<8x128xf32>
    %1232 = arith.mulf %1231, %877 : vector<8x128xf32>
    %1233 = arith.addf %1229, %1232 : vector<8x128xf32>
    %c304 = arith.constant 304 : index
    %1234 = memref.load %arg1[%c304] : memref<323xf32, #tpu.memory_space<smem>>
    %1235 = vector.broadcast %1234 : f32 to vector<8x128xf32>
    %1236 = arith.mulf %1235, %945 : vector<8x128xf32>
    %1237 = arith.addf %1233, %1236 : vector<8x128xf32>
    %c305 = arith.constant 305 : index
    %1238 = memref.load %arg1[%c305] : memref<323xf32, #tpu.memory_space<smem>>
    %1239 = vector.broadcast %1238 : f32 to vector<8x128xf32>
    %1240 = arith.mulf %1239, %1013 : vector<8x128xf32>
    %1241 = arith.addf %1237, %1240 : vector<8x128xf32>
    %c306 = arith.constant 306 : index
    %1242 = memref.load %arg1[%c306] : memref<323xf32, #tpu.memory_space<smem>>
    %1243 = vector.broadcast %1242 : f32 to vector<8x128xf32>
    %1244 = arith.mulf %1243, %1081 : vector<8x128xf32>
    %1245 = arith.addf %1241, %1244 : vector<8x128xf32>
    %c307 = arith.constant 307 : index
    %1246 = memref.load %arg1[%c307] : memref<323xf32, #tpu.memory_space<smem>>
    %1247 = vector.broadcast %1246 : f32 to vector<8x128xf32>
    %1248 = arith.mulf %1247, %1149 : vector<8x128xf32>
    %1249 = arith.addf %1245, %1248 : vector<8x128xf32>
    %c322 = arith.constant 322 : index
    %1250 = memref.load %arg1[%c322] : memref<323xf32, #tpu.memory_space<smem>>
    %1251 = vector.broadcast %1250 : f32 to vector<8x128xf32>
    %c308 = arith.constant 308 : index
    %1252 = memref.load %arg1[%c308] : memref<323xf32, #tpu.memory_space<smem>>
    %1253 = vector.broadcast %1252 : f32 to vector<8x128xf32>
    %1254 = arith.mulf %1253, %401 : vector<8x128xf32>
    %1255 = arith.addf %1251, %1254 : vector<8x128xf32>
    %c309 = arith.constant 309 : index
    %1256 = memref.load %arg1[%c309] : memref<323xf32, #tpu.memory_space<smem>>
    %1257 = vector.broadcast %1256 : f32 to vector<8x128xf32>
    %1258 = arith.mulf %1257, %469 : vector<8x128xf32>
    %1259 = arith.addf %1255, %1258 : vector<8x128xf32>
    %c310 = arith.constant 310 : index
    %1260 = memref.load %arg1[%c310] : memref<323xf32, #tpu.memory_space<smem>>
    %1261 = vector.broadcast %1260 : f32 to vector<8x128xf32>
    %1262 = arith.mulf %1261, %537 : vector<8x128xf32>
    %1263 = arith.addf %1259, %1262 : vector<8x128xf32>
    %c311 = arith.constant 311 : index
    %1264 = memref.load %arg1[%c311] : memref<323xf32, #tpu.memory_space<smem>>
    %1265 = vector.broadcast %1264 : f32 to vector<8x128xf32>
    %1266 = arith.mulf %1265, %605 : vector<8x128xf32>
    %1267 = arith.addf %1263, %1266 : vector<8x128xf32>
    %c312 = arith.constant 312 : index
    %1268 = memref.load %arg1[%c312] : memref<323xf32, #tpu.memory_space<smem>>
    %1269 = vector.broadcast %1268 : f32 to vector<8x128xf32>
    %1270 = arith.mulf %1269, %673 : vector<8x128xf32>
    %1271 = arith.addf %1267, %1270 : vector<8x128xf32>
    %c313 = arith.constant 313 : index
    %1272 = memref.load %arg1[%c313] : memref<323xf32, #tpu.memory_space<smem>>
    %1273 = vector.broadcast %1272 : f32 to vector<8x128xf32>
    %1274 = arith.mulf %1273, %741 : vector<8x128xf32>
    %1275 = arith.addf %1271, %1274 : vector<8x128xf32>
    %c314 = arith.constant 314 : index
    %1276 = memref.load %arg1[%c314] : memref<323xf32, #tpu.memory_space<smem>>
    %1277 = vector.broadcast %1276 : f32 to vector<8x128xf32>
    %1278 = arith.mulf %1277, %809 : vector<8x128xf32>
    %1279 = arith.addf %1275, %1278 : vector<8x128xf32>
    %c315 = arith.constant 315 : index
    %1280 = memref.load %arg1[%c315] : memref<323xf32, #tpu.memory_space<smem>>
    %1281 = vector.broadcast %1280 : f32 to vector<8x128xf32>
    %1282 = arith.mulf %1281, %877 : vector<8x128xf32>
    %1283 = arith.addf %1279, %1282 : vector<8x128xf32>
    %c316 = arith.constant 316 : index
    %1284 = memref.load %arg1[%c316] : memref<323xf32, #tpu.memory_space<smem>>
    %1285 = vector.broadcast %1284 : f32 to vector<8x128xf32>
    %1286 = arith.mulf %1285, %945 : vector<8x128xf32>
    %1287 = arith.addf %1283, %1286 : vector<8x128xf32>
    %c317 = arith.constant 317 : index
    %1288 = memref.load %arg1[%c317] : memref<323xf32, #tpu.memory_space<smem>>
    %1289 = vector.broadcast %1288 : f32 to vector<8x128xf32>
    %1290 = arith.mulf %1289, %1013 : vector<8x128xf32>
    %1291 = arith.addf %1287, %1290 : vector<8x128xf32>
    %c318 = arith.constant 318 : index
    %1292 = memref.load %arg1[%c318] : memref<323xf32, #tpu.memory_space<smem>>
    %1293 = vector.broadcast %1292 : f32 to vector<8x128xf32>
    %1294 = arith.mulf %1293, %1081 : vector<8x128xf32>
    %1295 = arith.addf %1291, %1294 : vector<8x128xf32>
    %c319 = arith.constant 319 : index
    %1296 = memref.load %arg1[%c319] : memref<323xf32, #tpu.memory_space<smem>>
    %1297 = vector.broadcast %1296 : f32 to vector<8x128xf32>
    %1298 = arith.mulf %1297, %1149 : vector<8x128xf32>
    %1299 = arith.addf %1295, %1298 : vector<8x128xf32>
    %c0_35 = arith.constant 0 : index
    %1300 = arith.index_cast %1 : i32 to index
    %c0_36 = arith.constant 0 : index
    %1301 = vector.load %arg3[%c0_35, %1300, %c0_36] : memref<3x16x128xf32, #tpu.memory_space<vmem>>, vector<1x8x128xf32>
    %1302 = vector.shape_cast %1301 : vector<1x8x128xf32> to vector<8x128xf32>
    %1303 = vector.shape_cast %1199 : vector<8x128xf32> to vector<1x8x128xf32>
    tpu.vector_store %arg3[%c0_35, %1300, %c0_36], %1303 {strides = array<i32>} : memref<3x16x128xf32, #tpu.memory_space<vmem>>, vector<1x8x128xf32>,
    %c1_37 = arith.constant 1 : index
    %1304 = arith.index_cast %1 : i32 to index
    %c0_38 = arith.constant 0 : index
    %1305 = vector.load %arg3[%c1_37, %1304, %c0_38] : memref<3x16x128xf32, #tpu.memory_space<vmem>>, vector<1x8x128xf32>
    %1306 = vector.shape_cast %1305 : vector<1x8x128xf32> to vector<8x128xf32>
    %1307 = vector.shape_cast %1249 : vector<8x128xf32> to vector<1x8x128xf32>
    tpu.vector_store %arg3[%c1_37, %1304, %c0_38], %1307 {strides = array<i32>} : memref<3x16x128xf32, #tpu.memory_space<vmem>>, vector<1x8x128xf32>,
    %c2_39 = arith.constant 2 : index
    %1308 = arith.index_cast %1 : i32 to index
    %c0_40 = arith.constant 0 : index
    %1309 = vector.load %arg3[%c2_39, %1308, %c0_40] : memref<3x16x128xf32, #tpu.memory_space<vmem>>, vector<1x8x128xf32>
    %1310 = vector.shape_cast %1309 : vector<1x8x128xf32> to vector<8x128xf32>
    %1311 = vector.shape_cast %1299 : vector<8x128xf32> to vector<1x8x128xf32>
    tpu.vector_store %arg3[%c2_39, %1308, %c0_40], %1311 {strides = array<i32>} : memref<3x16x128xf32, #tpu.memory_space<vmem>>, vector<1x8x128xf32>,
    %c1_i32 = arith.constant 1 : i32
    %c8_i32_41 = arith.constant 8 : i32
    %1312 = arith.muli %c1_i32, %c8_i32_41 : i32
    %1313 = tpu.assume_multiple %1312, 8 : i32
    %c0_42 = arith.constant 0 : index
    %1314 = arith.index_cast %1313 : i32 to index
    %c0_43 = arith.constant 0 : index
    %1315 = vector.load %arg2[%c0_42, %1314, %c0_43] : memref<4x16x128xf32, #tpu.memory_space<vmem>>, vector<1x8x128xf32>
    %1316 = vector.shape_cast %1315 : vector<1x8x128xf32> to vector<8x128xf32>
    %c1_44 = arith.constant 1 : index
    %1317 = arith.index_cast %1313 : i32 to index
    %c0_45 = arith.constant 0 : index
    %1318 = vector.load %arg2[%c1_44, %1317, %c0_45] : memref<4x16x128xf32, #tpu.memory_space<vmem>>, vector<1x8x128xf32>
    %1319 = vector.shape_cast %1318 : vector<1x8x128xf32> to vector<8x128xf32>
    %c2_46 = arith.constant 2 : index
    %1320 = arith.index_cast %1313 : i32 to index
    %c0_47 = arith.constant 0 : index
    %1321 = vector.load %arg2[%c2_46, %1320, %c0_47] : memref<4x16x128xf32, #tpu.memory_space<vmem>>, vector<1x8x128xf32>
    %1322 = vector.shape_cast %1321 : vector<1x8x128xf32> to vector<8x128xf32>
    %c3_48 = arith.constant 3 : index
    %1323 = arith.index_cast %1313 : i32 to index
    %c0_49 = arith.constant 0 : index
    %1324 = vector.load %arg2[%c3_48, %1323, %c0_49] : memref<4x16x128xf32, #tpu.memory_space<vmem>>, vector<1x8x128xf32>
    %1325 = vector.shape_cast %1324 : vector<1x8x128xf32> to vector<8x128xf32>
    %c64_50 = arith.constant 64 : index
    %1326 = memref.load %arg1[%c64_50] : memref<323xf32, #tpu.memory_space<smem>>
    %1327 = vector.broadcast %1326 : f32 to vector<8x128xf32>
    %c0_51 = arith.constant 0 : index
    %1328 = memref.load %arg1[%c0_51] : memref<323xf32, #tpu.memory_space<smem>>
    %1329 = vector.broadcast %1328 : f32 to vector<8x128xf32>
    %1330 = arith.mulf %1329, %1316 : vector<8x128xf32>
    %1331 = arith.addf %1327, %1330 : vector<8x128xf32>
    %c1_52 = arith.constant 1 : index
    %1332 = memref.load %arg1[%c1_52] : memref<323xf32, #tpu.memory_space<smem>>
    %1333 = vector.broadcast %1332 : f32 to vector<8x128xf32>
    %1334 = arith.mulf %1333, %1319 : vector<8x128xf32>
    %1335 = arith.addf %1331, %1334 : vector<8x128xf32>
    %c2_53 = arith.constant 2 : index
    %1336 = memref.load %arg1[%c2_53] : memref<323xf32, #tpu.memory_space<smem>>
    %1337 = vector.broadcast %1336 : f32 to vector<8x128xf32>
    %1338 = arith.mulf %1337, %1322 : vector<8x128xf32>
    %1339 = arith.addf %1335, %1338 : vector<8x128xf32>
    %c3_54 = arith.constant 3 : index
    %1340 = memref.load %arg1[%c3_54] : memref<323xf32, #tpu.memory_space<smem>>
    %1341 = vector.broadcast %1340 : f32 to vector<8x128xf32>
    %1342 = arith.mulf %1341, %1325 : vector<8x128xf32>
    %1343 = arith.addf %1339, %1342 : vector<8x128xf32>
    %cst_55 = arith.constant 0.000000e+00 : f32
    %1344 = vector.broadcast %cst_55 : f32 to vector<8x128xf32>
    %1345 = arith.maximumf %1343, %1344 : vector<8x128xf32>
    %c65_56 = arith.constant 65 : index
    %1346 = memref.load %arg1[%c65_56] : memref<323xf32, #tpu.memory_space<smem>>
    %1347 = vector.broadcast %1346 : f32 to vector<8x128xf32>
    %c4_57 = arith.constant 4 : index
    %1348 = memref.load %arg1[%c4_57] : memref<323xf32, #tpu.memory_space<smem>>
    %1349 = vector.broadcast %1348 : f32 to vector<8x128xf32>
    %1350 = arith.mulf %1349, %1316 : vector<8x128xf32>
    %1351 = arith.addf %1347, %1350 : vector<8x128xf32>
    %c5_58 = arith.constant 5 : index
    %1352 = memref.load %arg1[%c5_58] : memref<323xf32, #tpu.memory_space<smem>>
    %1353 = vector.broadcast %1352 : f32 to vector<8x128xf32>
    %1354 = arith.mulf %1353, %1319 : vector<8x128xf32>
    %1355 = arith.addf %1351, %1354 : vector<8x128xf32>
    %c6_59 = arith.constant 6 : index
    %1356 = memref.load %arg1[%c6_59] : memref<323xf32, #tpu.memory_space<smem>>
    %1357 = vector.broadcast %1356 : f32 to vector<8x128xf32>
    %1358 = arith.mulf %1357, %1322 : vector<8x128xf32>
    %1359 = arith.addf %1355, %1358 : vector<8x128xf32>
    %c7_60 = arith.constant 7 : index
    %1360 = memref.load %arg1[%c7_60] : memref<323xf32, #tpu.memory_space<smem>>
    %1361 = vector.broadcast %1360 : f32 to vector<8x128xf32>
    %1362 = arith.mulf %1361, %1325 : vector<8x128xf32>
    %1363 = arith.addf %1359, %1362 : vector<8x128xf32>
    %cst_61 = arith.constant 0.000000e+00 : f32
    %1364 = vector.broadcast %cst_61 : f32 to vector<8x128xf32>
    %1365 = arith.maximumf %1363, %1364 : vector<8x128xf32>
    %c66_62 = arith.constant 66 : index
    %1366 = memref.load %arg1[%c66_62] : memref<323xf32, #tpu.memory_space<smem>>
    %1367 = vector.broadcast %1366 : f32 to vector<8x128xf32>
    %c8_63 = arith.constant 8 : index
    %1368 = memref.load %arg1[%c8_63] : memref<323xf32, #tpu.memory_space<smem>>
    %1369 = vector.broadcast %1368 : f32 to vector<8x128xf32>
    %1370 = arith.mulf %1369, %1316 : vector<8x128xf32>
    %1371 = arith.addf %1367, %1370 : vector<8x128xf32>
    %c9_64 = arith.constant 9 : index
    %1372 = memref.load %arg1[%c9_64] : memref<323xf32, #tpu.memory_space<smem>>
    %1373 = vector.broadcast %1372 : f32 to vector<8x128xf32>
    %1374 = arith.mulf %1373, %1319 : vector<8x128xf32>
    %1375 = arith.addf %1371, %1374 : vector<8x128xf32>
    %c10_65 = arith.constant 10 : index
    %1376 = memref.load %arg1[%c10_65] : memref<323xf32, #tpu.memory_space<smem>>
    %1377 = vector.broadcast %1376 : f32 to vector<8x128xf32>
    %1378 = arith.mulf %1377, %1322 : vector<8x128xf32>
    %1379 = arith.addf %1375, %1378 : vector<8x128xf32>
    %c11_66 = arith.constant 11 : index
    %1380 = memref.load %arg1[%c11_66] : memref<323xf32, #tpu.memory_space<smem>>
    %1381 = vector.broadcast %1380 : f32 to vector<8x128xf32>
    %1382 = arith.mulf %1381, %1325 : vector<8x128xf32>
    %1383 = arith.addf %1379, %1382 : vector<8x128xf32>
    %cst_67 = arith.constant 0.000000e+00 : f32
    %1384 = vector.broadcast %cst_67 : f32 to vector<8x128xf32>
    %1385 = arith.maximumf %1383, %1384 : vector<8x128xf32>
    %c67_68 = arith.constant 67 : index
    %1386 = memref.load %arg1[%c67_68] : memref<323xf32, #tpu.memory_space<smem>>
    %1387 = vector.broadcast %1386 : f32 to vector<8x128xf32>
    %c12_69 = arith.constant 12 : index
    %1388 = memref.load %arg1[%c12_69] : memref<323xf32, #tpu.memory_space<smem>>
    %1389 = vector.broadcast %1388 : f32 to vector<8x128xf32>
    %1390 = arith.mulf %1389, %1316 : vector<8x128xf32>
    %1391 = arith.addf %1387, %1390 : vector<8x128xf32>
    %c13_70 = arith.constant 13 : index
    %1392 = memref.load %arg1[%c13_70] : memref<323xf32, #tpu.memory_space<smem>>
    %1393 = vector.broadcast %1392 : f32 to vector<8x128xf32>
    %1394 = arith.mulf %1393, %1319 : vector<8x128xf32>
    %1395 = arith.addf %1391, %1394 : vector<8x128xf32>
    %c14_71 = arith.constant 14 : index
    %1396 = memref.load %arg1[%c14_71] : memref<323xf32, #tpu.memory_space<smem>>
    %1397 = vector.broadcast %1396 : f32 to vector<8x128xf32>
    %1398 = arith.mulf %1397, %1322 : vector<8x128xf32>
    %1399 = arith.addf %1395, %1398 : vector<8x128xf32>
    %c15_72 = arith.constant 15 : index
    %1400 = memref.load %arg1[%c15_72] : memref<323xf32, #tpu.memory_space<smem>>
    %1401 = vector.broadcast %1400 : f32 to vector<8x128xf32>
    %1402 = arith.mulf %1401, %1325 : vector<8x128xf32>
    %1403 = arith.addf %1399, %1402 : vector<8x128xf32>
    %cst_73 = arith.constant 0.000000e+00 : f32
    %1404 = vector.broadcast %cst_73 : f32 to vector<8x128xf32>
    %1405 = arith.maximumf %1403, %1404 : vector<8x128xf32>
    %c68_74 = arith.constant 68 : index
    %1406 = memref.load %arg1[%c68_74] : memref<323xf32, #tpu.memory_space<smem>>
    %1407 = vector.broadcast %1406 : f32 to vector<8x128xf32>
    %c16_75 = arith.constant 16 : index
    %1408 = memref.load %arg1[%c16_75] : memref<323xf32, #tpu.memory_space<smem>>
    %1409 = vector.broadcast %1408 : f32 to vector<8x128xf32>
    %1410 = arith.mulf %1409, %1316 : vector<8x128xf32>
    %1411 = arith.addf %1407, %1410 : vector<8x128xf32>
    %c17_76 = arith.constant 17 : index
    %1412 = memref.load %arg1[%c17_76] : memref<323xf32, #tpu.memory_space<smem>>
    %1413 = vector.broadcast %1412 : f32 to vector<8x128xf32>
    %1414 = arith.mulf %1413, %1319 : vector<8x128xf32>
    %1415 = arith.addf %1411, %1414 : vector<8x128xf32>
    %c18_77 = arith.constant 18 : index
    %1416 = memref.load %arg1[%c18_77] : memref<323xf32, #tpu.memory_space<smem>>
    %1417 = vector.broadcast %1416 : f32 to vector<8x128xf32>
    %1418 = arith.mulf %1417, %1322 : vector<8x128xf32>
    %1419 = arith.addf %1415, %1418 : vector<8x128xf32>
    %c19_78 = arith.constant 19 : index
    %1420 = memref.load %arg1[%c19_78] : memref<323xf32, #tpu.memory_space<smem>>
    %1421 = vector.broadcast %1420 : f32 to vector<8x128xf32>
    %1422 = arith.mulf %1421, %1325 : vector<8x128xf32>
    %1423 = arith.addf %1419, %1422 : vector<8x128xf32>
    %cst_79 = arith.constant 0.000000e+00 : f32
    %1424 = vector.broadcast %cst_79 : f32 to vector<8x128xf32>
    %1425 = arith.maximumf %1423, %1424 : vector<8x128xf32>
    %c69_80 = arith.constant 69 : index
    %1426 = memref.load %arg1[%c69_80] : memref<323xf32, #tpu.memory_space<smem>>
    %1427 = vector.broadcast %1426 : f32 to vector<8x128xf32>
    %c20_81 = arith.constant 20 : index
    %1428 = memref.load %arg1[%c20_81] : memref<323xf32, #tpu.memory_space<smem>>
    %1429 = vector.broadcast %1428 : f32 to vector<8x128xf32>
    %1430 = arith.mulf %1429, %1316 : vector<8x128xf32>
    %1431 = arith.addf %1427, %1430 : vector<8x128xf32>
    %c21_82 = arith.constant 21 : index
    %1432 = memref.load %arg1[%c21_82] : memref<323xf32, #tpu.memory_space<smem>>
    %1433 = vector.broadcast %1432 : f32 to vector<8x128xf32>
    %1434 = arith.mulf %1433, %1319 : vector<8x128xf32>
    %1435 = arith.addf %1431, %1434 : vector<8x128xf32>
    %c22_83 = arith.constant 22 : index
    %1436 = memref.load %arg1[%c22_83] : memref<323xf32, #tpu.memory_space<smem>>
    %1437 = vector.broadcast %1436 : f32 to vector<8x128xf32>
    %1438 = arith.mulf %1437, %1322 : vector<8x128xf32>
    %1439 = arith.addf %1435, %1438 : vector<8x128xf32>
    %c23_84 = arith.constant 23 : index
    %1440 = memref.load %arg1[%c23_84] : memref<323xf32, #tpu.memory_space<smem>>
    %1441 = vector.broadcast %1440 : f32 to vector<8x128xf32>
    %1442 = arith.mulf %1441, %1325 : vector<8x128xf32>
    %1443 = arith.addf %1439, %1442 : vector<8x128xf32>
    %cst_85 = arith.constant 0.000000e+00 : f32
    %1444 = vector.broadcast %cst_85 : f32 to vector<8x128xf32>
    %1445 = arith.maximumf %1443, %1444 : vector<8x128xf32>
    %c70_86 = arith.constant 70 : index
    %1446 = memref.load %arg1[%c70_86] : memref<323xf32, #tpu.memory_space<smem>>
    %1447 = vector.broadcast %1446 : f32 to vector<8x128xf32>
    %c24_87 = arith.constant 24 : index
    %1448 = memref.load %arg1[%c24_87] : memref<323xf32, #tpu.memory_space<smem>>
    %1449 = vector.broadcast %1448 : f32 to vector<8x128xf32>
    %1450 = arith.mulf %1449, %1316 : vector<8x128xf32>
    %1451 = arith.addf %1447, %1450 : vector<8x128xf32>
    %c25_88 = arith.constant 25 : index
    %1452 = memref.load %arg1[%c25_88] : memref<323xf32, #tpu.memory_space<smem>>
    %1453 = vector.broadcast %1452 : f32 to vector<8x128xf32>
    %1454 = arith.mulf %1453, %1319 : vector<8x128xf32>
    %1455 = arith.addf %1451, %1454 : vector<8x128xf32>
    %c26_89 = arith.constant 26 : index
    %1456 = memref.load %arg1[%c26_89] : memref<323xf32, #tpu.memory_space<smem>>
    %1457 = vector.broadcast %1456 : f32 to vector<8x128xf32>
    %1458 = arith.mulf %1457, %1322 : vector<8x128xf32>
    %1459 = arith.addf %1455, %1458 : vector<8x128xf32>
    %c27_90 = arith.constant 27 : index
    %1460 = memref.load %arg1[%c27_90] : memref<323xf32, #tpu.memory_space<smem>>
    %1461 = vector.broadcast %1460 : f32 to vector<8x128xf32>
    %1462 = arith.mulf %1461, %1325 : vector<8x128xf32>
    %1463 = arith.addf %1459, %1462 : vector<8x128xf32>
    %cst_91 = arith.constant 0.000000e+00 : f32
    %1464 = vector.broadcast %cst_91 : f32 to vector<8x128xf32>
    %1465 = arith.maximumf %1463, %1464 : vector<8x128xf32>
    %c71_92 = arith.constant 71 : index
    %1466 = memref.load %arg1[%c71_92] : memref<323xf32, #tpu.memory_space<smem>>
    %1467 = vector.broadcast %1466 : f32 to vector<8x128xf32>
    %c28_93 = arith.constant 28 : index
    %1468 = memref.load %arg1[%c28_93] : memref<323xf32, #tpu.memory_space<smem>>
    %1469 = vector.broadcast %1468 : f32 to vector<8x128xf32>
    %1470 = arith.mulf %1469, %1316 : vector<8x128xf32>
    %1471 = arith.addf %1467, %1470 : vector<8x128xf32>
    %c29_94 = arith.constant 29 : index
    %1472 = memref.load %arg1[%c29_94] : memref<323xf32, #tpu.memory_space<smem>>
    %1473 = vector.broadcast %1472 : f32 to vector<8x128xf32>
    %1474 = arith.mulf %1473, %1319 : vector<8x128xf32>
    %1475 = arith.addf %1471, %1474 : vector<8x128xf32>
    %c30_95 = arith.constant 30 : index
    %1476 = memref.load %arg1[%c30_95] : memref<323xf32, #tpu.memory_space<smem>>
    %1477 = vector.broadcast %1476 : f32 to vector<8x128xf32>
    %1478 = arith.mulf %1477, %1322 : vector<8x128xf32>
    %1479 = arith.addf %1475, %1478 : vector<8x128xf32>
    %c31_96 = arith.constant 31 : index
    %1480 = memref.load %arg1[%c31_96] : memref<323xf32, #tpu.memory_space<smem>>
    %1481 = vector.broadcast %1480 : f32 to vector<8x128xf32>
    %1482 = arith.mulf %1481, %1325 : vector<8x128xf32>
    %1483 = arith.addf %1479, %1482 : vector<8x128xf32>
    %cst_97 = arith.constant 0.000000e+00 : f32
    %1484 = vector.broadcast %cst_97 : f32 to vector<8x128xf32>
    %1485 = arith.maximumf %1483, %1484 : vector<8x128xf32>
    %c72_98 = arith.constant 72 : index
    %1486 = memref.load %arg1[%c72_98] : memref<323xf32, #tpu.memory_space<smem>>
    %1487 = vector.broadcast %1486 : f32 to vector<8x128xf32>
    %c32_99 = arith.constant 32 : index
    %1488 = memref.load %arg1[%c32_99] : memref<323xf32, #tpu.memory_space<smem>>
    %1489 = vector.broadcast %1488 : f32 to vector<8x128xf32>
    %1490 = arith.mulf %1489, %1316 : vector<8x128xf32>
    %1491 = arith.addf %1487, %1490 : vector<8x128xf32>
    %c33_100 = arith.constant 33 : index
    %1492 = memref.load %arg1[%c33_100] : memref<323xf32, #tpu.memory_space<smem>>
    %1493 = vector.broadcast %1492 : f32 to vector<8x128xf32>
    %1494 = arith.mulf %1493, %1319 : vector<8x128xf32>
    %1495 = arith.addf %1491, %1494 : vector<8x128xf32>
    %c34_101 = arith.constant 34 : index
    %1496 = memref.load %arg1[%c34_101] : memref<323xf32, #tpu.memory_space<smem>>
    %1497 = vector.broadcast %1496 : f32 to vector<8x128xf32>
    %1498 = arith.mulf %1497, %1322 : vector<8x128xf32>
    %1499 = arith.addf %1495, %1498 : vector<8x128xf32>
    %c35_102 = arith.constant 35 : index
    %1500 = memref.load %arg1[%c35_102] : memref<323xf32, #tpu.memory_space<smem>>
    %1501 = vector.broadcast %1500 : f32 to vector<8x128xf32>
    %1502 = arith.mulf %1501, %1325 : vector<8x128xf32>
    %1503 = arith.addf %1499, %1502 : vector<8x128xf32>
    %cst_103 = arith.constant 0.000000e+00 : f32
    %1504 = vector.broadcast %cst_103 : f32 to vector<8x128xf32>
    %1505 = arith.maximumf %1503, %1504 : vector<8x128xf32>
    %c73_104 = arith.constant 73 : index
    %1506 = memref.load %arg1[%c73_104] : memref<323xf32, #tpu.memory_space<smem>>
    %1507 = vector.broadcast %1506 : f32 to vector<8x128xf32>
    %c36_105 = arith.constant 36 : index
    %1508 = memref.load %arg1[%c36_105] : memref<323xf32, #tpu.memory_space<smem>>
    %1509 = vector.broadcast %1508 : f32 to vector<8x128xf32>
    %1510 = arith.mulf %1509, %1316 : vector<8x128xf32>
    %1511 = arith.addf %1507, %1510 : vector<8x128xf32>
    %c37_106 = arith.constant 37 : index
    %1512 = memref.load %arg1[%c37_106] : memref<323xf32, #tpu.memory_space<smem>>
    %1513 = vector.broadcast %1512 : f32 to vector<8x128xf32>
    %1514 = arith.mulf %1513, %1319 : vector<8x128xf32>
    %1515 = arith.addf %1511, %1514 : vector<8x128xf32>
    %c38_107 = arith.constant 38 : index
    %1516 = memref.load %arg1[%c38_107] : memref<323xf32, #tpu.memory_space<smem>>
    %1517 = vector.broadcast %1516 : f32 to vector<8x128xf32>
    %1518 = arith.mulf %1517, %1322 : vector<8x128xf32>
    %1519 = arith.addf %1515, %1518 : vector<8x128xf32>
    %c39_108 = arith.constant 39 : index
    %1520 = memref.load %arg1[%c39_108] : memref<323xf32, #tpu.memory_space<smem>>
    %1521 = vector.broadcast %1520 : f32 to vector<8x128xf32>
    %1522 = arith.mulf %1521, %1325 : vector<8x128xf32>
    %1523 = arith.addf %1519, %1522 : vector<8x128xf32>
    %cst_109 = arith.constant 0.000000e+00 : f32
    %1524 = vector.broadcast %cst_109 : f32 to vector<8x128xf32>
    %1525 = arith.maximumf %1523, %1524 : vector<8x128xf32>
    %c74_110 = arith.constant 74 : index
    %1526 = memref.load %arg1[%c74_110] : memref<323xf32, #tpu.memory_space<smem>>
    %1527 = vector.broadcast %1526 : f32 to vector<8x128xf32>
    %c40_111 = arith.constant 40 : index
    %1528 = memref.load %arg1[%c40_111] : memref<323xf32, #tpu.memory_space<smem>>
    %1529 = vector.broadcast %1528 : f32 to vector<8x128xf32>
    %1530 = arith.mulf %1529, %1316 : vector<8x128xf32>
    %1531 = arith.addf %1527, %1530 : vector<8x128xf32>
    %c41_112 = arith.constant 41 : index
    %1532 = memref.load %arg1[%c41_112] : memref<323xf32, #tpu.memory_space<smem>>
    %1533 = vector.broadcast %1532 : f32 to vector<8x128xf32>
    %1534 = arith.mulf %1533, %1319 : vector<8x128xf32>
    %1535 = arith.addf %1531, %1534 : vector<8x128xf32>
    %c42_113 = arith.constant 42 : index
    %1536 = memref.load %arg1[%c42_113] : memref<323xf32, #tpu.memory_space<smem>>
    %1537 = vector.broadcast %1536 : f32 to vector<8x128xf32>
    %1538 = arith.mulf %1537, %1322 : vector<8x128xf32>
    %1539 = arith.addf %1535, %1538 : vector<8x128xf32>
    %c43_114 = arith.constant 43 : index
    %1540 = memref.load %arg1[%c43_114] : memref<323xf32, #tpu.memory_space<smem>>
    %1541 = vector.broadcast %1540 : f32 to vector<8x128xf32>
    %1542 = arith.mulf %1541, %1325 : vector<8x128xf32>
    %1543 = arith.addf %1539, %1542 : vector<8x128xf32>
    %cst_115 = arith.constant 0.000000e+00 : f32
    %1544 = vector.broadcast %cst_115 : f32 to vector<8x128xf32>
    %1545 = arith.maximumf %1543, %1544 : vector<8x128xf32>
    %c75_116 = arith.constant 75 : index
    %1546 = memref.load %arg1[%c75_116] : memref<323xf32, #tpu.memory_space<smem>>
    %1547 = vector.broadcast %1546 : f32 to vector<8x128xf32>
    %c44_117 = arith.constant 44 : index
    %1548 = memref.load %arg1[%c44_117] : memref<323xf32, #tpu.memory_space<smem>>
    %1549 = vector.broadcast %1548 : f32 to vector<8x128xf32>
    %1550 = arith.mulf %1549, %1316 : vector<8x128xf32>
    %1551 = arith.addf %1547, %1550 : vector<8x128xf32>
    %c45_118 = arith.constant 45 : index
    %1552 = memref.load %arg1[%c45_118] : memref<323xf32, #tpu.memory_space<smem>>
    %1553 = vector.broadcast %1552 : f32 to vector<8x128xf32>
    %1554 = arith.mulf %1553, %1319 : vector<8x128xf32>
    %1555 = arith.addf %1551, %1554 : vector<8x128xf32>
    %c46_119 = arith.constant 46 : index
    %1556 = memref.load %arg1[%c46_119] : memref<323xf32, #tpu.memory_space<smem>>
    %1557 = vector.broadcast %1556 : f32 to vector<8x128xf32>
    %1558 = arith.mulf %1557, %1322 : vector<8x128xf32>
    %1559 = arith.addf %1555, %1558 : vector<8x128xf32>
    %c47_120 = arith.constant 47 : index
    %1560 = memref.load %arg1[%c47_120] : memref<323xf32, #tpu.memory_space<smem>>
    %1561 = vector.broadcast %1560 : f32 to vector<8x128xf32>
    %1562 = arith.mulf %1561, %1325 : vector<8x128xf32>
    %1563 = arith.addf %1559, %1562 : vector<8x128xf32>
    %cst_121 = arith.constant 0.000000e+00 : f32
    %1564 = vector.broadcast %cst_121 : f32 to vector<8x128xf32>
    %1565 = arith.maximumf %1563, %1564 : vector<8x128xf32>
    %c76_122 = arith.constant 76 : index
    %1566 = memref.load %arg1[%c76_122] : memref<323xf32, #tpu.memory_space<smem>>
    %1567 = vector.broadcast %1566 : f32 to vector<8x128xf32>
    %c48_123 = arith.constant 48 : index
    %1568 = memref.load %arg1[%c48_123] : memref<323xf32, #tpu.memory_space<smem>>
    %1569 = vector.broadcast %1568 : f32 to vector<8x128xf32>
    %1570 = arith.mulf %1569, %1316 : vector<8x128xf32>
    %1571 = arith.addf %1567, %1570 : vector<8x128xf32>
    %c49_124 = arith.constant 49 : index
    %1572 = memref.load %arg1[%c49_124] : memref<323xf32, #tpu.memory_space<smem>>
    %1573 = vector.broadcast %1572 : f32 to vector<8x128xf32>
    %1574 = arith.mulf %1573, %1319 : vector<8x128xf32>
    %1575 = arith.addf %1571, %1574 : vector<8x128xf32>
    %c50_125 = arith.constant 50 : index
    %1576 = memref.load %arg1[%c50_125] : memref<323xf32, #tpu.memory_space<smem>>
    %1577 = vector.broadcast %1576 : f32 to vector<8x128xf32>
    %1578 = arith.mulf %1577, %1322 : vector<8x128xf32>
    %1579 = arith.addf %1575, %1578 : vector<8x128xf32>
    %c51_126 = arith.constant 51 : index
    %1580 = memref.load %arg1[%c51_126] : memref<323xf32, #tpu.memory_space<smem>>
    %1581 = vector.broadcast %1580 : f32 to vector<8x128xf32>
    %1582 = arith.mulf %1581, %1325 : vector<8x128xf32>
    %1583 = arith.addf %1579, %1582 : vector<8x128xf32>
    %cst_127 = arith.constant 0.000000e+00 : f32
    %1584 = vector.broadcast %cst_127 : f32 to vector<8x128xf32>
    %1585 = arith.maximumf %1583, %1584 : vector<8x128xf32>
    %c77_128 = arith.constant 77 : index
    %1586 = memref.load %arg1[%c77_128] : memref<323xf32, #tpu.memory_space<smem>>
    %1587 = vector.broadcast %1586 : f32 to vector<8x128xf32>
    %c52_129 = arith.constant 52 : index
    %1588 = memref.load %arg1[%c52_129] : memref<323xf32, #tpu.memory_space<smem>>
    %1589 = vector.broadcast %1588 : f32 to vector<8x128xf32>
    %1590 = arith.mulf %1589, %1316 : vector<8x128xf32>
    %1591 = arith.addf %1587, %1590 : vector<8x128xf32>
    %c53_130 = arith.constant 53 : index
    %1592 = memref.load %arg1[%c53_130] : memref<323xf32, #tpu.memory_space<smem>>
    %1593 = vector.broadcast %1592 : f32 to vector<8x128xf32>
    %1594 = arith.mulf %1593, %1319 : vector<8x128xf32>
    %1595 = arith.addf %1591, %1594 : vector<8x128xf32>
    %c54_131 = arith.constant 54 : index
    %1596 = memref.load %arg1[%c54_131] : memref<323xf32, #tpu.memory_space<smem>>
    %1597 = vector.broadcast %1596 : f32 to vector<8x128xf32>
    %1598 = arith.mulf %1597, %1322 : vector<8x128xf32>
    %1599 = arith.addf %1595, %1598 : vector<8x128xf32>
    %c55_132 = arith.constant 55 : index
    %1600 = memref.load %arg1[%c55_132] : memref<323xf32, #tpu.memory_space<smem>>
    %1601 = vector.broadcast %1600 : f32 to vector<8x128xf32>
    %1602 = arith.mulf %1601, %1325 : vector<8x128xf32>
    %1603 = arith.addf %1599, %1602 : vector<8x128xf32>
    %cst_133 = arith.constant 0.000000e+00 : f32
    %1604 = vector.broadcast %cst_133 : f32 to vector<8x128xf32>
    %1605 = arith.maximumf %1603, %1604 : vector<8x128xf32>
    %c78_134 = arith.constant 78 : index
    %1606 = memref.load %arg1[%c78_134] : memref<323xf32, #tpu.memory_space<smem>>
    %1607 = vector.broadcast %1606 : f32 to vector<8x128xf32>
    %c56_135 = arith.constant 56 : index
    %1608 = memref.load %arg1[%c56_135] : memref<323xf32, #tpu.memory_space<smem>>
    %1609 = vector.broadcast %1608 : f32 to vector<8x128xf32>
    %1610 = arith.mulf %1609, %1316 : vector<8x128xf32>
    %1611 = arith.addf %1607, %1610 : vector<8x128xf32>
    %c57_136 = arith.constant 57 : index
    %1612 = memref.load %arg1[%c57_136] : memref<323xf32, #tpu.memory_space<smem>>
    %1613 = vector.broadcast %1612 : f32 to vector<8x128xf32>
    %1614 = arith.mulf %1613, %1319 : vector<8x128xf32>
    %1615 = arith.addf %1611, %1614 : vector<8x128xf32>
    %c58_137 = arith.constant 58 : index
    %1616 = memref.load %arg1[%c58_137] : memref<323xf32, #tpu.memory_space<smem>>
    %1617 = vector.broadcast %1616 : f32 to vector<8x128xf32>
    %1618 = arith.mulf %1617, %1322 : vector<8x128xf32>
    %1619 = arith.addf %1615, %1618 : vector<8x128xf32>
    %c59_138 = arith.constant 59 : index
    %1620 = memref.load %arg1[%c59_138] : memref<323xf32, #tpu.memory_space<smem>>
    %1621 = vector.broadcast %1620 : f32 to vector<8x128xf32>
    %1622 = arith.mulf %1621, %1325 : vector<8x128xf32>
    %1623 = arith.addf %1619, %1622 : vector<8x128xf32>
    %cst_139 = arith.constant 0.000000e+00 : f32
    %1624 = vector.broadcast %cst_139 : f32 to vector<8x128xf32>
    %1625 = arith.maximumf %1623, %1624 : vector<8x128xf32>
    %c79_140 = arith.constant 79 : index
    %1626 = memref.load %arg1[%c79_140] : memref<323xf32, #tpu.memory_space<smem>>
    %1627 = vector.broadcast %1626 : f32 to vector<8x128xf32>
    %c60_141 = arith.constant 60 : index
    %1628 = memref.load %arg1[%c60_141] : memref<323xf32, #tpu.memory_space<smem>>
    %1629 = vector.broadcast %1628 : f32 to vector<8x128xf32>
    %1630 = arith.mulf %1629, %1316 : vector<8x128xf32>
    %1631 = arith.addf %1627, %1630 : vector<8x128xf32>
    %c61_142 = arith.constant 61 : index
    %1632 = memref.load %arg1[%c61_142] : memref<323xf32, #tpu.memory_space<smem>>
    %1633 = vector.broadcast %1632 : f32 to vector<8x128xf32>
    %1634 = arith.mulf %1633, %1319 : vector<8x128xf32>
    %1635 = arith.addf %1631, %1634 : vector<8x128xf32>
    %c62_143 = arith.constant 62 : index
    %1636 = memref.load %arg1[%c62_143] : memref<323xf32, #tpu.memory_space<smem>>
    %1637 = vector.broadcast %1636 : f32 to vector<8x128xf32>
    %1638 = arith.mulf %1637, %1322 : vector<8x128xf32>
    %1639 = arith.addf %1635, %1638 : vector<8x128xf32>
    %c63_144 = arith.constant 63 : index
    %1640 = memref.load %arg1[%c63_144] : memref<323xf32, #tpu.memory_space<smem>>
    %1641 = vector.broadcast %1640 : f32 to vector<8x128xf32>
    %1642 = arith.mulf %1641, %1325 : vector<8x128xf32>
    %1643 = arith.addf %1639, %1642 : vector<8x128xf32>
    %cst_145 = arith.constant 0.000000e+00 : f32
    %1644 = vector.broadcast %cst_145 : f32 to vector<8x128xf32>
    %1645 = arith.maximumf %1643, %1644 : vector<8x128xf32>
    %c272_146 = arith.constant 272 : index
    %1646 = memref.load %arg1[%c272_146] : memref<323xf32, #tpu.memory_space<smem>>
    %1647 = vector.broadcast %1646 : f32 to vector<8x128xf32>
    %c80_147 = arith.constant 80 : index
    %1648 = memref.load %arg1[%c80_147] : memref<323xf32, #tpu.memory_space<smem>>
    %1649 = vector.broadcast %1648 : f32 to vector<8x128xf32>
    %1650 = arith.mulf %1649, %1345 : vector<8x128xf32>
    %1651 = arith.addf %1647, %1650 : vector<8x128xf32>
    %c81_148 = arith.constant 81 : index
    %1652 = memref.load %arg1[%c81_148] : memref<323xf32, #tpu.memory_space<smem>>
    %1653 = vector.broadcast %1652 : f32 to vector<8x128xf32>
    %1654 = arith.mulf %1653, %1365 : vector<8x128xf32>
    %1655 = arith.addf %1651, %1654 : vector<8x128xf32>
    %c82_149 = arith.constant 82 : index
    %1656 = memref.load %arg1[%c82_149] : memref<323xf32, #tpu.memory_space<smem>>
    %1657 = vector.broadcast %1656 : f32 to vector<8x128xf32>
    %1658 = arith.mulf %1657, %1385 : vector<8x128xf32>
    %1659 = arith.addf %1655, %1658 : vector<8x128xf32>
    %c83_150 = arith.constant 83 : index
    %1660 = memref.load %arg1[%c83_150] : memref<323xf32, #tpu.memory_space<smem>>
    %1661 = vector.broadcast %1660 : f32 to vector<8x128xf32>
    %1662 = arith.mulf %1661, %1405 : vector<8x128xf32>
    %1663 = arith.addf %1659, %1662 : vector<8x128xf32>
    %c84_151 = arith.constant 84 : index
    %1664 = memref.load %arg1[%c84_151] : memref<323xf32, #tpu.memory_space<smem>>
    %1665 = vector.broadcast %1664 : f32 to vector<8x128xf32>
    %1666 = arith.mulf %1665, %1425 : vector<8x128xf32>
    %1667 = arith.addf %1663, %1666 : vector<8x128xf32>
    %c85_152 = arith.constant 85 : index
    %1668 = memref.load %arg1[%c85_152] : memref<323xf32, #tpu.memory_space<smem>>
    %1669 = vector.broadcast %1668 : f32 to vector<8x128xf32>
    %1670 = arith.mulf %1669, %1445 : vector<8x128xf32>
    %1671 = arith.addf %1667, %1670 : vector<8x128xf32>
    %c86_153 = arith.constant 86 : index
    %1672 = memref.load %arg1[%c86_153] : memref<323xf32, #tpu.memory_space<smem>>
    %1673 = vector.broadcast %1672 : f32 to vector<8x128xf32>
    %1674 = arith.mulf %1673, %1465 : vector<8x128xf32>
    %1675 = arith.addf %1671, %1674 : vector<8x128xf32>
    %c87_154 = arith.constant 87 : index
    %1676 = memref.load %arg1[%c87_154] : memref<323xf32, #tpu.memory_space<smem>>
    %1677 = vector.broadcast %1676 : f32 to vector<8x128xf32>
    %1678 = arith.mulf %1677, %1485 : vector<8x128xf32>
    %1679 = arith.addf %1675, %1678 : vector<8x128xf32>
    %c88_155 = arith.constant 88 : index
    %1680 = memref.load %arg1[%c88_155] : memref<323xf32, #tpu.memory_space<smem>>
    %1681 = vector.broadcast %1680 : f32 to vector<8x128xf32>
    %1682 = arith.mulf %1681, %1505 : vector<8x128xf32>
    %1683 = arith.addf %1679, %1682 : vector<8x128xf32>
    %c89_156 = arith.constant 89 : index
    %1684 = memref.load %arg1[%c89_156] : memref<323xf32, #tpu.memory_space<smem>>
    %1685 = vector.broadcast %1684 : f32 to vector<8x128xf32>
    %1686 = arith.mulf %1685, %1525 : vector<8x128xf32>
    %1687 = arith.addf %1683, %1686 : vector<8x128xf32>
    %c90_157 = arith.constant 90 : index
    %1688 = memref.load %arg1[%c90_157] : memref<323xf32, #tpu.memory_space<smem>>
    %1689 = vector.broadcast %1688 : f32 to vector<8x128xf32>
    %1690 = arith.mulf %1689, %1545 : vector<8x128xf32>
    %1691 = arith.addf %1687, %1690 : vector<8x128xf32>
    %c91_158 = arith.constant 91 : index
    %1692 = memref.load %arg1[%c91_158] : memref<323xf32, #tpu.memory_space<smem>>
    %1693 = vector.broadcast %1692 : f32 to vector<8x128xf32>
    %1694 = arith.mulf %1693, %1565 : vector<8x128xf32>
    %1695 = arith.addf %1691, %1694 : vector<8x128xf32>
    %c92_159 = arith.constant 92 : index
    %1696 = memref.load %arg1[%c92_159] : memref<323xf32, #tpu.memory_space<smem>>
    %1697 = vector.broadcast %1696 : f32 to vector<8x128xf32>
    %1698 = arith.mulf %1697, %1585 : vector<8x128xf32>
    %1699 = arith.addf %1695, %1698 : vector<8x128xf32>
    %c93_160 = arith.constant 93 : index
    %1700 = memref.load %arg1[%c93_160] : memref<323xf32, #tpu.memory_space<smem>>
    %1701 = vector.broadcast %1700 : f32 to vector<8x128xf32>
    %1702 = arith.mulf %1701, %1605 : vector<8x128xf32>
    %1703 = arith.addf %1699, %1702 : vector<8x128xf32>
    %c94_161 = arith.constant 94 : index
    %1704 = memref.load %arg1[%c94_161] : memref<323xf32, #tpu.memory_space<smem>>
    %1705 = vector.broadcast %1704 : f32 to vector<8x128xf32>
    %1706 = arith.mulf %1705, %1625 : vector<8x128xf32>
    %1707 = arith.addf %1703, %1706 : vector<8x128xf32>
    %c95_162 = arith.constant 95 : index
    %1708 = memref.load %arg1[%c95_162] : memref<323xf32, #tpu.memory_space<smem>>
    %1709 = vector.broadcast %1708 : f32 to vector<8x128xf32>
    %1710 = arith.mulf %1709, %1645 : vector<8x128xf32>
    %1711 = arith.addf %1707, %1710 : vector<8x128xf32>
    %cst_163 = arith.constant 0.000000e+00 : f32
    %1712 = vector.broadcast %cst_163 : f32 to vector<8x128xf32>
    %1713 = arith.maximumf %1711, %1712 : vector<8x128xf32>
    %c273_164 = arith.constant 273 : index
    %1714 = memref.load %arg1[%c273_164] : memref<323xf32, #tpu.memory_space<smem>>
    %1715 = vector.broadcast %1714 : f32 to vector<8x128xf32>
    %c96_165 = arith.constant 96 : index
    %1716 = memref.load %arg1[%c96_165] : memref<323xf32, #tpu.memory_space<smem>>
    %1717 = vector.broadcast %1716 : f32 to vector<8x128xf32>
    %1718 = arith.mulf %1717, %1345 : vector<8x128xf32>
    %1719 = arith.addf %1715, %1718 : vector<8x128xf32>
    %c97_166 = arith.constant 97 : index
    %1720 = memref.load %arg1[%c97_166] : memref<323xf32, #tpu.memory_space<smem>>
    %1721 = vector.broadcast %1720 : f32 to vector<8x128xf32>
    %1722 = arith.mulf %1721, %1365 : vector<8x128xf32>
    %1723 = arith.addf %1719, %1722 : vector<8x128xf32>
    %c98_167 = arith.constant 98 : index
    %1724 = memref.load %arg1[%c98_167] : memref<323xf32, #tpu.memory_space<smem>>
    %1725 = vector.broadcast %1724 : f32 to vector<8x128xf32>
    %1726 = arith.mulf %1725, %1385 : vector<8x128xf32>
    %1727 = arith.addf %1723, %1726 : vector<8x128xf32>
    %c99_168 = arith.constant 99 : index
    %1728 = memref.load %arg1[%c99_168] : memref<323xf32, #tpu.memory_space<smem>>
    %1729 = vector.broadcast %1728 : f32 to vector<8x128xf32>
    %1730 = arith.mulf %1729, %1405 : vector<8x128xf32>
    %1731 = arith.addf %1727, %1730 : vector<8x128xf32>
    %c100_169 = arith.constant 100 : index
    %1732 = memref.load %arg1[%c100_169] : memref<323xf32, #tpu.memory_space<smem>>
    %1733 = vector.broadcast %1732 : f32 to vector<8x128xf32>
    %1734 = arith.mulf %1733, %1425 : vector<8x128xf32>
    %1735 = arith.addf %1731, %1734 : vector<8x128xf32>
    %c101_170 = arith.constant 101 : index
    %1736 = memref.load %arg1[%c101_170] : memref<323xf32, #tpu.memory_space<smem>>
    %1737 = vector.broadcast %1736 : f32 to vector<8x128xf32>
    %1738 = arith.mulf %1737, %1445 : vector<8x128xf32>
    %1739 = arith.addf %1735, %1738 : vector<8x128xf32>
    %c102_171 = arith.constant 102 : index
    %1740 = memref.load %arg1[%c102_171] : memref<323xf32, #tpu.memory_space<smem>>
    %1741 = vector.broadcast %1740 : f32 to vector<8x128xf32>
    %1742 = arith.mulf %1741, %1465 : vector<8x128xf32>
    %1743 = arith.addf %1739, %1742 : vector<8x128xf32>
    %c103_172 = arith.constant 103 : index
    %1744 = memref.load %arg1[%c103_172] : memref<323xf32, #tpu.memory_space<smem>>
    %1745 = vector.broadcast %1744 : f32 to vector<8x128xf32>
    %1746 = arith.mulf %1745, %1485 : vector<8x128xf32>
    %1747 = arith.addf %1743, %1746 : vector<8x128xf32>
    %c104_173 = arith.constant 104 : index
    %1748 = memref.load %arg1[%c104_173] : memref<323xf32, #tpu.memory_space<smem>>
    %1749 = vector.broadcast %1748 : f32 to vector<8x128xf32>
    %1750 = arith.mulf %1749, %1505 : vector<8x128xf32>
    %1751 = arith.addf %1747, %1750 : vector<8x128xf32>
    %c105_174 = arith.constant 105 : index
    %1752 = memref.load %arg1[%c105_174] : memref<323xf32, #tpu.memory_space<smem>>
    %1753 = vector.broadcast %1752 : f32 to vector<8x128xf32>
    %1754 = arith.mulf %1753, %1525 : vector<8x128xf32>
    %1755 = arith.addf %1751, %1754 : vector<8x128xf32>
    %c106_175 = arith.constant 106 : index
    %1756 = memref.load %arg1[%c106_175] : memref<323xf32, #tpu.memory_space<smem>>
    %1757 = vector.broadcast %1756 : f32 to vector<8x128xf32>
    %1758 = arith.mulf %1757, %1545 : vector<8x128xf32>
    %1759 = arith.addf %1755, %1758 : vector<8x128xf32>
    %c107_176 = arith.constant 107 : index
    %1760 = memref.load %arg1[%c107_176] : memref<323xf32, #tpu.memory_space<smem>>
    %1761 = vector.broadcast %1760 : f32 to vector<8x128xf32>
    %1762 = arith.mulf %1761, %1565 : vector<8x128xf32>
    %1763 = arith.addf %1759, %1762 : vector<8x128xf32>
    %c108_177 = arith.constant 108 : index
    %1764 = memref.load %arg1[%c108_177] : memref<323xf32, #tpu.memory_space<smem>>
    %1765 = vector.broadcast %1764 : f32 to vector<8x128xf32>
    %1766 = arith.mulf %1765, %1585 : vector<8x128xf32>
    %1767 = arith.addf %1763, %1766 : vector<8x128xf32>
    %c109_178 = arith.constant 109 : index
    %1768 = memref.load %arg1[%c109_178] : memref<323xf32, #tpu.memory_space<smem>>
    %1769 = vector.broadcast %1768 : f32 to vector<8x128xf32>
    %1770 = arith.mulf %1769, %1605 : vector<8x128xf32>
    %1771 = arith.addf %1767, %1770 : vector<8x128xf32>
    %c110_179 = arith.constant 110 : index
    %1772 = memref.load %arg1[%c110_179] : memref<323xf32, #tpu.memory_space<smem>>
    %1773 = vector.broadcast %1772 : f32 to vector<8x128xf32>
    %1774 = arith.mulf %1773, %1625 : vector<8x128xf32>
    %1775 = arith.addf %1771, %1774 : vector<8x128xf32>
    %c111_180 = arith.constant 111 : index
    %1776 = memref.load %arg1[%c111_180] : memref<323xf32, #tpu.memory_space<smem>>
    %1777 = vector.broadcast %1776 : f32 to vector<8x128xf32>
    %1778 = arith.mulf %1777, %1645 : vector<8x128xf32>
    %1779 = arith.addf %1775, %1778 : vector<8x128xf32>
    %cst_181 = arith.constant 0.000000e+00 : f32
    %1780 = vector.broadcast %cst_181 : f32 to vector<8x128xf32>
    %1781 = arith.maximumf %1779, %1780 : vector<8x128xf32>
    %c274_182 = arith.constant 274 : index
    %1782 = memref.load %arg1[%c274_182] : memref<323xf32, #tpu.memory_space<smem>>
    %1783 = vector.broadcast %1782 : f32 to vector<8x128xf32>
    %c112_183 = arith.constant 112 : index
    %1784 = memref.load %arg1[%c112_183] : memref<323xf32, #tpu.memory_space<smem>>
    %1785 = vector.broadcast %1784 : f32 to vector<8x128xf32>
    %1786 = arith.mulf %1785, %1345 : vector<8x128xf32>
    %1787 = arith.addf %1783, %1786 : vector<8x128xf32>
    %c113_184 = arith.constant 113 : index
    %1788 = memref.load %arg1[%c113_184] : memref<323xf32, #tpu.memory_space<smem>>
    %1789 = vector.broadcast %1788 : f32 to vector<8x128xf32>
    %1790 = arith.mulf %1789, %1365 : vector<8x128xf32>
    %1791 = arith.addf %1787, %1790 : vector<8x128xf32>
    %c114_185 = arith.constant 114 : index
    %1792 = memref.load %arg1[%c114_185] : memref<323xf32, #tpu.memory_space<smem>>
    %1793 = vector.broadcast %1792 : f32 to vector<8x128xf32>
    %1794 = arith.mulf %1793, %1385 : vector<8x128xf32>
    %1795 = arith.addf %1791, %1794 : vector<8x128xf32>
    %c115_186 = arith.constant 115 : index
    %1796 = memref.load %arg1[%c115_186] : memref<323xf32, #tpu.memory_space<smem>>
    %1797 = vector.broadcast %1796 : f32 to vector<8x128xf32>
    %1798 = arith.mulf %1797, %1405 : vector<8x128xf32>
    %1799 = arith.addf %1795, %1798 : vector<8x128xf32>
    %c116_187 = arith.constant 116 : index
    %1800 = memref.load %arg1[%c116_187] : memref<323xf32, #tpu.memory_space<smem>>
    %1801 = vector.broadcast %1800 : f32 to vector<8x128xf32>
    %1802 = arith.mulf %1801, %1425 : vector<8x128xf32>
    %1803 = arith.addf %1799, %1802 : vector<8x128xf32>
    %c117_188 = arith.constant 117 : index
    %1804 = memref.load %arg1[%c117_188] : memref<323xf32, #tpu.memory_space<smem>>
    %1805 = vector.broadcast %1804 : f32 to vector<8x128xf32>
    %1806 = arith.mulf %1805, %1445 : vector<8x128xf32>
    %1807 = arith.addf %1803, %1806 : vector<8x128xf32>
    %c118_189 = arith.constant 118 : index
    %1808 = memref.load %arg1[%c118_189] : memref<323xf32, #tpu.memory_space<smem>>
    %1809 = vector.broadcast %1808 : f32 to vector<8x128xf32>
    %1810 = arith.mulf %1809, %1465 : vector<8x128xf32>
    %1811 = arith.addf %1807, %1810 : vector<8x128xf32>
    %c119_190 = arith.constant 119 : index
    %1812 = memref.load %arg1[%c119_190] : memref<323xf32, #tpu.memory_space<smem>>
    %1813 = vector.broadcast %1812 : f32 to vector<8x128xf32>
    %1814 = arith.mulf %1813, %1485 : vector<8x128xf32>
    %1815 = arith.addf %1811, %1814 : vector<8x128xf32>
    %c120_191 = arith.constant 120 : index
    %1816 = memref.load %arg1[%c120_191] : memref<323xf32, #tpu.memory_space<smem>>
    %1817 = vector.broadcast %1816 : f32 to vector<8x128xf32>
    %1818 = arith.mulf %1817, %1505 : vector<8x128xf32>
    %1819 = arith.addf %1815, %1818 : vector<8x128xf32>
    %c121_192 = arith.constant 121 : index
    %1820 = memref.load %arg1[%c121_192] : memref<323xf32, #tpu.memory_space<smem>>
    %1821 = vector.broadcast %1820 : f32 to vector<8x128xf32>
    %1822 = arith.mulf %1821, %1525 : vector<8x128xf32>
    %1823 = arith.addf %1819, %1822 : vector<8x128xf32>
    %c122_193 = arith.constant 122 : index
    %1824 = memref.load %arg1[%c122_193] : memref<323xf32, #tpu.memory_space<smem>>
    %1825 = vector.broadcast %1824 : f32 to vector<8x128xf32>
    %1826 = arith.mulf %1825, %1545 : vector<8x128xf32>
    %1827 = arith.addf %1823, %1826 : vector<8x128xf32>
    %c123_194 = arith.constant 123 : index
    %1828 = memref.load %arg1[%c123_194] : memref<323xf32, #tpu.memory_space<smem>>
    %1829 = vector.broadcast %1828 : f32 to vector<8x128xf32>
    %1830 = arith.mulf %1829, %1565 : vector<8x128xf32>
    %1831 = arith.addf %1827, %1830 : vector<8x128xf32>
    %c124_195 = arith.constant 124 : index
    %1832 = memref.load %arg1[%c124_195] : memref<323xf32, #tpu.memory_space<smem>>
    %1833 = vector.broadcast %1832 : f32 to vector<8x128xf32>
    %1834 = arith.mulf %1833, %1585 : vector<8x128xf32>
    %1835 = arith.addf %1831, %1834 : vector<8x128xf32>
    %c125_196 = arith.constant 125 : index
    %1836 = memref.load %arg1[%c125_196] : memref<323xf32, #tpu.memory_space<smem>>
    %1837 = vector.broadcast %1836 : f32 to vector<8x128xf32>
    %1838 = arith.mulf %1837, %1605 : vector<8x128xf32>
    %1839 = arith.addf %1835, %1838 : vector<8x128xf32>
    %c126_197 = arith.constant 126 : index
    %1840 = memref.load %arg1[%c126_197] : memref<323xf32, #tpu.memory_space<smem>>
    %1841 = vector.broadcast %1840 : f32 to vector<8x128xf32>
    %1842 = arith.mulf %1841, %1625 : vector<8x128xf32>
    %1843 = arith.addf %1839, %1842 : vector<8x128xf32>
    %c127_198 = arith.constant 127 : index
    %1844 = memref.load %arg1[%c127_198] : memref<323xf32, #tpu.memory_space<smem>>
    %1845 = vector.broadcast %1844 : f32 to vector<8x128xf32>
    %1846 = arith.mulf %1845, %1645 : vector<8x128xf32>
    %1847 = arith.addf %1843, %1846 : vector<8x128xf32>
    %cst_199 = arith.constant 0.000000e+00 : f32
    %1848 = vector.broadcast %cst_199 : f32 to vector<8x128xf32>
    %1849 = arith.maximumf %1847, %1848 : vector<8x128xf32>
    %c275_200 = arith.constant 275 : index
    %1850 = memref.load %arg1[%c275_200] : memref<323xf32, #tpu.memory_space<smem>>
    %1851 = vector.broadcast %1850 : f32 to vector<8x128xf32>
    %c128_201 = arith.constant 128 : index
    %1852 = memref.load %arg1[%c128_201] : memref<323xf32, #tpu.memory_space<smem>>
    %1853 = vector.broadcast %1852 : f32 to vector<8x128xf32>
    %1854 = arith.mulf %1853, %1345 : vector<8x128xf32>
    %1855 = arith.addf %1851, %1854 : vector<8x128xf32>
    %c129_202 = arith.constant 129 : index
    %1856 = memref.load %arg1[%c129_202] : memref<323xf32, #tpu.memory_space<smem>>
    %1857 = vector.broadcast %1856 : f32 to vector<8x128xf32>
    %1858 = arith.mulf %1857, %1365 : vector<8x128xf32>
    %1859 = arith.addf %1855, %1858 : vector<8x128xf32>
    %c130_203 = arith.constant 130 : index
    %1860 = memref.load %arg1[%c130_203] : memref<323xf32, #tpu.memory_space<smem>>
    %1861 = vector.broadcast %1860 : f32 to vector<8x128xf32>
    %1862 = arith.mulf %1861, %1385 : vector<8x128xf32>
    %1863 = arith.addf %1859, %1862 : vector<8x128xf32>
    %c131_204 = arith.constant 131 : index
    %1864 = memref.load %arg1[%c131_204] : memref<323xf32, #tpu.memory_space<smem>>
    %1865 = vector.broadcast %1864 : f32 to vector<8x128xf32>
    %1866 = arith.mulf %1865, %1405 : vector<8x128xf32>
    %1867 = arith.addf %1863, %1866 : vector<8x128xf32>
    %c132_205 = arith.constant 132 : index
    %1868 = memref.load %arg1[%c132_205] : memref<323xf32, #tpu.memory_space<smem>>
    %1869 = vector.broadcast %1868 : f32 to vector<8x128xf32>
    %1870 = arith.mulf %1869, %1425 : vector<8x128xf32>
    %1871 = arith.addf %1867, %1870 : vector<8x128xf32>
    %c133_206 = arith.constant 133 : index
    %1872 = memref.load %arg1[%c133_206] : memref<323xf32, #tpu.memory_space<smem>>
    %1873 = vector.broadcast %1872 : f32 to vector<8x128xf32>
    %1874 = arith.mulf %1873, %1445 : vector<8x128xf32>
    %1875 = arith.addf %1871, %1874 : vector<8x128xf32>
    %c134_207 = arith.constant 134 : index
    %1876 = memref.load %arg1[%c134_207] : memref<323xf32, #tpu.memory_space<smem>>
    %1877 = vector.broadcast %1876 : f32 to vector<8x128xf32>
    %1878 = arith.mulf %1877, %1465 : vector<8x128xf32>
    %1879 = arith.addf %1875, %1878 : vector<8x128xf32>
    %c135_208 = arith.constant 135 : index
    %1880 = memref.load %arg1[%c135_208] : memref<323xf32, #tpu.memory_space<smem>>
    %1881 = vector.broadcast %1880 : f32 to vector<8x128xf32>
    %1882 = arith.mulf %1881, %1485 : vector<8x128xf32>
    %1883 = arith.addf %1879, %1882 : vector<8x128xf32>
    %c136_209 = arith.constant 136 : index
    %1884 = memref.load %arg1[%c136_209] : memref<323xf32, #tpu.memory_space<smem>>
    %1885 = vector.broadcast %1884 : f32 to vector<8x128xf32>
    %1886 = arith.mulf %1885, %1505 : vector<8x128xf32>
    %1887 = arith.addf %1883, %1886 : vector<8x128xf32>
    %c137_210 = arith.constant 137 : index
    %1888 = memref.load %arg1[%c137_210] : memref<323xf32, #tpu.memory_space<smem>>
    %1889 = vector.broadcast %1888 : f32 to vector<8x128xf32>
    %1890 = arith.mulf %1889, %1525 : vector<8x128xf32>
    %1891 = arith.addf %1887, %1890 : vector<8x128xf32>
    %c138_211 = arith.constant 138 : index
    %1892 = memref.load %arg1[%c138_211] : memref<323xf32, #tpu.memory_space<smem>>
    %1893 = vector.broadcast %1892 : f32 to vector<8x128xf32>
    %1894 = arith.mulf %1893, %1545 : vector<8x128xf32>
    %1895 = arith.addf %1891, %1894 : vector<8x128xf32>
    %c139_212 = arith.constant 139 : index
    %1896 = memref.load %arg1[%c139_212] : memref<323xf32, #tpu.memory_space<smem>>
    %1897 = vector.broadcast %1896 : f32 to vector<8x128xf32>
    %1898 = arith.mulf %1897, %1565 : vector<8x128xf32>
    %1899 = arith.addf %1895, %1898 : vector<8x128xf32>
    %c140_213 = arith.constant 140 : index
    %1900 = memref.load %arg1[%c140_213] : memref<323xf32, #tpu.memory_space<smem>>
    %1901 = vector.broadcast %1900 : f32 to vector<8x128xf32>
    %1902 = arith.mulf %1901, %1585 : vector<8x128xf32>
    %1903 = arith.addf %1899, %1902 : vector<8x128xf32>
    %c141_214 = arith.constant 141 : index
    %1904 = memref.load %arg1[%c141_214] : memref<323xf32, #tpu.memory_space<smem>>
    %1905 = vector.broadcast %1904 : f32 to vector<8x128xf32>
    %1906 = arith.mulf %1905, %1605 : vector<8x128xf32>
    %1907 = arith.addf %1903, %1906 : vector<8x128xf32>
    %c142_215 = arith.constant 142 : index
    %1908 = memref.load %arg1[%c142_215] : memref<323xf32, #tpu.memory_space<smem>>
    %1909 = vector.broadcast %1908 : f32 to vector<8x128xf32>
    %1910 = arith.mulf %1909, %1625 : vector<8x128xf32>
    %1911 = arith.addf %1907, %1910 : vector<8x128xf32>
    %c143_216 = arith.constant 143 : index
    %1912 = memref.load %arg1[%c143_216] : memref<323xf32, #tpu.memory_space<smem>>
    %1913 = vector.broadcast %1912 : f32 to vector<8x128xf32>
    %1914 = arith.mulf %1913, %1645 : vector<8x128xf32>
    %1915 = arith.addf %1911, %1914 : vector<8x128xf32>
    %cst_217 = arith.constant 0.000000e+00 : f32
    %1916 = vector.broadcast %cst_217 : f32 to vector<8x128xf32>
    %1917 = arith.maximumf %1915, %1916 : vector<8x128xf32>
    %c276_218 = arith.constant 276 : index
    %1918 = memref.load %arg1[%c276_218] : memref<323xf32, #tpu.memory_space<smem>>
    %1919 = vector.broadcast %1918 : f32 to vector<8x128xf32>
    %c144_219 = arith.constant 144 : index
    %1920 = memref.load %arg1[%c144_219] : memref<323xf32, #tpu.memory_space<smem>>
    %1921 = vector.broadcast %1920 : f32 to vector<8x128xf32>
    %1922 = arith.mulf %1921, %1345 : vector<8x128xf32>
    %1923 = arith.addf %1919, %1922 : vector<8x128xf32>
    %c145_220 = arith.constant 145 : index
    %1924 = memref.load %arg1[%c145_220] : memref<323xf32, #tpu.memory_space<smem>>
    %1925 = vector.broadcast %1924 : f32 to vector<8x128xf32>
    %1926 = arith.mulf %1925, %1365 : vector<8x128xf32>
    %1927 = arith.addf %1923, %1926 : vector<8x128xf32>
    %c146_221 = arith.constant 146 : index
    %1928 = memref.load %arg1[%c146_221] : memref<323xf32, #tpu.memory_space<smem>>
    %1929 = vector.broadcast %1928 : f32 to vector<8x128xf32>
    %1930 = arith.mulf %1929, %1385 : vector<8x128xf32>
    %1931 = arith.addf %1927, %1930 : vector<8x128xf32>
    %c147_222 = arith.constant 147 : index
    %1932 = memref.load %arg1[%c147_222] : memref<323xf32, #tpu.memory_space<smem>>
    %1933 = vector.broadcast %1932 : f32 to vector<8x128xf32>
    %1934 = arith.mulf %1933, %1405 : vector<8x128xf32>
    %1935 = arith.addf %1931, %1934 : vector<8x128xf32>
    %c148_223 = arith.constant 148 : index
    %1936 = memref.load %arg1[%c148_223] : memref<323xf32, #tpu.memory_space<smem>>
    %1937 = vector.broadcast %1936 : f32 to vector<8x128xf32>
    %1938 = arith.mulf %1937, %1425 : vector<8x128xf32>
    %1939 = arith.addf %1935, %1938 : vector<8x128xf32>
    %c149_224 = arith.constant 149 : index
    %1940 = memref.load %arg1[%c149_224] : memref<323xf32, #tpu.memory_space<smem>>
    %1941 = vector.broadcast %1940 : f32 to vector<8x128xf32>
    %1942 = arith.mulf %1941, %1445 : vector<8x128xf32>
    %1943 = arith.addf %1939, %1942 : vector<8x128xf32>
    %c150_225 = arith.constant 150 : index
    %1944 = memref.load %arg1[%c150_225] : memref<323xf32, #tpu.memory_space<smem>>
    %1945 = vector.broadcast %1944 : f32 to vector<8x128xf32>
    %1946 = arith.mulf %1945, %1465 : vector<8x128xf32>
    %1947 = arith.addf %1943, %1946 : vector<8x128xf32>
    %c151_226 = arith.constant 151 : index
    %1948 = memref.load %arg1[%c151_226] : memref<323xf32, #tpu.memory_space<smem>>
    %1949 = vector.broadcast %1948 : f32 to vector<8x128xf32>
    %1950 = arith.mulf %1949, %1485 : vector<8x128xf32>
    %1951 = arith.addf %1947, %1950 : vector<8x128xf32>
    %c152_227 = arith.constant 152 : index
    %1952 = memref.load %arg1[%c152_227] : memref<323xf32, #tpu.memory_space<smem>>
    %1953 = vector.broadcast %1952 : f32 to vector<8x128xf32>
    %1954 = arith.mulf %1953, %1505 : vector<8x128xf32>
    %1955 = arith.addf %1951, %1954 : vector<8x128xf32>
    %c153_228 = arith.constant 153 : index
    %1956 = memref.load %arg1[%c153_228] : memref<323xf32, #tpu.memory_space<smem>>
    %1957 = vector.broadcast %1956 : f32 to vector<8x128xf32>
    %1958 = arith.mulf %1957, %1525 : vector<8x128xf32>
    %1959 = arith.addf %1955, %1958 : vector<8x128xf32>
    %c154_229 = arith.constant 154 : index
    %1960 = memref.load %arg1[%c154_229] : memref<323xf32, #tpu.memory_space<smem>>
    %1961 = vector.broadcast %1960 : f32 to vector<8x128xf32>
    %1962 = arith.mulf %1961, %1545 : vector<8x128xf32>
    %1963 = arith.addf %1959, %1962 : vector<8x128xf32>
    %c155_230 = arith.constant 155 : index
    %1964 = memref.load %arg1[%c155_230] : memref<323xf32, #tpu.memory_space<smem>>
    %1965 = vector.broadcast %1964 : f32 to vector<8x128xf32>
    %1966 = arith.mulf %1965, %1565 : vector<8x128xf32>
    %1967 = arith.addf %1963, %1966 : vector<8x128xf32>
    %c156_231 = arith.constant 156 : index
    %1968 = memref.load %arg1[%c156_231] : memref<323xf32, #tpu.memory_space<smem>>
    %1969 = vector.broadcast %1968 : f32 to vector<8x128xf32>
    %1970 = arith.mulf %1969, %1585 : vector<8x128xf32>
    %1971 = arith.addf %1967, %1970 : vector<8x128xf32>
    %c157_232 = arith.constant 157 : index
    %1972 = memref.load %arg1[%c157_232] : memref<323xf32, #tpu.memory_space<smem>>
    %1973 = vector.broadcast %1972 : f32 to vector<8x128xf32>
    %1974 = arith.mulf %1973, %1605 : vector<8x128xf32>
    %1975 = arith.addf %1971, %1974 : vector<8x128xf32>
    %c158_233 = arith.constant 158 : index
    %1976 = memref.load %arg1[%c158_233] : memref<323xf32, #tpu.memory_space<smem>>
    %1977 = vector.broadcast %1976 : f32 to vector<8x128xf32>
    %1978 = arith.mulf %1977, %1625 : vector<8x128xf32>
    %1979 = arith.addf %1975, %1978 : vector<8x128xf32>
    %c159_234 = arith.constant 159 : index
    %1980 = memref.load %arg1[%c159_234] : memref<323xf32, #tpu.memory_space<smem>>
    %1981 = vector.broadcast %1980 : f32 to vector<8x128xf32>
    %1982 = arith.mulf %1981, %1645 : vector<8x128xf32>
    %1983 = arith.addf %1979, %1982 : vector<8x128xf32>
    %cst_235 = arith.constant 0.000000e+00 : f32
    %1984 = vector.broadcast %cst_235 : f32 to vector<8x128xf32>
    %1985 = arith.maximumf %1983, %1984 : vector<8x128xf32>
    %c277_236 = arith.constant 277 : index
    %1986 = memref.load %arg1[%c277_236] : memref<323xf32, #tpu.memory_space<smem>>
    %1987 = vector.broadcast %1986 : f32 to vector<8x128xf32>
    %c160_237 = arith.constant 160 : index
    %1988 = memref.load %arg1[%c160_237] : memref<323xf32, #tpu.memory_space<smem>>
    %1989 = vector.broadcast %1988 : f32 to vector<8x128xf32>
    %1990 = arith.mulf %1989, %1345 : vector<8x128xf32>
    %1991 = arith.addf %1987, %1990 : vector<8x128xf32>
    %c161_238 = arith.constant 161 : index
    %1992 = memref.load %arg1[%c161_238] : memref<323xf32, #tpu.memory_space<smem>>
    %1993 = vector.broadcast %1992 : f32 to vector<8x128xf32>
    %1994 = arith.mulf %1993, %1365 : vector<8x128xf32>
    %1995 = arith.addf %1991, %1994 : vector<8x128xf32>
    %c162_239 = arith.constant 162 : index
    %1996 = memref.load %arg1[%c162_239] : memref<323xf32, #tpu.memory_space<smem>>
    %1997 = vector.broadcast %1996 : f32 to vector<8x128xf32>
    %1998 = arith.mulf %1997, %1385 : vector<8x128xf32>
    %1999 = arith.addf %1995, %1998 : vector<8x128xf32>
    %c163_240 = arith.constant 163 : index
    %2000 = memref.load %arg1[%c163_240] : memref<323xf32, #tpu.memory_space<smem>>
    %2001 = vector.broadcast %2000 : f32 to vector<8x128xf32>
    %2002 = arith.mulf %2001, %1405 : vector<8x128xf32>
    %2003 = arith.addf %1999, %2002 : vector<8x128xf32>
    %c164_241 = arith.constant 164 : index
    %2004 = memref.load %arg1[%c164_241] : memref<323xf32, #tpu.memory_space<smem>>
    %2005 = vector.broadcast %2004 : f32 to vector<8x128xf32>
    %2006 = arith.mulf %2005, %1425 : vector<8x128xf32>
    %2007 = arith.addf %2003, %2006 : vector<8x128xf32>
    %c165_242 = arith.constant 165 : index
    %2008 = memref.load %arg1[%c165_242] : memref<323xf32, #tpu.memory_space<smem>>
    %2009 = vector.broadcast %2008 : f32 to vector<8x128xf32>
    %2010 = arith.mulf %2009, %1445 : vector<8x128xf32>
    %2011 = arith.addf %2007, %2010 : vector<8x128xf32>
    %c166_243 = arith.constant 166 : index
    %2012 = memref.load %arg1[%c166_243] : memref<323xf32, #tpu.memory_space<smem>>
    %2013 = vector.broadcast %2012 : f32 to vector<8x128xf32>
    %2014 = arith.mulf %2013, %1465 : vector<8x128xf32>
    %2015 = arith.addf %2011, %2014 : vector<8x128xf32>
    %c167_244 = arith.constant 167 : index
    %2016 = memref.load %arg1[%c167_244] : memref<323xf32, #tpu.memory_space<smem>>
    %2017 = vector.broadcast %2016 : f32 to vector<8x128xf32>
    %2018 = arith.mulf %2017, %1485 : vector<8x128xf32>
    %2019 = arith.addf %2015, %2018 : vector<8x128xf32>
    %c168_245 = arith.constant 168 : index
    %2020 = memref.load %arg1[%c168_245] : memref<323xf32, #tpu.memory_space<smem>>
    %2021 = vector.broadcast %2020 : f32 to vector<8x128xf32>
    %2022 = arith.mulf %2021, %1505 : vector<8x128xf32>
    %2023 = arith.addf %2019, %2022 : vector<8x128xf32>
    %c169_246 = arith.constant 169 : index
    %2024 = memref.load %arg1[%c169_246] : memref<323xf32, #tpu.memory_space<smem>>
    %2025 = vector.broadcast %2024 : f32 to vector<8x128xf32>
    %2026 = arith.mulf %2025, %1525 : vector<8x128xf32>
    %2027 = arith.addf %2023, %2026 : vector<8x128xf32>
    %c170_247 = arith.constant 170 : index
    %2028 = memref.load %arg1[%c170_247] : memref<323xf32, #tpu.memory_space<smem>>
    %2029 = vector.broadcast %2028 : f32 to vector<8x128xf32>
    %2030 = arith.mulf %2029, %1545 : vector<8x128xf32>
    %2031 = arith.addf %2027, %2030 : vector<8x128xf32>
    %c171_248 = arith.constant 171 : index
    %2032 = memref.load %arg1[%c171_248] : memref<323xf32, #tpu.memory_space<smem>>
    %2033 = vector.broadcast %2032 : f32 to vector<8x128xf32>
    %2034 = arith.mulf %2033, %1565 : vector<8x128xf32>
    %2035 = arith.addf %2031, %2034 : vector<8x128xf32>
    %c172_249 = arith.constant 172 : index
    %2036 = memref.load %arg1[%c172_249] : memref<323xf32, #tpu.memory_space<smem>>
    %2037 = vector.broadcast %2036 : f32 to vector<8x128xf32>
    %2038 = arith.mulf %2037, %1585 : vector<8x128xf32>
    %2039 = arith.addf %2035, %2038 : vector<8x128xf32>
    %c173_250 = arith.constant 173 : index
    %2040 = memref.load %arg1[%c173_250] : memref<323xf32, #tpu.memory_space<smem>>
    %2041 = vector.broadcast %2040 : f32 to vector<8x128xf32>
    %2042 = arith.mulf %2041, %1605 : vector<8x128xf32>
    %2043 = arith.addf %2039, %2042 : vector<8x128xf32>
    %c174_251 = arith.constant 174 : index
    %2044 = memref.load %arg1[%c174_251] : memref<323xf32, #tpu.memory_space<smem>>
    %2045 = vector.broadcast %2044 : f32 to vector<8x128xf32>
    %2046 = arith.mulf %2045, %1625 : vector<8x128xf32>
    %2047 = arith.addf %2043, %2046 : vector<8x128xf32>
    %c175_252 = arith.constant 175 : index
    %2048 = memref.load %arg1[%c175_252] : memref<323xf32, #tpu.memory_space<smem>>
    %2049 = vector.broadcast %2048 : f32 to vector<8x128xf32>
    %2050 = arith.mulf %2049, %1645 : vector<8x128xf32>
    %2051 = arith.addf %2047, %2050 : vector<8x128xf32>
    %cst_253 = arith.constant 0.000000e+00 : f32
    %2052 = vector.broadcast %cst_253 : f32 to vector<8x128xf32>
    %2053 = arith.maximumf %2051, %2052 : vector<8x128xf32>
    %c278_254 = arith.constant 278 : index
    %2054 = memref.load %arg1[%c278_254] : memref<323xf32, #tpu.memory_space<smem>>
    %2055 = vector.broadcast %2054 : f32 to vector<8x128xf32>
    %c176_255 = arith.constant 176 : index
    %2056 = memref.load %arg1[%c176_255] : memref<323xf32, #tpu.memory_space<smem>>
    %2057 = vector.broadcast %2056 : f32 to vector<8x128xf32>
    %2058 = arith.mulf %2057, %1345 : vector<8x128xf32>
    %2059 = arith.addf %2055, %2058 : vector<8x128xf32>
    %c177_256 = arith.constant 177 : index
    %2060 = memref.load %arg1[%c177_256] : memref<323xf32, #tpu.memory_space<smem>>
    %2061 = vector.broadcast %2060 : f32 to vector<8x128xf32>
    %2062 = arith.mulf %2061, %1365 : vector<8x128xf32>
    %2063 = arith.addf %2059, %2062 : vector<8x128xf32>
    %c178_257 = arith.constant 178 : index
    %2064 = memref.load %arg1[%c178_257] : memref<323xf32, #tpu.memory_space<smem>>
    %2065 = vector.broadcast %2064 : f32 to vector<8x128xf32>
    %2066 = arith.mulf %2065, %1385 : vector<8x128xf32>
    %2067 = arith.addf %2063, %2066 : vector<8x128xf32>
    %c179_258 = arith.constant 179 : index
    %2068 = memref.load %arg1[%c179_258] : memref<323xf32, #tpu.memory_space<smem>>
    %2069 = vector.broadcast %2068 : f32 to vector<8x128xf32>
    %2070 = arith.mulf %2069, %1405 : vector<8x128xf32>
    %2071 = arith.addf %2067, %2070 : vector<8x128xf32>
    %c180_259 = arith.constant 180 : index
    %2072 = memref.load %arg1[%c180_259] : memref<323xf32, #tpu.memory_space<smem>>
    %2073 = vector.broadcast %2072 : f32 to vector<8x128xf32>
    %2074 = arith.mulf %2073, %1425 : vector<8x128xf32>
    %2075 = arith.addf %2071, %2074 : vector<8x128xf32>
    %c181_260 = arith.constant 181 : index
    %2076 = memref.load %arg1[%c181_260] : memref<323xf32, #tpu.memory_space<smem>>
    %2077 = vector.broadcast %2076 : f32 to vector<8x128xf32>
    %2078 = arith.mulf %2077, %1445 : vector<8x128xf32>
    %2079 = arith.addf %2075, %2078 : vector<8x128xf32>
    %c182_261 = arith.constant 182 : index
    %2080 = memref.load %arg1[%c182_261] : memref<323xf32, #tpu.memory_space<smem>>
    %2081 = vector.broadcast %2080 : f32 to vector<8x128xf32>
    %2082 = arith.mulf %2081, %1465 : vector<8x128xf32>
    %2083 = arith.addf %2079, %2082 : vector<8x128xf32>
    %c183_262 = arith.constant 183 : index
    %2084 = memref.load %arg1[%c183_262] : memref<323xf32, #tpu.memory_space<smem>>
    %2085 = vector.broadcast %2084 : f32 to vector<8x128xf32>
    %2086 = arith.mulf %2085, %1485 : vector<8x128xf32>
    %2087 = arith.addf %2083, %2086 : vector<8x128xf32>
    %c184_263 = arith.constant 184 : index
    %2088 = memref.load %arg1[%c184_263] : memref<323xf32, #tpu.memory_space<smem>>
    %2089 = vector.broadcast %2088 : f32 to vector<8x128xf32>
    %2090 = arith.mulf %2089, %1505 : vector<8x128xf32>
    %2091 = arith.addf %2087, %2090 : vector<8x128xf32>
    %c185_264 = arith.constant 185 : index
    %2092 = memref.load %arg1[%c185_264] : memref<323xf32, #tpu.memory_space<smem>>
    %2093 = vector.broadcast %2092 : f32 to vector<8x128xf32>
    %2094 = arith.mulf %2093, %1525 : vector<8x128xf32>
    %2095 = arith.addf %2091, %2094 : vector<8x128xf32>
    %c186_265 = arith.constant 186 : index
    %2096 = memref.load %arg1[%c186_265] : memref<323xf32, #tpu.memory_space<smem>>
    %2097 = vector.broadcast %2096 : f32 to vector<8x128xf32>
    %2098 = arith.mulf %2097, %1545 : vector<8x128xf32>
    %2099 = arith.addf %2095, %2098 : vector<8x128xf32>
    %c187_266 = arith.constant 187 : index
    %2100 = memref.load %arg1[%c187_266] : memref<323xf32, #tpu.memory_space<smem>>
    %2101 = vector.broadcast %2100 : f32 to vector<8x128xf32>
    %2102 = arith.mulf %2101, %1565 : vector<8x128xf32>
    %2103 = arith.addf %2099, %2102 : vector<8x128xf32>
    %c188_267 = arith.constant 188 : index
    %2104 = memref.load %arg1[%c188_267] : memref<323xf32, #tpu.memory_space<smem>>
    %2105 = vector.broadcast %2104 : f32 to vector<8x128xf32>
    %2106 = arith.mulf %2105, %1585 : vector<8x128xf32>
    %2107 = arith.addf %2103, %2106 : vector<8x128xf32>
    %c189_268 = arith.constant 189 : index
    %2108 = memref.load %arg1[%c189_268] : memref<323xf32, #tpu.memory_space<smem>>
    %2109 = vector.broadcast %2108 : f32 to vector<8x128xf32>
    %2110 = arith.mulf %2109, %1605 : vector<8x128xf32>
    %2111 = arith.addf %2107, %2110 : vector<8x128xf32>
    %c190_269 = arith.constant 190 : index
    %2112 = memref.load %arg1[%c190_269] : memref<323xf32, #tpu.memory_space<smem>>
    %2113 = vector.broadcast %2112 : f32 to vector<8x128xf32>
    %2114 = arith.mulf %2113, %1625 : vector<8x128xf32>
    %2115 = arith.addf %2111, %2114 : vector<8x128xf32>
    %c191_270 = arith.constant 191 : index
    %2116 = memref.load %arg1[%c191_270] : memref<323xf32, #tpu.memory_space<smem>>
    %2117 = vector.broadcast %2116 : f32 to vector<8x128xf32>
    %2118 = arith.mulf %2117, %1645 : vector<8x128xf32>
    %2119 = arith.addf %2115, %2118 : vector<8x128xf32>
    %cst_271 = arith.constant 0.000000e+00 : f32
    %2120 = vector.broadcast %cst_271 : f32 to vector<8x128xf32>
    %2121 = arith.maximumf %2119, %2120 : vector<8x128xf32>
    %c279_272 = arith.constant 279 : index
    %2122 = memref.load %arg1[%c279_272] : memref<323xf32, #tpu.memory_space<smem>>
    %2123 = vector.broadcast %2122 : f32 to vector<8x128xf32>
    %c192_273 = arith.constant 192 : index
    %2124 = memref.load %arg1[%c192_273] : memref<323xf32, #tpu.memory_space<smem>>
    %2125 = vector.broadcast %2124 : f32 to vector<8x128xf32>
    %2126 = arith.mulf %2125, %1345 : vector<8x128xf32>
    %2127 = arith.addf %2123, %2126 : vector<8x128xf32>
    %c193_274 = arith.constant 193 : index
    %2128 = memref.load %arg1[%c193_274] : memref<323xf32, #tpu.memory_space<smem>>
    %2129 = vector.broadcast %2128 : f32 to vector<8x128xf32>
    %2130 = arith.mulf %2129, %1365 : vector<8x128xf32>
    %2131 = arith.addf %2127, %2130 : vector<8x128xf32>
    %c194_275 = arith.constant 194 : index
    %2132 = memref.load %arg1[%c194_275] : memref<323xf32, #tpu.memory_space<smem>>
    %2133 = vector.broadcast %2132 : f32 to vector<8x128xf32>
    %2134 = arith.mulf %2133, %1385 : vector<8x128xf32>
    %2135 = arith.addf %2131, %2134 : vector<8x128xf32>
    %c195_276 = arith.constant 195 : index
    %2136 = memref.load %arg1[%c195_276] : memref<323xf32, #tpu.memory_space<smem>>
    %2137 = vector.broadcast %2136 : f32 to vector<8x128xf32>
    %2138 = arith.mulf %2137, %1405 : vector<8x128xf32>
    %2139 = arith.addf %2135, %2138 : vector<8x128xf32>
    %c196_277 = arith.constant 196 : index
    %2140 = memref.load %arg1[%c196_277] : memref<323xf32, #tpu.memory_space<smem>>
    %2141 = vector.broadcast %2140 : f32 to vector<8x128xf32>
    %2142 = arith.mulf %2141, %1425 : vector<8x128xf32>
    %2143 = arith.addf %2139, %2142 : vector<8x128xf32>
    %c197_278 = arith.constant 197 : index
    %2144 = memref.load %arg1[%c197_278] : memref<323xf32, #tpu.memory_space<smem>>
    %2145 = vector.broadcast %2144 : f32 to vector<8x128xf32>
    %2146 = arith.mulf %2145, %1445 : vector<8x128xf32>
    %2147 = arith.addf %2143, %2146 : vector<8x128xf32>
    %c198_279 = arith.constant 198 : index
    %2148 = memref.load %arg1[%c198_279] : memref<323xf32, #tpu.memory_space<smem>>
    %2149 = vector.broadcast %2148 : f32 to vector<8x128xf32>
    %2150 = arith.mulf %2149, %1465 : vector<8x128xf32>
    %2151 = arith.addf %2147, %2150 : vector<8x128xf32>
    %c199_280 = arith.constant 199 : index
    %2152 = memref.load %arg1[%c199_280] : memref<323xf32, #tpu.memory_space<smem>>
    %2153 = vector.broadcast %2152 : f32 to vector<8x128xf32>
    %2154 = arith.mulf %2153, %1485 : vector<8x128xf32>
    %2155 = arith.addf %2151, %2154 : vector<8x128xf32>
    %c200_281 = arith.constant 200 : index
    %2156 = memref.load %arg1[%c200_281] : memref<323xf32, #tpu.memory_space<smem>>
    %2157 = vector.broadcast %2156 : f32 to vector<8x128xf32>
    %2158 = arith.mulf %2157, %1505 : vector<8x128xf32>
    %2159 = arith.addf %2155, %2158 : vector<8x128xf32>
    %c201_282 = arith.constant 201 : index
    %2160 = memref.load %arg1[%c201_282] : memref<323xf32, #tpu.memory_space<smem>>
    %2161 = vector.broadcast %2160 : f32 to vector<8x128xf32>
    %2162 = arith.mulf %2161, %1525 : vector<8x128xf32>
    %2163 = arith.addf %2159, %2162 : vector<8x128xf32>
    %c202_283 = arith.constant 202 : index
    %2164 = memref.load %arg1[%c202_283] : memref<323xf32, #tpu.memory_space<smem>>
    %2165 = vector.broadcast %2164 : f32 to vector<8x128xf32>
    %2166 = arith.mulf %2165, %1545 : vector<8x128xf32>
    %2167 = arith.addf %2163, %2166 : vector<8x128xf32>
    %c203_284 = arith.constant 203 : index
    %2168 = memref.load %arg1[%c203_284] : memref<323xf32, #tpu.memory_space<smem>>
    %2169 = vector.broadcast %2168 : f32 to vector<8x128xf32>
    %2170 = arith.mulf %2169, %1565 : vector<8x128xf32>
    %2171 = arith.addf %2167, %2170 : vector<8x128xf32>
    %c204_285 = arith.constant 204 : index
    %2172 = memref.load %arg1[%c204_285] : memref<323xf32, #tpu.memory_space<smem>>
    %2173 = vector.broadcast %2172 : f32 to vector<8x128xf32>
    %2174 = arith.mulf %2173, %1585 : vector<8x128xf32>
    %2175 = arith.addf %2171, %2174 : vector<8x128xf32>
    %c205_286 = arith.constant 205 : index
    %2176 = memref.load %arg1[%c205_286] : memref<323xf32, #tpu.memory_space<smem>>
    %2177 = vector.broadcast %2176 : f32 to vector<8x128xf32>
    %2178 = arith.mulf %2177, %1605 : vector<8x128xf32>
    %2179 = arith.addf %2175, %2178 : vector<8x128xf32>
    %c206_287 = arith.constant 206 : index
    %2180 = memref.load %arg1[%c206_287] : memref<323xf32, #tpu.memory_space<smem>>
    %2181 = vector.broadcast %2180 : f32 to vector<8x128xf32>
    %2182 = arith.mulf %2181, %1625 : vector<8x128xf32>
    %2183 = arith.addf %2179, %2182 : vector<8x128xf32>
    %c207_288 = arith.constant 207 : index
    %2184 = memref.load %arg1[%c207_288] : memref<323xf32, #tpu.memory_space<smem>>
    %2185 = vector.broadcast %2184 : f32 to vector<8x128xf32>
    %2186 = arith.mulf %2185, %1645 : vector<8x128xf32>
    %2187 = arith.addf %2183, %2186 : vector<8x128xf32>
    %cst_289 = arith.constant 0.000000e+00 : f32
    %2188 = vector.broadcast %cst_289 : f32 to vector<8x128xf32>
    %2189 = arith.maximumf %2187, %2188 : vector<8x128xf32>
    %c280_290 = arith.constant 280 : index
    %2190 = memref.load %arg1[%c280_290] : memref<323xf32, #tpu.memory_space<smem>>
    %2191 = vector.broadcast %2190 : f32 to vector<8x128xf32>
    %c208_291 = arith.constant 208 : index
    %2192 = memref.load %arg1[%c208_291] : memref<323xf32, #tpu.memory_space<smem>>
    %2193 = vector.broadcast %2192 : f32 to vector<8x128xf32>
    %2194 = arith.mulf %2193, %1345 : vector<8x128xf32>
    %2195 = arith.addf %2191, %2194 : vector<8x128xf32>
    %c209_292 = arith.constant 209 : index
    %2196 = memref.load %arg1[%c209_292] : memref<323xf32, #tpu.memory_space<smem>>
    %2197 = vector.broadcast %2196 : f32 to vector<8x128xf32>
    %2198 = arith.mulf %2197, %1365 : vector<8x128xf32>
    %2199 = arith.addf %2195, %2198 : vector<8x128xf32>
    %c210_293 = arith.constant 210 : index
    %2200 = memref.load %arg1[%c210_293] : memref<323xf32, #tpu.memory_space<smem>>
    %2201 = vector.broadcast %2200 : f32 to vector<8x128xf32>
    %2202 = arith.mulf %2201, %1385 : vector<8x128xf32>
    %2203 = arith.addf %2199, %2202 : vector<8x128xf32>
    %c211_294 = arith.constant 211 : index
    %2204 = memref.load %arg1[%c211_294] : memref<323xf32, #tpu.memory_space<smem>>
    %2205 = vector.broadcast %2204 : f32 to vector<8x128xf32>
    %2206 = arith.mulf %2205, %1405 : vector<8x128xf32>
    %2207 = arith.addf %2203, %2206 : vector<8x128xf32>
    %c212_295 = arith.constant 212 : index
    %2208 = memref.load %arg1[%c212_295] : memref<323xf32, #tpu.memory_space<smem>>
    %2209 = vector.broadcast %2208 : f32 to vector<8x128xf32>
    %2210 = arith.mulf %2209, %1425 : vector<8x128xf32>
    %2211 = arith.addf %2207, %2210 : vector<8x128xf32>
    %c213_296 = arith.constant 213 : index
    %2212 = memref.load %arg1[%c213_296] : memref<323xf32, #tpu.memory_space<smem>>
    %2213 = vector.broadcast %2212 : f32 to vector<8x128xf32>
    %2214 = arith.mulf %2213, %1445 : vector<8x128xf32>
    %2215 = arith.addf %2211, %2214 : vector<8x128xf32>
    %c214_297 = arith.constant 214 : index
    %2216 = memref.load %arg1[%c214_297] : memref<323xf32, #tpu.memory_space<smem>>
    %2217 = vector.broadcast %2216 : f32 to vector<8x128xf32>
    %2218 = arith.mulf %2217, %1465 : vector<8x128xf32>
    %2219 = arith.addf %2215, %2218 : vector<8x128xf32>
    %c215_298 = arith.constant 215 : index
    %2220 = memref.load %arg1[%c215_298] : memref<323xf32, #tpu.memory_space<smem>>
    %2221 = vector.broadcast %2220 : f32 to vector<8x128xf32>
    %2222 = arith.mulf %2221, %1485 : vector<8x128xf32>
    %2223 = arith.addf %2219, %2222 : vector<8x128xf32>
    %c216_299 = arith.constant 216 : index
    %2224 = memref.load %arg1[%c216_299] : memref<323xf32, #tpu.memory_space<smem>>
    %2225 = vector.broadcast %2224 : f32 to vector<8x128xf32>
    %2226 = arith.mulf %2225, %1505 : vector<8x128xf32>
    %2227 = arith.addf %2223, %2226 : vector<8x128xf32>
    %c217_300 = arith.constant 217 : index
    %2228 = memref.load %arg1[%c217_300] : memref<323xf32, #tpu.memory_space<smem>>
    %2229 = vector.broadcast %2228 : f32 to vector<8x128xf32>
    %2230 = arith.mulf %2229, %1525 : vector<8x128xf32>
    %2231 = arith.addf %2227, %2230 : vector<8x128xf32>
    %c218_301 = arith.constant 218 : index
    %2232 = memref.load %arg1[%c218_301] : memref<323xf32, #tpu.memory_space<smem>>
    %2233 = vector.broadcast %2232 : f32 to vector<8x128xf32>
    %2234 = arith.mulf %2233, %1545 : vector<8x128xf32>
    %2235 = arith.addf %2231, %2234 : vector<8x128xf32>
    %c219_302 = arith.constant 219 : index
    %2236 = memref.load %arg1[%c219_302] : memref<323xf32, #tpu.memory_space<smem>>
    %2237 = vector.broadcast %2236 : f32 to vector<8x128xf32>
    %2238 = arith.mulf %2237, %1565 : vector<8x128xf32>
    %2239 = arith.addf %2235, %2238 : vector<8x128xf32>
    %c220_303 = arith.constant 220 : index
    %2240 = memref.load %arg1[%c220_303] : memref<323xf32, #tpu.memory_space<smem>>
    %2241 = vector.broadcast %2240 : f32 to vector<8x128xf32>
    %2242 = arith.mulf %2241, %1585 : vector<8x128xf32>
    %2243 = arith.addf %2239, %2242 : vector<8x128xf32>
    %c221_304 = arith.constant 221 : index
    %2244 = memref.load %arg1[%c221_304] : memref<323xf32, #tpu.memory_space<smem>>
    %2245 = vector.broadcast %2244 : f32 to vector<8x128xf32>
    %2246 = arith.mulf %2245, %1605 : vector<8x128xf32>
    %2247 = arith.addf %2243, %2246 : vector<8x128xf32>
    %c222_305 = arith.constant 222 : index
    %2248 = memref.load %arg1[%c222_305] : memref<323xf32, #tpu.memory_space<smem>>
    %2249 = vector.broadcast %2248 : f32 to vector<8x128xf32>
    %2250 = arith.mulf %2249, %1625 : vector<8x128xf32>
    %2251 = arith.addf %2247, %2250 : vector<8x128xf32>
    %c223_306 = arith.constant 223 : index
    %2252 = memref.load %arg1[%c223_306] : memref<323xf32, #tpu.memory_space<smem>>
    %2253 = vector.broadcast %2252 : f32 to vector<8x128xf32>
    %2254 = arith.mulf %2253, %1645 : vector<8x128xf32>
    %2255 = arith.addf %2251, %2254 : vector<8x128xf32>
    %cst_307 = arith.constant 0.000000e+00 : f32
    %2256 = vector.broadcast %cst_307 : f32 to vector<8x128xf32>
    %2257 = arith.maximumf %2255, %2256 : vector<8x128xf32>
    %c281_308 = arith.constant 281 : index
    %2258 = memref.load %arg1[%c281_308] : memref<323xf32, #tpu.memory_space<smem>>
    %2259 = vector.broadcast %2258 : f32 to vector<8x128xf32>
    %c224_309 = arith.constant 224 : index
    %2260 = memref.load %arg1[%c224_309] : memref<323xf32, #tpu.memory_space<smem>>
    %2261 = vector.broadcast %2260 : f32 to vector<8x128xf32>
    %2262 = arith.mulf %2261, %1345 : vector<8x128xf32>
    %2263 = arith.addf %2259, %2262 : vector<8x128xf32>
    %c225_310 = arith.constant 225 : index
    %2264 = memref.load %arg1[%c225_310] : memref<323xf32, #tpu.memory_space<smem>>
    %2265 = vector.broadcast %2264 : f32 to vector<8x128xf32>
    %2266 = arith.mulf %2265, %1365 : vector<8x128xf32>
    %2267 = arith.addf %2263, %2266 : vector<8x128xf32>
    %c226_311 = arith.constant 226 : index
    %2268 = memref.load %arg1[%c226_311] : memref<323xf32, #tpu.memory_space<smem>>
    %2269 = vector.broadcast %2268 : f32 to vector<8x128xf32>
    %2270 = arith.mulf %2269, %1385 : vector<8x128xf32>
    %2271 = arith.addf %2267, %2270 : vector<8x128xf32>
    %c227_312 = arith.constant 227 : index
    %2272 = memref.load %arg1[%c227_312] : memref<323xf32, #tpu.memory_space<smem>>
    %2273 = vector.broadcast %2272 : f32 to vector<8x128xf32>
    %2274 = arith.mulf %2273, %1405 : vector<8x128xf32>
    %2275 = arith.addf %2271, %2274 : vector<8x128xf32>
    %c228_313 = arith.constant 228 : index
    %2276 = memref.load %arg1[%c228_313] : memref<323xf32, #tpu.memory_space<smem>>
    %2277 = vector.broadcast %2276 : f32 to vector<8x128xf32>
    %2278 = arith.mulf %2277, %1425 : vector<8x128xf32>
    %2279 = arith.addf %2275, %2278 : vector<8x128xf32>
    %c229_314 = arith.constant 229 : index
    %2280 = memref.load %arg1[%c229_314] : memref<323xf32, #tpu.memory_space<smem>>
    %2281 = vector.broadcast %2280 : f32 to vector<8x128xf32>
    %2282 = arith.mulf %2281, %1445 : vector<8x128xf32>
    %2283 = arith.addf %2279, %2282 : vector<8x128xf32>
    %c230_315 = arith.constant 230 : index
    %2284 = memref.load %arg1[%c230_315] : memref<323xf32, #tpu.memory_space<smem>>
    %2285 = vector.broadcast %2284 : f32 to vector<8x128xf32>
    %2286 = arith.mulf %2285, %1465 : vector<8x128xf32>
    %2287 = arith.addf %2283, %2286 : vector<8x128xf32>
    %c231_316 = arith.constant 231 : index
    %2288 = memref.load %arg1[%c231_316] : memref<323xf32, #tpu.memory_space<smem>>
    %2289 = vector.broadcast %2288 : f32 to vector<8x128xf32>
    %2290 = arith.mulf %2289, %1485 : vector<8x128xf32>
    %2291 = arith.addf %2287, %2290 : vector<8x128xf32>
    %c232_317 = arith.constant 232 : index
    %2292 = memref.load %arg1[%c232_317] : memref<323xf32, #tpu.memory_space<smem>>
    %2293 = vector.broadcast %2292 : f32 to vector<8x128xf32>
    %2294 = arith.mulf %2293, %1505 : vector<8x128xf32>
    %2295 = arith.addf %2291, %2294 : vector<8x128xf32>
    %c233_318 = arith.constant 233 : index
    %2296 = memref.load %arg1[%c233_318] : memref<323xf32, #tpu.memory_space<smem>>
    %2297 = vector.broadcast %2296 : f32 to vector<8x128xf32>
    %2298 = arith.mulf %2297, %1525 : vector<8x128xf32>
    %2299 = arith.addf %2295, %2298 : vector<8x128xf32>
    %c234_319 = arith.constant 234 : index
    %2300 = memref.load %arg1[%c234_319] : memref<323xf32, #tpu.memory_space<smem>>
    %2301 = vector.broadcast %2300 : f32 to vector<8x128xf32>
    %2302 = arith.mulf %2301, %1545 : vector<8x128xf32>
    %2303 = arith.addf %2299, %2302 : vector<8x128xf32>
    %c235_320 = arith.constant 235 : index
    %2304 = memref.load %arg1[%c235_320] : memref<323xf32, #tpu.memory_space<smem>>
    %2305 = vector.broadcast %2304 : f32 to vector<8x128xf32>
    %2306 = arith.mulf %2305, %1565 : vector<8x128xf32>
    %2307 = arith.addf %2303, %2306 : vector<8x128xf32>
    %c236_321 = arith.constant 236 : index
    %2308 = memref.load %arg1[%c236_321] : memref<323xf32, #tpu.memory_space<smem>>
    %2309 = vector.broadcast %2308 : f32 to vector<8x128xf32>
    %2310 = arith.mulf %2309, %1585 : vector<8x128xf32>
    %2311 = arith.addf %2307, %2310 : vector<8x128xf32>
    %c237_322 = arith.constant 237 : index
    %2312 = memref.load %arg1[%c237_322] : memref<323xf32, #tpu.memory_space<smem>>
    %2313 = vector.broadcast %2312 : f32 to vector<8x128xf32>
    %2314 = arith.mulf %2313, %1605 : vector<8x128xf32>
    %2315 = arith.addf %2311, %2314 : vector<8x128xf32>
    %c238_323 = arith.constant 238 : index
    %2316 = memref.load %arg1[%c238_323] : memref<323xf32, #tpu.memory_space<smem>>
    %2317 = vector.broadcast %2316 : f32 to vector<8x128xf32>
    %2318 = arith.mulf %2317, %1625 : vector<8x128xf32>
    %2319 = arith.addf %2315, %2318 : vector<8x128xf32>
    %c239_324 = arith.constant 239 : index
    %2320 = memref.load %arg1[%c239_324] : memref<323xf32, #tpu.memory_space<smem>>
    %2321 = vector.broadcast %2320 : f32 to vector<8x128xf32>
    %2322 = arith.mulf %2321, %1645 : vector<8x128xf32>
    %2323 = arith.addf %2319, %2322 : vector<8x128xf32>
    %cst_325 = arith.constant 0.000000e+00 : f32
    %2324 = vector.broadcast %cst_325 : f32 to vector<8x128xf32>
    %2325 = arith.maximumf %2323, %2324 : vector<8x128xf32>
    %c282_326 = arith.constant 282 : index
    %2326 = memref.load %arg1[%c282_326] : memref<323xf32, #tpu.memory_space<smem>>
    %2327 = vector.broadcast %2326 : f32 to vector<8x128xf32>
    %c240_327 = arith.constant 240 : index
    %2328 = memref.load %arg1[%c240_327] : memref<323xf32, #tpu.memory_space<smem>>
    %2329 = vector.broadcast %2328 : f32 to vector<8x128xf32>
    %2330 = arith.mulf %2329, %1345 : vector<8x128xf32>
    %2331 = arith.addf %2327, %2330 : vector<8x128xf32>
    %c241_328 = arith.constant 241 : index
    %2332 = memref.load %arg1[%c241_328] : memref<323xf32, #tpu.memory_space<smem>>
    %2333 = vector.broadcast %2332 : f32 to vector<8x128xf32>
    %2334 = arith.mulf %2333, %1365 : vector<8x128xf32>
    %2335 = arith.addf %2331, %2334 : vector<8x128xf32>
    %c242_329 = arith.constant 242 : index
    %2336 = memref.load %arg1[%c242_329] : memref<323xf32, #tpu.memory_space<smem>>
    %2337 = vector.broadcast %2336 : f32 to vector<8x128xf32>
    %2338 = arith.mulf %2337, %1385 : vector<8x128xf32>
    %2339 = arith.addf %2335, %2338 : vector<8x128xf32>
    %c243_330 = arith.constant 243 : index
    %2340 = memref.load %arg1[%c243_330] : memref<323xf32, #tpu.memory_space<smem>>
    %2341 = vector.broadcast %2340 : f32 to vector<8x128xf32>
    %2342 = arith.mulf %2341, %1405 : vector<8x128xf32>
    %2343 = arith.addf %2339, %2342 : vector<8x128xf32>
    %c244_331 = arith.constant 244 : index
    %2344 = memref.load %arg1[%c244_331] : memref<323xf32, #tpu.memory_space<smem>>
    %2345 = vector.broadcast %2344 : f32 to vector<8x128xf32>
    %2346 = arith.mulf %2345, %1425 : vector<8x128xf32>
    %2347 = arith.addf %2343, %2346 : vector<8x128xf32>
    %c245_332 = arith.constant 245 : index
    %2348 = memref.load %arg1[%c245_332] : memref<323xf32, #tpu.memory_space<smem>>
    %2349 = vector.broadcast %2348 : f32 to vector<8x128xf32>
    %2350 = arith.mulf %2349, %1445 : vector<8x128xf32>
    %2351 = arith.addf %2347, %2350 : vector<8x128xf32>
    %c246_333 = arith.constant 246 : index
    %2352 = memref.load %arg1[%c246_333] : memref<323xf32, #tpu.memory_space<smem>>
    %2353 = vector.broadcast %2352 : f32 to vector<8x128xf32>
    %2354 = arith.mulf %2353, %1465 : vector<8x128xf32>
    %2355 = arith.addf %2351, %2354 : vector<8x128xf32>
    %c247_334 = arith.constant 247 : index
    %2356 = memref.load %arg1[%c247_334] : memref<323xf32, #tpu.memory_space<smem>>
    %2357 = vector.broadcast %2356 : f32 to vector<8x128xf32>
    %2358 = arith.mulf %2357, %1485 : vector<8x128xf32>
    %2359 = arith.addf %2355, %2358 : vector<8x128xf32>
    %c248_335 = arith.constant 248 : index
    %2360 = memref.load %arg1[%c248_335] : memref<323xf32, #tpu.memory_space<smem>>
    %2361 = vector.broadcast %2360 : f32 to vector<8x128xf32>
    %2362 = arith.mulf %2361, %1505 : vector<8x128xf32>
    %2363 = arith.addf %2359, %2362 : vector<8x128xf32>
    %c249_336 = arith.constant 249 : index
    %2364 = memref.load %arg1[%c249_336] : memref<323xf32, #tpu.memory_space<smem>>
    %2365 = vector.broadcast %2364 : f32 to vector<8x128xf32>
    %2366 = arith.mulf %2365, %1525 : vector<8x128xf32>
    %2367 = arith.addf %2363, %2366 : vector<8x128xf32>
    %c250_337 = arith.constant 250 : index
    %2368 = memref.load %arg1[%c250_337] : memref<323xf32, #tpu.memory_space<smem>>
    %2369 = vector.broadcast %2368 : f32 to vector<8x128xf32>
    %2370 = arith.mulf %2369, %1545 : vector<8x128xf32>
    %2371 = arith.addf %2367, %2370 : vector<8x128xf32>
    %c251_338 = arith.constant 251 : index
    %2372 = memref.load %arg1[%c251_338] : memref<323xf32, #tpu.memory_space<smem>>
    %2373 = vector.broadcast %2372 : f32 to vector<8x128xf32>
    %2374 = arith.mulf %2373, %1565 : vector<8x128xf32>
    %2375 = arith.addf %2371, %2374 : vector<8x128xf32>
    %c252_339 = arith.constant 252 : index
    %2376 = memref.load %arg1[%c252_339] : memref<323xf32, #tpu.memory_space<smem>>
    %2377 = vector.broadcast %2376 : f32 to vector<8x128xf32>
    %2378 = arith.mulf %2377, %1585 : vector<8x128xf32>
    %2379 = arith.addf %2375, %2378 : vector<8x128xf32>
    %c253_340 = arith.constant 253 : index
    %2380 = memref.load %arg1[%c253_340] : memref<323xf32, #tpu.memory_space<smem>>
    %2381 = vector.broadcast %2380 : f32 to vector<8x128xf32>
    %2382 = arith.mulf %2381, %1605 : vector<8x128xf32>
    %2383 = arith.addf %2379, %2382 : vector<8x128xf32>
    %c254_341 = arith.constant 254 : index
    %2384 = memref.load %arg1[%c254_341] : memref<323xf32, #tpu.memory_space<smem>>
    %2385 = vector.broadcast %2384 : f32 to vector<8x128xf32>
    %2386 = arith.mulf %2385, %1625 : vector<8x128xf32>
    %2387 = arith.addf %2383, %2386 : vector<8x128xf32>
    %c255_342 = arith.constant 255 : index
    %2388 = memref.load %arg1[%c255_342] : memref<323xf32, #tpu.memory_space<smem>>
    %2389 = vector.broadcast %2388 : f32 to vector<8x128xf32>
    %2390 = arith.mulf %2389, %1645 : vector<8x128xf32>
    %2391 = arith.addf %2387, %2390 : vector<8x128xf32>
    %cst_343 = arith.constant 0.000000e+00 : f32
    %2392 = vector.broadcast %cst_343 : f32 to vector<8x128xf32>
    %2393 = arith.maximumf %2391, %2392 : vector<8x128xf32>
    %c283_344 = arith.constant 283 : index
    %2394 = memref.load %arg1[%c283_344] : memref<323xf32, #tpu.memory_space<smem>>
    %2395 = vector.broadcast %2394 : f32 to vector<8x128xf32>
    %c256_345 = arith.constant 256 : index
    %2396 = memref.load %arg1[%c256_345] : memref<323xf32, #tpu.memory_space<smem>>
    %2397 = vector.broadcast %2396 : f32 to vector<8x128xf32>
    %2398 = arith.mulf %2397, %1345 : vector<8x128xf32>
    %2399 = arith.addf %2395, %2398 : vector<8x128xf32>
    %c257_346 = arith.constant 257 : index
    %2400 = memref.load %arg1[%c257_346] : memref<323xf32, #tpu.memory_space<smem>>
    %2401 = vector.broadcast %2400 : f32 to vector<8x128xf32>
    %2402 = arith.mulf %2401, %1365 : vector<8x128xf32>
    %2403 = arith.addf %2399, %2402 : vector<8x128xf32>
    %c258_347 = arith.constant 258 : index
    %2404 = memref.load %arg1[%c258_347] : memref<323xf32, #tpu.memory_space<smem>>
    %2405 = vector.broadcast %2404 : f32 to vector<8x128xf32>
    %2406 = arith.mulf %2405, %1385 : vector<8x128xf32>
    %2407 = arith.addf %2403, %2406 : vector<8x128xf32>
    %c259_348 = arith.constant 259 : index
    %2408 = memref.load %arg1[%c259_348] : memref<323xf32, #tpu.memory_space<smem>>
    %2409 = vector.broadcast %2408 : f32 to vector<8x128xf32>
    %2410 = arith.mulf %2409, %1405 : vector<8x128xf32>
    %2411 = arith.addf %2407, %2410 : vector<8x128xf32>
    %c260_349 = arith.constant 260 : index
    %2412 = memref.load %arg1[%c260_349] : memref<323xf32, #tpu.memory_space<smem>>
    %2413 = vector.broadcast %2412 : f32 to vector<8x128xf32>
    %2414 = arith.mulf %2413, %1425 : vector<8x128xf32>
    %2415 = arith.addf %2411, %2414 : vector<8x128xf32>
    %c261_350 = arith.constant 261 : index
    %2416 = memref.load %arg1[%c261_350] : memref<323xf32, #tpu.memory_space<smem>>
    %2417 = vector.broadcast %2416 : f32 to vector<8x128xf32>
    %2418 = arith.mulf %2417, %1445 : vector<8x128xf32>
    %2419 = arith.addf %2415, %2418 : vector<8x128xf32>
    %c262_351 = arith.constant 262 : index
    %2420 = memref.load %arg1[%c262_351] : memref<323xf32, #tpu.memory_space<smem>>
    %2421 = vector.broadcast %2420 : f32 to vector<8x128xf32>
    %2422 = arith.mulf %2421, %1465 : vector<8x128xf32>
    %2423 = arith.addf %2419, %2422 : vector<8x128xf32>
    %c263_352 = arith.constant 263 : index
    %2424 = memref.load %arg1[%c263_352] : memref<323xf32, #tpu.memory_space<smem>>
    %2425 = vector.broadcast %2424 : f32 to vector<8x128xf32>
    %2426 = arith.mulf %2425, %1485 : vector<8x128xf32>
    %2427 = arith.addf %2423, %2426 : vector<8x128xf32>
    %c264_353 = arith.constant 264 : index
    %2428 = memref.load %arg1[%c264_353] : memref<323xf32, #tpu.memory_space<smem>>
    %2429 = vector.broadcast %2428 : f32 to vector<8x128xf32>
    %2430 = arith.mulf %2429, %1505 : vector<8x128xf32>
    %2431 = arith.addf %2427, %2430 : vector<8x128xf32>
    %c265_354 = arith.constant 265 : index
    %2432 = memref.load %arg1[%c265_354] : memref<323xf32, #tpu.memory_space<smem>>
    %2433 = vector.broadcast %2432 : f32 to vector<8x128xf32>
    %2434 = arith.mulf %2433, %1525 : vector<8x128xf32>
    %2435 = arith.addf %2431, %2434 : vector<8x128xf32>
    %c266_355 = arith.constant 266 : index
    %2436 = memref.load %arg1[%c266_355] : memref<323xf32, #tpu.memory_space<smem>>
    %2437 = vector.broadcast %2436 : f32 to vector<8x128xf32>
    %2438 = arith.mulf %2437, %1545 : vector<8x128xf32>
    %2439 = arith.addf %2435, %2438 : vector<8x128xf32>
    %c267_356 = arith.constant 267 : index
    %2440 = memref.load %arg1[%c267_356] : memref<323xf32, #tpu.memory_space<smem>>
    %2441 = vector.broadcast %2440 : f32 to vector<8x128xf32>
    %2442 = arith.mulf %2441, %1565 : vector<8x128xf32>
    %2443 = arith.addf %2439, %2442 : vector<8x128xf32>
    %c268_357 = arith.constant 268 : index
    %2444 = memref.load %arg1[%c268_357] : memref<323xf32, #tpu.memory_space<smem>>
    %2445 = vector.broadcast %2444 : f32 to vector<8x128xf32>
    %2446 = arith.mulf %2445, %1585 : vector<8x128xf32>
    %2447 = arith.addf %2443, %2446 : vector<8x128xf32>
    %c269_358 = arith.constant 269 : index
    %2448 = memref.load %arg1[%c269_358] : memref<323xf32, #tpu.memory_space<smem>>
    %2449 = vector.broadcast %2448 : f32 to vector<8x128xf32>
    %2450 = arith.mulf %2449, %1605 : vector<8x128xf32>
    %2451 = arith.addf %2447, %2450 : vector<8x128xf32>
    %c270_359 = arith.constant 270 : index
    %2452 = memref.load %arg1[%c270_359] : memref<323xf32, #tpu.memory_space<smem>>
    %2453 = vector.broadcast %2452 : f32 to vector<8x128xf32>
    %2454 = arith.mulf %2453, %1625 : vector<8x128xf32>
    %2455 = arith.addf %2451, %2454 : vector<8x128xf32>
    %c271_360 = arith.constant 271 : index
    %2456 = memref.load %arg1[%c271_360] : memref<323xf32, #tpu.memory_space<smem>>
    %2457 = vector.broadcast %2456 : f32 to vector<8x128xf32>
    %2458 = arith.mulf %2457, %1645 : vector<8x128xf32>
    %2459 = arith.addf %2455, %2458 : vector<8x128xf32>
    %cst_361 = arith.constant 0.000000e+00 : f32
    %2460 = vector.broadcast %cst_361 : f32 to vector<8x128xf32>
    %2461 = arith.maximumf %2459, %2460 : vector<8x128xf32>
    %c320_362 = arith.constant 320 : index
    %2462 = memref.load %arg1[%c320_362] : memref<323xf32, #tpu.memory_space<smem>>
    %2463 = vector.broadcast %2462 : f32 to vector<8x128xf32>
    %c284_363 = arith.constant 284 : index
    %2464 = memref.load %arg1[%c284_363] : memref<323xf32, #tpu.memory_space<smem>>
    %2465 = vector.broadcast %2464 : f32 to vector<8x128xf32>
    %2466 = arith.mulf %2465, %1713 : vector<8x128xf32>
    %2467 = arith.addf %2463, %2466 : vector<8x128xf32>
    %c285_364 = arith.constant 285 : index
    %2468 = memref.load %arg1[%c285_364] : memref<323xf32, #tpu.memory_space<smem>>
    %2469 = vector.broadcast %2468 : f32 to vector<8x128xf32>
    %2470 = arith.mulf %2469, %1781 : vector<8x128xf32>
    %2471 = arith.addf %2467, %2470 : vector<8x128xf32>
    %c286_365 = arith.constant 286 : index
    %2472 = memref.load %arg1[%c286_365] : memref<323xf32, #tpu.memory_space<smem>>
    %2473 = vector.broadcast %2472 : f32 to vector<8x128xf32>
    %2474 = arith.mulf %2473, %1849 : vector<8x128xf32>
    %2475 = arith.addf %2471, %2474 : vector<8x128xf32>
    %c287_366 = arith.constant 287 : index
    %2476 = memref.load %arg1[%c287_366] : memref<323xf32, #tpu.memory_space<smem>>
    %2477 = vector.broadcast %2476 : f32 to vector<8x128xf32>
    %2478 = arith.mulf %2477, %1917 : vector<8x128xf32>
    %2479 = arith.addf %2475, %2478 : vector<8x128xf32>
    %c288_367 = arith.constant 288 : index
    %2480 = memref.load %arg1[%c288_367] : memref<323xf32, #tpu.memory_space<smem>>
    %2481 = vector.broadcast %2480 : f32 to vector<8x128xf32>
    %2482 = arith.mulf %2481, %1985 : vector<8x128xf32>
    %2483 = arith.addf %2479, %2482 : vector<8x128xf32>
    %c289_368 = arith.constant 289 : index
    %2484 = memref.load %arg1[%c289_368] : memref<323xf32, #tpu.memory_space<smem>>
    %2485 = vector.broadcast %2484 : f32 to vector<8x128xf32>
    %2486 = arith.mulf %2485, %2053 : vector<8x128xf32>
    %2487 = arith.addf %2483, %2486 : vector<8x128xf32>
    %c290_369 = arith.constant 290 : index
    %2488 = memref.load %arg1[%c290_369] : memref<323xf32, #tpu.memory_space<smem>>
    %2489 = vector.broadcast %2488 : f32 to vector<8x128xf32>
    %2490 = arith.mulf %2489, %2121 : vector<8x128xf32>
    %2491 = arith.addf %2487, %2490 : vector<8x128xf32>
    %c291_370 = arith.constant 291 : index
    %2492 = memref.load %arg1[%c291_370] : memref<323xf32, #tpu.memory_space<smem>>
    %2493 = vector.broadcast %2492 : f32 to vector<8x128xf32>
    %2494 = arith.mulf %2493, %2189 : vector<8x128xf32>
    %2495 = arith.addf %2491, %2494 : vector<8x128xf32>
    %c292_371 = arith.constant 292 : index
    %2496 = memref.load %arg1[%c292_371] : memref<323xf32, #tpu.memory_space<smem>>
    %2497 = vector.broadcast %2496 : f32 to vector<8x128xf32>
    %2498 = arith.mulf %2497, %2257 : vector<8x128xf32>
    %2499 = arith.addf %2495, %2498 : vector<8x128xf32>
    %c293_372 = arith.constant 293 : index
    %2500 = memref.load %arg1[%c293_372] : memref<323xf32, #tpu.memory_space<smem>>
    %2501 = vector.broadcast %2500 : f32 to vector<8x128xf32>
    %2502 = arith.mulf %2501, %2325 : vector<8x128xf32>
    %2503 = arith.addf %2499, %2502 : vector<8x128xf32>
    %c294_373 = arith.constant 294 : index
    %2504 = memref.load %arg1[%c294_373] : memref<323xf32, #tpu.memory_space<smem>>
    %2505 = vector.broadcast %2504 : f32 to vector<8x128xf32>
    %2506 = arith.mulf %2505, %2393 : vector<8x128xf32>
    %2507 = arith.addf %2503, %2506 : vector<8x128xf32>
    %c295_374 = arith.constant 295 : index
    %2508 = memref.load %arg1[%c295_374] : memref<323xf32, #tpu.memory_space<smem>>
    %2509 = vector.broadcast %2508 : f32 to vector<8x128xf32>
    %2510 = arith.mulf %2509, %2461 : vector<8x128xf32>
    %2511 = arith.addf %2507, %2510 : vector<8x128xf32>
    %c321_375 = arith.constant 321 : index
    %2512 = memref.load %arg1[%c321_375] : memref<323xf32, #tpu.memory_space<smem>>
    %2513 = vector.broadcast %2512 : f32 to vector<8x128xf32>
    %c296_376 = arith.constant 296 : index
    %2514 = memref.load %arg1[%c296_376] : memref<323xf32, #tpu.memory_space<smem>>
    %2515 = vector.broadcast %2514 : f32 to vector<8x128xf32>
    %2516 = arith.mulf %2515, %1713 : vector<8x128xf32>
    %2517 = arith.addf %2513, %2516 : vector<8x128xf32>
    %c297_377 = arith.constant 297 : index
    %2518 = memref.load %arg1[%c297_377] : memref<323xf32, #tpu.memory_space<smem>>
    %2519 = vector.broadcast %2518 : f32 to vector<8x128xf32>
    %2520 = arith.mulf %2519, %1781 : vector<8x128xf32>
    %2521 = arith.addf %2517, %2520 : vector<8x128xf32>
    %c298_378 = arith.constant 298 : index
    %2522 = memref.load %arg1[%c298_378] : memref<323xf32, #tpu.memory_space<smem>>
    %2523 = vector.broadcast %2522 : f32 to vector<8x128xf32>
    %2524 = arith.mulf %2523, %1849 : vector<8x128xf32>
    %2525 = arith.addf %2521, %2524 : vector<8x128xf32>
    %c299_379 = arith.constant 299 : index
    %2526 = memref.load %arg1[%c299_379] : memref<323xf32, #tpu.memory_space<smem>>
    %2527 = vector.broadcast %2526 : f32 to vector<8x128xf32>
    %2528 = arith.mulf %2527, %1917 : vector<8x128xf32>
    %2529 = arith.addf %2525, %2528 : vector<8x128xf32>
    %c300_380 = arith.constant 300 : index
    %2530 = memref.load %arg1[%c300_380] : memref<323xf32, #tpu.memory_space<smem>>
    %2531 = vector.broadcast %2530 : f32 to vector<8x128xf32>
    %2532 = arith.mulf %2531, %1985 : vector<8x128xf32>
    %2533 = arith.addf %2529, %2532 : vector<8x128xf32>
    %c301_381 = arith.constant 301 : index
    %2534 = memref.load %arg1[%c301_381] : memref<323xf32, #tpu.memory_space<smem>>
    %2535 = vector.broadcast %2534 : f32 to vector<8x128xf32>
    %2536 = arith.mulf %2535, %2053 : vector<8x128xf32>
    %2537 = arith.addf %2533, %2536 : vector<8x128xf32>
    %c302_382 = arith.constant 302 : index
    %2538 = memref.load %arg1[%c302_382] : memref<323xf32, #tpu.memory_space<smem>>
    %2539 = vector.broadcast %2538 : f32 to vector<8x128xf32>
    %2540 = arith.mulf %2539, %2121 : vector<8x128xf32>
    %2541 = arith.addf %2537, %2540 : vector<8x128xf32>
    %c303_383 = arith.constant 303 : index
    %2542 = memref.load %arg1[%c303_383] : memref<323xf32, #tpu.memory_space<smem>>
    %2543 = vector.broadcast %2542 : f32 to vector<8x128xf32>
    %2544 = arith.mulf %2543, %2189 : vector<8x128xf32>
    %2545 = arith.addf %2541, %2544 : vector<8x128xf32>
    %c304_384 = arith.constant 304 : index
    %2546 = memref.load %arg1[%c304_384] : memref<323xf32, #tpu.memory_space<smem>>
    %2547 = vector.broadcast %2546 : f32 to vector<8x128xf32>
    %2548 = arith.mulf %2547, %2257 : vector<8x128xf32>
    %2549 = arith.addf %2545, %2548 : vector<8x128xf32>
    %c305_385 = arith.constant 305 : index
    %2550 = memref.load %arg1[%c305_385] : memref<323xf32, #tpu.memory_space<smem>>
    %2551 = vector.broadcast %2550 : f32 to vector<8x128xf32>
    %2552 = arith.mulf %2551, %2325 : vector<8x128xf32>
    %2553 = arith.addf %2549, %2552 : vector<8x128xf32>
    %c306_386 = arith.constant 306 : index
    %2554 = memref.load %arg1[%c306_386] : memref<323xf32, #tpu.memory_space<smem>>
    %2555 = vector.broadcast %2554 : f32 to vector<8x128xf32>
    %2556 = arith.mulf %2555, %2393 : vector<8x128xf32>
    %2557 = arith.addf %2553, %2556 : vector<8x128xf32>
    %c307_387 = arith.constant 307 : index
    %2558 = memref.load %arg1[%c307_387] : memref<323xf32, #tpu.memory_space<smem>>
    %2559 = vector.broadcast %2558 : f32 to vector<8x128xf32>
    %2560 = arith.mulf %2559, %2461 : vector<8x128xf32>
    %2561 = arith.addf %2557, %2560 : vector<8x128xf32>
    %c322_388 = arith.constant 322 : index
    %2562 = memref.load %arg1[%c322_388] : memref<323xf32, #tpu.memory_space<smem>>
    %2563 = vector.broadcast %2562 : f32 to vector<8x128xf32>
    %c308_389 = arith.constant 308 : index
    %2564 = memref.load %arg1[%c308_389] : memref<323xf32, #tpu.memory_space<smem>>
    %2565 = vector.broadcast %2564 : f32 to vector<8x128xf32>
    %2566 = arith.mulf %2565, %1713 : vector<8x128xf32>
    %2567 = arith.addf %2563, %2566 : vector<8x128xf32>
    %c309_390 = arith.constant 309 : index
    %2568 = memref.load %arg1[%c309_390] : memref<323xf32, #tpu.memory_space<smem>>
    %2569 = vector.broadcast %2568 : f32 to vector<8x128xf32>
    %2570 = arith.mulf %2569, %1781 : vector<8x128xf32>
    %2571 = arith.addf %2567, %2570 : vector<8x128xf32>
    %c310_391 = arith.constant 310 : index
    %2572 = memref.load %arg1[%c310_391] : memref<323xf32, #tpu.memory_space<smem>>
    %2573 = vector.broadcast %2572 : f32 to vector<8x128xf32>
    %2574 = arith.mulf %2573, %1849 : vector<8x128xf32>
    %2575 = arith.addf %2571, %2574 : vector<8x128xf32>
    %c311_392 = arith.constant 311 : index
    %2576 = memref.load %arg1[%c311_392] : memref<323xf32, #tpu.memory_space<smem>>
    %2577 = vector.broadcast %2576 : f32 to vector<8x128xf32>
    %2578 = arith.mulf %2577, %1917 : vector<8x128xf32>
    %2579 = arith.addf %2575, %2578 : vector<8x128xf32>
    %c312_393 = arith.constant 312 : index
    %2580 = memref.load %arg1[%c312_393] : memref<323xf32, #tpu.memory_space<smem>>
    %2581 = vector.broadcast %2580 : f32 to vector<8x128xf32>
    %2582 = arith.mulf %2581, %1985 : vector<8x128xf32>
    %2583 = arith.addf %2579, %2582 : vector<8x128xf32>
    %c313_394 = arith.constant 313 : index
    %2584 = memref.load %arg1[%c313_394] : memref<323xf32, #tpu.memory_space<smem>>
    %2585 = vector.broadcast %2584 : f32 to vector<8x128xf32>
    %2586 = arith.mulf %2585, %2053 : vector<8x128xf32>
    %2587 = arith.addf %2583, %2586 : vector<8x128xf32>
    %c314_395 = arith.constant 314 : index
    %2588 = memref.load %arg1[%c314_395] : memref<323xf32, #tpu.memory_space<smem>>
    %2589 = vector.broadcast %2588 : f32 to vector<8x128xf32>
    %2590 = arith.mulf %2589, %2121 : vector<8x128xf32>
    %2591 = arith.addf %2587, %2590 : vector<8x128xf32>
    %c315_396 = arith.constant 315 : index
    %2592 = memref.load %arg1[%c315_396] : memref<323xf32, #tpu.memory_space<smem>>
    %2593 = vector.broadcast %2592 : f32 to vector<8x128xf32>
    %2594 = arith.mulf %2593, %2189 : vector<8x128xf32>
    %2595 = arith.addf %2591, %2594 : vector<8x128xf32>
    %c316_397 = arith.constant 316 : index
    %2596 = memref.load %arg1[%c316_397] : memref<323xf32, #tpu.memory_space<smem>>
    %2597 = vector.broadcast %2596 : f32 to vector<8x128xf32>
    %2598 = arith.mulf %2597, %2257 : vector<8x128xf32>
    %2599 = arith.addf %2595, %2598 : vector<8x128xf32>
    %c317_398 = arith.constant 317 : index
    %2600 = memref.load %arg1[%c317_398] : memref<323xf32, #tpu.memory_space<smem>>
    %2601 = vector.broadcast %2600 : f32 to vector<8x128xf32>
    %2602 = arith.mulf %2601, %2325 : vector<8x128xf32>
    %2603 = arith.addf %2599, %2602 : vector<8x128xf32>
    %c318_399 = arith.constant 318 : index
    %2604 = memref.load %arg1[%c318_399] : memref<323xf32, #tpu.memory_space<smem>>
    %2605 = vector.broadcast %2604 : f32 to vector<8x128xf32>
    %2606 = arith.mulf %2605, %2393 : vector<8x128xf32>
    %2607 = arith.addf %2603, %2606 : vector<8x128xf32>
    %c319_400 = arith.constant 319 : index
    %2608 = memref.load %arg1[%c319_400] : memref<323xf32, #tpu.memory_space<smem>>
    %2609 = vector.broadcast %2608 : f32 to vector<8x128xf32>
    %2610 = arith.mulf %2609, %2461 : vector<8x128xf32>
    %2611 = arith.addf %2607, %2610 : vector<8x128xf32>
    %c0_401 = arith.constant 0 : index
    %2612 = arith.index_cast %1313 : i32 to index
    %c0_402 = arith.constant 0 : index
    %2613 = vector.load %arg3[%c0_401, %2612, %c0_402] : memref<3x16x128xf32, #tpu.memory_space<vmem>>, vector<1x8x128xf32>
    %2614 = vector.shape_cast %2613 : vector<1x8x128xf32> to vector<8x128xf32>
    %2615 = vector.shape_cast %2511 : vector<8x128xf32> to vector<1x8x128xf32>
    tpu.vector_store %arg3[%c0_401, %2612, %c0_402], %2615 {strides = array<i32>} : memref<3x16x128xf32, #tpu.memory_space<vmem>>, vector<1x8x128xf32>,
    %c1_403 = arith.constant 1 : index
    %2616 = arith.index_cast %1313 : i32 to index
    %c0_404 = arith.constant 0 : index
    %2617 = vector.load %arg3[%c1_403, %2616, %c0_404] : memref<3x16x128xf32, #tpu.memory_space<vmem>>, vector<1x8x128xf32>
    %2618 = vector.shape_cast %2617 : vector<1x8x128xf32> to vector<8x128xf32>
    %2619 = vector.shape_cast %2561 : vector<8x128xf32> to vector<1x8x128xf32>
    tpu.vector_store %arg3[%c1_403, %2616, %c0_404], %2619 {strides = array<i32>} : memref<3x16x128xf32, #tpu.memory_space<vmem>>, vector<1x8x128xf32>,
    %c2_405 = arith.constant 2 : index
    %2620 = arith.index_cast %1313 : i32 to index
    %c0_406 = arith.constant 0 : index
    %2621 = vector.load %arg3[%c2_405, %2620, %c0_406] : memref<3x16x128xf32, #tpu.memory_space<vmem>>, vector<1x8x128xf32>
    %2622 = vector.shape_cast %2621 : vector<1x8x128xf32> to vector<8x128xf32>
    %2623 = vector.shape_cast %2611 : vector<8x128xf32> to vector<1x8x128xf32>
    tpu.vector_store %arg3[%c2_405, %2620, %c0_406], %2623 {strides = array<i32>} : memref<3x16x128xf32, #tpu.memory_space<vmem>>, vector<1x8x128xf32>,
    %c2_i32 = arith.constant 2 : i32
    return
  }
  func.func @transform_0(%arg0: i32) -> i32 {
    %c0_i32 = arith.constant 0 : i32
    %c0_i32_0 = arith.constant 0 : i32
    return %c0_i32 : i32
  }
  func.func @transform_1(%arg0: i32) -> (i32, i32, i32) {
    %c0_i32 = arith.constant 0 : i32
    %c0_i32_0 = arith.constant 0 : i32
    %c0_i32_1 = arith.constant 0 : i32
    return %c0_i32, %arg0, %c0_i32_0 : i32, i32, i32
  }
  func.func @transform_2(%arg0: i32) -> (i32, i32, i32) {
    %c0_i32 = arith.constant 0 : i32
    %c0_i32_0 = arith.constant 0 : i32
    %c0_i32_1 = arith.constant 0 : i32
    return %c0_i32, %arg0, %c0_i32_0 : i32, i32, i32
  }
}

</mosaic_0001>

<bundles_post_ra>
// kernel: tpu_custom_call.1
= control target key start
LH: loop header
LB: loop body
LE: loop exit
PB: predicated region body
PF: predicated region fallthrough
CT: control target
= control target key end

     0   :  { %s6565_s0 = inlined_call_operand.hbm [shape: f32[323], index: 0, kind: input, shape index: {}]   ;;  %s6566_s1 = inlined_call_operand.hbm [shape: f32[4,32,128], index: 1, kind: input, shape index: {}]   ;;  %s6567_s2 = inlined_call_operand.hbm [shape: f32[3,32,128], index: 2, kind: output, shape index: {}]  }
   0x1   :  { %6584 = sst [smem:[#allocation93_spill]] %s6565_s0 }
   0x2   :  { %6585 = sst [smem:[#allocation94_spill]] %s6566_s1 }
   0x3   :  { %6586 = sst [smem:[#allocation95_spill]] %s6567_s2 }
   0x4   :  { %7 = vsyncpa [#allocation5], 0 }
   0x5   :  { %8 = vsyncpa [#allocation3], 0 }
   0x6   :  { %10 = vsyncpa [#allocation3 + $0x1], 0 }
   0x7   :  { %11 = vsyncpa [#allocation4], 0 }
   0x8   :  { %13 = vsyncpa [#allocation4 + $0x1], 0  ;;  %s3718_s9 = smov 0   ;;  %s3720_s10 = smov 0  }
   0x9   :  { %s3722_s11 = smov 0   ;;  %s3724_s12 = smov 0  }
   0xa LB: > { %6587 = sst [smem:[#allocation16_spill]] %s3675_s9  ;;  %s3739_s13 = sadd.s32 4294967295, %s3687_s12   ;;  %s3687_s12 = sphi %s3724_s12, %s7064_s12   ;;  %s3683_s11 = sphi %s3722_s11, %s7067_s11   ;;  %s3679_s10 = sphi %s3720_s10, %s7066_s10   ;;  %s3675_s9 = sphi %s3718_s9, %s7065_s9  }
   0xb   : > { %6588 = sst [smem:[#allocation17_spill]] %s3679_s10  ;;  %s2881_s14 = sadd.s32 4294967294, %s3687_s12  }
   0xc   : > { %6589 = sst [smem:[#allocation18_spill]] %s3683_s11  ;;  %s3743_s15 = sadd.s32 1, %s3687_s12  }
   0xd   : > { %6590 = sst [smem:[#allocation19_spill]] %s3687_s12  ;;  %s47_s16 = sadd.s32 1, %s3683_s11 }
   0xe   : > { %6591 = sst [smem:[#allocation20_spill]] %s3739_s13  ;;  %s44_s17 = ssub.s32 %s3687_s12, %s3743_s15 }
   0xf   : > { %6592 = sst [smem:[#allocation21_spill]] %s3743_s15  ;;  %p54_p0 = scmp.ne.s32.totalorder %s3683_s11, %s3679_s10 }
  0x10   : > { %p45_p1 = scmp.eq.s32.totalorder %s44_s17, 0  ;;  %p55_p2 = scmp.eq.s32.totalorder %s3687_s12, 0 }
  0x11   : > { %p60_p3 = scmp.ne.s32.totalorder %s3679_s10, %s3675_s9  ;;  %p61_p4 = scmp.eq.s32.totalorder %s3739_s13, 0 }
  0x12   : > { %s3755_s18 = scalar_select %p45_p1, %s3683_s11, %s47_s16  }
  0x13   : > { %p3757_p5 = por %p55_p2, %p54_p0  ;;  %p3763_p6 = por %p61_p4, %p60_p3 }
  0x14   : > { %6593 = sst [smem:[#allocation22_spill]] %s3755_s18  ;;  %p84_p7 = scmp.eq.s32.totalorder %s3739_s13, 1 }
  0x15   : > { %p90_p8 = scmp.eq.s32.totalorder %s2881_s14, 1  ;;  %p2882_p9 = scmp.ge.s32.totalorder %s3687_s12, 1 }
  0x16   : > { %p97_p10 = scmp.lt.s32.totalorder %s3687_s12, 3  ;;  %p3770_p11 = por %p84_p7, %p54_p0 }
  0x17   : > { %p3774_p12 = por %p90_p8, %p60_p3  ;;  %s3689_s24 = smov [#allocation2]  }
  0x18   : > { %s6596_s21 = scalar_select %p3770_p11, 1, 0 }
  0x19   : > { %s6598_s22 = scalar_select %p3774_p12, 1, 0 }
  0x1a   : > { %6597 = sst [smem:[#allocation23_spill]] %s6596_s21  ;;  %p3778_p13 = pnand %p2882_p9, %p97_p10 }
  0x1b   : > { %6599 = sst [smem:[#allocation24_spill]] %s6598_s22  ;;  %p2884_p0 = scmp.ge.s32.totalorder %s3687_s12, 2 }
  0x1c   : > { %p3577_p1 = pneg %p3778_p13  ;;  %s6601_s0 = sld [smem:[#allocation93_spill]] }
  0x1e   : > { %p3578_p2 = pnand %p3577_p1, %p61_p4  ;;  %115 = sbr.rel (%p2884_p0) target bundleno = 49 (0x31), region = 20 }
  0x22   : > { %3580 = dma.hbm_to_smem (!%p3578_p2), %s6601_s0, 48, %s3689_s24, [#allocation5]  }
  0x23   : > { %s119_s27 = sand.u32 1, %s3683_s11   ;;  %s3553_s28 = sshll.u32 %s3687_s12, 8 }
  0x24   : > { %s2885_s29 = sshll.u32 %s119_s27, 6  ;;  %s6602_s1 = sld [smem:[#allocation94_spill]] }
  0x25   : > { %s3558_s5 = scalar_select %p3757_p5, [#allocation0], [#allocation12] }
  0x26   : > { %s123_s6 = scalar_lea.vmem [#allocation6], %s2885_s29  ;;  %s3690_s14 = smov 512  }
  0x27   : > { %s142_s7 = sshll.u32 %s123_s6, 4  ;;  %s134_s8 = sld [smem:[%s3558_s5]]   ;;  %s143_s7 = int_to_ptr.vmem [resolvable:$true] %s142_s7 }
  0x28   : > { %3559 = sst [smem:[#allocation9]] (%p3757_p5), %s3690_s14  ;;  %s3691_s16 = smov 256  }
  0x29   : > { %3560 = sst [smem:[#allocation9 + $0x1]] (%p3757_p5), %s3691_s16  ;;  %s3692_s17 = smov 2  }
  0x2a   : > { %s129_s4 = scalar_lea.hbm %s6602_s1, %s3553_s28  ;;  %3561 = sst [smem:[#allocation9 + $0x2]] (%p3757_p5), %s3692_s17 }
  0x2b   : > { %s3693_s24 = smov 128   ;;  %s3694_s26 = smov 8  }
  0x2c   : > { %3562 = sst [smem:[#allocation9 + $0x3]] (%p3757_p5), %s3693_s24  ;;  %s120_s29 = scalar_lea.sflag [#allocation3], %s119_s27 }
  0x2d   : > { %3563 = sst [smem:[#allocation9 + $0x4]] (%p3757_p5), %s3693_s24  ;;  %s2888_s25 = sshll.u32 %s134_s8, 26 }
  0x2e   : > { %3564 = sst [smem:[#allocation9 + $0x5]] (%p3757_p5), %s3694_s26  ;;  %s2889_s28 = sadd.s32 134217728, %s2888_s25 }
  0x2f   : > { %s3695_s30 = smov 131072  }
  0x30   : > { %3565 = dma.general (%p3757_p5), %s129_s4, 1024, %s143_s7, %s120_s29, %s3695_s30, [#allocation9], %s2889_s28, 0  }
  0x31 PF: > { %167 = sbr.rel (%p3778_p13) target bundleno = 1191 (0x4a7), region = 28 }
  0x36   : > { %3662 = dma.done.wait (%p61_p4), [#allocation5], 48  }
  0x37   : > { %3664 = vsyncadd (%p61_p4), [#allocation5], 4294967248  ;;  %s3820_s3 = sand.u32 1, %s3679_s10  }
  0x38   : > { %6603 = sst [smem:[#allocation25_spill]] %s3820_s3  ;;  %s2892_s27 = sshll.u32 %s3820_s3, 6 }
  0x39   : > { %s174_s5 = scalar_lea.sflag [#allocation3], %s3820_s3  ;;  %s3824_s19 = scalar_lea.vmem [#allocation6], %s2892_s27 }
  0x3a   : > { %6604 = sst [smem:[#allocation26_spill]] %s3824_s19 }
  0x3b   : > { %3666 = dma.done.wait (%p3763_p6), %s174_s5, 1024  }
  0x3c   : > { %3668 = vsyncadd (%p3763_p6), %s174_s5, 4294966272 }
  0x3d   : > { %182 = sfence }
  0x3e   : > { %s3830_s23 = sld [smem:[#allocation2 + $0x40]]  ;;  %v3993_v0 = vld [vmem:[%s3824_s19] sm:$0xff]  ;;  %v4006_v3 = vld [vmem:[%s3824_s19 + $0x10] sm:$0xff] }
  0x3f   : > { %s3832_s4 = sld [smem:[#allocation2]]  ;;  %v4021_v9 = vld [vmem:[%s3824_s19 + $0x20] sm:$0xff]  ;;  %v4038_v17 = vld [vmem:[%s3824_s19 + $0x30] sm:$0xff] }
  0x40   : > { %s3834_s6 = sld [smem:[#allocation2 + $0x1]] }
  0x41   : > { %s3836_s7 = sld [smem:[#allocation2 + $0x2]] }
  0x42   : > { %s3838_s8 = sld [smem:[#allocation2 + $0x3]] }
  0x43   : > { %s3840_s14 = sld [smem:[#allocation2 + $0x41]] }
  0x44   : > { %s3842_s16 = sld [smem:[#allocation2 + $0x4]]  ;;  %v212_v4 = vstv %s3830_s23 }
  0x45   : > { %s3844_s17 = sld [smem:[#allocation2 + $0x5]]  ;;  %v214_v1 = vstv %s3832_s4 }
  0x46   : > { %s3846_s24 = sld [smem:[#allocation2 + $0x6]]  ;;  %v215_v2 = vmul.f32 %v214_v1, %v3993_v0  ;;  %v218_v5 = vstv %s3834_s6 }
  0x47   : > { %s3848_s20 = sld [smem:[#allocation2 + $0x7]]  ;;  %v219_v8 = vmul.f32 %v4006_v3, %v218_v5  ;;  %v222_v10 = vstv %s3836_s7 }
  0x48   : > { %s3850_s25 = sld [smem:[#allocation2 + $0x42]]  ;;  %v216_v7 = vadd.f32 %v215_v2, %v212_v4  ;;  %v223_v15 = vmul.f32 %v4021_v9, %v222_v10  ;;  %v226_v18 = vstv %s3838_s8 }
  0x49   : > { %s3852_s26 = sld [smem:[#allocation2 + $0x8]]  ;;  %v231_v12 = vstv %s3840_s14  ;;  %v227_v26 = vmul.f32 %v4038_v17, %v226_v18 }
  0x4a   : > { %s3854_s28 = sld [smem:[#allocation2 + $0x9]]  ;;  %v233_v6 = vstv %s3842_s16  ;;  %v220_v14 = vadd.f32 %v219_v8, %v216_v7 }
  0x4b   : > { %s3856_s29 = sld [smem:[#allocation2 + $0xa]]  ;;  %v234_v11 = vmul.f32 %v233_v6, %v3993_v0  ;;  %v237_v13 = vstv %s3844_s17 }
  0x4c   : > { %s3858_s30 = sld [smem:[#allocation2 + $0xb]]  ;;  %v238_v20 = vmul.f32 %v4006_v3, %v237_v13  ;;  %v241_v21 = vstv %s3846_s24  ;;  %v224_v25 = vadd.f32 %v223_v15, %v220_v14 }
  0x4d   : > { %s3860_s27 = sld [smem:[#allocation2 + $0x43]]  ;;  %v235_v19 = vadd.f32 %v234_v11, %v231_v12  ;;  %v242_v29 = vmul.f32 %v4021_v9, %v241_v21  ;;  %v245_v30 = vstv %s3848_s20 }
  0x4e   : > { %s3862_s5 = sld [smem:[#allocation2 + $0xc]]  ;;  %v250_v27 = vstv %s3850_s25  ;;  %v4070_v38 = vadd.f32 %v227_v26, %v224_v25  ;;  %v4073_v39 = vmul.f32 %v4038_v17, %v245_v30 }
  0x4f   : > { %s3864_s0 = sld [smem:[#allocation2 + $0xd]]  ;;  %v252_v16 = vstv %s3852_s26  ;;  %v239_v28 = vadd.f32 %v238_v20, %v235_v19 }
  0x50   : > { %s3866_s1 = sld [smem:[#allocation2 + $0xe]]  ;;  %v253_v22 = vmul.f32 %v252_v16, %v3993_v0  ;;  %v256_v23 = vstv %s3854_s28 }
  0x51   : > { %s3868_s18 = sld [smem:[#allocation2 + $0xf]]  ;;  %v257_v31 = vmul.f32 %v4006_v3, %v256_v23  ;;  %v260_v32 = vstv %s3856_s29  ;;  %v243_v41 = vadd.f32 %v242_v29, %v239_v28 }
  0x52   : > { %6605 = sst [smem:[#allocation27_spill]] %s3858_s30  ;;  %v254_v34 = vadd.f32 %v253_v22, %v250_v27  ;;  %v261_v42 = vmul.f32 %v4021_v9, %v260_v32 }
  0x53   : > { %s3870_s11 = sld [smem:[#allocation2 + $0x44]]  ;;  %v269_v35 = vstv %s3860_s27  ;;  %v247_v29 = vadd.f32 %v4073_v39, %v243_v41 }
  0x54   : > { %s3872_s10 = sld [smem:[#allocation2 + $0x10]]  ;;  %v271_v24 = vstv %s3862_s5  ;;  %v258_v49 = vadd.f32 %v257_v31, %v254_v34 }
  0x55   : > { %s3874_s15 = sld [smem:[#allocation2 + $0x11]]  ;;  %v272_v33 = vmul.f32 %v271_v24, %v3993_v0  ;;  %v275_v36 = vstv %s3864_s0 }
  0x56   : > { %6606 = sst [smem:[#allocation28_spill]] %s3866_s1  ;;  %v276_v46 = vmul.f32 %v4006_v3, %v275_v36  ;;  %v262_v2 = vadd.f32 %v261_v42, %v258_v49 }
  0x57   : > { %6607 = sst [smem:[#allocation29_spill]] %s3868_s18  ;;  %v273_v45 = vadd.f32 %v272_v33, %v269_v35 }
  0x58   : > { %s3876_s12 = sld [smem:[#allocation2 + $0x12]] }
  0x59   : > { %6608 = sst [smem:[#allocation30_spill]] %s3870_s11  ;;  %v277_v61 = vadd.f32 %v276_v46, %v273_v45  ;;  %v4156_v46 = vmax.f32 %v4070_v38, 0.0 }
  0x5a   : > { %s3878_s22 = sld [smem:[#allocation2 + $0x13]]  ;;  %v290_v37 = vstv %s3872_s10 }
  0x5b   : > { %6609 = sst [smem:[#allocation31_spill]] %s3874_s15  ;;  %v291_v48 = vmul.f32 %v290_v37, %v3993_v0 }
  0x5c   : > { %s3880_s9 = sld [smem:[#allocation2 + $0x45]] }
  0x5d   : > { %s3882_s2 = sld [smem:[#allocation2 + $0x14]] }
  0x5e   : > { %6610 = sst [smem:[#allocation32_spill]] %s3876_s12 }
  0x5f   : > { %s3884_s21 = sld [smem:[#allocation2 + $0x15]] }
  0x60   : > { %6611 = sst [smem:[#allocation33_spill]] %s3878_s22 }
  0x61   : > { %s3886_s13 = sld [smem:[#allocation2 + $0x16]] }
  0x62   : > { %6612 = sst [smem:[#allocation34_spill]] %s3880_s9 }
  0x63   : > { %s3888_s3 = sld [smem:[#allocation2 + $0x17]]  ;;  %v309_v40 = vstv %s3882_s2 }
  0x64   : > { %s3890_s18 = sld [smem:[#allocation2 + $0x46]]  ;;  %v310_v52 = vmul.f32 %v309_v40, %v3993_v0 }
  0x65   : > { %6613 = sst [smem:[#allocation35_spill]] %s3884_s21 }
  0x66   : > { %s3892_s11 = sld [smem:[#allocation2 + $0x18]] }
  0x67   : > { %6614 = sst [smem:[#allocation36_spill]] %s3886_s13 }
  0x68   : > { %s3894_s1 = sld [smem:[#allocation2 + $0x19]] }
  0x69   : > { %6615 = sst [smem:[#allocation37_spill]] %s3888_s3 }
  0x6a   : > { %6616 = sst [smem:[#allocation38_spill]] %s3890_s18 }
  0x6b   : > { %s3896_s15 = sld [smem:[#allocation2 + $0x1a]] }
  0x6c   : > { %6617 = sst [smem:[#allocation39_spill]] %s3892_s11 }
  0x6d   : > { %s3898_s12 = sld [smem:[#allocation2 + $0x1b]] }
  0x6e   : > { %6618 = sst [smem:[#allocation40_spill]] %s3894_s1 }
  0x6f   : > { %s3900_s22 = sld [smem:[#allocation2 + $0x47]] }
  0x70   : > { %s3902_s9 = sld [smem:[#allocation2 + $0x1c]] }
  0x71   : > { %6619 = sst [smem:[#allocation41_spill]] %s3896_s15 }
  0x72   : > { %s3904_s30 = sld [smem:[#allocation2 + $0x1d]] }
  0x73   : > { %6620 = sst [smem:[#allocation42_spill]] %s3898_s12 }
  0x74   : > { %s3906_s21 = sld [smem:[#allocation2 + $0x1e]] }
  0x75   : > { %6621 = sst [smem:[#allocation43_spill]] %s3900_s22 }
  0x76   : > { %6622 = sst [smem:[#allocation44_spill]] %s3902_s9 }
  0x77   : > { %s3908_s13 = sld [smem:[#allocation2 + $0x1f]] }
  0x78   : > { %6623 = sst [smem:[#allocation45_spill]] %s3904_s30 }
  0x79   : > { %s3910_s3 = sld [smem:[#allocation2 + $0x48]] }
  0x7a   : > { %6624 = sst [smem:[#allocation46_spill]] %s3906_s21 }
  0x7b   : > { %s3912_s18 = sld [smem:[#allocation2 + $0x20]] }
  0x7c   : > { %s3914_s11 = sld [smem:[#allocation2 + $0x21]] }
  0x7d   : > { %6625 = sst [smem:[#allocation47_spill]] %s3908_s13 }
  0x7e   : > { %s3916_s1 = sld [smem:[#allocation2 + $0x22]] }
  0x7f   : > { %6626 = sst [smem:[#allocation48_spill]] %s3910_s3 }
  0x80   : > { %s3918_s15 = sld [smem:[#allocation2 + $0x23]] }
  0x81   : > { %6627 = sst [smem:[#allocation49_spill]] %s3912_s18 }
  0x82   : > { %6628 = sst [smem:[#allocation50_spill]] %s3914_s11 }
  0x83   : > { %s3920_s12 = sld [smem:[#allocation2 + $0x49]] }
  0x84   : > { %6629 = sst [smem:[#allocation51_spill]] %s3916_s1 }
  0x85   : > { %s3922_s22 = sld [smem:[#allocation2 + $0x24]] }
  0x86   : > { %6630 = sst [smem:[#allocation52_spill]] %s3918_s15 }
  0x87   : > { %s3924_s9 = sld [smem:[#allocation2 + $0x25]] }
  0x88   : > { %s3926_s30 = sld [smem:[#allocation2 + $0x26]] }
  0x89   : > { %6631 = sst [smem:[#allocation53_spill]] %s3920_s12 }
  0x8a   : > { %s3928_s21 = sld [smem:[#allocation2 + $0x27]] }
  0x8b   : > { %6632 = sst [smem:[#allocation54_spill]] %s3922_s22 }
  0x8c   : > { %s3930_s13 = sld [smem:[#allocation2 + $0x4a]] }
  0x8d   : > { %6633 = sst [smem:[#allocation55_spill]] %s3924_s9 }
  0x8e   : > { %6634 = sst [smem:[#allocation56_spill]] %s3926_s30 }
  0x8f   : > { %s3932_s3 = sld [smem:[#allocation2 + $0x28]] }
  0x90   : > { %6635 = sst [smem:[#allocation57_spill]] %s3928_s21 }
  0x91   : > { %s3934_s18 = sld [smem:[#allocation2 + $0x29]] }
  0x92   : > { %6636 = sst [smem:[#allocation58_spill]] %s3930_s13 }
  0x93   : > { %s3936_s11 = sld [smem:[#allocation2 + $0x2a]] }
  0x94   : > { %s3938_s1 = sld [smem:[#allocation2 + $0x2b]] }
  0x95   : > { %6637 = sst [smem:[#allocation59_spill]] %s3932_s3 }
  0x96   : > { %s3940_s15 = sld [smem:[#allocation2 + $0x4b]] }
  0x97   : > { %6638 = sst [smem:[#allocation60_spill]] %s3934_s18 }
  0x98   : > { %s3942_s12 = sld [smem:[#allocation2 + $0x2c]] }
  0x99   : > { %6639 = sst [smem:[#allocation61_spill]] %s3936_s11 }
  0x9a   : > { %6640 = sst [smem:[#allocation62_spill]] %s3938_s1 }
  0x9b   : > { %s3944_s22 = sld [smem:[#allocation2 + $0x2d]] }
  0x9c   : > { %6641 = sst [smem:[#allocation63_spill]] %s3940_s15 }
  0x9d   : > { %s3946_s9 = sld [smem:[#allocation2 + $0x2e]] }
  0x9e   : > { %s3948_s30 = sld [smem:[#allocation2 + $0x2f]] }
  0x9f   : > { %s3950_s21 = sld [smem:[#allocation2 + $0x4c]] }
  0xa0   : > { %s3952_s13 = sld [smem:[#allocation2 + $0x30]] }
  0xa1   : > { %6642 = sst [smem:[#allocation64_spill]] %s3944_s22 }
  0xa2   : > { %s3954_s3 = sld [smem:[#allocation2 + $0x31]] }
  0xa3   : > { %6643 = sst [smem:[#allocation65_spill]] %s3946_s9 }
  0xa4   : > { %6644 = sst [smem:[#allocation66_spill]] %s3948_s30 }
  0xa5   : > { %6645 = sst [smem:[#allocation67_spill]] %s3950_s21 }
  0xa6   : > { %6646 = sst [smem:[#allocation68_spill]] %s3952_s13 }
  0xa7   : > { %s3956_s18 = sld [smem:[#allocation2 + $0x32]] }
  0xa8   : > { %6647 = sst [smem:[#allocation69_spill]] %s3954_s3 }
  0xa9   : > { %s3958_s11 = sld [smem:[#allocation2 + $0x33]] }
  0xaa   : > { %s3960_s1 = sld [smem:[#allocation2 + $0x4d]] }
  0xab   : > { %s3962_s15 = sld [smem:[#allocation2 + $0x34]] }
  0xac   : > { %s3964_s22 = sld [smem:[#allocation2 + $0x35]] }
  0xad   : > { %s3966_s9 = sld [smem:[#allocation2 + $0x36]] }
  0xae   : > { %s3968_s30 = sld [smem:[#allocation2 + $0x37]] }
  0xaf   : > { %6648 = sst [smem:[#allocation70_spill]] %s3958_s11 }
  0xb0   : > { %6649 = sst [smem:[#allocation71_spill]] %s3960_s1 }
  0xb1   : > { %6650 = sst [smem:[#allocation72_spill]] %s3962_s15 }
  0xb2   : > { %6651 = sst [smem:[#allocation73_spill]] %s3964_s22 }
  0xb3   : > { %6652 = sst [smem:[#allocation74_spill]] %s3966_s9 }
  0xb4   : > { %6653 = sst [smem:[#allocation75_spill]] %s3968_s30 }
  0xb5   : > { %s3970_s21 = sld [smem:[#allocation2 + $0x4e]] }
  0xb6   : > { %s3972_s13 = sld [smem:[#allocation2 + $0x38]] }
  0xb7   : > { %s3974_s3 = sld [smem:[#allocation2 + $0x39]] }
  0xb8   : > { %s3976_s11 = sld [smem:[#allocation2 + $0x3a]] }
  0xb9   : > { %s3978_s1 = sld [smem:[#allocation2 + $0x3b]] }
  0xba   : > { %s3980_s15 = sld [smem:[#allocation2 + $0x4f]] }
  0xbb   : > { %6654 = sst [smem:[#allocation76_spill]] %s3970_s21 }
  0xbc   : > { %6655 = sst [smem:[#allocation77_spill]] %s3972_s13 }
  0xbd   : > { %6656 = sst [smem:[#allocation78_spill]] %s3974_s3 }
  0xbe   : > { %6657 = sst [smem:[#allocation79_spill]] %s3976_s11 }
  0xbf   : > { %6658 = sst [smem:[#allocation80_spill]] %s3978_s1 }
  0xc0   : > { %6659 = sst [smem:[#allocation81_spill]] %s3980_s15 }
  0xc1   : > { %s3982_s22 = sld [smem:[#allocation2 + $0x3c]] }
  0xc2   : > { %s3984_s9 = sld [smem:[#allocation2 + $0x3d]] }
  0xc3   : > { %s3986_s30 = sld [smem:[#allocation2 + $0x3e]] }
  0xc4   : > { %s3988_s21 = sld [smem:[#allocation2 + $0x3f]] }
  0xc5   : > { %s3990_s13 = sld [smem:[#allocation2 + $0x110]] }
  0xc6   : > { %s3996_s11 = sld [smem:[#allocation2 + $0x50]] }
  0xc7   : > { %6660 = sst [smem:[#allocation82_spill]] %s3982_s22 }
  0xc8   : > { %6661 = sst [smem:[#allocation83_spill]] %s3984_s9 }
  0xc9   : > { %6662 = sst [smem:[#allocation84_spill]] %s3986_s30 }
  0xca   : > { %6663 = sst [smem:[#allocation85_spill]] %s3988_s21 }
  0xcb   : > { %s3998_s1 = sld [smem:[#allocation2 + $0x51]] }
  0xcc   : > { %s4000_s15 = sld [smem:[#allocation2 + $0x52]] }
  0xcd   : > { %s4003_s9 = sld [smem:[#allocation2 + $0x53]] }
  0xce   : > { %s4010_s21 = sld [smem:[#allocation2 + $0x54]] }
  0xcf   : > { %s4013_s4 = sld [smem:[#allocation2 + $0x55]] }
  0xd0   : > { %s4015_s30 = sld [smem:[#allocation2 + $0x56]] }
  0xd1   : > { %s4018_s22 = sld [smem:[#allocation2 + $0x57]] }
  0xd2   : > { %s4025_s23 = sld [smem:[#allocation2 + $0x58]] }
  0xd3   : > { %s4029_s6 = sld [smem:[#allocation2 + $0x59]] }
  0xd4   : > { %s4031_s16 = sld [smem:[#allocation2 + $0x5a]] }
  0xd5   : > { %s4035_s3 = sld [smem:[#allocation2 + $0x5b]] }
  0xd6   : > { %s4042_s7 = sld [smem:[#allocation2 + $0x5c]] }
  0xd7   : > { %s4045_s14 = sld [smem:[#allocation2 + $0x5d]] }
  0xd8   : > { %s4050_s17 = sld [smem:[#allocation2 + $0x5e]] }
  0xd9   : > { %6664 = sst [smem:[#allocation86_spill]] %s4029_s6 }
  0xda   : > { %6665 = sst [smem:[#allocation87_spill]] %s4031_s16 }
  0xdb   : > { %6666 = sst [smem:[#allocation88_spill]] %s4035_s3 }
  0xdc   : > { %6667 = sst [smem:[#allocation89_spill]] %s4042_s7 }
  0xdd   : > { %6668 = sst [smem:[#allocation90_spill]] %s4045_s14 }
  0xde   : > { %6669 = sst [smem:[#allocation91_spill]] %s4050_s17 }
  0xdf   : > { %s4054_s8 = sld [smem:[#allocation2 + $0x5f]] }
  0xe0   : > { %s4058_s24 = sld [smem:[#allocation2 + $0x111]] }
  0xe1   : > { %s6671_s26 = sld [smem:[#allocation27_spill]] }
  0xe2   : > { %s6672_s28 = sld [smem:[#allocation39_spill]] }
  0xe3   : > { %s4063_s5 = sld [smem:[#allocation2 + $0x60]] }
  0xe4   : > { %s6673_s25 = sld [smem:[#allocation28_spill]] }
  0xe5   : > { %6670 = sst [smem:[#allocation92_spill]] %s4054_s8 }
  0xe6   : > { %s4068_s19 = sld [smem:[#allocation2 + $0x61]] }
  0xe7   : > { %s6674_s8 = sld [smem:[#allocation30_spill]]  ;;  %v264_v43 = vstv %s6671_s26 }
  0xe8   : > { %s6675_s20 = sld [smem:[#allocation31_spill]]  ;;  %v328_v44 = vstv %s6672_s28  ;;  %v265_v53 = vmul.f32 %v4038_v17, %v264_v43 }
  0xe9   : > { %s4076_s29 = sld [smem:[#allocation2 + $0x62]]  ;;  %v329_v56 = vmul.f32 %v328_v44, %v3993_v0 }
  0xea   : > { %s6676_s17 = sld [smem:[#allocation34_spill]]  ;;  %v279_v47 = vstv %s6673_s25  ;;  %v266_v30 = vadd.f32 %v265_v53, %v262_v2  ;;  %v4167_v53 = vmax.f32 %v247_v29, 0.0 }
  0xeb   : > { %s6677_s14 = sld [smem:[#allocation35_spill]]  ;;  %v280_v57 = vmul.f32 %v4021_v9, %v279_v47 }
  0xec   : > { %s4081_s0 = sld [smem:[#allocation2 + $0x63]] }
  0xed   : > { %s6678_s10 = sld [smem:[#allocation38_spill]]  ;;  %v288_v50 = vstv %s6674_s8  ;;  %v281_v16 = vadd.f32 %v280_v57, %v277_v61 }
  0xee   : > { %s6679_s27 = sld [smem:[#allocation40_spill]]  ;;  %v294_v51 = vstv %s6675_s20  ;;  %v292_v63 = vadd.f32 %v291_v48, %v288_v50 }
  0xef   : > { %s6680_s7 = sld [smem:[#allocation44_spill]]  ;;  %v295_v1 = vmul.f32 %v4006_v3, %v294_v51 }
  0xf0   : > { %s4086_s2 = sld [smem:[#allocation2 + $0x64]]  ;;  %v307_v54 = vstv %s6676_s17 }
  0xf1   : > { %s6681_s3 = sld [smem:[#allocation29_spill]]  ;;  %v313_v55 = vstv %s6677_s14  ;;  %v311_v5 = vadd.f32 %v310_v52, %v307_v54  ;;  %v296_v18 = vadd.f32 %v295_v1, %v292_v63  ;;  %v518_v52 = vstv %s3996_s11 }
  0xf2   : > { %s4091_s26 = sld [smem:[#allocation2 + $0x65]]  ;;  %v314_v6 = vmul.f32 %v4006_v3, %v313_v55  ;;  %v4169_v54 = vmax.f32 %v266_v30, 0.0  ;;  %v519_v63 = vmul.f32 %v518_v52, %v4156_v46 }
  0xf3   : > { %s6682_s28 = sld [smem:[#allocation32_spill]]  ;;  %v326_v58 = vstv %s6678_s10 }
  0xf4   : > { %s4097_s25 = sld [smem:[#allocation2 + $0x66]]  ;;  %v332_v59 = vstv %s6679_s27  ;;  %v330_v8 = vadd.f32 %v329_v56, %v326_v58  ;;  %v315_v21 = vadd.f32 %v314_v6, %v311_v5  ;;  %v522_v5 = vstv %s3998_s1 }
  0xf5   : > { %s6684_s16 = sld [smem:[#allocation36_spill]]  ;;  %v347_v60 = vstv %s6680_s7  ;;  %v333_v10 = vmul.f32 %v4006_v3, %v332_v59 }
  0xf6   : > { %s4103_s8 = sld [smem:[#allocation2 + $0x67]]  ;;  %v348_v11 = vmul.f32 %v347_v60, %v3993_v0 }
  0xf7   : > { %s6686_s20 = sld [smem:[#allocation41_spill]]  ;;  %v283_v62 = vstv %s6681_s3  ;;  %v334_v25 = vadd.f32 %v333_v10, %v330_v8 }
  0xf8   : > { %s6687_s6 = sld [smem:[#allocation43_spill]]  ;;  %v284_v12 = vmul.f32 %v4038_v17, %v283_v62 }
  0xf9   : > { %s6688_s17 = sld [smem:[#allocation45_spill]]  ;;  %v298_v4 = vstv %s6682_s28 }
  0xfa   : > { %6683 = sst [smem:[#allocation27_spill]] %s4097_s25  ;;  %v299_v19 = vmul.f32 %v4021_v9, %v298_v4  ;;  %v285_v33 = vadd.f32 %v284_v12, %v281_v16  ;;  %v516_v4 = vstv %s3990_s13 }
  0xfb   : > { %s4107_s14 = sld [smem:[#allocation2 + $0x68]]  ;;  %v317_v7 = vstv %s6684_s16 }
  0xfc   : > { %6685 = sst [smem:[#allocation39_spill]] %s4103_s8  ;;  %v318_v22 = vmul.f32 %v4021_v9, %v317_v7  ;;  %v300_v37 = vadd.f32 %v299_v19, %v296_v18  ;;  %v4173_v56 = vmax.f32 %v285_v33, 0.0  ;;  %v520_v18 = vadd.f32 %v519_v63, %v516_v4 }
  0xfd   : > { %s6690_s25 = sld [smem:[#allocation33_spill]]  ;;  %v336_v13 = vstv %s6686_s20  ;;  %v523_v19 = vmul.f32 %v522_v5, %v4167_v53  ;;  %v450_v63 = vstv %s3956_s18 }
  0xfe   : > { %s4111_s10 = sld [smem:[#allocation2 + $0x69]]  ;;  %v345_v14 = vstv %s6687_s6  ;;  %v337_v26 = vmul.f32 %v4021_v9, %v336_v13  ;;  %v319_v40 = vadd.f32 %v318_v22, %v315_v21 }
  0xff   : > { %s6692_s7 = sld [smem:[#allocation37_spill]]  ;;  %v351_v15 = vstv %s6688_s17  ;;  %v349_v27 = vadd.f32 %v348_v11, %v345_v14  ;;  %v423_v14 = vstv %s3942_s12 }
 0x100   : > { %s6693_s3 = sld [smem:[#allocation49_spill]]  ;;  %v352_v28 = vmul.f32 %v4006_v3, %v351_v15  ;;  %v338_v42 = vadd.f32 %v337_v26, %v334_v25  ;;  %v424_v26 = vmul.f32 %v423_v14, %v3993_v0  ;;  %v589_v14 = vstv %s4068_s19 }
 0x101   : > { %6689 = sst [smem:[#allocation28_spill]] %s4107_s14 }
 0x102   : > { %s4116_s27 = sld [smem:[#allocation2 + $0x6a]]  ;;  %v353_v44 = vadd.f32 %v352_v28, %v349_v27 }
 0x103   : > { %s4122_s28 = sld [smem:[#allocation2 + $0x6b]]  ;;  %v302_v20 = vstv %s6690_s25 }
 0x104   : > { %6691 = sst [smem:[#allocation30_spill]] %s4111_s10  ;;  %v303_v34 = vmul.f32 %v4038_v17, %v302_v20 }
 0x105   : > { %s6696_s16 = sld [smem:[#allocation42_spill]]  ;;  %v321_v23 = vstv %s6692_s7 }
 0x106   : > { %s6697_s10 = sld [smem:[#allocation46_spill]]  ;;  %v366_v24 = vstv %s6693_s3  ;;  %v322_v39 = vmul.f32 %v4038_v17, %v321_v23  ;;  %v304_v38 = vadd.f32 %v303_v34, %v300_v37  ;;  %v526_v23 = vstv %s4000_s15 }
 0x107   : > { %s4126_s14 = sld [smem:[#allocation2 + $0x6c]]  ;;  %v367_v35 = vmul.f32 %v366_v24, %v3993_v0  ;;  %v524_v34 = vadd.f32 %v523_v19, %v520_v18  ;;  %v451_v18 = vmul.f32 %v4021_v9, %v450_v63  ;;  %v538_v19 = vstv %s4013_s4 }
 0x108   : > { %6694 = sst [smem:[#allocation31_spill]] %s4116_s27  ;;  %v323_v55 = vadd.f32 %v322_v39, %v319_v40  ;;  %v4189_v6 = vmax.f32 %v304_v38, 0.0  ;;  %v530_v39 = vstv %s4003_s9  ;;  %v585_v38 = vstv %s4063_s5 }
 0x109   : > { %6695 = sst [smem:[#allocation34_spill]] %s4122_s28  ;;  %v531_v52 = vmul.f32 %v530_v39, %v4173_v56  ;;  %v586_v5 = vmul.f32 %v585_v38, %v4156_v46 }
 0x10a   : > { %s6699_s27 = sld [smem:[#allocation50_spill]]  ;;  %v4191_v7 = vmax.f32 %v323_v55, 0.0 }
 0x10b   : > { %s4131_s20 = sld [smem:[#allocation2 + $0x6d]]  ;;  %v340_v31 = vstv %s6696_s16 }
 0x10c   : > { %s6701_s6 = sld [smem:[#allocation48_spill]]  ;;  %v355_v32 = vstv %s6697_s10  ;;  %v341_v43 = vmul.f32 %v4038_v17, %v340_v31 }
 0x10d   : > { %6698 = sst [smem:[#allocation35_spill]] %s4126_s14  ;;  %v356_v45 = vmul.f32 %v4021_v9, %v355_v32 }
 0x10e   : > { %s4135_s17 = sld [smem:[#allocation2 + $0x6e]]  ;;  %v342_v57 = vadd.f32 %v341_v43, %v338_v42 }
 0x10f   : > { %s4140_s25 = sld [smem:[#allocation2 + $0x6f]]  ;;  %v357_v58 = vadd.f32 %v356_v45, %v353_v44 }
 0x110   : > { %s6704_s7 = sld [smem:[#allocation47_spill]]  ;;  %v370_v36 = vstv %s6699_s27  ;;  %v4197_v11 = vmax.f32 %v342_v57, 0.0 }
 0x111   : > { %6700 = sst [smem:[#allocation38_spill]] %s4131_s20  ;;  %v371_v48 = vmul.f32 %v4006_v3, %v370_v36 }
 0x112   : > { %s4145_s3 = sld [smem:[#allocation2 + $0x112]]  ;;  %v364_v41 = vstv %s6701_s6 }
 0x113   : > { %s6705_s20 = sld [smem:[#allocation51_spill]]  ;;  %v368_v49 = vadd.f32 %v367_v35, %v364_v41  ;;  %v527_v35 = vmul.f32 %v526_v23, %v4169_v54 }
 0x114   : > { %6702 = sst [smem:[#allocation40_spill]] %s4135_s17 }
 0x115   : > { %6703 = sst [smem:[#allocation44_spill]] %s4140_s25  ;;  %v372_v1 = vadd.f32 %v371_v48, %v368_v49 }
 0x116   : > { %s6706_s14 = sld [smem:[#allocation54_spill]]  ;;  %v359_v47 = vstv %s6704_s7 }
 0x117   : > { %s4149_s10 = sld [smem:[#allocation2 + $0x70]]  ;;  %v360_v59 = vmul.f32 %v4038_v17, %v359_v47 }
 0x118   : > { %s4153_s16 = sld [smem:[#allocation2 + $0x71]] }
 0x119   : > { %s4160_s27 = sld [smem:[#allocation2 + $0x72]]  ;;  %v374_v50 = vstv %s6705_s20  ;;  %v4199_v12 = vadd.f32 %v360_v59, %v357_v58  ;;  %v534_v59 = vstv %s4010_s21 }
 0x11a   : > { %s6707_s6 = sld [smem:[#allocation55_spill]]  ;;  %v375_v60 = vmul.f32 %v4021_v9, %v374_v50 }
 0x11b   : > { %s4165_s25 = sld [smem:[#allocation2 + $0x73]] }
 0x11c   : > { %v385_v51 = vstv %s6706_s14  ;;  %s6709_s17 = sld [smem:[#allocation53_spill]]  ;;  %v376_v20 = vadd.f32 %v375_v60, %v372_v1 }
 0x11d   : > { %s4171_s7 = sld [smem:[#allocation2 + $0x74]]  ;;  %v386_v61 = vmul.f32 %v385_v51, %v3993_v0  ;;  %v528_v51 = vadd.f32 %v527_v35, %v524_v34  ;;  %v542_v35 = vstv %s4015_s30 }
 0x11e   : > { %s6711_s20 = sld [smem:[#allocation52_spill]] }
 0x11f   : > { %s6712_s11 = sld [smem:[#allocation59_spill]] }
 0x120   : > { %s4176_s14 = sld [smem:[#allocation2 + $0x75]]  ;;  %v389_v62 = vstv %s6707_s6 }
 0x121   : > { %6708 = sst [smem:[#allocation29_spill]] %s4165_s25  ;;  %v390_v13 = vmul.f32 %v4006_v3, %v389_v62 }
 0x122   : > { %s4182_s28 = sld [smem:[#allocation2 + $0x76]]  ;;  %v383_v2 = vstv %s6709_s17 }
 0x123   : > { %6710 = sst [smem:[#allocation32_spill]] %s4171_s7  ;;  %v387_v15 = vadd.f32 %v386_v61, %v383_v2 }
 0x124   : > { %s6715_s7 = sld [smem:[#allocation56_spill]]  ;;  %v378_v8 = vstv %s6711_s20 }
 0x125   : > { %s4187_s8 = sld [smem:[#allocation2 + $0x77]]  ;;  %v404_v10 = vstv %s6712_s11  ;;  %v379_v21 = vmul.f32 %v4038_v17, %v378_v8  ;;  %v391_v32 = vadd.f32 %v390_v13, %v387_v15  ;;  %v532_v8 = vadd.f32 %v531_v52, %v528_v51 }
 0x126   : > { %6713 = sst [smem:[#allocation36_spill]] %s4176_s14  ;;  %v405_v22 = vmul.f32 %v404_v10, %v3993_v0  ;;  %v535_v10 = vmul.f32 %v534_v59, %v4189_v6  ;;  %v583_v13 = vstv %s4058_s24  ;;  %v546_v52 = vstv %s4018_s22 }
 0x127   : > { %s4195_s6 = sld [smem:[#allocation2 + $0x78]]  ;;  %v380_v45 = vadd.f32 %v379_v21, %v376_v20 }
 0x128   : > { %6714 = sst [smem:[#allocation41_spill]] %s4182_s28 }
 0x129   : > { %s6718_s14 = sld [smem:[#allocation58_spill]] }
 0x12a   : > { %s6719_s28 = sld [smem:[#allocation60_spill]]  ;;  %v393_v16 = vstv %s6715_s7 }
 0x12b   : > { %6716 = sst [smem:[#allocation43_spill]] %s4187_s8  ;;  %v394_v28 = vmul.f32 %v4021_v9, %v393_v16 }
 0x12c   : > { %s6720_s1 = sld [smem:[#allocation68_spill]] }
 0x12d   : > { %6717 = sst [smem:[#allocation45_spill]] %s4195_s6  ;;  %v395_v60 = vadd.f32 %v394_v28, %v391_v32 }
 0x12e   : > { %s4203_s13 = sld [smem:[#allocation2 + $0x79]] }
 0x12f   : > { %s6722_s17 = sld [smem:[#allocation57_spill]]  ;;  %v402_v24 = vstv %s6718_s14 }
 0x130   : > { %s6723_s20 = sld [smem:[#allocation63_spill]]  ;;  %v408_v25 = vstv %s6719_s28  ;;  %v406_v36 = vadd.f32 %v405_v22, %v402_v24 }
 0x131   : > { %s6724_s11 = sld [smem:[#allocation64_spill]]  ;;  %v409_v37 = vmul.f32 %v4006_v3, %v408_v25 }
 0x132   : > { %s4207_s6 = sld [smem:[#allocation2 + $0x7a]]  ;;  %v442_v27 = vstv %s6720_s1 }
 0x133   : > { %s6726_s8 = sld [smem:[#allocation61_spill]]  ;;  %v443_v40 = vmul.f32 %v442_v27, %v3993_v0  ;;  %v410_v55 = vadd.f32 %v409_v37, %v406_v36  ;;  %v590_v27 = vmul.f32 %v589_v14, %v4167_v53  ;;  %v4292_v36 = vmax.f32 %v4199_v12, 0.0 }
 0x134   : > { %6721 = sst [smem:[#allocation33_spill]] %s4203_s13  ;;  %v4294_v37 = vmax.f32 %v380_v45, 0.0  ;;  %v543_v45 = vmul.f32 %v542_v35, %v4197_v11 }
 0x135   : > { %s4212_s12 = sld [smem:[#allocation2 + $0x7b]]  ;;  %v397_v29 = vstv %s6722_s17 }
 0x136   : > { %s4218_s7 = sld [smem:[#allocation2 + $0x7c]]  ;;  %v421_v30 = vstv %s6723_s20  ;;  %v398_v47 = vmul.f32 %v4038_v17, %v397_v29  ;;  %v536_v29 = vadd.f32 %v535_v10, %v532_v8  ;;  %v550_v10 = vstv %s4025_s23 }
 0x137   : > { %s6728_s13 = sld [smem:[#allocation69_spill]]  ;;  %v427_v31 = vstv %s6724_s11  ;;  %v425_v41 = vadd.f32 %v424_v26, %v421_v30  ;;  %v587_v26 = vadd.f32 %v586_v5, %v583_v13  ;;  %v539_v30 = vmul.f32 %v538_v19, %v4191_v7 }
 0x138   : > { %6725 = sst [smem:[#allocation37_spill]] %s4207_s6  ;;  %v428_v42 = vmul.f32 %v4006_v3, %v427_v31  ;;  %v399_v20 = vadd.f32 %v398_v47, %v395_v60  ;;  %v593_v31 = vstv %s4076_s29 }
 0x139   : > { %s6727_s6 = sld [smem:[#allocation67_spill]]  ;;  %v412_v33 = vstv %s6726_s8  ;;  %v540_v12 = vadd.f32 %v539_v30, %v536_v29 }
 0x13a   : > { %s4224_s25 = sld [smem:[#allocation2 + $0x7d]]  ;;  %v413_v48 = vmul.f32 %v4021_v9, %v412_v33  ;;  %v429_v61 = vadd.f32 %v428_v42, %v425_v41 }
 0x13b   : > { %s6729_s15 = sld [smem:[#allocation65_spill]] }
 0x13c   : > { %s4228_s28 = sld [smem:[#allocation2 + $0x7e]]  ;;  %v414_v15 = vadd.f32 %v413_v48, %v410_v55  ;;  %v597_v48 = vstv %s4081_s0 }
 0x13d   : > { %s6731_s14 = sld [smem:[#allocation62_spill]]  ;;  %v446_v44 = vstv %s6728_s13 }
 0x13e   : > { %s4233_s1 = sld [smem:[#allocation2 + $0x7f]]  ;;  %v447_v58 = vmul.f32 %v4006_v3, %v446_v44  ;;  %v594_v44 = vmul.f32 %v593_v31, %v4169_v54 }
 0x13f   : > { %v440_v43 = vstv %s6727_s6  ;;  %s4238_s8 = sld [smem:[#allocation2 + $0x113]] }
 0x140   : > { %s4243_s17 = sld [smem:[#allocation2 + $0x80]]  ;;  %v444_v57 = vadd.f32 %v443_v40, %v440_v43  ;;  %v591_v43 = vadd.f32 %v590_v27, %v587_v26  ;;  %v605_v26 = vstv %s4091_s26 }
 0x141   : > { %v431_v49 = vstv %s6729_s15  ;;  %s6733_s9 = sld [smem:[#allocation66_spill]] }
 0x142   : > { %6730 = sst [smem:[#allocation49_spill]] %s4228_s28  ;;  %v432_v62 = vmul.f32 %v4021_v9, %v431_v49  ;;  %v448_v16 = vadd.f32 %v447_v58, %v444_v57  ;;  %v4308_v49 = vmax.f32 %v399_v20, 0.0  ;;  %v652_v58 = vstv %s4149_s10 }
 0x143   : > { %v416_v50 = vstv %s6731_s14  ;;  %s6734_s20 = sld [smem:[#allocation72_spill]]  ;;  %v653_v13 = vmul.f32 %v652_v58, %v4156_v46 }
 0x144   : > { %6732 = sst [smem:[#allocation42_spill]] %s4233_s1  ;;  %v417_v1 = vmul.f32 %v4038_v17, %v416_v50  ;;  %v433_v21 = vadd.f32 %v432_v62, %v429_v61  ;;  %v452_v33 = vadd.f32 %v451_v18, %v448_v16  ;;  %v595_v61 = vadd.f32 %v594_v44, %v591_v43 }
 0x145   : > { %s4248_s6 = sld [smem:[#allocation2 + $0x81]]  ;;  %v598_v62 = vmul.f32 %v597_v48, %v4173_v56  ;;  %v650_v16 = vstv %s4145_s3  ;;  %v656_v18 = vstv %s4153_s16 }
 0x146   : > { %s4252_s13 = sld [smem:[#allocation2 + $0x82]]  ;;  %v418_v32 = vadd.f32 %v417_v1, %v414_v15  ;;  %v544_v1 = vadd.f32 %v543_v45, %v540_v12  ;;  %v654_v29 = vadd.f32 %v653_v13, %v650_v16  ;;  %v657_v30 = vmul.f32 %v656_v18, %v4167_v53 }
 0x147   : > { %s4256_s11 = sld [smem:[#allocation2 + $0x83]]  ;;  %v435_v2 = vstv %s6733_s9 }
 0x148   : > { %s6735_s5 = sld [smem:[#allocation70_spill]]  ;;  %v436_v22 = vmul.f32 %v4038_v17, %v435_v2  ;;  %v4310_v50 = vmax.f32 %v418_v32, 0.0  ;;  %v547_v2 = vmul.f32 %v546_v52, %v4292_v36  ;;  %v658_v45 = vadd.f32 %v657_v30, %v654_v29 }
 0x149   : > { %v461_v4 = vstv %s6734_s20  ;;  %s4262_s15 = sld [smem:[#allocation2 + $0x84]] }
 0x14a   : > { %s6736_s21 = sld [smem:[#allocation73_spill]]  ;;  %v462_v24 = vmul.f32 %v461_v4, %v3993_v0  ;;  %v437_v40 = vadd.f32 %v436_v22, %v433_v21  ;;  %v601_v4 = vstv %s4086_s2  ;;  %v599_v21 = vadd.f32 %v598_v62, %v595_v61 }
 0x14b   : > { %s4267_s14 = sld [smem:[#allocation2 + $0x85]]  ;;  %v602_v22 = vmul.f32 %v601_v4, %v4189_v6  ;;  %v719_v61 = vstv %s4243_s17 }
 0x14c   : > { %s6737_s18 = sld [smem:[#allocation71_spill]]  ;;  %v4315_v38 = vmax.f32 %v437_v40, 0.0 }
 0x14d   : > { %s4271_s9 = sld [smem:[#allocation2 + $0x86]] }
 0x14e   : > { %v454_v23 = vstv %s6735_s5  ;;  %s4275_s20 = sld [smem:[#allocation2 + $0x87]] }
 0x14f   : > { %s4280_s19 = sld [smem:[#allocation2 + $0x88]]  ;;  %v455_v34 = vmul.f32 %v4038_v17, %v454_v23 }
 0x150   : > { %v465_v25 = vstv %s6736_s21  ;;  %s6738_s4 = sld [smem:[#allocation74_spill]] }
 0x151   : > { %s4285_s24 = sld [smem:[#allocation2 + $0x89]]  ;;  %v466_v39 = vmul.f32 %v4006_v3, %v465_v25  ;;  %v456_v51 = vadd.f32 %v455_v34, %v452_v33  ;;  %v551_v25 = vmul.f32 %v550_v10, %v4294_v37  ;;  %v660_v34 = vstv %s4160_s27 }
 0x152   : > { %v459_v28 = vstv %s6737_s18  ;;  %s6740_s1 = sld [smem:[#allocation75_spill]] }
 0x153   : > { %s4289_s5 = sld [smem:[#allocation2 + $0x8a]]  ;;  %v463_v41 = vadd.f32 %v462_v24, %v459_v28  ;;  %v4331_v5 = vmax.f32 %v456_v51, 0.0  ;;  %v548_v24 = vadd.f32 %v547_v2, %v544_v1 }
 0x154   : > { %s4297_s29 = sld [smem:[#allocation2 + $0x8b]] }
 0x155   : > { %s6743_s21 = sld [smem:[#allocation77_spill]]  ;;  %v467_v59 = vadd.f32 %v466_v39, %v463_v41  ;;  %v606_v39 = vmul.f32 %v605_v26, %v4191_v7 }
 0x156   : > { %v469_v42 = vstv %s6738_s4  ;;  %s4301_s30 = sld [smem:[#allocation2 + $0x8c]] }
 0x157   : > { %6739 = sst [smem:[#allocation46_spill]] %s4285_s24  ;;  %v470_v55 = vmul.f32 %v4021_v9, %v469_v42  ;;  %v552_v42 = vadd.f32 %v551_v25, %v548_v24 }
 0x158   : > { %v473_v47 = vstv %s6740_s1  ;;  %s4306_s18 = sld [smem:[#allocation2 + $0x8d]] }
 0x159   : > { %6741 = sst [smem:[#allocation50_spill]] %s4289_s5  ;;  %v474_v60 = vmul.f32 %v4038_v17, %v473_v47  ;;  %v471_v19 = vadd.f32 %v470_v55, %v467_v59 }
 0x15a   : > { %6742 = sst [smem:[#allocation48_spill]] %s4297_s29 }
 0x15b   : > { %s6746_s5 = sld [smem:[#allocation76_spill]]  ;;  %v480_v57 = vstv %s6743_s21  ;;  %v475_v48 = vadd.f32 %v474_v60, %v471_v19  ;;  %v717_v19 = vstv %s4238_s8 }
 0x15c   : > { %6744 = sst [smem:[#allocation47_spill]] %s4301_s30  ;;  %v481_v8 = vmul.f32 %v480_v57, %v3993_v0 }
 0x15d   : > { %s4313_s4 = sld [smem:[#allocation2 + $0x8e]] }
 0x15e   : > { %6745 = sst [smem:[#allocation51_spill]] %s4306_s18 }
 0x15f   : > { %s4320_s0 = sld [smem:[#allocation2 + $0x8f]] }
 0x160   : > { %s6749_s1 = sld [smem:[#allocation78_spill]] }
 0x161   : > { %s6750_s18 = sld [smem:[#allocation82_spill]]  ;;  %v478_v63 = vstv %s6746_s5 }
 0x162   : > { %s4324_s22 = sld [smem:[#allocation2 + $0x114]]  ;;  %v482_v31 = vadd.f32 %v481_v8, %v478_v63 }
 0x163   : > { %6747 = sst [smem:[#allocation54_spill]] %s4313_s4 }
 0x164   : > { %s6751_s4 = sld [smem:[#allocation79_spill]] }
 0x165   : > { %6748 = sst [smem:[#allocation55_spill]] %s4320_s0 }
 0x166   : > { %s4329_s10 = sld [smem:[#allocation2 + $0x90]]  ;;  %v484_v14 = vstv %s6749_s1 }
 0x167   : > { %s6752_s21 = sld [smem:[#allocation83_spill]]  ;;  %v499_v15 = vstv %s6750_s18  ;;  %v485_v32 = vmul.f32 %v4006_v3, %v484_v14 }
 0x168   : > { %s4336_s0 = sld [smem:[#allocation2 + $0x91]]  ;;  %v500_v27 = vmul.f32 %v499_v15, %v3993_v0  ;;  %v603_v0 = vadd.f32 %v602_v22, %v599_v21  ;;  %v720_v15 = vmul.f32 %v719_v61, %v4156_v46 }
 0x169   : > { %s6753_s5 = sld [smem:[#allocation86_spill]]  ;;  %v486_v51 = vadd.f32 %v485_v32, %v482_v31 }
 0x16a   : > { %s4342_s30 = sld [smem:[#allocation2 + $0x92]]  ;;  %v488_v20 = vstv %s6751_s4  ;;  %v607_v58 = vadd.f32 %v606_v39, %v603_v0  ;;  %v721_v31 = vadd.f32 %v720_v15, %v717_v19 }
 0x16b   : > { %s6754_s2 = sld [smem:[#allocation81_spill]]  ;;  %v489_v35 = vmul.f32 %v4021_v9, %v488_v20  ;;  %v723_v20 = vstv %s4248_s6 }
 0x16c   : > { %s4346_s23 = sld [smem:[#allocation2 + $0x93]] }
 0x16d   : > { %v503_v23 = vstv %s6752_s21  ;;  %s4351_s1 = sld [smem:[#allocation2 + $0x94]]  ;;  %v490_v10 = vadd.f32 %v489_v35, %v486_v51  ;;  %v4422_v35 = vmax.f32 %v475_v48, 0.0 }
 0x16e   : > { %s6755_s3 = sld [smem:[#allocation84_spill]]  ;;  %v504_v40 = vmul.f32 %v4006_v3, %v503_v23  ;;  %v661_v3 = vmul.f32 %v660_v34, %v4169_v54  ;;  %v727_v34 = vstv %s4252_s13 }
 0x16f   : > { %v554_v28 = vstv %s6753_s5  ;;  %s6756_s16 = sld [smem:[#allocation27_spill]] }
 0x170   : > { %s4356_s18 = sld [smem:[#allocation2 + $0x95]]  ;;  %v555_v43 = vmul.f32 %v554_v28, %v4308_v49  ;;  %v662_v8 = vadd.f32 %v661_v3, %v658_v45  ;;  %v728_v3 = vmul.f32 %v727_v34, %v4169_v54 }
 0x171   : > { %s6757_s4 = sld [smem:[#allocation87_spill]]  ;;  %v497_v33 = vstv %s6754_s2 }
 0x172   : > { %s4361_s21 = sld [smem:[#allocation2 + $0x96]]  ;;  %v501_v47 = vadd.f32 %v500_v27, %v497_v33  ;;  %v556_v63 = vadd.f32 %v555_v43, %v552_v42 }
 0x173   : > { %s6759_s26 = sld [smem:[#allocation80_spill]] }
 0x174   : > { %s6760_s5 = sld [smem:[#allocation29_spill]]  ;;  %v507_v41 = vstv %s6755_s3  ;;  %v505_v2 = vadd.f32 %v504_v40, %v501_v47 }
 0x175   : > { %s4366_s29 = sld [smem:[#allocation2 + $0x97]]  ;;  %v609_v44 = vstv %s6756_s16  ;;  %v508_v57 = vmul.f32 %v4021_v9, %v507_v41 }
 0x176   : > { %s4371_s27 = sld [smem:[#allocation2 + $0x98]]  ;;  %v610_v59 = vmul.f32 %v609_v44, %v4197_v11 }
 0x177   : > { %s6762_s2 = sld [smem:[#allocation85_spill]]  ;;  %v558_v12 = vstv %s6757_s4  ;;  %v509_v25 = vadd.f32 %v508_v57, %v505_v2 }
 0x178   : > { %6758 = sst [smem:[#allocation53_spill]] %s4361_s21  ;;  %v559_v60 = vmul.f32 %v558_v12, %v4310_v50  ;;  %v611_v16 = vadd.f32 %v610_v59, %v607_v58 }
 0x179   : > { %s6763_s21 = sld [smem:[#allocation39_spill]]  ;;  %v492_v52 = vstv %s6759_s26 }
 0x17a   : > { %s4375_s24 = sld [smem:[#allocation2 + $0x99]]  ;;  %v664_v55 = vstv %s6760_s5  ;;  %v493_v13 = vmul.f32 %v4038_v17, %v492_v52  ;;  %v560_v22 = vadd.f32 %v559_v60, %v556_v63  ;;  %v786_v60 = vstv %s4329_s10 }
 0x17b   : > { %s6765_s28 = sld [smem:[#allocation88_spill]]  ;;  %v665_v9 = vmul.f32 %v664_v55, %v4173_v56  ;;  %v731_v55 = vstv %s4256_s11  ;;  %v787_v19 = vmul.f32 %v786_v60, %v4156_v46 }
 0x17c   : > { %6761 = sst [smem:[#allocation52_spill]] %s4371_s27  ;;  %v494_v29 = vadd.f32 %v493_v13, %v490_v10 }
 0x17d   : > { %s4379_s3 = sld [smem:[#allocation2 + $0x9a]]  ;;  %v511_v62 = vstv %s6762_s2  ;;  %v666_v27 = vadd.f32 %v665_v9, %v662_v8  ;;  %v732_v8 = vmul.f32 %v731_v55, %v4173_v56 }
 0x17e   : > { %s6767_s16 = sld [smem:[#allocation32_spill]]  ;;  %v512_v21 = vmul.f32 %v4038_v17, %v511_v62  ;;  %v724_v17 = vmul.f32 %v723_v20, %v4167_v53  ;;  %v4432_v47 = vmax.f32 %v494_v29, 0.0 }
 0x17f   : > { %s4384_s4 = sld [smem:[#allocation2 + $0x9b]]  ;;  %v613_v1 = vstv %s6763_s21 }
 0x180   : > { %6764 = sst [smem:[#allocation59_spill]] %s4375_s24  ;;  %v614_v18 = vmul.f32 %v613_v1, %v4292_v36  ;;  %v513_v41 = vadd.f32 %v512_v21, %v509_v25  ;;  %v725_v45 = vadd.f32 %v724_v17, %v721_v31  ;;  %v739_v31 = vstv %s4267_s14 }
 0x181   : > { %s4389_s26 = sld [smem:[#allocation2 + $0x9c]]  ;;  %v562_v4 = vstv %s6765_s28 }
 0x182   : > { %s6770_s5 = sld [smem:[#allocation28_spill]]  ;;  %v563_v23 = vmul.f32 %v562_v4, %v4315_v38  ;;  %v615_v32 = vadd.f32 %v614_v18, %v611_v16  ;;  %v4447_v61 = vmax.f32 %v513_v41, 0.0  ;;  %v729_v4 = vadd.f32 %v728_v3, %v725_v45 }
 0x183   : > { %6766 = sst [smem:[#allocation56_spill]] %s4379_s3  ;;  %v794_v41 = vstv %s4342_s30 }
 0x184   : > { %s4393_s3 = sld [smem:[#allocation2 + $0x9d]]  ;;  %v668_v14 = vstv %s6767_s16  ;;  %v564_v40 = vadd.f32 %v563_v23, %v560_v22  ;;  %v784_v22 = vstv %s4324_s22  ;;  %v790_v23 = vstv %s4336_s0 }
 0x185   : > { %6768 = sst [smem:[#allocation58_spill]] %s4384_s4  ;;  %v669_v28 = vmul.f32 %v668_v14, %v4189_v6  ;;  %v735_v14 = vstv %s4262_s15  ;;  %v791_v34 = vmul.f32 %v790_v23, %v4167_v53 }
 0x186   : > { %s6772_s17 = sld [smem:[#allocation89_spill]] }
 0x187   : > { %6769 = sst [smem:[#allocation60_spill]] %s4389_s26  ;;  %v670_v43 = vadd.f32 %v669_v28, %v666_v27  ;;  %v736_v27 = vmul.f32 %v735_v14, %v4189_v6  ;;  %v747_v14 = vstv %s4275_s20 }
 0x188   : > { %s4398_s2 = sld [smem:[#allocation2 + $0x9e]]  ;;  %v617_v24 = vstv %s6770_s5 }
 0x189   : > { %s6774_s21 = sld [smem:[#allocation36_spill]]  ;;  %v618_v33 = vmul.f32 %v617_v24, %v4294_v37 }
 0x18a   : > { %6771 = sst [smem:[#allocation68_spill]] %s4393_s3 }
 0x18b   : > { %s4403_s28 = sld [smem:[#allocation2 + $0x9f]]  ;;  %v619_v51 = vadd.f32 %v618_v33, %v615_v32  ;;  %v788_v33 = vadd.f32 %v787_v19, %v784_v22 }
 0x18c   : > { %s4408_s16 = sld [smem:[#allocation2 + $0x115]]  ;;  %v566_v26 = vstv %s6772_s17 }
 0x18d   : > { %s4412_s3 = sld [smem:[#allocation2 + $0xa0]]  ;;  %v567_v0 = vmul.f32 %v566_v26, %v4331_v5  ;;  %v733_v26 = vadd.f32 %v732_v8, %v729_v4 }
 0x18e   : > { %6773 = sst [smem:[#allocation57_spill]] %s4398_s2 }
 0x18f   : > { %s6776_s2 = sld [smem:[#allocation30_spill]]  ;;  %v672_v30 = vstv %s6774_s21  ;;  %v568_v57 = vadd.f32 %v567_v0, %v564_v40 }
 0x190   : > { %s6777_s8 = sld [smem:[#allocation90_spill]]  ;;  %v673_v44 = vmul.f32 %v672_v30, %v4191_v7 }
 0x191   : > { %6775 = sst [smem:[#allocation63_spill]] %s4403_s28 }
 0x192   : > { %s4416_s6 = sld [smem:[#allocation2 + $0xa1]]  ;;  %v674_v62 = vadd.f32 %v673_v44, %v670_v43  ;;  %v737_v43 = vadd.f32 %v736_v27, %v733_v26  ;;  %v740_v44 = vmul.f32 %v739_v31, %v4191_v7  ;;  %v851_v4 = vstv %s4408_s16 }
 0x193   : > { %s6778_s28 = sld [smem:[#allocation41_spill]]  ;;  %v748_v26 = vmul.f32 %v747_v14, %v4292_v36  ;;  %v751_v31 = vstv %s4280_s19 }
 0x194   : > { %s4420_s5 = sld [smem:[#allocation2 + $0xa2]] }
 0x195   : > { %s6779_s17 = sld [smem:[#allocation91_spill]]  ;;  %v621_v39 = vstv %s6776_s2 }
 0x196   : > { %s4426_s21 = sld [smem:[#allocation2 + $0xa3]]  ;;  %v570_v42 = vstv %s6777_s8  ;;  %v622_v52 = vmul.f32 %v621_v39, %v4308_v49 }
 0x197   : > { %s6780_s26 = sld [smem:[#allocation31_spill]]  ;;  %v571_v58 = vmul.f32 %v570_v42, %v4422_v35 }
 0x198   : > { %s4430_s4 = sld [smem:[#allocation2 + $0xa4]]  ;;  %v623_v10 = vadd.f32 %v622_v52, %v619_v51  ;;  %v743_v51 = vstv %s4271_s9  ;;  %v857_v8 = vstv %s4416_s6 }
 0x199   : > { %v676_v12 = vstv %s6778_s28  ;;  %s4436_s13 = sld [smem:[#allocation2 + $0xa5]]  ;;  %v572_v15 = vadd.f32 %v571_v58, %v568_v57  ;;  %v792_v57 = vadd.f32 %v791_v34, %v788_v33  ;;  %v795_v58 = vmul.f32 %v794_v41, %v4169_v54 }
 0x19a   : > { %s6782_s2 = sld [smem:[#allocation43_spill]]  ;;  %v677_v63 = vmul.f32 %v676_v12, %v4197_v11  ;;  %v853_v12 = vstv %s4412_s3  ;;  %v858_v23 = vmul.f32 %v857_v8, %v4167_v53  ;;  %v861_v27 = vstv %s4420_s5 }
 0x19b   : > { %v574_v48 = vstv %s6779_s17  ;;  %s6783_s8 = sld [smem:[#allocation92_spill]]  ;;  %v854_v60 = vmul.f32 %v853_v12, %v4156_v46  ;;  %v862_v41 = vmul.f32 %v861_v27, %v4169_v54 }
 0x19c   : > { %s4441_s24 = sld [smem:[#allocation2 + $0xa6]]  ;;  %v575_v1 = vmul.f32 %v574_v48, %v4432_v47  ;;  %v678_v20 = vadd.f32 %v677_v63, %v674_v62  ;;  %v798_v63 = vstv %s4346_s23  ;;  %v865_v12 = vstv %s4426_s21 }
 0x19d   : > { %v625_v59 = vstv %s6780_s26  ;;  %s4445_s28 = sld [smem:[#allocation2 + $0xa7]]  ;;  %v799_v19 = vmul.f32 %v798_v63, %v4173_v56  ;;  %v855_v22 = vadd.f32 %v854_v60, %v851_v4 }
 0x19e   : > { %s6785_s27 = sld [smem:[#allocation34_spill]]  ;;  %v626_v13 = vmul.f32 %v625_v59, %v4310_v50  ;;  %v576_v40 = vadd.f32 %v575_v1, %v572_v15  ;;  %v741_v1 = vadd.f32 %v740_v44, %v737_v43  ;;  %v696_v15 = vstv %s4212_s12 }
 0x19f   : > { %6781 = sst [smem:[#allocation64_spill]] %s4436_s13  ;;  %v752_v44 = vmul.f32 %v751_v31, %v4294_v37  ;;  %v869_v8 = vstv %s4430_s4 }
 0x1a0   : > { %s6786_s17 = sld [smem:[#allocation35_spill]]  ;;  %v680_v2 = vstv %s6782_s2  ;;  %v627_v28 = vadd.f32 %v626_v13, %v623_v10 }
 0x1a1   : > { %s4451_s13 = sld [smem:[#allocation2 + $0xa8]]  ;;  %v578_v9 = vstv %s6783_s8  ;;  %v681_v21 = vmul.f32 %v680_v2, %v4292_v36  ;;  %v744_v2 = vmul.f32 %v743_v51, %v4197_v11 }
 0x1a2   : > { %s4456_s11 = sld [smem:[#allocation2 + $0xa9]]  ;;  %v579_v24 = vmul.f32 %v578_v9, %v4447_v61 }
 0x1a3   : > { %6784 = sst [smem:[#allocation61_spill]] %s4445_s28  ;;  %v682_v0 = vadd.f32 %v681_v21, %v678_v20  ;;  %v802_v21 = vstv %s4351_s1 }
 0x1a4   : > { %s6788_s26 = sld [smem:[#allocation45_spill]]  ;;  %v629_v16 = vstv %s6785_s27  ;;  %v580_v9 = vadd.f32 %v579_v24, %v576_v40  ;;  %v803_v33 = vmul.f32 %v802_v21, %v4189_v6  ;;  %v814_v21 = vstv %s4366_s29 }
 0x1a5   : > { %s4461_s28 = sld [smem:[#allocation2 + $0xaa]]  ;;  %v630_v29 = vmul.f32 %v629_v16, %v4315_v38  ;;  %v700_v16 = vstv %s4218_s7 }
 0x1a6   : > { %v633_v18 = vstv %s6786_s17  ;;  %s4466_s10 = sld [smem:[#allocation2 + $0xab]] }
 0x1a7   : > { %s6789_s2 = sld [smem:[#allocation38_spill]]  ;;  %v634_v30 = vmul.f32 %v633_v18, %v4331_v5  ;;  %v631_v45 = vadd.f32 %v630_v29, %v627_v28  ;;  %v796_v18 = vadd.f32 %v795_v58, %v792_v57  ;;  %v4535_v28 = vmax.f32 %v580_v9, 0.0 }
 0x1a8   : > { %6787 = sst [smem:[#allocation67_spill]] %s4456_s11 }
 0x1a9   : > { %s6790_s11 = sld [smem:[#allocation40_spill]]  ;;  %v635_v10 = vadd.f32 %v634_v30, %v631_v45  ;;  %v697_v30 = vmul.f32 %v696_v15, %v4315_v38 }
 0x1aa   : > { %s4471_s8 = sld [smem:[#allocation2 + $0xac]]  ;;  %v684_v25 = vstv %s6788_s26 }
 0x1ab   : > { %s4476_s15 = sld [smem:[#allocation2 + $0xad]]  ;;  %v685_v39 = vmul.f32 %v684_v25, %v4294_v37  ;;  %v745_v25 = vadd.f32 %v744_v2, %v741_v1 }
 0x1ac   : > { %s6792_s27 = sld [smem:[#allocation33_spill]] }
 0x1ad   : > { %s4481_s0 = sld [smem:[#allocation2 + $0xae]]  ;;  %v637_v17 = vstv %s6789_s2  ;;  %v686_v59 = vadd.f32 %v685_v39, %v682_v0  ;;  %v806_v0 = vstv %s4356_s18  ;;  %v859_v39 = vadd.f32 %v858_v23, %v855_v22 }
 0x1ae   : > { %s4486_s22 = sld [smem:[#allocation2 + $0xaf]]  ;;  %v638_v3 = vmul.f32 %v637_v17, %v4422_v35  ;;  %v701_v17 = vmul.f32 %v700_v16, %v4331_v5  ;;  %v749_v43 = vadd.f32 %v748_v26, %v745_v25  ;;  %v807_v57 = vmul.f32 %v806_v0, %v4191_v7 }
 0x1af   : > { %v641_v32 = vstv %s6790_s11  ;;  %s6793_s17 = sld [smem:[#allocation44_spill]]  ;;  %v863_v60 = vadd.f32 %v862_v41, %v859_v39  ;;  %v870_v23 = vmul.f32 %v869_v8, %v4189_v6 }
 0x1b0   : > { %s6794_s26 = sld [smem:[#allocation37_spill]]  ;;  %v642_v48 = vmul.f32 %v641_v32, %v4432_v47  ;;  %v639_v29 = vadd.f32 %v638_v3, %v635_v10  ;;  %v800_v32 = vadd.f32 %v799_v19, %v796_v18  ;;  %v753_v2 = vadd.f32 %v752_v44, %v749_v43 }
 0x1b1   : > { %6791 = sst [smem:[#allocation69_spill]] %s4476_s15 }
 0x1b2   : > { %s4490_s15 = sld [smem:[#allocation2 + $0x116]]  ;;  %v688_v42 = vstv %s6792_s27  ;;  %v643_v45 = vadd.f32 %v642_v48, %v639_v29  ;;  %v866_v48 = vmul.f32 %v865_v12, %v4173_v56 }
 0x1b3   : > { %s4495_s14 = sld [smem:[#allocation2 + $0xb0]]  ;;  %v689_v62 = vmul.f32 %v688_v42, %v4308_v49  ;;  %v704_v42 = vstv %s4224_s25 }
 0x1b4   : > { %s4500_s11 = sld [smem:[#allocation2 + $0xb1]]  ;;  %v705_v1 = vmul.f32 %v704_v42, %v4422_v35  ;;  %v867_v22 = vadd.f32 %v866_v48, %v863_v60 }
 0x1b5   : > { %v645_v52 = vstv %s6793_s17  ;;  %s4505_s30 = sld [smem:[#allocation2 + $0xb2]]  ;;  %v690_v20 = vadd.f32 %v689_v62, %v686_v59 }
 0x1b6   : > { %v692_v55 = vstv %s6794_s26  ;;  %s4510_s3 = sld [smem:[#allocation2 + $0xb3]]  ;;  %v646_v24 = vmul.f32 %v645_v52, %v4447_v61  ;;  %v871_v41 = vadd.f32 %v870_v23, %v867_v22  ;;  %v885_v23 = vstv %s4451_s13 }
 0x1b7   : > { %s4515_s9 = sld [smem:[#allocation2 + $0xb4]]  ;;  %v693_v13 = vmul.f32 %v692_v55, %v4310_v50  ;;  %v804_v55 = vadd.f32 %v803_v33, %v800_v32 }
 0x1b8   : > { %s4519_s2 = sld [smem:[#allocation2 + $0xb5]]  ;;  %v918_v58 = vstv %s4490_s15  ;;  %v647_v25 = vadd.f32 %v646_v24, %v643_v45  ;;  %v815_v24 = vmul.f32 %v814_v21, %v4292_v36  ;;  %v877_v45 = vstv %s4441_s24 }
 0x1b9   : > { %s4524_s23 = sld [smem:[#allocation2 + $0xb6]]  ;;  %v920_v34 = vstv %s4495_s14  ;;  %v694_v40 = vadd.f32 %v693_v13, %v690_v20  ;;  %v808_v16 = vadd.f32 %v807_v57, %v804_v55 }
 0x1ba   : > { %s4528_s16 = sld [smem:[#allocation2 + $0xb7]]  ;;  %v921_v52 = vmul.f32 %v920_v34, %v4156_v46  ;;  %v924_v59 = vstv %s4500_s11  ;;  %v4606_v43 = vmax.f32 %v647_v25, 0.0 }
 0x1bb   : > { %s4533_s12 = sld [smem:[#allocation2 + $0xb8]]  ;;  %v698_v62 = vadd.f32 %v697_v30, %v694_v40  ;;  %v925_v14 = vmul.f32 %v924_v59, %v4167_v53  ;;  %v928_v19 = vstv %s4505_s30 }
 0x1bc   : > { %s4539_s7 = sld [smem:[#allocation2 + $0xb9]]  ;;  %v922_v13 = vadd.f32 %v921_v52, %v918_v58  ;;  %v932_v40 = vstv %s4510_s3 }
 0x1bd   : > { %s6795_s20 = sld [smem:[#allocation49_spill]]  ;;  %v702_v20 = vadd.f32 %v701_v17, %v698_v62  ;;  %v929_v17 = vmul.f32 %v928_v19, %v4169_v54  ;;  %v933_v55 = vmul.f32 %v932_v40, %v4173_v56  ;;  %v936_v62 = vstv %s4515_s9 }
 0x1be   : > { %s6796_s1 = sld [smem:[#allocation46_spill]]  ;;  %v926_v32 = vadd.f32 %v925_v14, %v922_v13 }
 0x1bf   : > { %s4544_s6 = sld [smem:[#allocation2 + $0xba]]  ;;  %v706_v0 = vadd.f32 %v705_v1, %v702_v20  ;;  %v878_v1 = vmul.f32 %v877_v45, %v4197_v11  ;;  %v940_v20 = vstv %s4519_s2 }
 0x1c0   : > { %s4548_s19 = sld [smem:[#allocation2 + $0xbb]]  ;;  %v930_v52 = vadd.f32 %v929_v17, %v926_v32 }
 0x1c1   : > { %s6797_s5 = sld [smem:[#allocation53_spill]] }
 0x1c2   : > { %s4553_s27 = sld [smem:[#allocation2 + $0xbc]] }
 0x1c3   : > { %v708_v3 = vstv %s6795_s20  ;;  %s4558_s18 = sld [smem:[#allocation2 + $0xbd]] }
 0x1c4   : > { %v755_v51 = vstv %s6796_s1  ;;  %s6800_s17 = sld [smem:[#allocation50_spill]]  ;;  %v709_v9 = vmul.f32 %v708_v3, %v4432_v47 }
 0x1c5   : > { %s4563_s25 = sld [smem:[#allocation2 + $0xbe]]  ;;  %v756_v4 = vmul.f32 %v755_v51, %v4308_v49 }
 0x1c6   : > { %s6802_s26 = sld [smem:[#allocation42_spill]] }
 0x1c7   : > { %v810_v63 = vstv %s6797_s5  ;;  %s4567_s21 = sld [smem:[#allocation2 + $0xbf]]  ;;  %v757_v26 = vadd.f32 %v756_v4, %v753_v2 }
 0x1c8   : > { %6798 = sst [smem:[#allocation65_spill]] %s4553_s27  ;;  %v811_v18 = vmul.f32 %v810_v63, %v4197_v11  ;;  %v710_v63 = vadd.f32 %v709_v9, %v706_v0  ;;  %v934_v9 = vadd.f32 %v933_v55, %v930_v52  ;;  %v886_v0 = vmul.f32 %v885_v23, %v4294_v37 }
 0x1c9   : > { %6799 = sst [smem:[#allocation62_spill]] %s4558_s18 }
 0x1ca   : > { %s4572_s15 = sld [smem:[#allocation2 + $0x117]]  ;;  %v759_v10 = vstv %s6800_s17  ;;  %v812_v34 = vadd.f32 %v811_v18, %v808_v16 }
 0x1cb   : > { %6801 = sst [smem:[#allocation66_spill]] %s4563_s25  ;;  %v760_v27 = vmul.f32 %v759_v10, %v4310_v50 }
 0x1cc   : > { %s6804_s14 = sld [smem:[#allocation64_spill]]  ;;  %v712_v15 = vstv %s6802_s26  ;;  %v816_v58 = vadd.f32 %v815_v24, %v812_v34  ;;  %v941_v34 = vmul.f32 %v940_v20, %v4191_v7 }
 0x1cd   : > { %6803 = sst [smem:[#allocation72_spill]] %s4567_s21  ;;  %v713_v30 = vmul.f32 %v712_v15, %v4447_v61  ;;  %v761_v44 = vadd.f32 %v760_v27, %v757_v26  ;;  %v937_v15 = vmul.f32 %v936_v62, %v4189_v6 }
 0x1ce   : > { %s4577_s11 = sld [smem:[#allocation2 + $0xc0]] }
 0x1cf   : > { %s6805_s20 = sld [smem:[#allocation48_spill]]  ;;  %v714_v26 = vadd.f32 %v713_v30, %v710_v63  ;;  %v944_v30 = vstv %s4524_s23 }
 0x1d0   : > { %s4582_s1 = sld [smem:[#allocation2 + $0xc1]] }
 0x1d1   : > { %s6806_s4 = sld [smem:[#allocation47_spill]] }
 0x1d2   : > { %s4586_s5 = sld [smem:[#allocation2 + $0xc2]]  ;;  %v873_v29 = vstv %s6804_s14 }
 0x1d3   : > { %s6807_s17 = sld [smem:[#allocation52_spill]]  ;;  %v874_v42 = vmul.f32 %v873_v29, %v4191_v7  ;;  %v985_v29 = vstv %s4572_s15 }
 0x1d4   : > { %s4590_s26 = sld [smem:[#allocation2 + $0xc3]]  ;;  %v987_v10 = vstv %s4577_s11 }
 0x1d5   : > { %v763_v31 = vstv %s6805_s20  ;;  %s4595_s29 = sld [smem:[#allocation2 + $0xc4]]  ;;  %v875_v48 = vadd.f32 %v874_v42, %v871_v41  ;;  %v988_v25 = vmul.f32 %v987_v10, %v4156_v46 }
 0x1d6   : > { %s6808_s30 = sld [smem:[#allocation51_spill]]  ;;  %v764_v12 = vmul.f32 %v763_v31, %v4315_v38  ;;  %v991_v31 = vstv %s4582_s1 }
 0x1d7   : > { %v767_v33 = vstv %s6806_s4  ;;  %s4600_s21 = sld [smem:[#allocation2 + $0xc5]]  ;;  %v879_v21 = vadd.f32 %v878_v1, %v875_v48  ;;  %v989_v42 = vadd.f32 %v988_v25, %v985_v29  ;;  %v893_v1 = vstv %s4461_s28 }
 0x1d8   : > { %s6809_s14 = sld [smem:[#allocation54_spill]]  ;;  %v768_v3 = vmul.f32 %v767_v33, %v4331_v5  ;;  %v765_v2 = vadd.f32 %v764_v12, %v761_v44  ;;  %v938_v33 = vadd.f32 %v937_v15, %v934_v9  ;;  %v992_v44 = vmul.f32 %v991_v31, %v4167_v53 }
 0x1d9   : > { %v818_v39 = vstv %s6807_s17  ;;  %s4604_s20 = sld [smem:[#allocation2 + $0xc6]]  ;;  %v4664_v12 = vmax.f32 %v714_v26, 0.0  ;;  %v897_v25 = vstv %s4466_s10 }
 0x1da   : > { %s6810_s25 = sld [smem:[#allocation59_spill]]  ;;  %v819_v59 = vmul.f32 %v818_v39, %v4294_v37  ;;  %v769_v27 = vadd.f32 %v768_v3, %v765_v2  ;;  %v942_v55 = vadd.f32 %v941_v34, %v938_v33  ;;  %v993_v2 = vadd.f32 %v992_v44, %v989_v42 }
 0x1db   : > { %s4610_s4 = sld [smem:[#allocation2 + $0xc7]]  ;;  %v1003_v31 = vstv %s4595_s29  ;;  %v901_v44 = vstv %s4471_s8 }
 0x1dc   : > { %v771_v51 = vstv %s6808_s30  ;;  %s6811_s3 = sld [smem:[#allocation61_spill]]  ;;  %v820_v16 = vadd.f32 %v819_v59, %v816_v58  ;;  %v948_v58 = vstv %s4528_s16 }
 0x1dd   : > { %s4615_s17 = sld [smem:[#allocation2 + $0xc8]]  ;;  %v772_v4 = vmul.f32 %v771_v51, %v4422_v35  ;;  %v995_v51 = vstv %s4586_s5  ;;  %v949_v10 = vmul.f32 %v948_v58, %v4292_v36 }
 0x1de   : > { %v775_v57 = vstv %s6809_s14  ;;  %s6812_s18 = sld [smem:[#allocation55_spill]] }
 0x1df   : > { %s4620_s27 = sld [smem:[#allocation2 + $0xc9]]  ;;  %v776_v13 = vmul.f32 %v775_v57, %v4432_v47  ;;  %v773_v45 = vadd.f32 %v772_v4, %v769_v27  ;;  %v945_v57 = vmul.f32 %v944_v30, %v4197_v11  ;;  %v996_v4 = vmul.f32 %v995_v51, %v4169_v54 }
 0x1e0   : > { %v822_v60 = vstv %s6810_s25  ;;  %s6813_s24 = sld [smem:[#allocation56_spill]]  ;;  %v1004_v51 = vmul.f32 %v1003_v31, %v4189_v6 }
 0x1e1   : > { %s4624_s30 = sld [smem:[#allocation2 + $0xca]]  ;;  %v823_v18 = vmul.f32 %v822_v60, %v4308_v49  ;;  %v946_v15 = vadd.f32 %v945_v57, %v942_v55  ;;  %v997_v26 = vadd.f32 %v996_v4, %v993_v2  ;;  %v1007_v55 = vstv %s4600_s21 }
 0x1e2   : > { %v881_v8 = vstv %s6811_s3  ;;  %s4629_s14 = sld [smem:[#allocation2 + $0xcb]]  ;;  %v960_v2 = vstv %s4544_s6 }
 0x1e3   : > { %s4634_s9 = sld [smem:[#allocation2 + $0xcc]]  ;;  %v882_v22 = vmul.f32 %v881_v8, %v4292_v36  ;;  %v824_v24 = vadd.f32 %v823_v18, %v820_v16  ;;  %v777_v8 = vadd.f32 %v776_v13, %v773_v45  ;;  %v952_v13 = vstv %s4533_s12 }
 0x1e4   : > { %v779_v14 = vstv %s6812_s18  ;;  %s6816_s25 = sld [smem:[#allocation58_spill]]  ;;  %v950_v34 = vadd.f32 %v949_v10, %v946_v15  ;;  %v1011_v15 = vstv %s4604_s20 }
 0x1e5   : > { %s4639_s3 = sld [smem:[#allocation2 + $0xcd]]  ;;  %v883_v39 = vadd.f32 %v882_v22, %v879_v21  ;;  %v780_v3 = vmul.f32 %v779_v14, %v4447_v61  ;;  %v999_v14 = vstv %s4590_s26  ;;  %v894_v22 = vmul.f32 %v893_v1, %v4310_v50 }
 0x1e6   : > { %v826_v19 = vstv %s6813_s24  ;;  %s6817_s11 = sld [smem:[#allocation60_spill]]  ;;  %v1000_v27 = vmul.f32 %v999_v14, %v4173_v56  ;;  %v1008_v14 = vmul.f32 %v1007_v55, %v4191_v7  ;;  %v1012_v31 = vmul.f32 %v1011_v15, %v4197_v11 }
 0x1e7   : > { %s4644_s18 = sld [smem:[#allocation2 + $0xce]]  ;;  %v827_v32 = vmul.f32 %v826_v19, %v4310_v50  ;;  %v887_v48 = vadd.f32 %v886_v0, %v883_v39  ;;  %v898_v39 = vmul.f32 %v897_v25, %v4315_v38 }
 0x1e8   : > { %6814 = sst [smem:[#allocation70_spill]] %s4629_s14  ;;  %v1001_v45 = vadd.f32 %v1000_v27, %v997_v26  ;;  %v913_v26 = vstv %s4486_s22 }
 0x1e9   : > { %6815 = sst [smem:[#allocation73_spill]] %s4634_s9  ;;  %v828_v59 = vadd.f32 %v827_v32, %v824_v24  ;;  %v953_v24 = vmul.f32 %v952_v13, %v4294_v37 }
 0x1ea   : > { %s6818_s9 = sld [smem:[#allocation67_spill]]  ;;  %v830_v17 = vstv %s6816_s25  ;;  %v1005_v10 = vadd.f32 %v1004_v51, %v1001_v45 }
 0x1eb   : > { %s4648_s14 = sld [smem:[#allocation2 + $0xcf]]  ;;  %v831_v52 = vmul.f32 %v830_v17, %v4315_v38 }
 0x1ec   : > { %s4653_s13 = sld [smem:[#allocation2 + $0x118]]  ;;  %v834_v40 = vstv %s6817_s11 }
 0x1ed   : > { %s4658_s2 = sld [smem:[#allocation2 + $0xd0]]  ;;  %v835_v62 = vmul.f32 %v834_v40, %v4331_v5  ;;  %v832_v20 = vadd.f32 %v831_v52, %v828_v59  ;;  %v781_v52 = vadd.f32 %v780_v3, %v777_v8  ;;  %v902_v3 = vmul.f32 %v901_v44, %v4331_v5 }
 0x1ee   : > { %s6819_s15 = sld [smem:[#allocation68_spill]]  ;;  %v909_v8 = vstv %s4481_s0 }
 0x1ef   : > { %s4662_s1 = sld [smem:[#allocation2 + $0xd1]]  ;;  %v836_v0 = vadd.f32 %v835_v62, %v832_v20  ;;  %v954_v62 = vadd.f32 %v953_v24, %v950_v34  ;;  %v961_v20 = vmul.f32 %v960_v2, %v4310_v50  ;;  %v910_v25 = vmul.f32 %v909_v8, %v4432_v47 }
 0x1f0   : > { %v889_v41 = vstv %s6818_s9  ;;  %s4668_s24 = sld [smem:[#allocation2 + $0xd2]] }
 0x1f1   : > { %s4673_s23 = sld [smem:[#allocation2 + $0xd3]]  ;;  %v890_v60 = vmul.f32 %v889_v41, %v4308_v49  ;;  %v956_v41 = vstv %s4539_s7 }
 0x1f2   : > { %s4678_s5 = sld [smem:[#allocation2 + $0xd4]]  ;;  %v1052_v16 = vstv %s4653_s13 }
 0x1f3   : > { %s6820_s9 = sld [smem:[#allocation57_spill]]  ;;  %v1054_v9 = vstv %s4658_s2  ;;  %v891_v23 = vadd.f32 %v890_v60, %v887_v48 }
 0x1f4   : > { %v838_v63 = vstv %s6819_s15  ;;  %s4682_s16 = sld [smem:[#allocation2 + $0xd5]]  ;;  %v1055_v18 = vmul.f32 %v1054_v9, %v4156_v46  ;;  %v4742_v9 = vmax.f32 %v781_v52, 0.0 }
 0x1f5   : > { %s4687_s25 = sld [smem:[#allocation2 + $0xd6]]  ;;  %v1058_v19 = vstv %s4662_s1  ;;  %v839_v29 = vmul.f32 %v838_v63, %v4422_v35  ;;  %v895_v42 = vadd.f32 %v894_v22, %v891_v23  ;;  %v957_v63 = vmul.f32 %v956_v41, %v4308_v49 }
 0x1f6   : > { %s4692_s28 = sld [smem:[#allocation2 + $0xd7]]  ;;  %v1056_v32 = vadd.f32 %v1055_v18, %v1052_v16  ;;  %v1059_v17 = vmul.f32 %v1058_v19, %v4167_v53  ;;  %v1062_v40 = vstv %s4668_s24 }
 0x1f7   : > { %s4697_s11 = sld [smem:[#allocation2 + $0xd8]]  ;;  %v1063_v58 = vmul.f32 %v1062_v40, %v4169_v54  ;;  %v1066_v60 = vstv %s4673_s23  ;;  %v840_v48 = vadd.f32 %v839_v29, %v836_v0  ;;  %v899_v4 = vadd.f32 %v898_v39, %v895_v42 }
 0x1f8   : > { %s6821_s26 = sld [smem:[#allocation63_spill]]  ;;  %v1060_v57 = vadd.f32 %v1059_v17, %v1056_v32  ;;  %v1067_v18 = vmul.f32 %v1066_v60, %v4173_v56  ;;  %v958_v19 = vadd.f32 %v957_v63, %v954_v62  ;;  %v1070_v22 = vstv %s4678_s5 }
 0x1f9   : > { %v842_v21 = vstv %s6820_s9  ;;  %s4701_s13 = sld [smem:[#allocation2 + $0xd9]]  ;;  %v903_v27 = vadd.f32 %v902_v3, %v899_v4  ;;  %v1009_v29 = vadd.f32 %v1008_v14, %v1005_v10  ;;  %v1015_v32 = vstv %s4610_s4 }
 0x1fa   : > { %s4706_s2 = sld [smem:[#allocation2 + $0xda]]  ;;  %v843_v33 = vmul.f32 %v842_v21, %v4432_v47  ;;  %v1064_v16 = vadd.f32 %v1063_v58, %v1060_v57  ;;  %v964_v21 = vstv %s4548_s19  ;;  %v1071_v34 = vmul.f32 %v1070_v22, %v4189_v6 }
 0x1fb   : > { %s4711_s10 = sld [smem:[#allocation2 + $0xdb]]  ;;  %v965_v17 = vmul.f32 %v964_v21, %v4315_v38  ;;  %v1074_v24 = vstv %s4682_s16  ;;  %v962_v40 = vadd.f32 %v961_v20, %v958_v19  ;;  %v1016_v41 = vmul.f32 %v1015_v32, %v4292_v36 }
 0x1fc   : > { %s4716_s12 = sld [smem:[#allocation2 + $0xdc]]  ;;  %v844_v13 = vadd.f32 %v843_v33, %v840_v48  ;;  %v1068_v33 = vadd.f32 %v1067_v18, %v1064_v16  ;;  %v1019_v42 = vstv %s4615_s17  ;;  %v1013_v51 = vadd.f32 %v1012_v31, %v1009_v29 }
 0x1fd   : > { %s6822_s29 = sld [smem:[#allocation69_spill]]  ;;  %v1075_v52 = vmul.f32 %v1074_v24, %v4191_v7  ;;  %v966_v4 = vadd.f32 %v965_v17, %v962_v40  ;;  %v1020_v16 = vmul.f32 %v1019_v42, %v4294_v37  ;;  %v1023_v18 = vstv %s4620_s27 }
 0x1fe   : > { %v846_v30 = vstv %s6821_s26  ;;  %s4720_s15 = sld [smem:[#allocation2 + $0xdd]]  ;;  %v1072_v58 = vadd.f32 %v1071_v34, %v1068_v33  ;;  %v1017_v15 = vadd.f32 %v1016_v41, %v1013_v51  ;;  %v914_v31 = vmul.f32 %v913_v26, %v4447_v61 }
 0x1ff   : > { %s4724_s1 = sld [smem:[#allocation2 + $0xde]]  ;;  %v4727_v59 = vmul.f32 %v846_v30, %v4447_v61  ;;  %v1082_v32 = vstv %s4692_s28  ;;  %v1027_v26 = vstv %s4624_s30 }
 0x200   : > { %s4731_s8 = sld [smem:[#allocation2 + $0xdf]]  ;;  %v1076_v20 = vadd.f32 %v1075_v52, %v1072_v58 }
 0x201   : > { %s4736_s7 = sld [smem:[#allocation2 + $0x119]] }
 0x202   : > { %s4740_s21 = sld [smem:[#allocation2 + $0xe0]] }
 0x203   : > { %v905_v1 = vstv %s6822_s29  ;;  %s4746_s24 = sld [smem:[#allocation2 + $0xe1]] }
 0x204   : > { %s4751_s0 = sld [smem:[#allocation2 + $0xe2]]  ;;  %v906_v23 = vmul.f32 %v905_v1, %v4422_v35  ;;  %v1078_v1 = vstv %s4687_s25 }
 0x205   : > { %s6823_s6 = sld [smem:[#allocation65_spill]]  ;;  %v1079_v21 = vmul.f32 %v1078_v1, %v4197_v11 }
 0x206   : > { %s4756_s20 = sld [smem:[#allocation2 + $0xe3]]  ;;  %v907_v48 = vadd.f32 %v906_v23, %v903_v27  ;;  %v848_v27 = vadd.f32 %v4727_v59, %v844_v13  ;;  %v1021_v59 = vadd.f32 %v1020_v16, %v1017_v15  ;;  %v1024_v13 = vmul.f32 %v1023_v18, %v4308_v49 }
 0x207   : > { %s4760_s19 = sld [smem:[#allocation2 + $0xe4]]  ;;  %v1119_v30 = vstv %s4736_s7 }
 0x208   : > { %s4765_s23 = sld [smem:[#allocation2 + $0xe5]]  ;;  %v1121_v39 = vstv %s4740_s21  ;;  %v911_v29 = vadd.f32 %v910_v25, %v907_v48  ;;  %v4823_v41 = vmax.f32 %v848_v27, 0.0 }
 0x209   : > { %s4770_s22 = sld [smem:[#allocation2 + $0xe6]]  ;;  %v1122_v44 = vmul.f32 %v1121_v39, %v4156_v46  ;;  %v1125_v45 = vstv %s4746_s24 }
 0x20a   : > { %s4776_s4 = sld [smem:[#allocation2 + $0xe7]]  ;;  %v1126_v55 = vmul.f32 %v1125_v45, %v4167_v53  ;;  %v1129_v57 = vstv %s4751_s0  ;;  %v1086_v45 = vstv %s4697_s11  ;;  %v4835_v58 = vadd.f32 %v914_v31, %v911_v29 }
 0x20b   : > { %v968_v0 = vstv %s6823_s6  ;;  %s6824_s5 = sld [smem:[#allocation62_spill]]  ;;  %v1123_v62 = vadd.f32 %v1122_v44, %v1119_v30  ;;  %v1130_v63 = vmul.f32 %v1129_v57, %v4169_v54  ;;  %v1083_v30 = vmul.f32 %v1082_v32, %v4292_v36 }
 0x20c   : > { %s4781_s9 = sld [smem:[#allocation2 + $0xe8]]  ;;  %v1133_v60 = vstv %s4756_s20  ;;  %v969_v3 = vmul.f32 %v968_v0, %v4331_v5  ;;  %v1080_v0 = vadd.f32 %v1079_v21, %v1076_v20 }
 0x20d   : > { %s4785_s17 = sld [smem:[#allocation2 + $0xe9]]  ;;  %v1137_v2 = vstv %s4760_s19  ;;  %v1127_v10 = vadd.f32 %v1126_v55, %v1123_v62  ;;  %v1134_v14 = vmul.f32 %v1133_v60, %v4173_v56  ;;  %v1025_v62 = vadd.f32 %v1024_v13, %v1021_v59 }
 0x20e   : > { %s4790_s16 = sld [smem:[#allocation2 + $0xea]]  ;;  %v1141_v19 = vstv %s4765_s23  ;;  %v1138_v23 = vmul.f32 %v1137_v2, %v4189_v6  ;;  %v970_v40 = vadd.f32 %v969_v3, %v966_v4  ;;  %v1084_v1 = vadd.f32 %v1083_v30, %v1080_v0 }
 0x20f   : > { %s4794_s26 = sld [smem:[#allocation2 + $0xeb]]  ;;  %v1131_v22 = vadd.f32 %v1130_v63, %v1127_v10  ;;  %v1142_v24 = vmul.f32 %v1141_v19, %v4191_v7  ;;  %v1145_v25 = vstv %s4770_s22  ;;  %v1028_v63 = vmul.f32 %v1027_v26, %v4310_v50 }
 0x210   : > { %s6825_s29 = sld [smem:[#allocation66_spill]]  ;;  %v1146_v57 = vmul.f32 %v1145_v25, %v4197_v11  ;;  %v1149_v60 = vstv %s4776_s4  ;;  %v1087_v2 = vmul.f32 %v1086_v45, %v4294_v37  ;;  %v1039_v10 = vstv %s4639_s3 }
 0x211   : > { %v972_v8 = vstv %s6824_s5  ;;  %s4799_s7 = sld [smem:[#allocation2 + $0xec]]  ;;  %v1135_v34 = vadd.f32 %v1134_v14, %v1131_v22  ;;  %v1090_v14 = vstv %s4701_s13  ;;  %v1150_v16 = vmul.f32 %v1149_v60, %v4292_v36 }
 0x212   : > { %s4803_s25 = sld [smem:[#allocation2 + $0xed]]  ;;  %v973_v17 = vmul.f32 %v972_v8, %v4422_v35  ;;  %v1029_v20 = vadd.f32 %v1028_v63, %v1025_v62  ;;  %v1153_v21 = vstv %s4781_s9  ;;  %v1088_v27 = vadd.f32 %v1087_v2, %v1084_v1 }
 0x213   : > { %s4808_s27 = sld [smem:[#allocation2 + $0xee]]  ;;  %v1139_v39 = vadd.f32 %v1138_v23, %v1135_v34  ;;  %v1091_v29 = vmul.f32 %v1090_v14, %v4308_v49  ;;  %v1154_v13 = vmul.f32 %v1153_v21, %v4294_v37  ;;  %v1043_v26 = vstv %s4644_s18 }
 0x214   : > { %s6826_s21 = sld [smem:[#allocation72_spill]]  ;;  %v974_v48 = vadd.f32 %v973_v17, %v970_v40  ;;  %v1094_v17 = vstv %s4706_s2  ;;  %v1157_v0 = vstv %s4785_s17  ;;  %v4892_v63 = vmul.f32 %v1043_v26, %v4432_v47 }
 0x215   : > { %s4813_s24 = sld [smem:[#allocation2 + $0xef]]  ;;  %v1143_v55 = vadd.f32 %v1142_v24, %v1139_v39  ;;  %v1092_v45 = vadd.f32 %v1091_v29, %v1088_v27  ;;  %v1047_v2 = vstv %s4648_s14  ;;  %v1102_v21 = vstv %s4716_s12 }
 0x216   : > { %v976_v33 = vstv %s6825_s29  ;;  %s6827_s0 = sld [smem:[#allocation70_spill]]  ;;  %v1106_v27 = vstv %s4720_s15 }
 0x217   : > { %s6828_s6 = sld [smem:[#allocation73_spill]]  ;;  %v977_v42 = vmul.f32 %v976_v33, %v4432_v47  ;;  %v1147_v15 = vadd.f32 %v1146_v57, %v1143_v55  ;;  %v1098_v55 = vstv %s4711_s10 }
 0x218   : > { %s4817_s28 = sld [smem:[#allocation2 + $0x11a]] }
 0x219   : > { %s4821_s20 = sld [smem:[#allocation2 + $0xf0]]  ;;  %v978_v40 = vadd.f32 %v977_v42, %v974_v48  ;;  %v1151_v59 = vadd.f32 %v1150_v16, %v1147_v15  ;;  %v1095_v42 = vmul.f32 %v1094_v17, %v4310_v50  ;;  %v1158_v48 = vmul.f32 %v1157_v0, %v4308_v49 }
 0x21a   : > { %v980_v44 = vstv %s6826_s21  ;;  %s4828_s19 = sld [smem:[#allocation2 + $0xf1]] }
 0x21b   : > { %s4833_s30 = sld [smem:[#allocation2 + $0xf2]]  ;;  %v4842_v3 = vmul.f32 %v980_v44, %v4447_v61  ;;  %v1155_v60 = vadd.f32 %v1154_v13, %v1151_v59  ;;  %v1096_v16 = vadd.f32 %v1095_v42, %v1092_v45  ;;  %v1107_v13 = vmul.f32 %v1106_v27, %v4422_v35 }
 0x21c   : > { %v1031_v51 = vstv %s6827_s0  ;;  %s4839_s11 = sld [smem:[#allocation2 + $0xf3]]  ;;  %v1169_v45 = vstv %s4799_s7 }
 0x21d   : > { %v1035_v52 = vstv %s6828_s6  ;;  %s4845_s23 = sld [smem:[#allocation2 + $0xf4]]  ;;  %v1032_v4 = vmul.f32 %v1031_v51, %v4315_v38  ;;  %v1159_v29 = vadd.f32 %v1158_v48, %v1155_v60 }
 0x21e   : > { %v1036_v8 = vmul.f32 %v1035_v52, %v4331_v5  ;;  %s4851_s22 = sld [smem:[#allocation2 + $0xf5]]  ;;  %v1186_v18 = vstv %s4817_s28  ;;  %v1040_v52 = vmul.f32 %v1039_v10, %v4422_v35 }
 0x21f   : > { %v1188_v19 = vstv %s4821_s20  ;;  %s4856_s4 = sld [smem:[#allocation2 + $0xf6]]  ;;  %v1033_v44 = vadd.f32 %v1032_v4, %v1029_v20  ;;  %v1161_v4 = vstv %s4790_s16  ;;  %v4908_v20 = vadd.f32 %v4842_v3, %v978_v40 }
 0x220   : > { %v1189_v22 = vmul.f32 %v1188_v19, %v4156_v46  ;;  %v1192_v23 = vstv %s4828_s19  ;;  %s4861_s3 = sld [smem:[#allocation2 + $0xf7]]  ;;  %v1165_v3 = vstv %s4794_s26  ;;  %v1103_v40 = vmul.f32 %v1102_v21, %v4331_v5 }
 0x221   : > { %v1193_v31 = vmul.f32 %v1192_v23, %v4167_v53  ;;  %v1196_v32 = vstv %s4833_s30  ;;  %s4866_s13 = sld [smem:[#allocation2 + $0xf8]]  ;;  %v1037_v15 = vadd.f32 %v1036_v8, %v1033_v44  ;;  %v1162_v8 = vmul.f32 %v1161_v4, %v4310_v50 }
 0x222   : > { %v1190_v33 = vadd.f32 %v1189_v22, %v1186_v18  ;;  %v1197_v34 = vmul.f32 %v1196_v32, %v4169_v54  ;;  %v1200_v24 = vstv %s4839_s11  ;;  %s4871_s5 = sld [smem:[#allocation2 + $0xf9]]  ;;  %v1099_v18 = vmul.f32 %v1098_v55, %v4315_v38 }
 0x223   : > { %v1204_v25 = vstv %s4845_s23  ;;  %s4875_s9 = sld [smem:[#allocation2 + $0xfa]]  ;;  %v1201_v39 = vmul.f32 %v1200_v24, %v4173_v56  ;;  %v4920_v32 = vmul.f32 %v1047_v2, %v4447_v61  ;;  %v1166_v44 = vmul.f32 %v1165_v3, %v4315_v38 }
 0x224   : > { %v1194_v30 = vadd.f32 %v1193_v31, %v1190_v33  ;;  %s4880_s2 = sld [smem:[#allocation2 + $0xfb]]  ;;  %v1208_v51 = vstv %s4851_s22  ;;  %v1205_v62 = vmul.f32 %v1204_v25, %v4189_v6  ;;  %v1100_v24 = vadd.f32 %v1099_v18, %v1096_v16 }
 0x225   : > { %s4884_s29 = sld [smem:[#allocation2 + $0xfc]]  ;;  %v1212_v1 = vstv %s4856_s4  ;;  %v1209_v14 = vmul.f32 %v1208_v51, %v4191_v7 }
 0x226   : > { %v1198_v57 = vadd.f32 %v1197_v34, %v1194_v30  ;;  %s4889_s18 = sld [smem:[#allocation2 + $0xfd]]  ;;  %v1216_v19 = vstv %s4861_s3  ;;  %v1213_v23 = vmul.f32 %v1212_v1, %v4197_v11  ;;  %v4926_v34 = vadd.f32 %v1040_v52, %v1037_v15 }
 0x227   : > { %s4896_s17 = sld [smem:[#allocation2 + $0xfe]]  ;;  %v1220_v31 = vstv %s4866_s13  ;;  %v1217_v33 = vmul.f32 %v1216_v19, %v4292_v36  ;;  %v1110_v30 = vstv %s4724_s1  ;;  %v1173_v19 = vstv %s4803_s25 }
 0x228   : > { %v1202_v10 = vadd.f32 %v1201_v39, %v1198_v57  ;;  %s4901_s10 = sld [smem:[#allocation2 + $0xff]]  ;;  %v1224_v59 = vstv %s4871_s5  ;;  %v1221_v26 = vmul.f32 %v1220_v31, %v4294_v37  ;;  %v1163_v39 = vadd.f32 %v1162_v8, %v1159_v29 }
 0x229   : > { %s4905_s21 = sld [smem:[#allocation2 + $0x11b]]  ;;  %v1228_v0 = vstv %s4875_s9  ;;  %v1225_v51 = vmul.f32 %v1224_v59, %v4308_v49  ;;  %v1104_v57 = vadd.f32 %v1103_v40, %v1100_v24  ;;  %v1111_v8 = vmul.f32 %v1110_v30, %v4432_v47 }
 0x22a   : > { %v1206_v22 = vadd.f32 %v1205_v62, %v1202_v10  ;;  %s4912_s14 = sld [smem:[#allocation2 + $0x100]]  ;;  %v1229_v62 = vmul.f32 %v1228_v0, %v4310_v50  ;;  %v1232_v2 = vstv %s4880_s2  ;;  %v1177_v59 = vstv %s4808_s27 }
 0x22b   : > { %s4917_s16 = sld [smem:[#allocation2 + $0x101]] }
 0x22c   : > { %v1210_v17 = vadd.f32 %v1209_v14, %v1206_v22  ;;  %s4924_s12 = sld [smem:[#allocation2 + $0x102]]  ;;  %v1170_v14 = vmul.f32 %v1169_v45, %v4331_v5  ;;  %v1240_v0 = vstv %s4889_s18 }
 0x22d   : > { %s4930_s15 = sld [smem:[#allocation2 + $0x103]] }
 0x22e   : > { %v1214_v25 = vadd.f32 %v1213_v23, %v1210_v17  ;;  %s4935_s26 = sld [smem:[#allocation2 + $0x104]]  ;;  %v1236_v23 = vstv %s4884_s29  ;;  %v1114_v17 = vstv %s4731_s8 }
 0x22f   : > { %s4940_s0 = sld [smem:[#allocation2 + $0x105]]  ;;  %v1253_v52 = vstv %s4905_s21  ;;  %v1115_v45 = vmul.f32 %v1114_v17, %v4447_v61 }
 0x230   : > { %v1218_v42 = vadd.f32 %v1217_v33, %v1214_v25  ;;  %v1255_v55 = vstv %s4912_s14  ;;  %s4945_s6 = sld [smem:[#allocation2 + $0x106]]  ;;  %v1174_v33 = vmul.f32 %v1173_v19, %v4422_v35 }
 0x231   : > { %v1256_v60 = vmul.f32 %v1255_v55, %v4156_v46  ;;  %v1259_v48 = vstv %s4917_s16  ;;  %s4950_s1 = sld [smem:[#allocation2 + $0x107]]  ;;  %v1167_v46 = vadd.f32 %v1166_v44, %v1163_v39 }
 0x232   : > { %v1222_v1 = vadd.f32 %v1221_v26, %v1218_v42  ;;  %v1260_v4 = vmul.f32 %v1259_v48, %v4167_v53  ;;  %v1263_v10 = vstv %s4924_s12  ;;  %s4955_s7 = sld [smem:[#allocation2 + $0x108]]  ;;  %v1233_v53 = vmul.f32 %v1232_v2, %v4315_v38 }
 0x233   : > { %v1257_v15 = vadd.f32 %v1256_v60, %v1253_v52  ;;  %v1264_v16 = vmul.f32 %v1263_v10, %v4169_v54  ;;  %v1267_v18 = vstv %s4930_s15  ;;  %s4960_s28 = sld [smem:[#allocation2 + $0x109]]  ;;  %v1108_v54 = vadd.f32 %v1107_v13, %v1104_v57 }
 0x234   : > { %v1226_v21 = vadd.f32 %v1225_v51, %v1222_v1  ;;  %v1271_v22 = vstv %s4935_s26  ;;  %s4964_s20 = sld [smem:[#allocation2 + $0x10a]]  ;;  %v1268_v29 = vmul.f32 %v1267_v18, %v4173_v56  ;;  %v1171_v56 = vadd.f32 %v1170_v14, %v1167_v46 }
 0x235   : > { %v1261_v27 = vadd.f32 %v1260_v4, %v1257_v15  ;;  %s4969_s19 = sld [smem:[#allocation2 + $0x10b]]  ;;  %v1275_v3 = vstv %s4940_s0  ;;  %v1272_v40 = vmul.f32 %v1271_v22, %v4189_v6  ;;  %v1237_v13 = vmul.f32 %v1236_v23, %v4331_v5 }
 0x236   : > { %v1230_v31 = vadd.f32 %v1229_v62, %v1226_v21  ;;  %s4973_s25 = sld [smem:[#allocation2 + $0x10c]]  ;;  %v1279_v25 = vstv %s4945_s6  ;;  %v1276_v39 = vmul.f32 %v1275_v3, %v4191_v7  ;;  %v1045_v6 = vadd.f32 %v4892_v63, %v4926_v34 }
 0x237   : > { %v1265_v24 = vadd.f32 %v1264_v16, %v1261_v27  ;;  %s4978_s30 = sld [smem:[#allocation2 + $0x10d]]  ;;  %v1112_v44 = vadd.f32 %v1111_v8, %v1108_v54  ;;  %v1283_v42 = vstv %s4950_s1  ;;  %v1178_v51 = vmul.f32 %v1177_v59, %v4432_v47 }
 0x238   : > { %s4983_s11 = sld [smem:[#allocation2 + $0x10e]]  ;;  %v1234_v26 = vadd.f32 %v1233_v53, %v1230_v31  ;;  %v1181_v52 = vstv %s4813_s24  ;;  %v1280_v57 = vmul.f32 %v1279_v25, %v4197_v11  ;;  %v1175_v7 = vadd.f32 %v1174_v33, %v1171_v56 }
 0x239   : > { %v1269_v30 = vadd.f32 %v1268_v29, %v1265_v24  ;;  %s4987_s8 = sld [smem:[#allocation2 + $0x10f]]  ;;  %v1241_v62 = vmul.f32 %v1240_v0, %v4422_v35  ;;  %v1244_v63 = vstv %s4896_s17  ;;  %v1287_v34 = vstv %s4955_s7 }
 0x23a   : > { %s4993_s27 = sld [smem:[#allocation2 + $0x140]]  ;;  %v1238_v60 = vadd.f32 %v1237_v13, %v1234_v26  ;;  %v1284_v1 = vmul.f32 %v1283_v42, %v4292_v36  ;;  %v1291_v2 = vstv %s4960_s28  ;;  %v5010_v11 = vmax.f32 %v4835_v58, 0.0 }
 0x23b   : > { %v1273_v55 = vadd.f32 %v1272_v40, %v1269_v30  ;;  %s4998_s23 = sld [smem:[#allocation2 + $0x11c]]  ;;  %v5013_v4 = vmax.f32 %v4908_v20, 0.0  ;;  %v1049_v10 = vadd.f32 %v4920_v32, %v1045_v6  ;;  %v1116_v14 = vadd.f32 %v1115_v45, %v1112_v44 }
 0x23c   : > { %s5003_s22 = sld [smem:[#allocation2 + $0x11d]]  ;;  %v1182_v15 = vmul.f32 %v1181_v52, %v4447_v61  ;;  %v1248_v36 = vstv %s4901_s10  ;;  %v1288_v18 = vmul.f32 %v1287_v34, %v4294_v37  ;;  %v1179_v58 = vadd.f32 %v1178_v51, %v1175_v7 }
 0x23d   : > { %v1277_v48 = vadd.f32 %v1276_v39, %v1273_v55  ;;  %s5007_s24 = sld [smem:[#allocation2 + $0x11e]]  ;;  %v1245_v20 = vmul.f32 %v1244_v63, %v4432_v47  ;;  %v1292_v46 = vmul.f32 %v1291_v2, %v4308_v49  ;;  %v1295_v32 = vstv %s4964_s20 }
 0x23e   : > { %s5016_s4 = sld [smem:[#allocation2 + $0x11f]]  ;;  %v1242_v19 = vadd.f32 %v1241_v62, %v1238_v60  ;;  %v1249_v37 = vmul.f32 %v1248_v36, %v4447_v61  ;;  %v1299_v23 = vstv %s4969_s19  ;;  %v1296_v54 = vmul.f32 %v1295_v32, %v4310_v50 }
 0x23f   : > { %v1281_v16 = vadd.f32 %v1280_v57, %v1277_v48  ;;  %s5021_s3 = sld [smem:[#allocation2 + $0x120]]  ;;  %v1303_v3 = vstv %s4973_s25  ;;  %v1300_v59 = vmul.f32 %v1299_v23, %v4315_v38  ;;  %v5052_v50 = vmax.f32 %v1049_v10, 0.0 }
 0x240   : > { %s5026_s13 = sld [smem:[#allocation2 + $0x121]]  ;;  %v1320_v22 = vstv %s4993_s27  ;;  %v1246_v40 = vadd.f32 %v1245_v20, %v1242_v19  ;;  %v1307_v25 = vstv %s4978_s30  ;;  %v5058_v30 = vmax.f32 %v1116_v14, 0.0 }
 0x241   : > { %v1285_v21 = vadd.f32 %v1284_v1, %v1281_v16  ;;  %v1322_v53 = vstv %s4998_s23  ;;  %s5030_s5 = sld [smem:[#allocation2 + $0x122]]  ;;  %v1304_v6 = vmul.f32 %v1303_v3, %v4331_v5  ;;  %v1183_v44 = vadd.f32 %v1182_v15, %v1179_v58 }
 0x242   : > { %v1323_v27 = vmul.f32 %v1322_v53, %v4535_v28  ;;  %v1326_v29 = vstv %s5003_s22  ;;  %s5036_s9 = sld [smem:[#allocation2 + $0x123]]  ;;  %v1311_v45 = vstv %s4983_s11  ;;  %v1250_v52 = vadd.f32 %v1249_v37, %v1246_v40 }
 0x243   : > { %v1289_v49 = vadd.f32 %v1288_v18, %v1285_v21  ;;  %v1327_v8 = vmul.f32 %v1326_v29, %v4606_v43  ;;  %v1330_v31 = vstv %s5007_s24  ;;  %s5041_s2 = sld [smem:[#allocation2 + $0x124]]  ;;  %v1308_v57 = vmul.f32 %v1307_v25, %v4422_v35 }
 0x244   : > { %v1324_v17 = vadd.f32 %v1323_v27, %v1320_v22  ;;  %v1331_v33 = vmul.f32 %v1330_v31, %v4664_v12  ;;  %v1334_v24 = vstv %s5016_s4  ;;  %s5046_s29 = sld [smem:[#allocation2 + $0x125]]  ;;  %v1315_v5 = vstv %s4987_s8 }
 0x245   : > { %v1293_v56 = vadd.f32 %v1292_v46, %v1289_v49  ;;  %v1338_v13 = vstv %s5021_s3  ;;  %s5050_s18 = sld [smem:[#allocation2 + $0x126]]  ;;  %v1335_v0 = vmul.f32 %v1334_v24, %v4742_v9  ;;  %v1312_v48 = vmul.f32 %v1311_v45, %v4432_v47 }
 0x246   : > { %v1328_v26 = vadd.f32 %v1327_v8, %v1324_v17  ;;  %s5056_s17 = sld [smem:[#allocation2 + $0x127]]  ;;  %v1342_v38 = vstv %s5026_s13  ;;  %v1339_v51 = vmul.f32 %v1338_v13, %v4823_v41  ;;  %v5081_v35 = vmax.f32 %v1183_v44, 0.0 }
 0x247   : > { %v1297_v39 = vadd.f32 %v1296_v54, %v1293_v56  ;;  %s5062_s10 = sld [smem:[#allocation2 + $0x141]]  ;;  %v1346_v7 = vstv %s5030_s5  ;;  %v1343_v63 = vmul.f32 %v1342_v38, %v5010_v11  ;;  %v5086_v14 = vmax.f32 %v1250_v52, 0.0 }
 0x248   : > { %v1332_v42 = vadd.f32 %v1331_v33, %v1328_v26  ;;  %s5066_s21 = sld [smem:[#allocation2 + $0x128]]  ;;  %v1350_v34 = vstv %s5036_s9  ;;  %v1347_v10 = vmul.f32 %v1346_v7, %v5013_v4  ;;  %v1316_v36 = vmul.f32 %v1315_v5, %v4447_v61 }
 0x249   : > { %v1301_v55 = vadd.f32 %v1300_v59, %v1297_v39  ;;  %s5070_s14 = sld [smem:[#allocation2 + $0x129]]  ;;  %v1354_v1 = vstv %s5041_s2  ;;  %v1351_v47 = vmul.f32 %v1350_v34, %v5052_v50 }
 0x24a   : > { %v1336_v62 = vadd.f32 %v1335_v0, %v1332_v42  ;;  %s5075_s16 = sld [smem:[#allocation2 + $0x12a]]  ;;  %v1355_v18 = vmul.f32 %v1354_v1, %v5058_v30  ;;  %v1358_v32 = vstv %s5046_s29 }
 0x24b   : > { %v1305_v60 = vadd.f32 %v1304_v6, %v1301_v55  ;;  %s5079_s12 = sld [smem:[#allocation2 + $0x12b]]  ;;  %v1362_v22 = vstv %s5050_s18  ;;  %v1359_v8 = vmul.f32 %v1358_v32, %v5081_v35 }
 0x24c   : > { %v1340_v2 = vadd.f32 %v1339_v51, %v1336_v62  ;;  %s5084_s15 = sld [smem:[#allocation2 + $0x12c]]  ;;  %v1366_v17 = vstv %s5056_s17  ;;  %v1363_v56 = vmul.f32 %v1362_v22, %v5086_v14 }
 0x24d   : > { %v1309_v15 = vadd.f32 %v1308_v57, %v1305_v60  ;;  %s5090_s26 = sld [smem:[#allocation2 + $0x12d]]  ;;  %v1370_v58 = vstv %s5062_s10 }
 0x24e   : > { %v1344_v16 = vadd.f32 %v1343_v63, %v1340_v2  ;;  %v1372_v20 = vstv %s5066_s21  ;;  %s5095_s0 = sld [smem:[#allocation2 + $0x12e]] }
 0x24f   : > { %v1313_v46 = vadd.f32 %v1312_v48, %v1309_v15  ;;  %v1373_v19 = vmul.f32 %v1372_v20, %v4535_v28  ;;  %v1376_v21 = vstv %s5070_s14  ;;  %s5100_s6 = sld [smem:[#allocation2 + $0x12f]] }
 0x250   : > { %v1348_v61 = vadd.f32 %v1347_v10, %v1344_v16  ;;  %v1377_v53 = vmul.f32 %v1376_v21, %v4606_v43  ;;  %v1380_v37 = vstv %s5075_s16  ;;  %s5105_s1 = sld [smem:[#allocation2 + $0x130]] }
 0x251   : > { %v1317_v23 = vadd.f32 %v1316_v36, %v1313_v46  ;;  %v1374_v27 = vadd.f32 %v1373_v19, %v1370_v58  ;;  %v1381_v29 = vmul.f32 %v1380_v37, %v4664_v12  ;;  %s6829_s7 = sld [smem:[#allocation25_spill]]  ;;  %v1384_v49 = vstv %s5079_s12 }
 0x252   : > { %s5109_s28 = sld [smem:[#allocation2 + $0x131]]  ;;  %v1352_v54 = vadd.f32 %v1351_v47, %v1348_v61  ;;  %v1388_v31 = vstv %s5084_s15  ;;  %v1385_v24 = vmul.f32 %v1384_v49, %v4742_v9 }
 0x253   : > { %s5113_s20 = sld [smem:[#allocation2 + $0x132]]  ;;  %v5115_v3 = vmax.f32 %v1317_v23, 0.0  ;;  %v1378_v33 = vadd.f32 %v1377_v53, %v1374_v27  ;;  %v1392_v59 = vstv %s5090_s26  ;;  %v1389_v25 = vmul.f32 %v1388_v31, %v4823_v41 }
 0x254   : > { %s5119_s19 = sld [smem:[#allocation2 + $0x133]]  ;;  %v1356_v40 = vadd.f32 %v1355_v18, %v1352_v54  ;;  %v1396_v39 = vstv %s5095_s0  ;;  %v1393_v38 = vmul.f32 %v1392_v59, %v5010_v11 }
 0x255   : > { %s5123_s25 = sld [smem:[#allocation2 + $0x142]]  ;;  %v1382_v13 = vadd.f32 %v1381_v29, %v1378_v33  ;;  %v1367_v0 = vmul.f32 %v1366_v17, %v5115_v3  ;;  %v1400_v45 = vstv %s5100_s6  ;;  %v1397_v51 = vmul.f32 %v1396_v39, %v5013_v4 }
 0x256   : > { %s3206_s11 = sld [smem:[#allocation2 + $0x134]]  ;;  %v1360_v26 = vadd.f32 %v1359_v8, %v1356_v40  ;;  %v1404_v55 = vstv %s5105_s1  ;;  %v1401_v7 = vmul.f32 %v1400_v45, %v5052_v50 }
 0x257   : > { %s3555_s30 = smul.u32 48, %s6829_s7  ;;  %s3207_s8 = sld [smem:[#allocation2 + $0x135]]  ;;  %v1386_v6 = vadd.f32 %v1385_v24, %v1382_v13  ;;  %v1405_v1 = vmul.f32 %v1404_v55, %v5058_v30 }
 0x258   : > { %s3208_s27 = sld [smem:[#allocation2 + $0x136]]  ;;  %v1364_v44 = vadd.f32 %v1363_v56, %v1360_v26  ;;  %v1408_v63 = vstv %s5109_s28 }
 0x259   : > { %s5131_s23 = sld [smem:[#allocation2 + $0x137]]  ;;  %v1390_v42 = vadd.f32 %v1389_v25, %v1386_v6  ;;  %s5147_s13 = scalar_lea.vmem [#allocation7], %s3555_s30  ;;  %v1412_v15 = vstv %s5113_s20  ;;  %v1409_v18 = vmul.f32 %v1408_v63, %v5081_v35 }
 0x25a   : > { %s5134_s22 = sld [smem:[#allocation2 + $0x138]]  ;;  %v1368_v52 = vadd.f32 %v1367_v0, %v1364_v44  ;;  %v1416_v20 = vstv %s5119_s19 }
 0x25b   : > { %s5137_s24 = sld [smem:[#allocation2 + $0x139]]  ;;  %v1394_v57 = vadd.f32 %v1393_v38, %v1390_v42  ;;  %v1420_v5 = vstv %s5123_s25  ;;  %v1417_v53 = vmul.f32 %v1416_v20, %v5115_v3 }
 0x25c   : > { %v1422_v62 = vstv %s3206_s11  ;;  %s5141_s4 = sld [smem:[#allocation2 + $0x13a]]  ;;  %1469 = vst [vmem:[%s5147_s13] sm:$0xff] %v1368_v52 }
 0x25d   : > { %v1423_v34 = vmul.f32 %v1422_v62, %v4535_v28  ;;  %v1426_v60 = vstv %s3207_s8  ;;  %s5145_s3 = sld [smem:[#allocation2 + $0x13b]]  ;;  %v1398_v48 = vadd.f32 %v1397_v51, %v1394_v57 }
 0x25e   : > { %6830 = sst [smem:[#allocation71_spill]] %s5147_s13  ;;  %v1427_v2 = vmul.f32 %v1426_v60, %v4606_v43  ;;  %v1430_v10 = vstv %s3208_s27 }
 0x25f   : > { %s5152_s5 = sld [smem:[#allocation2 + $0x13c]]  ;;  %v1424_v28 = vadd.f32 %v1423_v34, %v1420_v5  ;;  %v1431_v36 = vmul.f32 %v1430_v10, %v4664_v12  ;;  %v1434_v47 = vstv %s5131_s23  ;;  %v1402_v16 = vadd.f32 %v1401_v7, %v1398_v48 }
 0x260   : > { %s5157_s9 = sld [smem:[#allocation2 + $0x13d]]  ;;  %v1438_v58 = vstv %s5134_s22  ;;  %v1435_v46 = vmul.f32 %v1434_v47, %v4742_v9  ;;  %v1413_v12 = vmul.f32 %v1412_v15, %v5086_v14 }
 0x261   : > { %s5161_s2 = sld [smem:[#allocation2 + $0x13e]]  ;;  %v1428_v43 = vadd.f32 %v1427_v2, %v1424_v28  ;;  %v1406_v32 = vadd.f32 %v1405_v1, %v1402_v16  ;;  %v1442_v19 = vstv %s5137_s24  ;;  %v1439_v61 = vmul.f32 %v1438_v58, %v4823_v41 }
 0x262   : > { %s5165_s29 = sld [smem:[#allocation2 + $0x13f]]  ;;  %v1446_v37 = vstv %s5141_s4  ;;  %v1443_v23 = vmul.f32 %v1442_v19, %v5010_v11 }
 0x263   : > { %s5169_s18 = sld [smem:[#allocation2 + $0x40]]  ;;  %v1432_v21 = vadd.f32 %v1431_v36, %v1428_v43  ;;  %v1410_v22 = vadd.f32 %v1409_v18, %v1406_v32  ;;  %v1450_v29 = vstv %s5145_s3  ;;  %v1447_v49 = vmul.f32 %v1446_v37, %v5013_v4 }
 0x264   : > { %s5172_s17 = sld [smem:[#allocation2]]  ;;  %v1451_v11 = vmul.f32 %v1450_v29, %v5052_v50 }
 0x265   : > { %s5176_s10 = sld [smem:[#allocation2 + $0x1]]  ;;  %v1436_v9 = vadd.f32 %v1435_v46, %v1432_v21  ;;  %v1414_v27 = vadd.f32 %v1413_v12, %v1410_v22  ;;  %v1454_v8 = vstv %s5152_s5 }
 0x266   : > { %s5179_s21 = sld [smem:[#allocation2 + $0x2]]  ;;  %v1458_v17 = vstv %s5157_s9  ;;  %v1455_v24 = vmul.f32 %v1454_v8, %v5058_v30 }
 0x267   : > { %s5182_s14 = sld [smem:[#allocation2 + $0x3]]  ;;  %v1440_v41 = vadd.f32 %v1439_v61, %v1436_v9  ;;  %v1418_v54 = vadd.f32 %v1417_v53, %v1414_v27  ;;  %v1462_v4 = vstv %s5161_s2  ;;  %v1459_v56 = vmul.f32 %v1458_v17, %v5081_v35 }
 0x268   : > { %s5185_s16 = sld [smem:[#allocation2 + $0x41]]  ;;  %v1466_v50 = vstv %s5165_s29  ;;  %v1463_v13 = vmul.f32 %v1462_v4, %v5086_v14 }
 0x269   : > { %s5188_s12 = sld [smem:[#allocation2 + $0x4]]  ;;  %v1444_v31 = vadd.f32 %v1443_v23, %v1440_v41  ;;  %3218 = vst [vmem:[%s5147_s13 + $0x10] sm:$0xff] %v1418_v54  ;;  %v1467_v25 = vmul.f32 %v1466_v50, %v5115_v3  ;;  %v1486_v6 = vstv %s5169_s18 }
 0x26a   : > { %s5191_s15 = sld [smem:[#allocation2 + $0x5]]  ;;  %v1488_v3 = vstv %s5172_s17 }
 0x26b   : > { %s5195_s26 = sld [smem:[#allocation2 + $0x6]]  ;;  %v1448_v33 = vadd.f32 %v1447_v49, %v1444_v31  ;;  %v1492_v38 = vstv %s5176_s10 }
 0x26c   : > { %s5198_s0 = sld [smem:[#allocation2 + $0x7]]  ;;  %v1496_v52 = vstv %s5179_s21 }
 0x26d   : > { %s5201_s6 = sld [smem:[#allocation2 + $0x42]]  ;;  %v1452_v40 = vadd.f32 %v1451_v11, %v1448_v33  ;;  %v1500_v60 = vstv %s5182_s14 }
 0x26e   : > { %s5204_s1 = sld [smem:[#allocation2 + $0x8]]  ;;  %v1505_v57 = vstv %s5185_s16 }
 0x26f   : > { %s5207_s28 = sld [smem:[#allocation2 + $0x9]]  ;;  %v1456_v59 = vadd.f32 %v1455_v24, %v1452_v40  ;;  %v1507_v44 = vstv %s5188_s12 }
 0x270   : > { %s5210_s20 = sld [smem:[#allocation2 + $0xa]]  ;;  %v1511_v7 = vstv %s5191_s15 }
 0x271   : > { %s5212_s19 = sld [smem:[#allocation2 + $0xb]]  ;;  %v1460_v30 = vadd.f32 %v1459_v56, %v1456_v59  ;;  %v1515_v2 = vstv %s5195_s26 }
 0x272   : > { %s5215_s25 = sld [smem:[#allocation2 + $0x43]]  ;;  %v1519_v20 = vstv %s5198_s0 }
 0x273   : > { %s5217_s30 = sld [smem:[#allocation2 + $0xc]]  ;;  %v1464_v35 = vadd.f32 %v1463_v13, %v1460_v30  ;;  %v1524_v16 = vstv %s5201_s6 }
 0x274   : > { %s5219_s11 = sld [smem:[#allocation2 + $0xd]]  ;;  %v1526_v63 = vstv %s5204_s1 }
 0x275   : > { %s5221_s8 = sld [smem:[#allocation2 + $0xe]]  ;;  %v1468_v26 = vadd.f32 %v1467_v25, %v1464_v35  ;;  %v1530_v15 = vstv %s5207_s28 }
 0x276   : > { %s5223_s27 = sld [smem:[#allocation2 + $0xf]]  ;;  %v1534_v46 = vstv %s5210_s20 }
 0x277   : > { %s5225_s23 = sld [smem:[#allocation2 + $0x44]]  ;;  %3219 = vst [vmem:[%s5147_s13 + $0x20] sm:$0xff] %v1468_v26  ;;  %v1538_v27 = vstv %s5212_s19 }
 0x278   : > { %s5228_s22 = sld [smem:[#allocation2 + $0x10]]  ;;  %v1543_v19 = vstv %s5215_s25 }
 0x279   : > { %s5230_s24 = sld [smem:[#allocation2 + $0x11]]  ;;  %v1545_v28 = vstv %s5217_s30 }
 0x27a   : > { %s5232_s4 = sld [smem:[#allocation2 + $0x12]]  ;;  %v1549_v21 = vstv %s5219_s11 }
 0x27b   : > { %6831 = sst [smem:[#allocation74_spill]] %s5221_s8 }
 0x27c   : > { %6832 = sst [smem:[#allocation75_spill]] %s5223_s27 }
 0x27d   : > { %6833 = sst [smem:[#allocation77_spill]] %s5225_s23 }
 0x27e   : > { %s5234_s3 = sld [smem:[#allocation2 + $0x13]]  ;;  %v1564_v61 = vstv %s5228_s22 }
 0x27f   : > { %6834 = sst [smem:[#allocation76_spill]] %s5230_s24 }
 0x280   : > { %6835 = sst [smem:[#allocation78_spill]] %s5232_s4 }
 0x281   : > { %s5236_s5 = sld [smem:[#allocation2 + $0x45]] }
 0x282   : > { %s5238_s9 = sld [smem:[#allocation2 + $0x14]] }
 0x283   : > { %s5240_s2 = sld [smem:[#allocation2 + $0x15]] }
 0x284   : > { %6836 = sst [smem:[#allocation82_spill]] %s5234_s3 }
 0x285   : > { %s5242_s29 = sld [smem:[#allocation2 + $0x16]] }
 0x286   : > { %s5244_s7 = sld [smem:[#allocation2 + $0x17]] }
 0x287   : > { %6837 = sst [smem:[#allocation79_spill]] %s5236_s5 }
 0x288   : > { %s5246_s27 = sld [smem:[#allocation2 + $0x46]]  ;;  %v1583_v37 = vstv %s5238_s9 }
 0x289   : > { %6838 = sst [smem:[#allocation83_spill]] %s5240_s2 }
 0x28a   : > { %s5248_s13 = sld [smem:[#allocation2 + $0x18]] }
 0x28b   : > { %6839 = sst [smem:[#allocation86_spill]] %s5242_s29 }
 0x28c   : > { %6840 = sst [smem:[#allocation81_spill]] %s5244_s7 }
 0x28d   : > { %s5250_s23 = sld [smem:[#allocation2 + $0x19]] }
 0x28e   : > { %6841 = sst [smem:[#allocation84_spill]] %s5246_s27 }
 0x28f   : > { %s5252_s24 = sld [smem:[#allocation2 + $0x1a]] }
 0x290   : > { %6842 = sst [smem:[#allocation27_spill]] %s5248_s13 }
 0x291   : > { %s5254_s4 = sld [smem:[#allocation2 + $0x1b]] }
 0x292   : > { %s5256_s3 = sld [smem:[#allocation2 + $0x47]] }
 0x293   : > { %6843 = sst [smem:[#allocation87_spill]] %s5250_s23 }
 0x294   : > { %s5258_s5 = sld [smem:[#allocation2 + $0x1c]] }
 0x295   : > { %6844 = sst [smem:[#allocation80_spill]] %s5252_s24 }
 0x296   : > { %s5260_s8 = sld [smem:[#allocation2 + $0x1d]] }
 0x297   : > { %6845 = sst [smem:[#allocation29_spill]] %s5254_s4 }
 0x298   : > { %6846 = sst [smem:[#allocation85_spill]] %s5256_s3 }
 0x299   : > { %s5262_s2 = sld [smem:[#allocation2 + $0x1e]] }
 0x29a   : > { %6847 = sst [smem:[#allocation39_spill]] %s5258_s5 }
 0x29b   : > { %s5264_s29 = sld [smem:[#allocation2 + $0x1f]] }
 0x29c   : > { %6848 = sst [smem:[#allocation88_spill]] %s5260_s8 }
 0x29d   : > { %s5266_s7 = sld [smem:[#allocation2 + $0x48]] }
 0x29e   : > { %s5268_s27 = sld [smem:[#allocation2 + $0x20]] }
 0x29f   : > { %6849 = sst [smem:[#allocation32_spill]] %s5262_s2 }
 0x2a0   : > { %s5270_s13 = sld [smem:[#allocation2 + $0x21]] }
 0x2a1   : > { %6850 = sst [smem:[#allocation28_spill]] %s5264_s29 }
 0x2a2   : > { %s5272_s23 = sld [smem:[#allocation2 + $0x22]] }
 0x2a3   : > { %6851 = sst [smem:[#allocation89_spill]] %s5266_s7 }
 0x2a4   : > { %6852 = sst [smem:[#allocation36_spill]] %s5268_s27 }
 0x2a5   : > { %s5274_s24 = sld [smem:[#allocation2 + $0x23]] }
 0x2a6   : > { %6853 = sst [smem:[#allocation30_spill]] %s5270_s13 }
 0x2a7   : > { %s5276_s4 = sld [smem:[#allocation2 + $0x49]] }
 0x2a8   : > { %6854 = sst [smem:[#allocation90_spill]] %s5272_s23 }
 0x2a9   : > { %s5278_s3 = sld [smem:[#allocation2 + $0x24]] }
 0x2aa   : > { %s5280_s5 = sld [smem:[#allocation2 + $0x25]] }
 0x2ab   : > { %6855 = sst [smem:[#allocation41_spill]] %s5274_s24 }
 0x2ac   : > { %s5282_s8 = sld [smem:[#allocation2 + $0x26]] }
 0x2ad   : > { %6856 = sst [smem:[#allocation91_spill]] %s5276_s4 }
 0x2ae   : > { %s5284_s2 = sld [smem:[#allocation2 + $0x27]] }
 0x2af   : > { %6857 = sst [smem:[#allocation31_spill]] %s5278_s3 }
 0x2b0   : > { %6858 = sst [smem:[#allocation43_spill]] %s5280_s5 }
 0x2b1   : > { %s5286_s29 = sld [smem:[#allocation2 + $0x4a]] }
 0x2b2   : > { %6859 = sst [smem:[#allocation92_spill]] %s5282_s8 }
 0x2b3   : > { %s5288_s7 = sld [smem:[#allocation2 + $0x28]] }
 0x2b4   : > { %6860 = sst [smem:[#allocation34_spill]] %s5284_s2 }
 0x2b5   : > { %s5290_s27 = sld [smem:[#allocation2 + $0x29]] }
 0x2b6   : > { %s5292_s13 = sld [smem:[#allocation2 + $0x2a]] }
 0x2b7   : > { %6861 = sst [smem:[#allocation35_spill]] %s5286_s29 }
 0x2b8   : > { %s5294_s23 = sld [smem:[#allocation2 + $0x2b]] }
 0x2b9   : > { %6862 = sst [smem:[#allocation45_spill]] %s5288_s7 }
 0x2ba   : > { %s5296_s24 = sld [smem:[#allocation2 + $0x4b]] }
 0x2bb   : > { %6863 = sst [smem:[#allocation38_spill]] %s5290_s27 }
 0x2bc   : > { %6864 = sst [smem:[#allocation40_spill]] %s5292_s13 }
 0x2bd   : > { %s5298_s4 = sld [smem:[#allocation2 + $0x2c]] }
 0x2be   : > { %6865 = sst [smem:[#allocation33_spill]] %s5294_s23 }
 0x2bf   : > { %s5300_s3 = sld [smem:[#allocation2 + $0x2d]] }
 0x2c0   : > { %6866 = sst [smem:[#allocation44_spill]] %s5296_s24 }
 0x2c1   : > { %s5302_s5 = sld [smem:[#allocation2 + $0x2e]] }
 0x2c2   : > { %s5304_s8 = sld [smem:[#allocation2 + $0x2f]] }
 0x2c3   : > { %6867 = sst [smem:[#allocation37_spill]] %s5298_s4 }
 0x2c4   : > { %s5306_s2 = sld [smem:[#allocation2 + $0x4c]] }
 0x2c5   : > { %6868 = sst [smem:[#allocation49_spill]] %s5300_s3 }
 0x2c6   : > { %s5308_s29 = sld [smem:[#allocation2 + $0x30]] }
 0x2c7   : > { %6869 = sst [smem:[#allocation46_spill]] %s5302_s5 }
 0x2c8   : > { %6870 = sst [smem:[#allocation53_spill]] %s5304_s8 }
 0x2c9   : > { %s5310_s7 = sld [smem:[#allocation2 + $0x31]] }
 0x2ca   : > { %6871 = sst [smem:[#allocation50_spill]] %s5306_s2 }
 0x2cb   : > { %s5312_s27 = sld [smem:[#allocation2 + $0x32]] }
 0x2cc   : > { %6872 = sst [smem:[#allocation42_spill]] %s5308_s29 }
 0x2cd   : > { %s5314_s13 = sld [smem:[#allocation2 + $0x33]] }
 0x2ce   : > { %s5316_s23 = sld [smem:[#allocation2 + $0x4d]] }
 0x2cf   : > { %6873 = sst [smem:[#allocation64_spill]] %s5310_s7 }
 0x2d0   : > { %s6876_s24 = sld [smem:[#allocation26_spill]] }
 0x2d1   : > { %s5318_s4 = sld [smem:[#allocation2 + $0x34]] }
 0x2d2   : > { %s5320_s3 = sld [smem:[#allocation2 + $0x35]] }
 0x2d3   : > { %6874 = sst [smem:[#allocation48_spill]] %s5314_s13 }
 0x2d4   : > { %6875 = sst [smem:[#allocation47_spill]] %s5316_s23 }
 0x2d5   : > { %s5322_s5 = sld [smem:[#allocation2 + $0x36]] }
 0x2d6   : > { %s5324_s8 = sld [smem:[#allocation2 + $0x37]]  ;;  %v5349_v14 = vld [vmem:[%s6876_s24 + $0x8] sm:$0xff]  ;;  %v5362_v39 = vld [vmem:[%s6876_s24 + $0x18] sm:$0xff] }
 0x2d7   : > { %6877 = sst [smem:[#allocation52_spill]] %s5318_s4  ;;  %v1489_v0 = vmul.f32 %v5349_v14, %v1488_v3  ;;  %v1493_v42 = vmul.f32 %v5362_v39, %v1492_v38  ;;  %v5377_v51 = vld [vmem:[%s6876_s24 + $0x28] sm:$0xff]  ;;  %v1508_v55 = vmul.f32 %v5349_v14, %v1507_v44  ;;  %v5394_v34 = vld [vmem:[%s6876_s24 + $0x38] sm:$0xff]  ;;  %v1512_v1 = vmul.f32 %v5362_v39, %v1511_v7 }
 0x2d8   : > { %6878 = sst [smem:[#allocation51_spill]] %s5320_s3  ;;  %v1497_v62 = vmul.f32 %v5377_v51, %v1496_v52  ;;  %v1527_v10 = vmul.f32 %v5349_v14, %v1526_v63  ;;  %v1501_v47 = vmul.f32 %v5394_v34, %v1500_v60  ;;  %v1516_v58 = vmul.f32 %v5377_v51, %v1515_v2 }
 0x2d9   : > { %s5326_s2 = sld [smem:[#allocation2 + $0x4e]]  ;;  %v1490_v45 = vadd.f32 %v1489_v0, %v1486_v6  ;;  %v1509_v48 = vadd.f32 %v1508_v55, %v1505_v57  ;;  %v1531_v43 = vmul.f32 %v5362_v39, %v1530_v15  ;;  %v1546_v32 = vmul.f32 %v5349_v14, %v1545_v28 }
 0x2da   : > { %s5328_s29 = sld [smem:[#allocation2 + $0x38]]  ;;  %v1528_v12 = vadd.f32 %v1527_v10, %v1524_v16  ;;  %v5429_v53 = vmul.f32 %v5394_v34, %v1519_v20  ;;  %v1535_v23 = vmul.f32 %v5377_v51, %v1534_v46  ;;  %v1550_v49 = vmul.f32 %v5362_v39, %v1549_v21 }
 0x2db   : > { %6879 = sst [smem:[#allocation54_spill]] %s5322_s5  ;;  %v1494_v5 = vadd.f32 %v1493_v42, %v1490_v45  ;;  %v1513_v18 = vadd.f32 %v1512_v1, %v1509_v48  ;;  %v1547_v41 = vadd.f32 %v1546_v32, %v1543_v19  ;;  %v1565_v8 = vmul.f32 %v5349_v14, %v1564_v61 }
 0x2dc   : > { %6880 = sst [smem:[#allocation59_spill]] %s5324_s8  ;;  %v1532_v31 = vadd.f32 %v1531_v43, %v1528_v12  ;;  %v1584_v33 = vmul.f32 %v5349_v14, %v1583_v37  ;;  %v1539_v24 = vmul.f32 %v5394_v34, %v1538_v27 }
 0x2dd   : > { %s5330_s7 = sld [smem:[#allocation2 + $0x39]]  ;;  %v1498_v36 = vadd.f32 %v1497_v62, %v1494_v5  ;;  %v1517_v9 = vadd.f32 %v1516_v58, %v1513_v18  ;;  %v1551_v25 = vadd.f32 %v1550_v49, %v1547_v41 }
 0x2de   : > { %s5332_s13 = sld [smem:[#allocation2 + $0x3a]]  ;;  %v1536_v0 = vadd.f32 %v1535_v23, %v1532_v31 }
 0x2df   : > { %6881 = sst [smem:[#allocation61_spill]] %s5326_s2  ;;  %v5426_v22 = vadd.f32 %v1501_v47, %v1498_v36  ;;  %v1521_v58 = vadd.f32 %v5429_v53, %v1517_v9 }
 0x2e0   : > { %6882 = sst [smem:[#allocation55_spill]] %s5328_s29  ;;  %v1540_v20 = vadd.f32 %v1539_v24, %v1536_v0 }
 0x2e1   : > { %s5334_s23 = sld [smem:[#allocation2 + $0x3b]]  ;;  %v5512_v49 = vmax.f32 %v5426_v22, 0.0  ;;  %v5523_v24 = vmax.f32 %v1521_v58, 0.0 }
 0x2e2   : > { %s5336_s4 = sld [smem:[#allocation2 + $0x4f]] }
 0x2e3   : > { %6883 = sst [smem:[#allocation56_spill]] %s5330_s7 }
 0x2e4   : > { %6884 = sst [smem:[#allocation58_spill]] %s5332_s13 }
 0x2e5   : > { %s5338_s3 = sld [smem:[#allocation2 + $0x3c]] }
 0x2e6   : > { %s5340_s5 = sld [smem:[#allocation2 + $0x3d]] }
 0x2e7   : > { %6885 = sst [smem:[#allocation60_spill]] %s5334_s23 }
 0x2e8   : > { %6886 = sst [smem:[#allocation67_spill]] %s5336_s4 }
 0x2e9   : > { %s5342_s8 = sld [smem:[#allocation2 + $0x3e]] }
 0x2ea   : > { %s5344_s2 = sld [smem:[#allocation2 + $0x3f]] }
 0x2eb   : > { %6887 = sst [smem:[#allocation68_spill]] %s5338_s3 }
 0x2ec   : > { %6888 = sst [smem:[#allocation57_spill]] %s5340_s5 }
 0x2ed   : > { %s5346_s29 = sld [smem:[#allocation2 + $0x110]] }
 0x2ee   : > { %s5352_s13 = sld [smem:[#allocation2 + $0x50]] }
 0x2ef   : > { %6889 = sst [smem:[#allocation63_spill]] %s5342_s8 }
 0x2f0   : > { %6890 = sst [smem:[#allocation69_spill]] %s5344_s2 }
 0x2f1   : > { %s5354_s23 = sld [smem:[#allocation2 + $0x51]] }
 0x2f2   : > { %s5356_s4 = sld [smem:[#allocation2 + $0x52]] }
 0x2f3   : > { %s5359_s5 = sld [smem:[#allocation2 + $0x53]] }
 0x2f4   : > { %s5366_s2 = sld [smem:[#allocation2 + $0x54]] }
 0x2f5   : > { %s5369_s17 = sld [smem:[#allocation2 + $0x55]] }
 0x2f6   : > { %s5371_s8 = sld [smem:[#allocation2 + $0x56]] }
 0x2f7   : > { %s5374_s3 = sld [smem:[#allocation2 + $0x57]] }
 0x2f8   : > { %s5381_s18 = sld [smem:[#allocation2 + $0x58]] }
 0x2f9   : > { %s5385_s10 = sld [smem:[#allocation2 + $0x59]] }
 0x2fa   : > { %s5387_s12 = sld [smem:[#allocation2 + $0x5a]] }
 0x2fb   : > { %s5391_s7 = sld [smem:[#allocation2 + $0x5b]] }
 0x2fc   : > { %s5398_s21 = sld [smem:[#allocation2 + $0x5c]] }
 0x2fd   : > { %s5401_s16 = sld [smem:[#allocation2 + $0x5d]] }
 0x2fe   : > { %s5406_s15 = sld [smem:[#allocation2 + $0x5e]] }
 0x2ff   : > { %s5410_s14 = sld [smem:[#allocation2 + $0x5f]] }
 0x300   : > { %6891 = sst [smem:[#allocation65_spill]] %s5387_s12 }
 0x301   : > { %6892 = sst [smem:[#allocation62_spill]] %s5391_s7 }
 0x302   : > { %6893 = sst [smem:[#allocation66_spill]] %s5398_s21 }
 0x303   : > { %6894 = sst [smem:[#allocation72_spill]] %s5401_s16 }
 0x304   : > { %6895 = sst [smem:[#allocation70_spill]] %s5406_s15 }
 0x305   : > { %6896 = sst [smem:[#allocation73_spill]] %s5410_s14 }
 0x306   : > { %s5414_s26 = sld [smem:[#allocation2 + $0x111]] }
 0x307   : > { %s6897_s1 = sld [smem:[#allocation27_spill]] }
 0x308   : > { %s5419_s28 = sld [smem:[#allocation2 + $0x60]] }
 0x309   : > { %s6898_s6 = sld [smem:[#allocation74_spill]] }
 0x30a   : > { %s5424_s30 = sld [smem:[#allocation2 + $0x61]] }
 0x30b   : > { %s6899_s24 = sld [smem:[#allocation77_spill]] }
 0x30c   : > { %s6900_s0 = sld [smem:[#allocation76_spill]] }
 0x30d   : > { %s5432_s20 = sld [smem:[#allocation2 + $0x62]]  ;;  %v1602_v29 = vstv %s6897_s1 }
 0x30e   : > { %s6901_s14 = sld [smem:[#allocation79_spill]]  ;;  %v1603_v56 = vmul.f32 %v5349_v14, %v1602_v29 }
 0x30f   : > { %s6902_s15 = sld [smem:[#allocation83_spill]]  ;;  %v1553_v54 = vstv %s6898_s6 }
 0x310   : > { %s5437_s25 = sld [smem:[#allocation2 + $0x63]]  ;;  %v1554_v50 = vmul.f32 %v5377_v51, %v1553_v54 }
 0x311   : > { %s6903_s11 = sld [smem:[#allocation84_spill]]  ;;  %v1562_v11 = vstv %s6899_s24 }
 0x312   : > { %s6904_s22 = sld [smem:[#allocation87_spill]]  ;;  %v1568_v17 = vstv %s6900_s0  ;;  %v1566_v26 = vadd.f32 %v1565_v8, %v1562_v11  ;;  %v1555_v63 = vadd.f32 %v1554_v50, %v1551_v25 }
 0x313   : > { %s6905_s16 = sld [smem:[#allocation39_spill]]  ;;  %v1569_v3 = vmul.f32 %v5362_v39, %v1568_v17 }
 0x314   : > { %s5442_s9 = sld [smem:[#allocation2 + $0x64]]  ;;  %v1581_v4 = vstv %s6901_s14 }
 0x315   : > { %s6906_s21 = sld [smem:[#allocation75_spill]]  ;;  %v1587_v40 = vstv %s6902_s15  ;;  %v1585_v38 = vadd.f32 %v1584_v33, %v1581_v4  ;;  %v1570_v60 = vadd.f32 %v1569_v3, %v1566_v26  ;;  %v1792_v33 = vstv %s5352_s13 }
 0x316   : > { %s5447_s19 = sld [smem:[#allocation2 + $0x65]]  ;;  %v1588_v44 = vmul.f32 %v5362_v39, %v1587_v40  ;;  %v5525_v4 = vmax.f32 %v1540_v20, 0.0  ;;  %v1793_v26 = vmul.f32 %v1792_v33, %v5512_v49 }
 0x317   : > { %s6907_s1 = sld [smem:[#allocation78_spill]]  ;;  %v1600_v59 = vstv %s6903_s11 }
 0x318   : > { %s5453_s6 = sld [smem:[#allocation2 + $0x66]]  ;;  %v1606_v13 = vstv %s6904_s22  ;;  %v1604_v42 = vadd.f32 %v1603_v56, %v1600_v59  ;;  %v1589_v2 = vadd.f32 %v1588_v44, %v1585_v38  ;;  %v1796_v38 = vstv %s5354_s23 }
 0x319   : > { %s6909_s7 = sld [smem:[#allocation86_spill]]  ;;  %v1621_v30 = vstv %s6905_s16  ;;  %v1607_v52 = vmul.f32 %v5362_v39, %v1606_v13 }
 0x31a   : > { %s5459_s24 = sld [smem:[#allocation2 + $0x67]]  ;;  %v1622_v55 = vmul.f32 %v5349_v14, %v1621_v30 }
 0x31b   : > { %s6911_s0 = sld [smem:[#allocation80_spill]]  ;;  %v1557_v35 = vstv %s6906_s21  ;;  %v1608_v36 = vadd.f32 %v1607_v52, %v1604_v42 }
 0x31c   : > { %s6912_s12 = sld [smem:[#allocation85_spill]]  ;;  %v1558_v57 = vmul.f32 %v5394_v34, %v1557_v35 }
 0x31d   : > { %s6913_s14 = sld [smem:[#allocation88_spill]]  ;;  %v1572_v6 = vstv %s6907_s1 }
 0x31e   : > { %6908 = sst [smem:[#allocation26_spill]] %s5453_s6  ;;  %v1573_v48 = vmul.f32 %v5377_v51, %v1572_v6  ;;  %v1559_v32 = vadd.f32 %v1558_v57, %v1555_v63  ;;  %v1790_v6 = vstv %s5346_s29 }
 0x31f   : > { %s5463_s15 = sld [smem:[#allocation2 + $0x68]]  ;;  %v1591_v45 = vstv %s6909_s7 }
 0x320   : > { %6910 = sst [smem:[#allocation27_spill]] %s5459_s24  ;;  %v1592_v10 = vmul.f32 %v5377_v51, %v1591_v45  ;;  %v1574_v61 = vadd.f32 %v1573_v48, %v1570_v60  ;;  %v5529_v56 = vmax.f32 %v1559_v32, 0.0  ;;  %v1794_v60 = vadd.f32 %v1793_v26, %v1790_v6 }
 0x321   : > { %s6915_s6 = sld [smem:[#allocation82_spill]]  ;;  %v1610_v7 = vstv %s6911_s0  ;;  %v1797_v48 = vmul.f32 %v1796_v38, %v5523_v24  ;;  %v1724_v26 = vstv %s5312_s27 }
 0x322   : > { %s5467_s11 = sld [smem:[#allocation2 + $0x69]]  ;;  %v1619_v5 = vstv %s6912_s12  ;;  %v1611_v47 = vmul.f32 %v5377_v51, %v1610_v7  ;;  %v1593_v37 = vadd.f32 %v1592_v10, %v1589_v2 }
 0x323   : > { %s6917_s16 = sld [smem:[#allocation81_spill]]  ;;  %v1625_v62 = vstv %s6913_s14  ;;  %v1623_v16 = vadd.f32 %v1622_v55, %v1619_v5 }
 0x324   : > { %s6918_s21 = sld [smem:[#allocation36_spill]]  ;;  %v1626_v18 = vmul.f32 %v5362_v39, %v1625_v62  ;;  %v1612_v23 = vadd.f32 %v1611_v47, %v1608_v36 }
 0x325   : > { %6914 = sst [smem:[#allocation74_spill]] %s5463_s15 }
 0x326   : > { %s5472_s22 = sld [smem:[#allocation2 + $0x6a]]  ;;  %v1627_v29 = vadd.f32 %v1626_v18, %v1623_v16 }
 0x327   : > { %s5478_s1 = sld [smem:[#allocation2 + $0x6b]]  ;;  %v1576_v1 = vstv %s6915_s6 }
 0x328   : > { %6916 = sst [smem:[#allocation77_spill]] %s5467_s11  ;;  %v1577_v12 = vmul.f32 %v5394_v34, %v1576_v1 }
 0x329   : > { %s6921_s7 = sld [smem:[#allocation29_spill]]  ;;  %v1595_v15 = vstv %s6917_s16 }
 0x32a   : > { %s6922_s11 = sld [smem:[#allocation32_spill]]  ;;  %v1640_v28 = vstv %s6918_s21  ;;  %v1596_v53 = vmul.f32 %v5394_v34, %v1595_v15  ;;  %v1578_v22 = vadd.f32 %v1577_v12, %v1574_v61  ;;  %v1800_v15 = vstv %s5356_s4 }
 0x32b   : > { %s5482_s15 = sld [smem:[#allocation2 + $0x6c]]  ;;  %v1641_v19 = vmul.f32 %v5349_v14, %v1640_v28  ;;  %v1798_v12 = vadd.f32 %v1797_v48, %v1794_v60  ;;  %v1725_v60 = vmul.f32 %v5377_v51, %v1724_v26  ;;  %v1812_v48 = vstv %s5369_s17 }
 0x32c   : > { %6919 = sst [smem:[#allocation76_spill]] %s5472_s22  ;;  %v1597_v40 = vadd.f32 %v1596_v53, %v1593_v37  ;;  %v5545_v44 = vmax.f32 %v1578_v22, 0.0  ;;  %v1804_v53 = vstv %s5359_s5  ;;  %v1859_v22 = vstv %s5419_s28 }
 0x32d   : > { %6920 = sst [smem:[#allocation79_spill]] %s5478_s1  ;;  %v1805_v33 = vmul.f32 %v1804_v53, %v5529_v56  ;;  %v1860_v38 = vmul.f32 %v1859_v22, %v5512_v49 }
 0x32e   : > { %s6924_s22 = sld [smem:[#allocation30_spill]]  ;;  %v5547_v45 = vmax.f32 %v1597_v40, 0.0 }
 0x32f   : > { %s5487_s0 = sld [smem:[#allocation2 + $0x6d]]  ;;  %v1614_v43 = vstv %s6921_s7 }
 0x330   : > { %s6926_s12 = sld [smem:[#allocation89_spill]]  ;;  %v1629_v46 = vstv %s6922_s11  ;;  %v1615_v27 = vmul.f32 %v5394_v34, %v1614_v43 }
 0x331   : > { %6923 = sst [smem:[#allocation83_spill]] %s5482_s15  ;;  %v1630_v41 = vmul.f32 %v5377_v51, %v1629_v46 }
 0x332   : > { %s5491_s14 = sld [smem:[#allocation2 + $0x6e]]  ;;  %v1616_v50 = vadd.f32 %v1615_v27, %v1612_v23 }
 0x333   : > { %s5496_s6 = sld [smem:[#allocation2 + $0x6f]]  ;;  %v1631_v59 = vadd.f32 %v1630_v41, %v1627_v29 }
 0x334   : > { %s6929_s16 = sld [smem:[#allocation28_spill]]  ;;  %v1644_v21 = vstv %s6924_s22  ;;  %v5553_v55 = vmax.f32 %v1616_v50, 0.0 }
 0x335   : > { %6925 = sst [smem:[#allocation84_spill]] %s5487_s0  ;;  %v1645_v8 = vmul.f32 %v5362_v39, %v1644_v21 }
 0x336   : > { %s5501_s21 = sld [smem:[#allocation2 + $0x112]]  ;;  %v1638_v9 = vstv %s6926_s12 }
 0x337   : > { %s6930_s0 = sld [smem:[#allocation90_spill]]  ;;  %v1642_v31 = vadd.f32 %v1641_v19, %v1638_v9  ;;  %v1801_v19 = vmul.f32 %v1800_v15, %v5525_v4 }
 0x338   : > { %6927 = sst [smem:[#allocation87_spill]] %s5491_s14 }
 0x339   : > { %6928 = sst [smem:[#allocation39_spill]] %s5496_s6  ;;  %v1646_v3 = vadd.f32 %v1645_v8, %v1642_v31 }
 0x33a   : > { %s6931_s15 = sld [smem:[#allocation31_spill]]  ;;  %v1633_v54 = vstv %s6929_s16 }
 0x33b   : > { %s5505_s11 = sld [smem:[#allocation2 + $0x70]]  ;;  %v1634_v13 = vmul.f32 %v5394_v34, %v1633_v54 }
 0x33c   : > { %s5509_s7 = sld [smem:[#allocation2 + $0x71]] }
 0x33d   : > { %s5516_s22 = sld [smem:[#allocation2 + $0x72]]  ;;  %v1648_v11 = vstv %s6930_s0  ;;  %v5555_v57 = vadd.f32 %v1634_v13, %v1631_v59  ;;  %v1808_v13 = vstv %s5366_s2 }
 0x33e   : > { %s6933_s12 = sld [smem:[#allocation43_spill]]  ;;  %v1649_v30 = vmul.f32 %v5377_v51, %v1648_v11 }
 0x33f   : > { %s5521_s6 = sld [smem:[#allocation2 + $0x73]] }
 0x340   : > { %v1659_v17 = vstv %s6931_s15  ;;  %s6935_s14 = sld [smem:[#allocation91_spill]]  ;;  %v1650_v1 = vadd.f32 %v1649_v30, %v1646_v3 }
 0x341   : > { %s5527_s16 = sld [smem:[#allocation2 + $0x74]]  ;;  %v1660_v25 = vmul.f32 %v5349_v14, %v1659_v17  ;;  %v1802_v17 = vadd.f32 %v1801_v19, %v1798_v12  ;;  %v1816_v19 = vstv %s5371_s8 }
 0x342   : > { %s6937_s0 = sld [smem:[#allocation41_spill]] }
 0x343   : > { %6932 = sst [smem:[#allocation75_spill]] %s5516_s22 }
 0x344   : > { %s6938_s13 = sld [smem:[#allocation45_spill]]  ;;  %v1663_v35 = vstv %s6933_s12 }
 0x345   : > { %6934 = sst [smem:[#allocation78_spill]] %s5521_s6  ;;  %v1664_v7 = vmul.f32 %v5362_v39, %v1663_v35 }
 0x346   : > { %s5532_s15 = sld [smem:[#allocation2 + $0x75]]  ;;  %v1657_v0 = vstv %s6935_s14 }
 0x347   : > { %6936 = sst [smem:[#allocation86_spill]] %s5527_s16  ;;  %v1661_v62 = vadd.f32 %v1660_v25, %v1657_v0 }
 0x348   : > { %s6940_s1 = sld [smem:[#allocation37_spill]]  ;;  %v1652_v42 = vstv %s6937_s0 }
 0x349   : > { %s5538_s24 = sld [smem:[#allocation2 + $0x76]]  ;;  %v1653_v2 = vmul.f32 %v5394_v34, %v1652_v42  ;;  %v1665_v46 = vadd.f32 %v1664_v7, %v1661_v62  ;;  %v1806_v42 = vadd.f32 %v1805_v33, %v1802_v17  ;;  %v1857_v7 = vstv %s5414_s26 }
 0x34a   : > { %s6942_s16 = sld [smem:[#allocation92_spill]]  ;;  %v1678_v52 = vstv %s6938_s13  ;;  %v1820_v33 = vstv %s5374_s3 }
 0x34b   : > { %s5543_s6 = sld [smem:[#allocation2 + $0x77]]  ;;  %v1679_v10 = vmul.f32 %v5349_v14, %v1678_v52  ;;  %v1654_v41 = vadd.f32 %v1653_v2, %v1650_v1  ;;  %v1809_v52 = vmul.f32 %v1808_v13, %v5545_v44 }
 0x34c   : > { %6939 = sst [smem:[#allocation80_spill]] %s5532_s15 }
 0x34d   : > { %s5551_s12 = sld [smem:[#allocation2 + $0x78]] }
 0x34e   : > { %s6945_s15 = sld [smem:[#allocation35_spill]]  ;;  %v1697_v5 = vstv %s6940_s1 }
 0x34f   : > { %6941 = sst [smem:[#allocation85_spill]] %s5538_s24  ;;  %v1698_v47 = vmul.f32 %v5349_v14, %v1697_v5  ;;  %v1863_v5 = vstv %s5424_s30 }
 0x350   : > { %s6946_s24 = sld [smem:[#allocation38_spill]]  ;;  %v1667_v63 = vstv %s6942_s16 }
 0x351   : > { %6943 = sst [smem:[#allocation88_spill]] %s5543_s6  ;;  %v1668_v18 = vmul.f32 %v5377_v51, %v1667_v63 }
 0x352   : > { %s6947_s23 = sld [smem:[#allocation42_spill]] }
 0x353   : > { %6944 = sst [smem:[#allocation82_spill]] %s5551_s12  ;;  %v1669_v30 = vadd.f32 %v1668_v18, %v1665_v46 }
 0x354   : > { %s5559_s29 = sld [smem:[#allocation2 + $0x79]]  ;;  %v1676_v28 = vstv %s6945_s15 }
 0x355   : > { %s6949_s14 = sld [smem:[#allocation34_spill]]  ;;  %v1680_v21 = vadd.f32 %v1679_v10, %v1676_v28 }
 0x356   : > { %s6950_s0 = sld [smem:[#allocation44_spill]]  ;;  %v1682_v36 = vstv %s6946_s24 }
 0x357   : > { %s6951_s13 = sld [smem:[#allocation49_spill]]  ;;  %v1683_v61 = vmul.f32 %v5362_v39, %v1682_v36 }
 0x358   : > { %s5563_s12 = sld [smem:[#allocation2 + $0x7a]]  ;;  %v1716_v16 = vstv %s6947_s23 }
 0x359   : > { %s6953_s6 = sld [smem:[#allocation40_spill]]  ;;  %v1717_v37 = vmul.f32 %v5349_v14, %v1716_v16  ;;  %v1684_v40 = vadd.f32 %v1683_v61, %v1680_v21  ;;  %v1864_v16 = vmul.f32 %v1863_v5, %v5523_v24  ;;  %v5648_v21 = vmax.f32 %v5555_v57, 0.0 }
 0x35a   : > { %6948 = sst [smem:[#allocation81_spill]] %s5559_s29  ;;  %v5650_v61 = vmax.f32 %v1654_v41, 0.0  ;;  %v1817_v41 = vmul.f32 %v1816_v19, %v5553_v55 }
 0x35b   : > { %s5568_s1 = sld [smem:[#allocation2 + $0x7b]]  ;;  %v1671_v58 = vstv %s6949_s14 }
 0x35c   : > { %s5574_s16 = sld [smem:[#allocation2 + $0x7c]]  ;;  %v1695_v20 = vstv %s6950_s0  ;;  %v1672_v54 = vmul.f32 %v5394_v34, %v1671_v58  ;;  %v1810_v58 = vadd.f32 %v1809_v52, %v1806_v42  ;;  %v1824_v52 = vstv %s5381_s18 }
 0x35d   : > { %s6955_s29 = sld [smem:[#allocation64_spill]]  ;;  %v1701_v43 = vstv %s6951_s13  ;;  %v1699_v9 = vadd.f32 %v1698_v47, %v1695_v20  ;;  %v1861_v47 = vadd.f32 %v1860_v38, %v1857_v7  ;;  %v1813_v20 = vmul.f32 %v1812_v48, %v5547_v45 }
 0x35e   : > { %6952 = sst [smem:[#allocation36_spill]] %s5563_s12  ;;  %v1702_v23 = vmul.f32 %v5362_v39, %v1701_v43  ;;  %v1673_v1 = vadd.f32 %v1672_v54, %v1669_v30  ;;  %v1867_v43 = vstv %s5432_s20 }
 0x35f   : > { %s6954_s12 = sld [smem:[#allocation50_spill]]  ;;  %v1686_v32 = vstv %s6953_s6  ;;  %v1814_v57 = vadd.f32 %v1813_v20, %v1810_v58 }
 0x360   : > { %s5580_s22 = sld [smem:[#allocation2 + $0x7d]]  ;;  %v1687_v8 = vmul.f32 %v5377_v51, %v1686_v32  ;;  %v1703_v25 = vadd.f32 %v1702_v23, %v1699_v9 }
 0x361   : > { %s6956_s4 = sld [smem:[#allocation46_spill]] }
 0x362   : > { %s5584_s24 = sld [smem:[#allocation2 + $0x7e]]  ;;  %v1688_v62 = vadd.f32 %v1687_v8, %v1684_v40  ;;  %v1871_v8 = vstv %s5437_s25 }
 0x363   : > { %s6958_s15 = sld [smem:[#allocation33_spill]]  ;;  %v1720_v29 = vstv %s6955_s29 }
 0x364   : > { %s5589_s23 = sld [smem:[#allocation2 + $0x7f]]  ;;  %v1721_v59 = vmul.f32 %v5362_v39, %v1720_v29  ;;  %v1868_v29 = vmul.f32 %v1867_v43, %v5525_v4 }
 0x365   : > { %v1714_v27 = vstv %s6954_s12  ;;  %s5594_s6 = sld [smem:[#allocation2 + $0x113]] }
 0x366   : > { %s5599_s14 = sld [smem:[#allocation2 + $0x80]]  ;;  %v1718_v50 = vadd.f32 %v1717_v37, %v1714_v27  ;;  %v1865_v27 = vadd.f32 %v1864_v16, %v1861_v47  ;;  %v1879_v47 = vstv %s5447_s19 }
 0x367   : > { %v1705_v31 = vstv %s6956_s4  ;;  %s6960_s5 = sld [smem:[#allocation53_spill]] }
 0x368   : > { %6957 = sst [smem:[#allocation29_spill]] %s5584_s24  ;;  %v1706_v35 = vmul.f32 %v5377_v51, %v1705_v31  ;;  %v1722_v63 = vadd.f32 %v1721_v59, %v1718_v50  ;;  %v5664_v31 = vmax.f32 %v1673_v1, 0.0  ;;  %v1926_v59 = vstv %s5505_s11 }
 0x369   : > { %v1690_v11 = vstv %s6958_s15  ;;  %s6961_s0 = sld [smem:[#allocation52_spill]]  ;;  %v1927_v7 = vmul.f32 %v1926_v59, %v5512_v49 }
 0x36a   : > { %6959 = sst [smem:[#allocation32_spill]] %s5589_s23  ;;  %v1691_v3 = vmul.f32 %v5394_v34, %v1690_v11  ;;  %v1707_v2 = vadd.f32 %v1706_v35, %v1703_v25  ;;  %v1726_v32 = vadd.f32 %v1725_v60, %v1722_v63  ;;  %v1869_v25 = vadd.f32 %v1868_v29, %v1865_v27 }
 0x36b   : > { %s5604_s12 = sld [smem:[#allocation2 + $0x81]]  ;;  %v1872_v35 = vmul.f32 %v1871_v8, %v5529_v56  ;;  %v1924_v63 = vstv %s5501_s21  ;;  %v1930_v60 = vstv %s5509_s7 }
 0x36c   : > { %s5608_s29 = sld [smem:[#allocation2 + $0x82]]  ;;  %v1692_v46 = vadd.f32 %v1691_v3, %v1688_v62  ;;  %v1818_v3 = vadd.f32 %v1817_v41, %v1814_v57  ;;  %v1928_v58 = vadd.f32 %v1927_v7, %v1924_v63  ;;  %v1931_v20 = vmul.f32 %v1930_v60, %v5523_v24 }
 0x36d   : > { %s5612_s13 = sld [smem:[#allocation2 + $0x83]]  ;;  %v1709_v0 = vstv %s6960_s5 }
 0x36e   : > { %s6962_s28 = sld [smem:[#allocation48_spill]]  ;;  %v1710_v10 = vmul.f32 %v5394_v34, %v1709_v0  ;;  %v5666_v11 = vmax.f32 %v1692_v46, 0.0  ;;  %v1821_v0 = vmul.f32 %v1820_v33, %v5648_v21  ;;  %v1932_v41 = vadd.f32 %v1931_v20, %v1928_v58 }
 0x36f   : > { %v1735_v6 = vstv %s6961_s0  ;;  %s5618_s4 = sld [smem:[#allocation2 + $0x84]] }
 0x370   : > { %s6963_s2 = sld [smem:[#allocation51_spill]]  ;;  %v1736_v28 = vmul.f32 %v5349_v14, %v1735_v6  ;;  %v1711_v37 = vadd.f32 %v1710_v10, %v1707_v2  ;;  %v1875_v6 = vstv %s5442_s9  ;;  %v1873_v2 = vadd.f32 %v1872_v35, %v1869_v25 }
 0x371   : > { %s5623_s15 = sld [smem:[#allocation2 + $0x85]]  ;;  %v1876_v10 = vmul.f32 %v1875_v6, %v5545_v44  ;;  %v1993_v25 = vstv %s5599_s14 }
 0x372   : > { %s6964_s27 = sld [smem:[#allocation47_spill]]  ;;  %v5671_v22 = vmax.f32 %v1711_v37, 0.0 }
 0x373   : > { %s5627_s5 = sld [smem:[#allocation2 + $0x86]] }
 0x374   : > { %v1728_v15 = vstv %s6962_s28  ;;  %s5631_s0 = sld [smem:[#allocation2 + $0x87]] }
 0x375   : > { %s5636_s26 = sld [smem:[#allocation2 + $0x88]]  ;;  %v1729_v12 = vmul.f32 %v5394_v34, %v1728_v15 }
 0x376   : > { %v1739_v36 = vstv %s6963_s2  ;;  %s6965_s17 = sld [smem:[#allocation54_spill]] }
 0x377   : > { %s5641_s30 = sld [smem:[#allocation2 + $0x89]]  ;;  %v1740_v53 = vmul.f32 %v5362_v39, %v1739_v36  ;;  %v1730_v17 = vadd.f32 %v1729_v12, %v1726_v32  ;;  %v1825_v36 = vmul.f32 %v1824_v52, %v5650_v61 }
 0x378   : > { %v1733_v18 = vstv %s6964_s27  ;;  %s6967_s23 = sld [smem:[#allocation59_spill]] }
 0x379   : > { %s5645_s28 = sld [smem:[#allocation2 + $0x8a]]  ;;  %v1737_v9 = vadd.f32 %v1736_v28, %v1733_v18  ;;  %v5687_v38 = vmax.f32 %v1730_v17, 0.0  ;;  %v1822_v28 = vadd.f32 %v1821_v0, %v1818_v3  ;;  %v1828_v18 = vstv %s5385_s10 }
 0x37a   : > { %s5653_s20 = sld [smem:[#allocation2 + $0x8b]]  ;;  %v1829_v27 = vmul.f32 %v1828_v18, %v5664_v31 }
 0x37b   : > { %s6970_s2 = sld [smem:[#allocation55_spill]]  ;;  %v1741_v13 = vadd.f32 %v1740_v53, %v1737_v9  ;;  %v1880_v53 = vmul.f32 %v1879_v47, %v5547_v45 }
 0x37c   : > { %v1743_v23 = vstv %s6965_s17  ;;  %s5657_s8 = sld [smem:[#allocation2 + $0x8c]] }
 0x37d   : > { %6966 = sst [smem:[#allocation30_spill]] %s5641_s30  ;;  %v1744_v40 = vmul.f32 %v5377_v51, %v1743_v23  ;;  %v1826_v23 = vadd.f32 %v1825_v36, %v1822_v28 }
 0x37e   : > { %v1747_v54 = vstv %s6967_s23  ;;  %s5662_s27 = sld [smem:[#allocation2 + $0x8d]] }
 0x37f   : > { %6968 = sst [smem:[#allocation89_spill]] %s5645_s28  ;;  %v1748_v30 = vmul.f32 %v5394_v34, %v1747_v54  ;;  %v1745_v48 = vadd.f32 %v1744_v40, %v1741_v13 }
 0x380   : > { %6969 = sst [smem:[#allocation28_spill]] %s5653_s20 }
 0x381   : > { %s6973_s28 = sld [smem:[#allocation61_spill]]  ;;  %v1754_v50 = vstv %s6970_s2  ;;  %v1749_v8 = vadd.f32 %v1748_v30, %v1745_v48  ;;  %v1991_v48 = vstv %s5594_s6 }
 0x382   : > { %6971 = sst [smem:[#allocation90_spill]] %s5657_s8  ;;  %v1755_v42 = vmul.f32 %v5349_v14, %v1754_v50 }
 0x383   : > { %s5669_s17 = sld [smem:[#allocation2 + $0x8e]] }
 0x384   : > { %6972 = sst [smem:[#allocation31_spill]] %s5662_s27 }
 0x385   : > { %s5676_s25 = sld [smem:[#allocation2 + $0x8f]] }
 0x386   : > { %s6976_s23 = sld [smem:[#allocation56_spill]] }
 0x387   : > { %s6977_s27 = sld [smem:[#allocation68_spill]]  ;;  %v1752_v26 = vstv %s6973_s28 }
 0x388   : > { %s5680_s3 = sld [smem:[#allocation2 + $0x114]]  ;;  %v1756_v43 = vadd.f32 %v1755_v42, %v1752_v26  ;;  %v1830_v26 = vadd.f32 %v1829_v27, %v1826_v23 }
 0x389   : > { %6974 = sst [smem:[#allocation43_spill]] %s5669_s17 }
 0x38a   : > { %s6978_s17 = sld [smem:[#allocation58_spill]] }
 0x38b   : > { %6975 = sst [smem:[#allocation91_spill]] %s5676_s25 }
 0x38c   : > { %s5685_s11 = sld [smem:[#allocation2 + $0x90]]  ;;  %v1758_v5 = vstv %s6976_s23 }
 0x38d   : > { %s6979_s2 = sld [smem:[#allocation57_spill]]  ;;  %v1773_v62 = vstv %s6977_s27  ;;  %v1759_v46 = vmul.f32 %v5362_v39, %v1758_v5 }
 0x38e   : > { %s5692_s25 = sld [smem:[#allocation2 + $0x91]]  ;;  %v1774_v16 = vmul.f32 %v5349_v14, %v1773_v62  ;;  %v1877_v14 = vadd.f32 %v1876_v10, %v1873_v2  ;;  %v1994_v62 = vmul.f32 %v1993_v25, %v5512_v49 }
 0x38f   : > { %s5698_s28 = sld [smem:[#allocation2 + $0x92]]  ;;  %v1760_v17 = vadd.f32 %v1759_v46, %v1756_v43 }
 0x390   : > { %v1762_v1 = vstv %s6978_s17  ;;  %s6980_s9 = sld [smem:[#allocation67_spill]]  ;;  %v1881_v59 = vadd.f32 %v1880_v53, %v1877_v14  ;;  %v1995_v43 = vadd.f32 %v1994_v62, %v1991_v48 }
 0x391   : > { %s6981_s8 = sld [smem:[#allocation75_spill]]  ;;  %v1763_v19 = vmul.f32 %v5377_v51, %v1762_v1  ;;  %v1997_v1 = vstv %s5604_s12 }
 0x392   : > { %s5702_s18 = sld [smem:[#allocation2 + $0x93]] }
 0x393   : > { %v1777_v15 = vstv %s6979_s2  ;;  %s5707_s23 = sld [smem:[#allocation2 + $0x94]]  ;;  %v1764_v52 = vadd.f32 %v1763_v19, %v1760_v17  ;;  %v5778_v19 = vmax.f32 %v1749_v8, 0.0 }
 0x394   : > { %s6982_s21 = sld [smem:[#allocation63_spill]]  ;;  %v1778_v37 = vmul.f32 %v5362_v39, %v1777_v15 }
 0x395   : > { %s6983_s7 = sld [smem:[#allocation26_spill]] }
 0x396   : > { %s5712_s27 = sld [smem:[#allocation2 + $0x95]]  ;;  %v1771_v32 = vstv %s6980_s9 }
 0x397   : > { %s6984_s17 = sld [smem:[#allocation65_spill]]  ;;  %v1934_v12 = vstv %s6981_s8  ;;  %v1775_v54 = vadd.f32 %v1774_v16, %v1771_v32 }
 0x398   : > { %s5717_s2 = sld [smem:[#allocation2 + $0x96]]  ;;  %v1935_v39 = vmul.f32 %v1934_v12, %v5525_v4  ;;  %v2001_v12 = vstv %s5608_s29 }
 0x399   : > { %s6986_s19 = sld [smem:[#allocation60_spill]]  ;;  %v1779_v0 = vadd.f32 %v1778_v37, %v1775_v54 }
 0x39a   : > { %s6987_s10 = sld [smem:[#allocation78_spill]]  ;;  %v1781_v9 = vstv %s6982_s21  ;;  %v1936_v42 = vadd.f32 %v1935_v39, %v1932_v41  ;;  %v2002_v39 = vmul.f32 %v2001_v12, %v5525_v4 }
 0x39b   : > { %s5722_s20 = sld [smem:[#allocation2 + $0x97]]  ;;  %v1883_v29 = vstv %s6983_s7  ;;  %v1782_v50 = vmul.f32 %v5377_v51, %v1781_v9 }
 0x39c   : > { %s5727_s8 = sld [smem:[#allocation2 + $0x98]]  ;;  %v1884_v13 = vmul.f32 %v1883_v29, %v5553_v55 }
 0x39d   : > { %s6989_s9 = sld [smem:[#allocation69_spill]]  ;;  %v1832_v57 = vstv %s6984_s17  ;;  %v1783_v36 = vadd.f32 %v1782_v50, %v1779_v0 }
 0x39e   : > { %6985 = sst [smem:[#allocation41_spill]] %s5717_s2  ;;  %v1833_v30 = vmul.f32 %v1832_v57, %v5666_v11  ;;  %v1885_v63 = vadd.f32 %v1884_v13, %v1881_v59 }
 0x39f   : > { %s6990_s2 = sld [smem:[#allocation27_spill]]  ;;  %v1766_v33 = vstv %s6986_s19 }
 0x3a0   : > { %s5731_s30 = sld [smem:[#allocation2 + $0x99]]  ;;  %v1938_v40 = vstv %s6987_s10  ;;  %v1767_v7 = vmul.f32 %v5394_v34, %v1766_v33  ;;  %v1834_v10 = vadd.f32 %v1833_v30, %v1830_v26  ;;  %v2060_v30 = vstv %s5685_s11 }
 0x3a1   : > { %s6992_s24 = sld [smem:[#allocation62_spill]]  ;;  %v1939_v51 = vmul.f32 %v1938_v40, %v5529_v56  ;;  %v2005_v40 = vstv %s5612_s13  ;;  %v2061_v48 = vmul.f32 %v2060_v30, %v5512_v49 }
 0x3a2   : > { %6988 = sst [smem:[#allocation45_spill]] %s5727_s8  ;;  %v1768_v58 = vadd.f32 %v1767_v7, %v1764_v52 }
 0x3a3   : > { %s5735_s21 = sld [smem:[#allocation2 + $0x9a]]  ;;  %v1785_v35 = vstv %s6989_s9  ;;  %v1940_v16 = vadd.f32 %v1939_v51, %v1936_v42  ;;  %v2006_v42 = vmul.f32 %v2005_v40, %v5529_v56 }
 0x3a4   : > { %s6994_s7 = sld [smem:[#allocation86_spill]]  ;;  %v1786_v2 = vmul.f32 %v5394_v34, %v1785_v35  ;;  %v1998_v34 = vmul.f32 %v1997_v1, %v5523_v24  ;;  %v5788_v54 = vmax.f32 %v1768_v58, 0.0 }
 0x3a5   : > { %s5740_s17 = sld [smem:[#allocation2 + $0x9b]]  ;;  %v1887_v3 = vstv %s6990_s2 }
 0x3a6   : > { %6991 = sst [smem:[#allocation37_spill]] %s5731_s30  ;;  %v1888_v60 = vmul.f32 %v1887_v3, %v5648_v21  ;;  %v1787_v9 = vadd.f32 %v1786_v2, %v1783_v36  ;;  %v1999_v41 = vadd.f32 %v1998_v34, %v1995_v43  ;;  %v2013_v43 = vstv %s5623_s15 }
 0x3a7   : > { %s5745_s19 = sld [smem:[#allocation2 + $0x9c]]  ;;  %v1836_v6 = vstv %s6992_s24 }
 0x3a8   : > { %s6997_s10 = sld [smem:[#allocation74_spill]]  ;;  %v1837_v15 = vmul.f32 %v1836_v6, %v5671_v22  ;;  %v1889_v46 = vadd.f32 %v1888_v60, %v1885_v63  ;;  %v5803_v25 = vmax.f32 %v1787_v9, 0.0  ;;  %v2003_v6 = vadd.f32 %v2002_v39, %v1999_v41 }
 0x3a9   : > { %6993 = sst [smem:[#allocation92_spill]] %s5735_s21  ;;  %v2068_v9 = vstv %s5698_s28 }
 0x3aa   : > { %s5749_s21 = sld [smem:[#allocation2 + $0x9d]]  ;;  %v1942_v5 = vstv %s6994_s7  ;;  %v1838_v37 = vadd.f32 %v1837_v15, %v1834_v10  ;;  %v2058_v10 = vstv %s5680_s3  ;;  %v2064_v15 = vstv %s5692_s25 }
 0x3ab   : > { %6995 = sst [smem:[#allocation35_spill]] %s5740_s17  ;;  %v1943_v18 = vmul.f32 %v1942_v5, %v5545_v44  ;;  %v2009_v5 = vstv %s5618_s4  ;;  %v2065_v12 = vmul.f32 %v2064_v15, %v5523_v24 }
 0x3ac   : > { %s6999_s14 = sld [smem:[#allocation66_spill]] }
 0x3ad   : > { %6996 = sst [smem:[#allocation38_spill]] %s5745_s19  ;;  %v1944_v27 = vadd.f32 %v1943_v18, %v1940_v16  ;;  %v2010_v16 = vmul.f32 %v2009_v5, %v5545_v44  ;;  %v2021_v5 = vstv %s5631_s0 }
 0x3ae   : > { %s5754_s9 = sld [smem:[#allocation2 + $0x9e]]  ;;  %v1891_v28 = vstv %s6997_s10 }
 0x3af   : > { %s7001_s2 = sld [smem:[#allocation80_spill]]  ;;  %v1892_v32 = vmul.f32 %v1891_v28, %v5650_v61 }
 0x3b0   : > { %6998 = sst [smem:[#allocation42_spill]] %s5749_s21 }
 0x3b1   : > { %s5759_s24 = sld [smem:[#allocation2 + $0x9f]]  ;;  %v1893_v17 = vadd.f32 %v1892_v32, %v1889_v46  ;;  %v2062_v32 = vadd.f32 %v2061_v48, %v2058_v10 }
 0x3b2   : > { %s5764_s7 = sld [smem:[#allocation2 + $0x115]]  ;;  %v1840_v47 = vstv %s6999_s14 }
 0x3b3   : > { %s5768_s21 = sld [smem:[#allocation2 + $0xa0]]  ;;  %v1841_v14 = vmul.f32 %v1840_v47, %v5687_v38  ;;  %v2007_v47 = vadd.f32 %v2006_v42, %v2003_v6 }
 0x3b4   : > { %7000 = sst [smem:[#allocation34_spill]] %s5754_s9 }
 0x3b5   : > { %s7003_s9 = sld [smem:[#allocation77_spill]]  ;;  %v1946_v20 = vstv %s7001_s2  ;;  %v1842_v50 = vadd.f32 %v1841_v14, %v1838_v37 }
 0x3b6   : > { %s7004_s6 = sld [smem:[#allocation72_spill]]  ;;  %v1947_v29 = vmul.f32 %v1946_v20, %v5547_v45 }
 0x3b7   : > { %7002 = sst [smem:[#allocation44_spill]] %s5759_s24 }
 0x3b8   : > { %s5772_s12 = sld [smem:[#allocation2 + $0xa1]]  ;;  %v1948_v35 = vadd.f32 %v1947_v29, %v1944_v27  ;;  %v2011_v27 = vadd.f32 %v2010_v16, %v2007_v47  ;;  %v2014_v29 = vmul.f32 %v2013_v43, %v5547_v45  ;;  %v2125_v6 = vstv %s5764_s7 }
 0x3b9   : > { %s7005_s24 = sld [smem:[#allocation85_spill]]  ;;  %v2022_v47 = vmul.f32 %v2021_v5, %v5648_v21  ;;  %v2025_v43 = vstv %s5636_s26 }
 0x3ba   : > { %s5776_s10 = sld [smem:[#allocation2 + $0xa2]] }
 0x3bb   : > { %s7006_s14 = sld [smem:[#allocation70_spill]]  ;;  %v1895_v53 = vstv %s7003_s9 }
 0x3bc   : > { %s5782_s2 = sld [smem:[#allocation2 + $0xa3]]  ;;  %v1844_v23 = vstv %s7004_s6  ;;  %v1896_v33 = vmul.f32 %v1895_v53, %v5664_v31 }
 0x3bd   : > { %s7007_s19 = sld [smem:[#allocation76_spill]]  ;;  %v1845_v59 = vmul.f32 %v1844_v23, %v5778_v19 }
 0x3be   : > { %s5786_s17 = sld [smem:[#allocation2 + $0xa4]]  ;;  %v1897_v52 = vadd.f32 %v1896_v33, %v1893_v17  ;;  %v2017_v17 = vstv %s5627_s5  ;;  %v2131_v42 = vstv %s5772_s12 }
 0x3bf   : > { %v1950_v57 = vstv %s7005_s24  ;;  %s5792_s29 = sld [smem:[#allocation2 + $0xa5]]  ;;  %v1846_v62 = vadd.f32 %v1845_v59, %v1842_v50  ;;  %v2066_v50 = vadd.f32 %v2065_v12, %v2062_v32  ;;  %v2069_v59 = vmul.f32 %v2068_v9, %v5525_v4 }
 0x3c0   : > { %s7009_s9 = sld [smem:[#allocation88_spill]]  ;;  %v1951_v26 = vmul.f32 %v1950_v57, %v5553_v55  ;;  %v2127_v57 = vstv %s5768_s21  ;;  %v2132_v15 = vmul.f32 %v2131_v42, %v5523_v24  ;;  %v2135_v16 = vstv %s5776_s10 }
 0x3c1   : > { %v1848_v8 = vstv %s7006_s14  ;;  %s7010_s6 = sld [smem:[#allocation73_spill]]  ;;  %v2128_v30 = vmul.f32 %v2127_v57, %v5512_v49  ;;  %v2136_v9 = vmul.f32 %v2135_v16, %v5525_v4 }
 0x3c2   : > { %s5797_s30 = sld [smem:[#allocation2 + $0xa6]]  ;;  %v1849_v3 = vmul.f32 %v1848_v8, %v5788_v54  ;;  %v1952_v1 = vadd.f32 %v1951_v26, %v1948_v35  ;;  %v2072_v26 = vstv %s5702_s18  ;;  %v2139_v57 = vstv %s5782_s2 }
 0x3c3   : > { %v1899_v13 = vstv %s7007_s19  ;;  %s5801_s24 = sld [smem:[#allocation2 + $0xa7]]  ;;  %v2073_v48 = vmul.f32 %v2072_v26, %v5529_v56  ;;  %v2129_v10 = vadd.f32 %v2128_v30, %v2125_v6 }
 0x3c4   : > { %s7012_s8 = sld [smem:[#allocation79_spill]]  ;;  %v1900_v7 = vmul.f32 %v1899_v13, %v5666_v11  ;;  %v1850_v37 = vadd.f32 %v1849_v3, %v1846_v62  ;;  %v2015_v3 = vadd.f32 %v2014_v29, %v2011_v27  ;;  %v1970_v62 = vstv %s5568_s1 }
 0x3c5   : > { %7008 = sst [smem:[#allocation49_spill]] %s5792_s29  ;;  %v2026_v29 = vmul.f32 %v2025_v43, %v5650_v61  ;;  %v2143_v42 = vstv %s5786_s17 }
 0x3c6   : > { %s7013_s14 = sld [smem:[#allocation83_spill]]  ;;  %v1954_v0 = vstv %s7009_s9  ;;  %v1901_v18 = vadd.f32 %v1900_v7, %v1897_v52 }
 0x3c7   : > { %s5807_s29 = sld [smem:[#allocation2 + $0xa8]]  ;;  %v1852_v51 = vstv %s7010_s6  ;;  %v1955_v2 = vmul.f32 %v1954_v0, %v5648_v21  ;;  %v2018_v0 = vmul.f32 %v2017_v17, %v5553_v55 }
 0x3c8   : > { %s5812_s13 = sld [smem:[#allocation2 + $0xa9]]  ;;  %v1853_v28 = vmul.f32 %v1852_v51, %v5803_v25 }
 0x3c9   : > { %7011 = sst [smem:[#allocation40_spill]] %s5801_s24  ;;  %v1956_v14 = vadd.f32 %v1955_v2, %v1952_v1  ;;  %v2076_v2 = vstv %s5707_s23 }
 0x3ca   : > { %s7015_s19 = sld [smem:[#allocation82_spill]]  ;;  %v1903_v63 = vstv %s7012_s8  ;;  %v1854_v51 = vadd.f32 %v1853_v28, %v1850_v37  ;;  %v2077_v32 = vmul.f32 %v2076_v2, %v5545_v44  ;;  %v2088_v2 = vstv %s5722_s20 }
 0x3cb   : > { %s5817_s24 = sld [smem:[#allocation2 + $0xaa]]  ;;  %v1904_v58 = vmul.f32 %v1903_v63, %v5671_v22  ;;  %v1974_v63 = vstv %s5574_s16 }
 0x3cc   : > { %v1907_v60 = vstv %s7013_s14  ;;  %s5822_s11 = sld [smem:[#allocation2 + $0xab]] }
 0x3cd   : > { %s7016_s9 = sld [smem:[#allocation84_spill]]  ;;  %v1908_v20 = vmul.f32 %v1907_v60, %v5687_v38  ;;  %v1905_v41 = vadd.f32 %v1904_v58, %v1901_v18  ;;  %v2070_v60 = vadd.f32 %v2069_v59, %v2066_v50  ;;  %v5891_v18 = vmax.f32 %v1854_v51, 0.0 }
 0x3ce   : > { %7014 = sst [smem:[#allocation50_spill]] %s5812_s13 }
 0x3cf   : > { %s7017_s13 = sld [smem:[#allocation87_spill]]  ;;  %v1909_v52 = vadd.f32 %v1908_v20, %v1905_v41  ;;  %v1971_v20 = vmul.f32 %v1970_v62, %v5671_v22 }
 0x3d0   : > { %s5827_s6 = sld [smem:[#allocation2 + $0xac]]  ;;  %v1958_v36 = vstv %s7015_s19 }
 0x3d1   : > { %s5832_s4 = sld [smem:[#allocation2 + $0xad]]  ;;  %v1959_v53 = vmul.f32 %v1958_v36, %v5650_v61  ;;  %v2019_v36 = vadd.f32 %v2018_v0, %v2015_v3 }
 0x3d2   : > { %s7019_s8 = sld [smem:[#allocation81_spill]] }
 0x3d3   : > { %s5837_s25 = sld [smem:[#allocation2 + $0xae]]  ;;  %v1911_v34 = vstv %s7016_s9  ;;  %v1960_v13 = vadd.f32 %v1959_v53, %v1956_v14  ;;  %v2080_v14 = vstv %s5712_s27  ;;  %v2133_v53 = vadd.f32 %v2132_v15, %v2129_v10 }
 0x3d4   : > { %s5842_s3 = sld [smem:[#allocation2 + $0xaf]]  ;;  %v1912_v39 = vmul.f32 %v1911_v34, %v5778_v19  ;;  %v1975_v34 = vmul.f32 %v1974_v63, %v5687_v38  ;;  %v2023_v27 = vadd.f32 %v2022_v47, %v2019_v36  ;;  %v2081_v50 = vmul.f32 %v2080_v14, %v5547_v45 }
 0x3d5   : > { %v1915_v46 = vstv %s7017_s13  ;;  %s7020_s14 = sld [smem:[#allocation39_spill]]  ;;  %v2137_v30 = vadd.f32 %v2136_v9, %v2133_v53  ;;  %v2144_v15 = vmul.f32 %v2143_v42, %v5545_v44 }
 0x3d6   : > { %s7021_s19 = sld [smem:[#allocation36_spill]]  ;;  %v1916_v8 = vmul.f32 %v1915_v46, %v5788_v54  ;;  %v1913_v58 = vadd.f32 %v1912_v39, %v1909_v52  ;;  %v2074_v46 = vadd.f32 %v2073_v48, %v2070_v60  ;;  %v2027_v0 = vadd.f32 %v2026_v29, %v2023_v27 }
 0x3d7   : > { %7018 = sst [smem:[#allocation64_spill]] %s5832_s4 }
 0x3d8   : > { %s5846_s4 = sld [smem:[#allocation2 + $0x116]]  ;;  %v1962_v23 = vstv %s7019_s8  ;;  %v1917_v41 = vadd.f32 %v1916_v8, %v1913_v58  ;;  %v2140_v8 = vmul.f32 %v2139_v57, %v5529_v56 }
 0x3d9   : > { %s5851_s15 = sld [smem:[#allocation2 + $0xb0]]  ;;  %v1963_v35 = vmul.f32 %v1962_v23, %v5664_v31  ;;  %v1978_v23 = vstv %s5580_s22 }
 0x3da   : > { %s5856_s13 = sld [smem:[#allocation2 + $0xb1]]  ;;  %v1979_v3 = vmul.f32 %v1978_v23, %v5778_v19  ;;  %v2141_v10 = vadd.f32 %v2140_v8, %v2137_v30 }
 0x3db   : > { %v1919_v33 = vstv %s7020_s14  ;;  %s5861_s28 = sld [smem:[#allocation2 + $0xb2]]  ;;  %v1964_v1 = vadd.f32 %v1963_v35, %v1960_v13 }
 0x3dc   : > { %v1966_v40 = vstv %s7021_s19  ;;  %s5866_s21 = sld [smem:[#allocation2 + $0xb3]]  ;;  %v1920_v28 = vmul.f32 %v1919_v33, %v5803_v25  ;;  %v2145_v9 = vadd.f32 %v2144_v15, %v2141_v10  ;;  %v2159_v15 = vstv %s5807_s29 }
 0x3dd   : > { %s5871_s5 = sld [smem:[#allocation2 + $0xb4]]  ;;  %v1967_v7 = vmul.f32 %v1966_v40, %v5666_v11  ;;  %v2078_v40 = vadd.f32 %v2077_v32, %v2074_v46 }
 0x3de   : > { %s5875_s9 = sld [smem:[#allocation2 + $0xb5]]  ;;  %v2192_v59 = vstv %s5846_s4  ;;  %v1921_v36 = vadd.f32 %v1920_v28, %v1917_v41  ;;  %v2089_v28 = vmul.f32 %v2088_v2, %v5648_v21  ;;  %v2151_v41 = vstv %s5797_s30 }
 0x3df   : > { %s5880_s18 = sld [smem:[#allocation2 + $0xb6]]  ;;  %v2194_v12 = vstv %s5851_s15  ;;  %v1968_v37 = vadd.f32 %v1967_v7, %v1964_v1  ;;  %v2082_v63 = vadd.f32 %v2081_v50, %v2078_v40 }
 0x3e0   : > { %s5884_s7 = sld [smem:[#allocation2 + $0xb7]]  ;;  %v2195_v33 = vmul.f32 %v2194_v12, %v5512_v49  ;;  %v2198_v13 = vstv %s5856_s13  ;;  %v5962_v27 = vmax.f32 %v1921_v36, 0.0 }
 0x3e1   : > { %s5889_s1 = sld [smem:[#allocation2 + $0xb8]]  ;;  %v1972_v35 = vadd.f32 %v1971_v20, %v1968_v37  ;;  %v2199_v5 = vmul.f32 %v2198_v13, %v5523_v24  ;;  %v2202_v48 = vstv %s5861_s28 }
 0x3e2   : > { %s5895_s16 = sld [smem:[#allocation2 + $0xb9]]  ;;  %v2196_v7 = vadd.f32 %v2195_v33, %v2192_v59  ;;  %v2206_v37 = vstv %s5866_s21 }
 0x3e3   : > { %s7022_s0 = sld [smem:[#allocation29_spill]]  ;;  %v1976_v1 = vadd.f32 %v1975_v34, %v1972_v35  ;;  %v2203_v34 = vmul.f32 %v2202_v48, %v5525_v4  ;;  %v2207_v40 = vmul.f32 %v2206_v37, %v5529_v56  ;;  %v2210_v35 = vstv %s5871_s5 }
 0x3e4   : > { %s7023_s23 = sld [smem:[#allocation30_spill]]  ;;  %v2200_v46 = vadd.f32 %v2199_v5, %v2196_v7 }
 0x3e5   : > { %s5900_s12 = sld [smem:[#allocation2 + $0xba]]  ;;  %v1980_v14 = vadd.f32 %v1979_v3, %v1976_v1  ;;  %v2152_v3 = vmul.f32 %v2151_v41, %v5553_v55  ;;  %v2214_v1 = vstv %s5875_s9 }
 0x3e6   : > { %s5904_s26 = sld [smem:[#allocation2 + $0xbb]]  ;;  %v2204_v33 = vadd.f32 %v2203_v34, %v2200_v46 }
 0x3e7   : > { %s7024_s10 = sld [smem:[#allocation41_spill]] }
 0x3e8   : > { %s5909_s8 = sld [smem:[#allocation2 + $0xbc]] }
 0x3e9   : > { %v1982_v39 = vstv %s7022_s0  ;;  %s5914_s27 = sld [smem:[#allocation2 + $0xbd]] }
 0x3ea   : > { %v2029_v17 = vstv %s7023_s23  ;;  %s7027_s14 = sld [smem:[#allocation89_spill]]  ;;  %v1983_v51 = vmul.f32 %v1982_v39, %v5788_v54 }
 0x3eb   : > { %s5919_s22 = sld [smem:[#allocation2 + $0xbe]]  ;;  %v2030_v6 = vmul.f32 %v2029_v17, %v5664_v31 }
 0x3ec   : > { %s7029_s19 = sld [smem:[#allocation32_spill]] }
 0x3ed   : > { %v2084_v26 = vstv %s7024_s10  ;;  %s5923_s2 = sld [smem:[#allocation2 + $0xbf]]  ;;  %v2031_v47 = vadd.f32 %v2030_v6, %v2027_v0 }
 0x3ee   : > { %7025 = sst [smem:[#allocation46_spill]] %s5909_s8  ;;  %v2085_v60 = vmul.f32 %v2084_v26, %v5553_v55  ;;  %v1984_v26 = vadd.f32 %v1983_v51, %v1980_v14  ;;  %v2208_v51 = vadd.f32 %v2207_v40, %v2204_v33  ;;  %v2160_v14 = vmul.f32 %v2159_v15, %v5650_v61 }
 0x3ef   : > { %7026 = sst [smem:[#allocation33_spill]] %s5914_s27 }
 0x3f0   : > { %s5928_s4 = sld [smem:[#allocation2 + $0x117]]  ;;  %v2033_v52 = vstv %s7027_s14  ;;  %v2086_v12 = vadd.f32 %v2085_v60, %v2082_v63 }
 0x3f1   : > { %7028 = sst [smem:[#allocation53_spill]] %s5919_s22  ;;  %v2034_v16 = vmul.f32 %v2033_v52, %v5666_v11 }
 0x3f2   : > { %s7031_s15 = sld [smem:[#allocation49_spill]]  ;;  %v1986_v62 = vstv %s7029_s19  ;;  %v2090_v59 = vadd.f32 %v2089_v28, %v2086_v12  ;;  %v2215_v12 = vmul.f32 %v2214_v1, %v5547_v45 }
 0x3f3   : > { %7030 = sst [smem:[#allocation52_spill]] %s5923_s2  ;;  %v1987_v20 = vmul.f32 %v1986_v62, %v5803_v25  ;;  %v2035_v29 = vadd.f32 %v2034_v16, %v2031_v47  ;;  %v2211_v62 = vmul.f32 %v2210_v35, %v5545_v44 }
 0x3f4   : > { %s5933_s13 = sld [smem:[#allocation2 + $0xc0]] }
 0x3f5   : > { %s7032_s0 = sld [smem:[#allocation28_spill]]  ;;  %v1988_v47 = vadd.f32 %v1987_v20, %v1984_v26  ;;  %v2218_v20 = vstv %s5880_s18 }
 0x3f6   : > { %s5938_s23 = sld [smem:[#allocation2 + $0xc1]] }
 0x3f7   : > { %s7033_s17 = sld [smem:[#allocation90_spill]] }
 0x3f8   : > { %s5942_s10 = sld [smem:[#allocation2 + $0xc2]]  ;;  %v2147_v58 = vstv %s7031_s15 }
 0x3f9   : > { %s7034_s14 = sld [smem:[#allocation45_spill]]  ;;  %v2148_v23 = vmul.f32 %v2147_v58, %v5547_v45  ;;  %v2259_v58 = vstv %s5928_s4 }
 0x3fa   : > { %s5946_s19 = sld [smem:[#allocation2 + $0xc3]]  ;;  %v2261_v52 = vstv %s5933_s13 }
 0x3fb   : > { %v2037_v43 = vstv %s7032_s0  ;;  %s5951_s20 = sld [smem:[#allocation2 + $0xc4]]  ;;  %v2149_v8 = vadd.f32 %v2148_v23, %v2145_v9  ;;  %v2262_v36 = vmul.f32 %v2261_v52, %v5512_v49 }
 0x3fc   : > { %s7035_s28 = sld [smem:[#allocation31_spill]]  ;;  %v2038_v57 = vmul.f32 %v2037_v43, %v5671_v22  ;;  %v2265_v43 = vstv %s5938_s23 }
 0x3fd   : > { %v2041_v32 = vstv %s7033_s17  ;;  %s5956_s2 = sld [smem:[#allocation2 + $0xc5]]  ;;  %v2153_v2 = vadd.f32 %v2152_v3, %v2149_v8  ;;  %v2263_v23 = vadd.f32 %v2262_v36, %v2259_v58  ;;  %v2167_v3 = vstv %s5817_s24 }
 0x3fe   : > { %s7036_s15 = sld [smem:[#allocation43_spill]]  ;;  %v2042_v39 = vmul.f32 %v2041_v32, %v5687_v38  ;;  %v2039_v0 = vadd.f32 %v2038_v57, %v2035_v29  ;;  %v2212_v32 = vadd.f32 %v2211_v62, %v2208_v51  ;;  %v2266_v29 = vmul.f32 %v2265_v43, %v5523_v24 }
 0x3ff   : > { %v2092_v53 = vstv %s7034_s14  ;;  %s5960_s0 = sld [smem:[#allocation2 + $0xc6]]  ;;  %v6020_v57 = vmax.f32 %v1988_v47, 0.0  ;;  %v2171_v36 = vstv %s5822_s11 }
 0x400   : > { %s7037_s22 = sld [smem:[#allocation37_spill]]  ;;  %v2093_v13 = vmul.f32 %v2092_v53, %v5650_v61  ;;  %v2043_v16 = vadd.f32 %v2042_v39, %v2039_v0  ;;  %v2216_v40 = vadd.f32 %v2215_v12, %v2212_v32  ;;  %v2267_v0 = vadd.f32 %v2266_v29, %v2263_v23 }
 0x401   : > { %s5966_s17 = sld [smem:[#allocation2 + $0xc7]]  ;;  %v2277_v43 = vstv %s5951_s20  ;;  %v2175_v29 = vstv %s5827_s6 }
 0x402   : > { %v2045_v17 = vstv %s7035_s28  ;;  %s7038_s21 = sld [smem:[#allocation40_spill]]  ;;  %v2094_v63 = vadd.f32 %v2093_v13, %v2090_v59  ;;  %v2222_v59 = vstv %s5884_s7 }
 0x403   : > { %s5971_s14 = sld [smem:[#allocation2 + $0xc8]]  ;;  %v2046_v6 = vmul.f32 %v2045_v17, %v5778_v19  ;;  %v2269_v17 = vstv %s5942_s10  ;;  %v2223_v52 = vmul.f32 %v2222_v59, %v5648_v21 }
 0x404   : > { %v2049_v50 = vstv %s7036_s15  ;;  %s7039_s27 = sld [smem:[#allocation91_spill]] }
 0x405   : > { %s5976_s8 = sld [smem:[#allocation2 + $0xc9]]  ;;  %v2050_v7 = vmul.f32 %v2049_v50, %v5788_v54  ;;  %v2047_v41 = vadd.f32 %v2046_v6, %v2043_v16  ;;  %v2219_v50 = vmul.f32 %v2218_v20, %v5553_v55  ;;  %v2270_v6 = vmul.f32 %v2269_v17, %v5525_v4 }
 0x406   : > { %v2096_v30 = vstv %s7037_s22  ;;  %s7040_s30 = sld [smem:[#allocation92_spill]]  ;;  %v2278_v17 = vmul.f32 %v2277_v43, %v5545_v44 }
 0x407   : > { %s5980_s28 = sld [smem:[#allocation2 + $0xca]]  ;;  %v2097_v60 = vmul.f32 %v2096_v30, %v5664_v31  ;;  %v2220_v62 = vadd.f32 %v2219_v50, %v2216_v40  ;;  %v2271_v47 = vadd.f32 %v2270_v6, %v2267_v0  ;;  %v2281_v40 = vstv %s5956_s2 }
 0x408   : > { %v2155_v42 = vstv %s7038_s21  ;;  %s5985_s15 = sld [smem:[#allocation2 + $0xcb]]  ;;  %v2234_v0 = vstv %s5900_s12 }
 0x409   : > { %s5990_s5 = sld [smem:[#allocation2 + $0xcc]]  ;;  %v2156_v10 = vmul.f32 %v2155_v42, %v5648_v21  ;;  %v2098_v28 = vadd.f32 %v2097_v60, %v2094_v63  ;;  %v2051_v42 = vadd.f32 %v2050_v7, %v2047_v41  ;;  %v2226_v7 = vstv %s5889_s1 }
 0x40a   : > { %v2053_v5 = vstv %s7039_s27  ;;  %s7043_s22 = sld [smem:[#allocation35_spill]]  ;;  %v2224_v12 = vadd.f32 %v2223_v52, %v2220_v62  ;;  %v2285_v62 = vstv %s5960_s0 }
 0x40b   : > { %s5995_s21 = sld [smem:[#allocation2 + $0xcd]]  ;;  %v2157_v53 = vadd.f32 %v2156_v10, %v2153_v2  ;;  %v2054_v39 = vmul.f32 %v2053_v5, %v5803_v25  ;;  %v2273_v5 = vstv %s5946_s19  ;;  %v2168_v10 = vmul.f32 %v2167_v3, %v5666_v11 }
 0x40c   : > { %v2100_v48 = vstv %s7040_s30  ;;  %s7044_s13 = sld [smem:[#allocation38_spill]]  ;;  %v2274_v16 = vmul.f32 %v2273_v5, %v5529_v56  ;;  %v2282_v5 = vmul.f32 %v2281_v40, %v5547_v45  ;;  %v2286_v43 = vmul.f32 %v2285_v62, %v5553_v55 }
 0x40d   : > { %s6000_s27 = sld [smem:[#allocation2 + $0xce]]  ;;  %v2101_v46 = vmul.f32 %v2100_v48, %v5666_v11  ;;  %v2161_v8 = vadd.f32 %v2160_v14, %v2157_v53  ;;  %v2172_v53 = vmul.f32 %v2171_v36, %v5671_v22 }
 0x40e   : > { %7041 = sst [smem:[#allocation48_spill]] %s5985_s15  ;;  %v2275_v41 = vadd.f32 %v2274_v16, %v2271_v47  ;;  %v2187_v47 = vstv %s5842_s3 }
 0x40f   : > { %7042 = sst [smem:[#allocation51_spill]] %s5990_s5  ;;  %v2102_v13 = vadd.f32 %v2101_v46, %v2098_v28  ;;  %v2227_v28 = vmul.f32 %v2226_v7, %v5650_v61 }
 0x410   : > { %s7045_s5 = sld [smem:[#allocation50_spill]]  ;;  %v2104_v34 = vstv %s7043_s22  ;;  %v2279_v52 = vadd.f32 %v2278_v17, %v2275_v41 }
 0x411   : > { %s6004_s15 = sld [smem:[#allocation2 + $0xcf]]  ;;  %v2105_v33 = vmul.f32 %v2104_v34, %v5671_v22 }
 0x412   : > { %s6009_s29 = sld [smem:[#allocation2 + $0x118]]  ;;  %v2108_v37 = vstv %s7044_s13 }
 0x413   : > { %s6014_s9 = sld [smem:[#allocation2 + $0xd0]]  ;;  %v2109_v35 = vmul.f32 %v2108_v37, %v5687_v38  ;;  %v2106_v1 = vadd.f32 %v2105_v33, %v2102_v13  ;;  %v2055_v33 = vadd.f32 %v2054_v39, %v2051_v42  ;;  %v2176_v39 = vmul.f32 %v2175_v29, %v5687_v38 }
 0x414   : > { %s7046_s4 = sld [smem:[#allocation42_spill]]  ;;  %v2183_v42 = vstv %s5837_s25 }
 0x415   : > { %s6018_s23 = sld [smem:[#allocation2 + $0xd1]]  ;;  %v2110_v14 = vadd.f32 %v2109_v35, %v2106_v1  ;;  %v2228_v35 = vadd.f32 %v2227_v28, %v2224_v12  ;;  %v2235_v1 = vmul.f32 %v2234_v0, %v5666_v11  ;;  %v2184_v36 = vmul.f32 %v2183_v42, %v5788_v54 }
 0x416   : > { %v2163_v9 = vstv %s7045_s5  ;;  %s6024_s30 = sld [smem:[#allocation2 + $0xd2]] }
 0x417   : > { %s6029_s18 = sld [smem:[#allocation2 + $0xd3]]  ;;  %v2164_v30 = vmul.f32 %v2163_v9, %v5664_v31  ;;  %v2230_v9 = vstv %s5895_s16 }
 0x418   : > { %s6034_s10 = sld [smem:[#allocation2 + $0xd4]]  ;;  %v2326_v63 = vstv %s6009_s29 }
 0x419   : > { %s7047_s5 = sld [smem:[#allocation34_spill]]  ;;  %v2328_v51 = vstv %s6014_s9  ;;  %v2165_v15 = vadd.f32 %v2164_v30, %v2161_v8 }
 0x41a   : > { %v2112_v26 = vstv %s7046_s4  ;;  %s6038_s7 = sld [smem:[#allocation2 + $0xd5]]  ;;  %v2329_v60 = vmul.f32 %v2328_v51, %v5512_v49  ;;  %v6098_v51 = vmax.f32 %v2055_v33, 0.0 }
 0x41b   : > { %s6043_s22 = sld [smem:[#allocation2 + $0xd6]]  ;;  %v2332_v48 = vstv %s6018_s23  ;;  %v2113_v58 = vmul.f32 %v2112_v26, %v5778_v19  ;;  %v2169_v23 = vadd.f32 %v2168_v10, %v2165_v15  ;;  %v2231_v26 = vmul.f32 %v2230_v9, %v5664_v31 }
 0x41c   : > { %s6048_s24 = sld [smem:[#allocation2 + $0xd7]]  ;;  %v2330_v46 = vadd.f32 %v2329_v60, %v2326_v63  ;;  %v2333_v34 = vmul.f32 %v2332_v48, %v5523_v24  ;;  %v2336_v37 = vstv %s6024_s30 }
 0x41d   : > { %s6053_s13 = sld [smem:[#allocation2 + $0xd8]]  ;;  %v2337_v59 = vmul.f32 %v2336_v37, %v5525_v4  ;;  %v2340_v30 = vstv %s6029_s18  ;;  %v2114_v8 = vadd.f32 %v2113_v58, %v2110_v14  ;;  %v2173_v6 = vadd.f32 %v2172_v53, %v2169_v23 }
 0x41e   : > { %s7048_s19 = sld [smem:[#allocation44_spill]]  ;;  %v2334_v50 = vadd.f32 %v2333_v34, %v2330_v46  ;;  %v2341_v60 = vmul.f32 %v2340_v30, %v5529_v56  ;;  %v2232_v48 = vadd.f32 %v2231_v26, %v2228_v35  ;;  %v2344_v10 = vstv %s6034_s10 }
 0x41f   : > { %v2116_v2 = vstv %s7047_s5  ;;  %s6057_s29 = sld [smem:[#allocation2 + $0xd9]]  ;;  %v2177_v16 = vadd.f32 %v2176_v39, %v2173_v6  ;;  %v2283_v58 = vadd.f32 %v2282_v5, %v2279_v52  ;;  %v2289_v46 = vstv %s5966_s17 }
 0x420   : > { %s6062_s9 = sld [smem:[#allocation2 + $0xda]]  ;;  %v2117_v32 = vmul.f32 %v2116_v2, %v5788_v54  ;;  %v2338_v63 = vadd.f32 %v2337_v59, %v2334_v50  ;;  %v2238_v2 = vstv %s5904_s26  ;;  %v2345_v12 = vmul.f32 %v2344_v10, %v5545_v44 }
 0x421   : > { %s6067_s11 = sld [smem:[#allocation2 + $0xdb]]  ;;  %v2239_v34 = vmul.f32 %v2238_v2, %v5671_v22  ;;  %v2348_v28 = vstv %s6038_s7  ;;  %v2236_v37 = vadd.f32 %v2235_v1, %v2232_v48  ;;  %v2290_v9 = vmul.f32 %v2289_v46, %v5648_v21 }
 0x422   : > { %s6072_s1 = sld [smem:[#allocation2 + $0xdc]]  ;;  %v2118_v7 = vadd.f32 %v2117_v32, %v2114_v8  ;;  %v2342_v32 = vadd.f32 %v2341_v60, %v2338_v63  ;;  %v2293_v23 = vstv %s5971_s14  ;;  %v2287_v17 = vadd.f32 %v2286_v43, %v2283_v58 }
 0x423   : > { %s7049_s20 = sld [smem:[#allocation64_spill]]  ;;  %v2349_v33 = vmul.f32 %v2348_v28, %v5547_v45  ;;  %v2240_v6 = vadd.f32 %v2239_v34, %v2236_v37  ;;  %v2294_v63 = vmul.f32 %v2293_v23, %v5650_v61  ;;  %v2297_v60 = vstv %s5976_s8 }
 0x424   : > { %v2120_v20 = vstv %s7048_s19  ;;  %s6076_s4 = sld [smem:[#allocation2 + $0xdd]]  ;;  %v2346_v59 = vadd.f32 %v2345_v12, %v2342_v32  ;;  %v2291_v62 = vadd.f32 %v2290_v9, %v2287_v17  ;;  %v2188_v43 = vmul.f32 %v2187_v47, %v5803_v25 }
 0x425   : > { %s6080_s23 = sld [smem:[#allocation2 + $0xde]]  ;;  %v6083_v13 = vmul.f32 %v2120_v20, %v5803_v25  ;;  %v2356_v46 = vstv %s6048_s24  ;;  %v2301_v47 = vstv %s5980_s28 }
 0x426   : > { %s6087_s6 = sld [smem:[#allocation2 + $0xdf]]  ;;  %v2350_v1 = vadd.f32 %v2349_v33, %v2346_v59 }
 0x427   : > { %s6092_s16 = sld [smem:[#allocation2 + $0x119]] }
 0x428   : > { %s6096_s2 = sld [smem:[#allocation2 + $0xe0]] }
 0x429   : > { %v2179_v3 = vstv %s7049_s20  ;;  %s6102_s30 = sld [smem:[#allocation2 + $0xe1]] }
 0x42a   : > { %s6107_s25 = sld [smem:[#allocation2 + $0xe2]]  ;;  %v2180_v15 = vmul.f32 %v2179_v3, %v5778_v19  ;;  %v2352_v3 = vstv %s6043_s22 }
 0x42b   : > { %s7050_s12 = sld [smem:[#allocation46_spill]]  ;;  %v2353_v2 = vmul.f32 %v2352_v3, %v5553_v55 }
 0x42c   : > { %s6112_s0 = sld [smem:[#allocation2 + $0xe3]]  ;;  %v2181_v8 = vadd.f32 %v2180_v15, %v2177_v16  ;;  %v2122_v16 = vadd.f32 %v6083_v13, %v2118_v7  ;;  %v2295_v13 = vadd.f32 %v2294_v63, %v2291_v62  ;;  %v2298_v7 = vmul.f32 %v2297_v60, %v5664_v31 }
 0x42d   : > { %s6116_s26 = sld [smem:[#allocation2 + $0xe4]]  ;;  %v2393_v20 = vstv %s6092_s16 }
 0x42e   : > { %s6121_s18 = sld [smem:[#allocation2 + $0xe5]]  ;;  %v2395_v53 = vstv %s6096_s2  ;;  %v2185_v58 = vadd.f32 %v2184_v36, %v2181_v8  ;;  %v6179_v9 = vmax.f32 %v2122_v16, 0.0 }
 0x42f   : > { %s6126_s3 = sld [smem:[#allocation2 + $0xe6]]  ;;  %v2396_v29 = vmul.f32 %v2395_v53, %v5512_v49  ;;  %v2399_v41 = vstv %s6102_s30 }
 0x430   : > { %s6132_s17 = sld [smem:[#allocation2 + $0xe7]]  ;;  %v2400_v40 = vmul.f32 %v2399_v41, %v5523_v24  ;;  %v2403_v50 = vstv %s6107_s25  ;;  %v2360_v41 = vstv %s6053_s13  ;;  %v6191_v59 = vadd.f32 %v2188_v43, %v2185_v58 }
 0x431   : > { %v2242_v14 = vstv %s7050_s12  ;;  %s7051_s10 = sld [smem:[#allocation33_spill]]  ;;  %v2397_v35 = vadd.f32 %v2396_v29, %v2393_v20  ;;  %v2404_v26 = vmul.f32 %v2403_v50, %v5525_v4  ;;  %v2357_v20 = vmul.f32 %v2356_v46, %v5648_v21 }
 0x432   : > { %s6137_s5 = sld [smem:[#allocation2 + $0xe8]]  ;;  %v2407_v30 = vstv %s6112_s0  ;;  %v2243_v39 = vmul.f32 %v2242_v14, %v5687_v38  ;;  %v2354_v14 = vadd.f32 %v2353_v2, %v2350_v1 }
 0x433   : > { %s6141_s14 = sld [smem:[#allocation2 + $0xe9]]  ;;  %v2411_v0 = vstv %s6116_s26  ;;  %v2401_v52 = vadd.f32 %v2400_v40, %v2397_v35  ;;  %v2408_v5 = vmul.f32 %v2407_v30, %v5529_v56  ;;  %v2299_v35 = vadd.f32 %v2298_v7, %v2295_v13 }
 0x434   : > { %s6146_s7 = sld [smem:[#allocation2 + $0xea]]  ;;  %v2415_v48 = vstv %s6121_s18  ;;  %v2412_v15 = vmul.f32 %v2411_v0, %v5545_v44  ;;  %v2244_v37 = vadd.f32 %v2243_v39, %v2240_v6  ;;  %v2358_v3 = vadd.f32 %v2357_v20, %v2354_v14 }
 0x435   : > { %s6150_s19 = sld [smem:[#allocation2 + $0xeb]]  ;;  %v2405_v10 = vadd.f32 %v2404_v26, %v2401_v52  ;;  %v2416_v28 = vmul.f32 %v2415_v48, %v5547_v45  ;;  %v2419_v36 = vstv %s6126_s3  ;;  %v2302_v26 = vmul.f32 %v2301_v47, %v5666_v11 }
 0x436   : > { %s7052_s20 = sld [smem:[#allocation53_spill]]  ;;  %v2420_v50 = vmul.f32 %v2419_v36, %v5553_v55  ;;  %v2423_v30 = vstv %s6132_s17  ;;  %v2361_v0 = vmul.f32 %v2360_v41, %v5650_v61  ;;  %v2313_v52 = vstv %s5995_s21 }
 0x437   : > { %v2246_v42 = vstv %s7051_s10  ;;  %s6155_s16 = sld [smem:[#allocation2 + $0xec]]  ;;  %v2409_v12 = vadd.f32 %v2408_v5, %v2405_v10  ;;  %v2364_v5 = vstv %s6057_s29  ;;  %v2424_v63 = vmul.f32 %v2423_v30, %v5648_v21 }
 0x438   : > { %s6159_s22 = sld [smem:[#allocation2 + $0xed]]  ;;  %v2247_v34 = vmul.f32 %v2246_v42, %v5778_v19  ;;  %v2303_v1 = vadd.f32 %v2302_v26, %v2299_v35  ;;  %v2427_v2 = vstv %s6137_s5  ;;  %v2362_v16 = vadd.f32 %v2361_v0, %v2358_v3 }
 0x439   : > { %s6164_s8 = sld [smem:[#allocation2 + $0xee]]  ;;  %v2413_v53 = vadd.f32 %v2412_v15, %v2409_v12  ;;  %v2365_v58 = vmul.f32 %v2364_v5, %v5664_v31  ;;  %v2428_v7 = vmul.f32 %v2427_v2, %v5650_v61  ;;  %v2317_v47 = vstv %s6000_s27 }
 0x43a   : > { %s7053_s2 = sld [smem:[#allocation52_spill]]  ;;  %v2248_v8 = vadd.f32 %v2247_v34, %v2244_v37  ;;  %v2368_v34 = vstv %s6062_s9  ;;  %v2431_v14 = vstv %s6141_s14  ;;  %v6248_v26 = vmul.f32 %v2317_v47, %v5788_v54 }
 0x43b   : > { %s6169_s30 = sld [smem:[#allocation2 + $0xef]]  ;;  %v2417_v40 = vadd.f32 %v2416_v28, %v2413_v53  ;;  %v2366_v41 = vadd.f32 %v2365_v58, %v2362_v16  ;;  %v2321_v0 = vstv %s6004_s15  ;;  %v2376_v2 = vstv %s6072_s1 }
 0x43c   : > { %v2250_v32 = vstv %s7052_s20  ;;  %s7054_s25 = sld [smem:[#allocation48_spill]]  ;;  %v2380_v16 = vstv %s6076_s4 }
 0x43d   : > { %s7055_s12 = sld [smem:[#allocation51_spill]]  ;;  %v2251_v23 = vmul.f32 %v2250_v32, %v5788_v54  ;;  %v2421_v62 = vadd.f32 %v2420_v50, %v2417_v40  ;;  %v2372_v40 = vstv %s6067_s11 }
 0x43e   : > { %s6173_s24 = sld [smem:[#allocation2 + $0x11a]] }
 0x43f   : > { %s6177_s0 = sld [smem:[#allocation2 + $0xf0]]  ;;  %v2252_v37 = vadd.f32 %v2251_v23, %v2248_v8  ;;  %v2425_v13 = vadd.f32 %v2424_v63, %v2421_v62  ;;  %v2369_v23 = vmul.f32 %v2368_v34, %v5666_v11  ;;  %v2432_v8 = vmul.f32 %v2431_v14, %v5664_v31 }
 0x440   : > { %v2254_v29 = vstv %s7053_s2  ;;  %s6184_s26 = sld [smem:[#allocation2 + $0xf1]] }
 0x441   : > { %s6189_s28 = sld [smem:[#allocation2 + $0xf2]]  ;;  %v6198_v39 = vmul.f32 %v2254_v29, %v5803_v25  ;;  %v2429_v30 = vadd.f32 %v2428_v7, %v2425_v13  ;;  %v2370_v63 = vadd.f32 %v2369_v23, %v2366_v41  ;;  %v2381_v7 = vmul.f32 %v2380_v16, %v5778_v19 }
 0x442   : > { %v2305_v17 = vstv %s7054_s25  ;;  %s6195_s13 = sld [smem:[#allocation2 + $0xf3]]  ;;  %v2443_v41 = vstv %s6155_s16 }
 0x443   : > { %v2309_v33 = vstv %s7055_s12  ;;  %s6201_s18 = sld [smem:[#allocation2 + $0xf4]]  ;;  %v2306_v6 = vmul.f32 %v2305_v17, %v5671_v22  ;;  %v2433_v58 = vadd.f32 %v2432_v8, %v2429_v30 }
 0x444   : > { %v2310_v42 = vmul.f32 %v2309_v33, %v5687_v38  ;;  %s6207_s3 = sld [smem:[#allocation2 + $0xf5]]  ;;  %v2460_v60 = vstv %s6173_s24  ;;  %v2314_v33 = vmul.f32 %v2313_v52, %v5778_v19 }
 0x445   : > { %v2462_v48 = vstv %s6177_s0  ;;  %s6212_s17 = sld [smem:[#allocation2 + $0xf6]]  ;;  %v2307_v29 = vadd.f32 %v2306_v6, %v2303_v1  ;;  %v2435_v6 = vstv %s6146_s7  ;;  %v6264_v1 = vadd.f32 %v6198_v39, %v2252_v37 }
 0x446   : > { %v2463_v10 = vmul.f32 %v2462_v48, %v5512_v49  ;;  %v2466_v15 = vstv %s6184_s26  ;;  %s6217_s21 = sld [smem:[#allocation2 + $0xf7]]  ;;  %v2439_v39 = vstv %s6150_s19  ;;  %v2377_v37 = vmul.f32 %v2376_v2, %v5687_v38 }
 0x447   : > { %v2467_v43 = vmul.f32 %v2466_v15, %v5523_v24  ;;  %v2470_v46 = vstv %s6189_s28  ;;  %s6222_s29 = sld [smem:[#allocation2 + $0xf8]]  ;;  %v2311_v62 = vadd.f32 %v2310_v42, %v2307_v29  ;;  %v2436_v42 = vmul.f32 %v2435_v6, %v5666_v11 }
 0x448   : > { %v2464_v32 = vadd.f32 %v2463_v10, %v2460_v60  ;;  %v2471_v12 = vmul.f32 %v2470_v46, %v5525_v4  ;;  %v2474_v28 = vstv %s6195_s13  ;;  %s6227_s10 = sld [smem:[#allocation2 + $0xf9]]  ;;  %v2373_v60 = vmul.f32 %v2372_v40, %v5671_v22 }
 0x449   : > { %v2478_v36 = vstv %s6201_s18  ;;  %s6231_s5 = sld [smem:[#allocation2 + $0xfa]]  ;;  %v2475_v53 = vmul.f32 %v2474_v28, %v5529_v56  ;;  %v6276_v46 = vmul.f32 %v2321_v0, %v5803_v25  ;;  %v2440_v29 = vmul.f32 %v2439_v39, %v5671_v22 }
 0x44a   : > { %v2468_v20 = vadd.f32 %v2467_v43, %v2464_v32  ;;  %s6236_s9 = sld [smem:[#allocation2 + $0xfb]]  ;;  %v2482_v17 = vstv %s6207_s3  ;;  %v2479_v35 = vmul.f32 %v2478_v36, %v5545_v44  ;;  %v2374_v28 = vadd.f32 %v2373_v60, %v2370_v63 }
 0x44b   : > { %s6240_s20 = sld [smem:[#allocation2 + $0xfc]]  ;;  %v2486_v3 = vstv %s6212_s17  ;;  %v2483_v5 = vmul.f32 %v2482_v17, %v5547_v45 }
 0x44c   : > { %v2472_v50 = vadd.f32 %v2471_v12, %v2468_v20  ;;  %s6245_s27 = sld [smem:[#allocation2 + $0xfd]]  ;;  %v2490_v48 = vstv %s6217_s21  ;;  %v2487_v15 = vmul.f32 %v2486_v3, %v5553_v55  ;;  %v6282_v12 = vadd.f32 %v2314_v33, %v2311_v62 }
 0x44d   : > { %s6252_s14 = sld [smem:[#allocation2 + $0xfe]]  ;;  %v2494_v43 = vstv %s6222_s29  ;;  %v2491_v32 = vmul.f32 %v2490_v48, %v5648_v21  ;;  %v2384_v20 = vstv %s6080_s23  ;;  %v2447_v48 = vstv %s6159_s22 }
 0x44e   : > { %v2476_v52 = vadd.f32 %v2475_v53, %v2472_v50  ;;  %s6257_s11 = sld [smem:[#allocation2 + $0xff]]  ;;  %v2498_v13 = vstv %s6227_s10  ;;  %v2495_v47 = vmul.f32 %v2494_v43, %v5650_v61  ;;  %v2437_v53 = vadd.f32 %v2436_v42, %v2433_v58 }
 0x44f   : > { %s6261_s2 = sld [smem:[#allocation2 + $0x11b]]  ;;  %v2502_v14 = vstv %s6231_s5  ;;  %v2499_v17 = vmul.f32 %v2498_v13, %v5664_v31  ;;  %v2378_v50 = vadd.f32 %v2377_v37, %v2374_v28  ;;  %v2385_v42 = vmul.f32 %v2384_v20, %v5788_v54 }
 0x450   : > { %v2480_v10 = vadd.f32 %v2479_v35, %v2476_v52  ;;  %s6268_s15 = sld [smem:[#allocation2 + $0x100]]  ;;  %v2503_v35 = vmul.f32 %v2502_v14, %v5666_v11  ;;  %v2506_v0 = vstv %s6236_s9  ;;  %v2451_v13 = vstv %s6164_s8 }
 0x451   : > { %s6273_s7 = sld [smem:[#allocation2 + $0x101]] }
 0x452   : > { %v2484_v34 = vadd.f32 %v2483_v5, %v2480_v10  ;;  %s6280_s1 = sld [smem:[#allocation2 + $0x102]]  ;;  %v2444_v5 = vmul.f32 %v2443_v41, %v5687_v38  ;;  %v2514_v14 = vstv %s6245_s27 }
 0x453   : > { %s6286_s4 = sld [smem:[#allocation2 + $0x103]] }
 0x454   : > { %v2488_v36 = vadd.f32 %v2487_v15, %v2484_v34  ;;  %s6291_s19 = sld [smem:[#allocation2 + $0x104]]  ;;  %v2510_v15 = vstv %s6240_s20  ;;  %v2388_v34 = vstv %s6087_s6 }
 0x455   : > { %s6296_s25 = sld [smem:[#allocation2 + $0x105]]  ;;  %v2527_v33 = vstv %s6261_s2  ;;  %v2389_v41 = vmul.f32 %v2388_v34, %v5803_v25 }
 0x456   : > { %v2492_v23 = vadd.f32 %v2491_v32, %v2488_v36  ;;  %v2529_v40 = vstv %s6268_s15  ;;  %s6301_s12 = sld [smem:[#allocation2 + $0x106]]  ;;  %v2448_v32 = vmul.f32 %v2447_v48, %v5778_v19 }
 0x457   : > { %v2530_v30 = vmul.f32 %v2529_v40, %v5512_v49  ;;  %v2533_v8 = vstv %s6273_s7  ;;  %s6306_s23 = sld [smem:[#allocation2 + $0x107]]  ;;  %v2441_v49 = vadd.f32 %v2440_v29, %v2437_v53 }
 0x458   : > { %v2496_v3 = vadd.f32 %v2495_v47, %v2492_v23  ;;  %v2534_v6 = vmul.f32 %v2533_v8, %v5523_v24  ;;  %v2537_v52 = vstv %s6280_s1  ;;  %s6311_s16 = sld [smem:[#allocation2 + $0x108]]  ;;  %v2507_v24 = vmul.f32 %v2506_v0, %v5671_v22 }
 0x459   : > { %v2531_v62 = vadd.f32 %v2530_v30, %v2527_v33  ;;  %v2538_v63 = vmul.f32 %v2537_v52, %v5525_v4  ;;  %v2541_v60 = vstv %s6286_s4  ;;  %s6316_s24 = sld [smem:[#allocation2 + $0x109]]  ;;  %v2382_v4 = vadd.f32 %v2381_v7, %v2378_v50 }
 0x45a   : > { %v2500_v2 = vadd.f32 %v2499_v17, %v2496_v3  ;;  %v2545_v10 = vstv %s6291_s19  ;;  %s6320_s0 = sld [smem:[#allocation2 + $0x10a]]  ;;  %v2542_v58 = vmul.f32 %v2541_v60, %v5529_v56  ;;  %v2445_v56 = vadd.f32 %v2444_v5, %v2441_v49 }
 0x45b   : > { %v2535_v16 = vadd.f32 %v2534_v6, %v2531_v62  ;;  %s6325_s26 = sld [smem:[#allocation2 + $0x10b]]  ;;  %v2549_v39 = vstv %s6296_s25  ;;  %v2546_v37 = vmul.f32 %v2545_v10, %v5545_v44  ;;  %v2511_v7 = vmul.f32 %v2510_v15, %v5687_v38 }
 0x45c   : > { %v2504_v43 = vadd.f32 %v2503_v35, %v2500_v2  ;;  %s6329_s22 = sld [smem:[#allocation2 + $0x10c]]  ;;  %v2553_v36 = vstv %s6301_s12  ;;  %v2550_v53 = vmul.f32 %v2549_v39, %v5547_v45  ;;  %v2319_v44 = vadd.f32 %v6248_v26, %v6282_v12 }
 0x45d   : > { %v2539_v28 = vadd.f32 %v2538_v63, %v2535_v16  ;;  %s6334_s28 = sld [smem:[#allocation2 + $0x10d]]  ;;  %v2386_v29 = vadd.f32 %v2385_v42, %v2382_v4  ;;  %v2557_v23 = vstv %s6306_s23  ;;  %v2452_v17 = vmul.f32 %v2451_v13, %v5788_v54 }
 0x45e   : > { %s6339_s13 = sld [smem:[#allocation2 + $0x10e]]  ;;  %v2508_v47 = vadd.f32 %v2507_v24, %v2504_v43  ;;  %v2455_v33 = vstv %s6169_s30  ;;  %v2554_v50 = vmul.f32 %v2553_v36, %v5553_v55  ;;  %v2449_v45 = vadd.f32 %v2448_v32, %v2445_v56 }
 0x45f   : > { %v2543_v20 = vadd.f32 %v2542_v58, %v2539_v28  ;;  %s6343_s6 = sld [smem:[#allocation2 + $0x10f]]  ;;  %v2515_v35 = vmul.f32 %v2514_v14, %v5778_v19  ;;  %v2518_v26 = vstv %s6252_s14  ;;  %v2561_v12 = vstv %s6311_s16 }
 0x460   : > { %s6349_s8 = sld [smem:[#allocation2 + $0x140]]  ;;  %v2512_v30 = vadd.f32 %v2511_v7, %v2508_v47  ;;  %v2558_v3 = vmul.f32 %v2557_v23, %v5648_v21  ;;  %v2565_v0 = vstv %s6316_s24  ;;  %v6366_v55 = vmax.f32 %v6191_v59, 0.0 }
 0x461   : > { %v2547_v40 = vadd.f32 %v2546_v37, %v2543_v20  ;;  %s6354_s18 = sld [smem:[#allocation2 + $0x11c]]  ;;  %v6369_v6 = vmax.f32 %v6264_v1, 0.0  ;;  %v2323_v52 = vadd.f32 %v6276_v46, %v2319_v44  ;;  %v2390_v5 = vadd.f32 %v2389_v41, %v2386_v29 }
 0x462   : > { %s6359_s3 = sld [smem:[#allocation2 + $0x11d]]  ;;  %v2456_v62 = vmul.f32 %v2455_v33, %v5803_v25  ;;  %v2522_v21 = vstv %s6257_s11  ;;  %v2562_v60 = vmul.f32 %v2561_v12, %v5650_v61  ;;  %v2453_v59 = vadd.f32 %v2452_v17, %v2449_v45 }
 0x463   : > { %v2551_v8 = vadd.f32 %v2550_v53, %v2547_v40  ;;  %s6363_s30 = sld [smem:[#allocation2 + $0x11e]]  ;;  %v2519_v1 = vmul.f32 %v2518_v26, %v5788_v54  ;;  %v2566_v49 = vmul.f32 %v2565_v0, %v5664_v31  ;;  %v2569_v46 = vstv %s6320_s0 }
 0x464   : > { %s6372_s17 = sld [smem:[#allocation2 + $0x11f]]  ;;  %v2516_v48 = vadd.f32 %v2515_v35, %v2512_v30  ;;  %v2523_v61 = vmul.f32 %v2522_v21, %v5803_v25  ;;  %v2573_v15 = vstv %s6325_s26  ;;  %v2570_v4 = vmul.f32 %v2569_v46, %v5666_v11 }
 0x465   : > { %v2555_v63 = vadd.f32 %v2554_v50, %v2551_v8  ;;  %s6377_s21 = sld [smem:[#allocation2 + $0x120]]  ;;  %v2577_v39 = vstv %s6329_s22  ;;  %v2574_v13 = vmul.f32 %v2573_v15, %v5671_v22  ;;  %v6408_v11 = vmax.f32 %v2323_v52, 0.0 }
 0x466   : > { %s6382_s29 = sld [smem:[#allocation2 + $0x121]]  ;;  %v2594_v10 = vstv %s6349_s8  ;;  %v2520_v37 = vadd.f32 %v2519_v1, %v2516_v48  ;;  %v2581_v36 = vstv %s6334_s28  ;;  %v6414_v20 = vmax.f32 %v2390_v5, 0.0 }
 0x467   : > { %v2559_v2 = vadd.f32 %v2558_v3, %v2555_v63  ;;  %v2596_v24 = vstv %s6354_s18  ;;  %s6386_s10 = sld [smem:[#allocation2 + $0x122]]  ;;  %v2578_v44 = vmul.f32 %v2577_v39, %v5687_v38  ;;  %v2457_v29 = vadd.f32 %v2456_v62, %v2453_v59 }
 0x468   : > { %v2597_v16 = vmul.f32 %v2596_v24, %v5891_v18  ;;  %v2600_v58 = vstv %s6359_s3  ;;  %s6392_s5 = sld [smem:[#allocation2 + $0x123]]  ;;  %v2585_v41 = vstv %s6339_s13  ;;  %v2524_v33 = vadd.f32 %v2523_v61, %v2520_v37 }
 0x469   : > { %v2563_v31 = vadd.f32 %v2562_v60, %v2559_v2  ;;  %v2601_v42 = vmul.f32 %v2600_v58, %v5962_v27  ;;  %v2604_v43 = vstv %s6363_s30  ;;  %s6397_s9 = sld [smem:[#allocation2 + $0x124]]  ;;  %v2582_v50 = vmul.f32 %v2581_v36, %v5778_v19 }
 0x46a   : > { %v2598_v34 = vadd.f32 %v2597_v16, %v2594_v10  ;;  %v2605_v32 = vmul.f32 %v2604_v43, %v6020_v57  ;;  %v2608_v28 = vstv %s6372_s17  ;;  %s6402_s20 = sld [smem:[#allocation2 + $0x125]]  ;;  %v2589_v38 = vstv %s6343_s6 }
 0x46b   : > { %v2567_v56 = vadd.f32 %v2566_v49, %v2563_v31  ;;  %v2612_v7 = vstv %s6377_s21  ;;  %s6406_s27 = sld [smem:[#allocation2 + $0x126]]  ;;  %v2609_v14 = vmul.f32 %v2608_v28, %v6098_v51  ;;  %v2586_v8 = vmul.f32 %v2585_v41, %v5788_v54 }
 0x46c   : > { %v2602_v47 = vadd.f32 %v2601_v42, %v2598_v34  ;;  %s6412_s14 = sld [smem:[#allocation2 + $0x127]]  ;;  %v2616_v22 = vstv %s6382_s29  ;;  %v2613_v17 = vmul.f32 %v2612_v7, %v6179_v9  ;;  %v6437_v19 = vmax.f32 %v2457_v29, 0.0 }
 0x46d   : > { %v2571_v53 = vadd.f32 %v2570_v4, %v2567_v56  ;;  %s6418_s11 = sld [smem:[#allocation2 + $0x141]]  ;;  %v2620_v45 = vstv %s6386_s10  ;;  %v2617_v26 = vmul.f32 %v2616_v22, %v6366_v55  ;;  %v6442_v5 = vmax.f32 %v2524_v33, 0.0 }
 0x46e   : > { %v2606_v23 = vadd.f32 %v2605_v32, %v2602_v47  ;;  %s6422_s2 = sld [smem:[#allocation2 + $0x128]]  ;;  %v2624_v12 = vstv %s6392_s5  ;;  %v2621_v52 = vmul.f32 %v2620_v45, %v6369_v6  ;;  %v2590_v21 = vmul.f32 %v2589_v38, %v5803_v25 }
 0x46f   : > { %v2575_v40 = vadd.f32 %v2574_v13, %v2571_v53  ;;  %s6426_s15 = sld [smem:[#allocation2 + $0x129]]  ;;  %v2628_v3 = vstv %s6397_s9  ;;  %v2625_v54 = vmul.f32 %v2624_v12, %v6408_v11 }
 0x470   : > { %v2610_v35 = vadd.f32 %v2609_v14, %v2606_v23  ;;  %s6431_s7 = sld [smem:[#allocation2 + $0x12a]]  ;;  %v2629_v60 = vmul.f32 %v2628_v3, %v6414_v20  ;;  %v2632_v46 = vstv %s6402_s20 }
 0x471   : > { %v2579_v30 = vadd.f32 %v2578_v44, %v2575_v40  ;;  %s6435_s1 = sld [smem:[#allocation2 + $0x12b]]  ;;  %v2636_v10 = vstv %s6406_s27  ;;  %v2633_v42 = vmul.f32 %v2632_v46, %v6437_v19 }
 0x472   : > { %v2614_v0 = vadd.f32 %v2613_v17, %v2610_v35  ;;  %s6440_s4 = sld [smem:[#allocation2 + $0x12c]]  ;;  %v2640_v34 = vstv %s6412_s14  ;;  %v2637_v56 = vmul.f32 %v2636_v10, %v6442_v5 }
 0x473   : > { %v2583_v62 = vadd.f32 %v2582_v50, %v2579_v30  ;;  %s6446_s19 = sld [smem:[#allocation2 + $0x12d]]  ;;  %v2644_v59 = vstv %s6418_s11 }
 0x474   : > { %v2618_v63 = vadd.f32 %v2617_v26, %v2614_v0  ;;  %v2646_v1 = vstv %s6422_s2  ;;  %s6451_s25 = sld [smem:[#allocation2 + $0x12e]] }
 0x475   : > { %v2587_v49 = vadd.f32 %v2586_v8, %v2583_v62  ;;  %v2647_v48 = vmul.f32 %v2646_v1, %v5891_v18  ;;  %v2650_v2 = vstv %s6426_s15  ;;  %s6456_s12 = sld [smem:[#allocation2 + $0x12f]] }
 0x476   : > { %v2622_v25 = vadd.f32 %v2621_v52, %v2618_v63  ;;  %v2651_v24 = vmul.f32 %v2650_v2, %v5962_v27  ;;  %v2654_v61 = vstv %s6431_s7  ;;  %s6461_s23 = sld [smem:[#allocation2 + $0x130]] }
 0x477   : > { %v2591_v15 = vadd.f32 %v2590_v21, %v2587_v49  ;;  %v2648_v16 = vadd.f32 %v2647_v48, %v2644_v59  ;;  %v2655_v58 = vmul.f32 %v2654_v61, %v6020_v57  ;;  %v2658_v31 = vstv %s6435_s1  ;;  %s6465_s16 = sld [smem:[#allocation2 + $0x131]] }
 0x478   : > { %v2626_v4 = vadd.f32 %v2625_v54, %v2622_v25  ;;  %v2662_v43 = vstv %s6440_s4  ;;  %s6469_s24 = sld [smem:[#allocation2 + $0x132]]  ;;  %v2659_v28 = vmul.f32 %v2658_v31, %v6098_v51 }
 0x479   : > { %v6471_v39 = vmax.f32 %v2591_v15, 0.0  ;;  %v2652_v32 = vadd.f32 %v2651_v24, %v2648_v16  ;;  %s6475_s0 = sld [smem:[#allocation2 + $0x133]]  ;;  %v2666_v13 = vstv %s6446_s19  ;;  %v2663_v36 = vmul.f32 %v2662_v43, %v6179_v9 }
 0x47a   : > { %v2630_v37 = vadd.f32 %v2629_v60, %v2626_v4  ;;  %s6479_s26 = sld [smem:[#allocation2 + $0x142]]  ;;  %v2670_v53 = vstv %s6451_s25  ;;  %v2667_v22 = vmul.f32 %v2666_v13, %v6366_v55 }
 0x47b   : > { %v2656_v7 = vadd.f32 %v2655_v58, %v2652_v32  ;;  %s3534_s22 = sld [smem:[#allocation2 + $0x134]]  ;;  %v2641_v14 = vmul.f32 %v2640_v34, %v6471_v39  ;;  %v2674_v41 = vstv %s6456_s12  ;;  %v2671_v17 = vmul.f32 %v2670_v53, %v6369_v6 }
 0x47c   : > { %v2634_v47 = vadd.f32 %v2633_v42, %v2630_v37  ;;  %s3535_s28 = sld [smem:[#allocation2 + $0x135]]  ;;  %v2678_v40 = vstv %s6461_s23  ;;  %v2675_v45 = vmul.f32 %v2674_v41, %v6408_v11 }
 0x47d   : > { %v2660_v44 = vadd.f32 %v2659_v28, %v2656_v7  ;;  %s3536_s13 = sld [smem:[#allocation2 + $0x136]]  ;;  %v2682_v26 = vstv %s6465_s16  ;;  %v2679_v3 = vmul.f32 %v2678_v40, %v6414_v20 }
 0x47e   : > { %v2638_v29 = vadd.f32 %v2637_v56, %v2634_v47  ;;  %s7056_s6 = sld [smem:[#allocation71_spill]]  ;;  %v2686_v62 = vstv %s6469_s24 }
 0x47f   : > { %s6486_s8 = sld [smem:[#allocation2 + $0x137]]  ;;  %v2664_v23 = vadd.f32 %v2663_v36, %v2660_v44  ;;  %v2690_v1 = vstv %s6475_s0  ;;  %v2687_v48 = vmul.f32 %v2686_v62, %v6442_v5 }
 0x480   : > { %s6489_s18 = sld [smem:[#allocation2 + $0x138]]  ;;  %v2642_v33 = vadd.f32 %v2641_v14, %v2638_v29  ;;  %v2694_v38 = vstv %s6479_s26  ;;  %v2691_v24 = vmul.f32 %v2690_v1, %v6471_v39 }
 0x481   : > { %s6492_s3 = sld [smem:[#allocation2 + $0x139]]  ;;  %v2668_v50 = vadd.f32 %v2667_v22, %v2664_v23  ;;  %v2696_v35 = vstv %s3534_s22 }
 0x482   : > { %s6496_s30 = sld [smem:[#allocation2 + $0x13a]]  ;;  %v2697_v12 = vmul.f32 %v2696_v35, %v5891_v18  ;;  %v2700_v30 = vstv %s3535_s28  ;;  %v2683_v18 = vmul.f32 %v2682_v26, %v6437_v19 }
 0x483   : > { %v2672_v8 = vadd.f32 %v2671_v17, %v2668_v50  ;;  %v2701_v0 = vmul.f32 %v2700_v30, %v5962_v27  ;;  %v2704_v52 = vstv %s3536_s13  ;;  %s6503_s17 = sld [smem:[#allocation2 + $0x13b]] }
 0x484   : > { %3546 = vst [vmem:[%s7056_s6 + $0x8] sm:$0xff] %v2642_v33  ;;  %v2698_v21 = vadd.f32 %v2697_v12, %v2694_v38  ;;  %v2705_v54 = vmul.f32 %v2704_v52, %v6020_v57  ;;  %s3542_s21 = sld [smem:[#allocation2 + $0x13c]] }
 0x485   : > { %v2708_v63 = vstv %s6486_s8  ;;  %v2676_v60 = vadd.f32 %v2675_v45, %v2672_v8  ;;  %s3543_s29 = sld [smem:[#allocation2 + $0x13d]] }
 0x486   : > { %v2712_v59 = vstv %s6489_s18  ;;  %v2702_v49 = vadd.f32 %v2701_v0, %v2698_v21  ;;  %v2709_v27 = vmul.f32 %v2708_v63, %v6098_v51  ;;  %s3544_s10 = sld [smem:[#allocation2 + $0x13e]] }
 0x487   : > { %v2680_v46 = vadd.f32 %v2679_v3, %v2676_v60  ;;  %v2716_v2 = vstv %s6492_s3  ;;  %v2713_v57 = vmul.f32 %v2712_v59, %v6179_v9  ;;  %s3545_s5 = sld [smem:[#allocation2 + $0x13f]] }
 0x488   : > { %v2706_v25 = vadd.f32 %v2705_v54, %v2702_v49  ;;  %v2720_v61 = vstv %s6496_s30  ;;  %v2717_v16 = vmul.f32 %v2716_v2, %v6366_v55  ;;  %s7057_s9 = sld [smem:[#allocation25_spill]] }
 0x489   : > { %v2684_v10 = vadd.f32 %v2683_v18, %v2680_v46  ;;  %v2724_v31 = vstv %s6503_s17  ;;  %v2721_v4 = vmul.f32 %v2720_v61, %v6369_v6 }
 0x48a   : > { %v2710_v15 = vadd.f32 %v2709_v27, %v2706_v25  ;;  %v2728_v43 = vstv %s3542_s21  ;;  %v2725_v9 = vmul.f32 %v2724_v31, %v6408_v11 }
 0x48b   : > { %v2688_v58 = vadd.f32 %v2687_v48, %v2684_v10  ;;  %v2732_v32 = vstv %s3543_s29  ;;  %v2729_v37 = vmul.f32 %v2728_v43, %v6414_v20 }
 0x48c   : > { %v2714_v51 = vadd.f32 %v2713_v57, %v2710_v15  ;;  %v2736_v56 = vstv %s3544_s10  ;;  %v2733_v13 = vmul.f32 %v2732_v32, %v6437_v19 }
 0x48d   : > { %v2692_v42 = vadd.f32 %v2691_v24, %v2688_v58  ;;  %v2740_v7 = vstv %s3545_s5  ;;  %v2737_v6 = vmul.f32 %v2736_v56, %v6442_v5 }
 0x48e   : > { %v2718_v34 = vadd.f32 %v2717_v16, %v2714_v51  ;;  %v2741_v14 = vmul.f32 %v2740_v7, %v6471_v39  ;;  %s2750_s20 = scalar_lea.sflag [#allocation4], %s7057_s9 }
 0x48f   : > { %3547 = vst [vmem:[%s7056_s6 + $0x18] sm:$0xff] %v2692_v42 }
 0x490   : > { %v2722_v28 = vadd.f32 %v2721_v4, %v2718_v34 }
 0x492   : > { %v2726_v55 = vadd.f32 %v2725_v9, %v2722_v28 }
 0x494   : > { %v2730_v36 = vadd.f32 %v2729_v37, %v2726_v55 }
 0x496   : > { %v2734_v47 = vadd.f32 %v2733_v13, %v2730_v36 }
 0x498   : > { %v2738_v53 = vadd.f32 %v2737_v6, %v2734_v47 }
 0x49a   : > { %v2742_v44 = vadd.f32 %v2741_v14, %v2738_v53 }
 0x49c   : > { %3548 = vst [vmem:[%s7056_s6 + $0x28] sm:$0xff] %v2742_v44 }
 0x49d   : > { %s7058_s27 = sld [smem:[#allocation20_spill]]  ;;  %s2773_s2 = sshll.u32 %s7056_s6, 4  ;;  %s2774_s2 = int_to_ptr.vmem [resolvable:$true] %s2773_s2 }
 0x49e   : > { %s7060_s1 = sld [smem:[#allocation95_spill]]  ;;  %s3696_s19 = smov 256  }
 0x49f   : > { %3569 = sst [smem:[#allocation11]] (%p3770_p11), %s3696_s19  ;;  %s3697_s25 = smov 512  }
 0x4a0   : > { %3570 = sst [smem:[#allocation11 + $0x1]] (%p3770_p11), %s3697_s25  ;;  %s3698_s12 = smov 2  }
 0x4a1   : > { %3571 = sst [smem:[#allocation11 + $0x2]] (%p3770_p11), %s3698_s12  ;;  %s3699_s23 = smov 128  }
 0x4a2   : > { %3572 = sst [smem:[#allocation11 + $0x3]] (%p3770_p11), %s3699_s23  ;;  %s3700_s16 = smov 8  }
 0x4a3   : > { %s3554_s11 = sshll.u32 %s7058_s27, 8  ;;  %3573 = sst [smem:[#allocation11 + $0x4]] (%p3770_p11), %s3699_s23 }
 0x4a4   : > { %s2762_s4 = scalar_lea.hbm %s7060_s1, %s3554_s11  ;;  %3574 = sst [smem:[#allocation11 + $0x5]] (%p3770_p11), %s3700_s16 }
 0x4a5   : > { %s3701_s24 = smov 131072   ;;  %s3702_s0 = smov 0  }
 0x4a6   : > { %3575 = dma.general (%p3770_p11), %s2774_s2, 768, %s2762_s4, %s2750_s20, %s3701_s24, [#allocation11], %s3702_s0, 0  }
 0x4a7 PF: > { %s7061_s26 = sld [smem:[#allocation16_spill]]  ;;  %p3582_p3 = pnand %p2884_p0, %p3774_p12 }
 0x4a9   : > { %p3583_p4 = pneg %p3582_p3 }
 0x4ad   : > { %s2801_s13 = sand.u32 1, %s7061_s26  }
 0x4ae   : > { %s2802_s6 = scalar_lea.sflag [#allocation4], %s2801_s13 }
 0x4af   : > { %3670 = dma.done.wait (%p3583_p4), %s2802_s6, 768  }
 0x4b0   : > { %3672 = vsyncadd (%p3583_p4), %s2802_s6, 4294966528  ;;  %s7064_s12 = sld [smem:[#allocation21_spill]] }
 0x4b1   : > { %s7065_s9 = sld [smem:[#allocation17_spill]] }
 0x4b2   : > { %s7066_s10 = sld [smem:[#allocation18_spill]] }
 0x4b3   : > { %s7067_s11 = sld [smem:[#allocation22_spill]] }
 0x4b6   : > { %p16_p5 = scmp.ge.s32.totalorder %s7064_s12, 4  }
 0x4b8   :  { %18 = sbr.rel (!%p16_p5) target bundleno = 10 (0xa), region = 100 }
 0x4bd   :  { %2807 = vsyncpa [#allocation3], 1 }
 0x4be   :  { %2809 = vsyncpa [#allocation3 + $0x1], 1 }
 0x4bf   :  { %2810 = vsyncpa [#allocation4], 1 }
 0x4c0   :  { %2812 = vsyncpa [#allocation4 + $0x1], 1 }
 0x4c1   :  { %2813 = vsyncpa [#allocation5], 1 }
 0x4c2   :  { %2815 = vsyncpa [#allocation5 + $0x1], 1 }

</bundles_post_ra>
